<compile_context>
chip_gen: v5e
topology: v5e:2x2
jax: 0.10.0
libtpu: 0.0.40
codegen_flags: <defaults>
</compile_context>

<pallas_src>
import jax
import jax.numpy as jnp
from jax.experimental import pallas as pl
from jax.experimental.pallas import tpu as pltpu


# ---------------------------------------------------------------------------
# Config / helpers
# ---------------------------------------------------------------------------
BACKBONE_CHANNELS = (8, 16, 32, 64)   # c2..c5
BACKBONE_STRIDES = (4, 8, 16, 32)
FPN_OUT_CHANNELS = 32                 # cfg.MODEL.FPN.OUT_CHANNELS (small demo size)
NUM_PROPOSALS = 8                     # cfg.MODEL.NUM_PROPOSALS
NUM_CLASSES = 5
LANE = 128                            # TPU vreg lane width


def _round_up(x, m):
    return (x + m - 1) // m * m


def _pick_tile(dim, candidates):
    """Largest candidate that evenly divides dim, else the full dim."""
    for c in candidates:
        if dim % c == 0:
            return c
    return dim


# ---------------------------------------------------------------------------
# Fused bilinear upsample (align_corners=True) + lateral add.
#   out[n, h, :] = lat[n, h, :] + Ah[h, :] @ small_w[n, :, :]
# where small_w is the W-interpolated source map with (Wl, C) folded lane-dense.
# Grid = (N, Hl // th): one (th, Hs)@(Hs, Wl*C) MXU matmul + add per block.
# ---------------------------------------------------------------------------
def _upsample_add_kernel(ah_ref, small_ref, lat_ref, o_ref):
    # ah_ref:    (th, Hs)       f32  H-interp weights for this row block
    # small_ref: (1, Hs, Wl*C)  f32  W-interpolated source map (resident per image)
    # lat_ref:   (1, th, Wl*C)  bf16 lateral rows
    # o_ref:     (1, th, Wl*C)  bf16 lane-dense output rows
    up = jnp.dot(ah_ref[...], small_ref[0], preferred_element_type=jnp.float32)
    o_ref[...] = (lat_ref[0].astype(jnp.float32) + up)[None].astype(o_ref.dtype)


def _interp_matrix(out_size, in_size):
    """Bilinear (align_corners=True) row-interpolation matrix of shape (out, in)."""
    if in_size == 1:
        return jnp.ones((out_size, 1), jnp.float32)
    if out_size == 1:
        # align_corners=True with a single output sample reads source index 0
        return jnp.zeros((1, in_size), jnp.float32).at[0, 0].set(1.0)
    src = jnp.arange(out_size, dtype=jnp.float32) * (in_size - 1) / (out_size - 1)
    i0 = jnp.clip(jnp.floor(src).astype(jnp.int32), 0, in_size - 2)
    frac = src - i0.astype(jnp.float32)
    rows = jnp.arange(out_size)
    A = jnp.zeros((out_size, in_size), jnp.float32)
    A = A.at[rows, i0].add(1.0 - frac)
    A = A.at[rows, i0 + 1].add(frac)
    return A


def upsample_add(lateral, small):
    """lateral (N,Hl,Wl,C) + bilinear_upsample(small (N,Hs,Ws,C)) -> (N,Hl,Wl,C) bf16."""
    N, Hl, Wl, C = lateral.shape
    _, Hs, Ws, _ = small.shape
    Ah = _interp_matrix(Hl, Hs)                               # (Hl, Hs) f32
    Aw = _interp_matrix(Wl, Ws)                               # (Wl, Ws) f32
    # W-interp once in XLA on the tiny source map, folded lane-dense.
    small_w = jnp.einsum("wj,nijc->niwc", Aw, small.astype(jnp.float32))
    small_w = small_w.reshape(N, Hs, Wl * C)
    lat2 = lateral.astype(jnp.bfloat16).reshape(N, Hl, Wl * C)

    th = _pick_tile(Hl, (16, 8, 4, 2, 1))
    out = pl.pallas_call(
        _upsample_add_kernel,
        out_shape=jax.ShapeDtypeStruct((N, Hl, Wl * C), jnp.bfloat16),
        grid=(N, Hl // th),
        in_specs=[
            pl.BlockSpec((th, Hs), lambda n, r: (r, 0)),
            pl.BlockSpec((1, Hs, Wl * C), lambda n, r: (n, 0, 0)),
            pl.BlockSpec((1, th, Wl * C), lambda n, r: (n, r, 0)),
        ],
        out_specs=pl.BlockSpec((1, th, Wl * C), lambda n, r: (n, r, 0)),
        compiler_params=pltpu.CompilerParams(
            dimension_semantics=("parallel", "parallel")),
    )(Ah, small_w, lat2)
    return out.reshape(N, Hl, Wl, C)


# ---------------------------------------------------------------------------
# 3x3 same-padding conv (stride 1, pad 1, no bias) -- FPN output convs.
# Halo-row-blocked input (pre-sliced in the wrapper, bf16), 9 per-tap bf16 dots
# with f32 accumulation, Cout padded to a 128-lane multiple so stores are dense.
# ---------------------------------------------------------------------------
def _conv3x3_kernel(x_ref, w_ref, o_ref):
    # x_ref: (1, 1, th+2, W+2, C)  bf16 halo row-block
    # w_ref: (3, 3, C, Co_pad)     bf16 (resident, fetched once)
    # o_ref: (1, th*W, Co_pad)     bf16 lane-dense output block
    wpad, c = x_ref.shape[3], x_ref.shape[4]
    W = wpad - 2
    th = o_ref.shape[1] // W
    acc = None
    for kh in range(3):
        for kw in range(3):
            xt = x_ref[0, 0, kh:kh + th, kw:kw + W, :].reshape(th * W, c)
            y = jnp.dot(xt, w_ref[kh, kw], preferred_element_type=jnp.float32)
            acc = y if acc is None else acc + y
    o_ref[...] = acc.astype(o_ref.dtype)[None]


def conv3x3_same(x, w):
    """x: (N,H,W,C) NHWC, w: (3,3,C,Co) -> (N,H,W,Co) bf16."""
    N, H, W, C = x.shape
    Co = w.shape[-1]
    Co_pad = _round_up(Co, LANE)          # lane-dense stores; no-op when Co%128==0
    if Co_pad != Co:
        w = jnp.pad(w, ((0, 0), (0, 0), (0, 0), (0, Co_pad - Co)))
    w = w.astype(jnp.bfloat16)

    # Row tile: keep th*W around one MXU pass and the f32 accumulator modest.
    th = next((c for c in (16, 8, 4, 2, 1) if H % c == 0 and c * W <= 256),
              _pick_tile(H, (8, 4, 2, 1)))
    nR = H // th

    # Pre-materialized (th+2)-row halo blocks: per-step VMEM is O(th rows)
    # regardless of feature-map size, and each block pipelines normally.
    xp = jnp.pad(x.astype(jnp.bfloat16), ((0, 0), (1, 1), (1, 1), (0, 0)))
    xb = jnp.stack([xp[:, r * th:r * th + th + 2] for r in range(nR)], axis=1)

    out = pl.pallas_call(
        _conv3x3_kernel,
        out_shape=jax.ShapeDtypeStruct((N, H * W, Co_pad), jnp.bfloat16),
        grid=(N, nR),
        in_specs=[
            pl.BlockSpec((1, 1, th + 2, W + 2, C), lambda n, r: (n, r, 0, 0, 0)),
            pl.BlockSpec((3, 3, C, Co_pad), lambda n, r: (0, 0, 0, 0)),
        ],
        out_specs=pl.BlockSpec((1, th * W, Co_pad), lambda n, r: (n, r, 0)),
        compiler_params=pltpu.CompilerParams(
            dimension_semantics=("parallel", "parallel")),
    )(xb, w)
    return out.reshape(N, H, W, Co_pad)[..., :Co]


# ---------------------------------------------------------------------------
# Tiny plain-JAX pieces (a pallas_call here is pure launch overhead).
# ---------------------------------------------------------------------------
def avg_pool(x, s):
    N, H, W, C = x.shape
    return x.reshape(N, H // s, s, W // s, s, C).mean(axis=(2, 4))


def proposal_boxes_xyxy(boxes_cxcywh, img_whwh):
    cx, cy, w, h = jnp.split(boxes_cxcywh.astype(jnp.float32), 4, axis=-1)
    xyxy = jnp.concatenate(
        [cx - 0.5 * w, cy - 0.5 * h, cx + 0.5 * w, cy + 0.5 * h], axis=-1)
    return xyxy[None, :, :] * img_whwh.astype(jnp.float32)[:, None, :]


# ---------------------------------------------------------------------------
# Parameters (deterministic)
# ---------------------------------------------------------------------------
def init_params(key):
    ks = list(jax.random.split(key, 16))
    p = {}
    # synthetic backbone 1x1 projections (3 -> ci)
    p["backbone"] = [0.05 * jax.random.normal(ks[i], (3, c), jnp.float32)
                     for i, c in enumerate(BACKBONE_CHANNELS)]
    # FPN lateral 1x1 convs (ci -> inner) and 3x3 output convs (inner -> inner)
    p["fpn_lat"] = [0.05 * jax.random.normal(ks[4 + i], (c, FPN_OUT_CHANNELS), jnp.float32)
                    for i, c in enumerate(BACKBONE_CHANNELS)]
    p["fpn_out"] = [0.05 * jax.random.normal(
        ks[8 + i], (3, 3, FPN_OUT_CHANNELS, FPN_OUT_CHANNELS), jnp.float32)
        for i in range(4)]
    # init_proposal_boxes: (:, :2) = 0.5 (cx,cy), (:, 2:) = 1.0 (w,h)
    p["proposal_boxes"] = jnp.concatenate(
        [jnp.full((NUM_PROPOSALS, 2), 0.5, jnp.float32),
         jnp.full((NUM_PROPOSALS, 2), 1.0, jnp.float32)], axis=-1)
    # init_proposal_features: nn.Embedding default init N(0,1)
    p["proposal_features"] = jax.random.normal(
        ks[12], (NUM_PROPOSALS, FPN_OUT_CHANNELS), jnp.float32)
    # stand-in classification head weight
    p["cls_w"] = 0.05 * jax.random.normal(
        ks[13], (FPN_OUT_CHANNELS, NUM_CLASSES), jnp.float32)
    return p


# ---------------------------------------------------------------------------
# Forward pass (inference branch of SparseRCNN.forward)
# ---------------------------------------------------------------------------
def sparse_rcnn_forward(params, x_nchw, img_whwh):
    x = jnp.transpose(x_nchw, (0, 2, 3, 1)).astype(jnp.float32)   # NHWC, once
    B = x.shape[0]

    # Backbone stand-in + FPN lateral 1x1, algebraically fused: the (3->Ci) and
    # (Ci->32) weights pre-multiply to one (3->32) map == 3 broadcast FMAs,
    # done in plain JAX fused with the avg-pool. Laterals kept in bf16.
    lats = []
    for i, s in enumerate(BACKBONE_STRIDES):
        w_fused = params["backbone"][i] @ params["fpn_lat"][i]     # (3, 32), tiny
        lat = jnp.einsum("nhwc,cd->nhwd", avg_pool(x, s), w_fused)
        lats.append(lat.astype(jnp.bfloat16))
    l2, l3, l4, l5 = lats

    # FPN top-down path: fused upsample + add kernels, then 3x3 output convs.
    f4 = upsample_add(l4, l5)
    f3 = upsample_add(l3, f4)
    f2 = upsample_add(l2, f3)
    p2 = conv3x3_same(f2, params["fpn_out"][0])
    p3 = conv3x3_same(f3, params["fpn_out"][1])
    p4 = conv3x3_same(f4, params["fpn_out"][2])
    p5 = conv3x3_same(l5, params["fpn_out"][3])

    # Proposal boxes: cxcywh -> xyxy, scaled by img_whwh (tiny; plain JAX).
    boxes = proposal_boxes_xyxy(params["proposal_boxes"], img_whwh)   # (B, P, 4)

    # Head stand-in: 8x32 @ 32x5 + sigmoid + max/argmax in plain JAX under jit.
    logits = params["proposal_features"] @ params["cls_w"]
    s = jax.nn.sigmoid(logits)
    scores = jnp.broadcast_to(jnp.max(s, axis=-1)[None], (B, NUM_PROPOSALS))
    labels = jnp.broadcast_to(jnp.argmax(s, axis=-1).astype(jnp.int32)[None],
                              (B, NUM_PROPOSALS))

    return {
        "scores": scores,              # (B, P)
        "labels": labels,              # (B, P) int32
        "boxes": boxes,                # (B, P, 4)
        "fpn_features": [p2, p3, p4, p5],
    }


if __name__ == "__main__":
    key = jax.random.PRNGKey(0)
    k_param, k_x = jax.random.split(key)

    B, H, W = 2, 128, 128
    x = jax.random.normal(k_x, (B, 3, H, W), jnp.float32)          # NCHW module input
    img_whwh = jnp.tile(jnp.array([[W, H, W, H]], jnp.float32), (B, 1))

    params = init_params(k_param)
    fwd = jax.jit(sparse_rcnn_forward)
    out = jax.block_until_ready(fwd(params, x, img_whwh))

    assert out["scores"].shape == (B, NUM_PROPOSALS)
    assert out["labels"].shape == (B, NUM_PROPOSALS)
    assert out["labels"].dtype == jnp.int32
    assert out["boxes"].shape == (B, NUM_PROPOSALS, 4)
    assert out["fpn_features"][0].shape == (B, H // 4, W // 4, FPN_OUT_CHANNELS)
    assert out["fpn_features"][3].shape == (B, H // 32, W // 32, FPN_OUT_CHANNELS)
    assert bool(jnp.isfinite(out["scores"]).all())
    assert bool(jnp.isfinite(out["fpn_features"][0].astype(jnp.float32)).all())
    print("KERNEL_OK")
</pallas_src>

<mosaic_0001>
module attributes {stable_mosaic.version = 11 : i64} {
  func.func @_upsample_add_kernel(%arg0: i32, %arg1: i32, %arg2: memref<8x4xf32, #tpu.memory_space<vmem>>, %arg3: memref<1x4x256xf32, #tpu.memory_space<vmem>>, %arg4: memref<1x8x256xbf16, #tpu.memory_space<vmem>>, %arg5: memref<1x8x256xbf16, #tpu.memory_space<vmem>>) attributes {dimension_semantics = [#tpu.dimension_semantics<parallel>, #tpu.dimension_semantics<parallel>], iteration_bounds = array<i64: 2, 1>, scalar_prefetch = 0 : i64, scratch_operands = 0 : i64, tpu.core_type = #tpu.core_type<tc>, window_params = [{transform_indices = @transform_0, window_bounds = array<i64: 8, 4>}, {transform_indices = @transform_1, window_bounds = array<i64: 1, 4, 256>}, {transform_indices = @transform_2, window_bounds = array<i64: 1, 8, 256>}, {transform_indices = @transform_3, window_bounds = array<i64: 1, 8, 256>}]} {
    %c0 = arith.constant 0 : index
    %c0_0 = arith.constant 0 : index
    %0 = vector.load %arg2[%c0, %c0_0] : memref<8x4xf32, #tpu.memory_space<vmem>>, vector<8x4xf32>
    %c0_1 = arith.constant 0 : index
    %c0_2 = arith.constant 0 : index
    %c0_3 = arith.constant 0 : index
    %1 = vector.load %arg3[%c0_1, %c0_2, %c0_3] : memref<1x4x256xf32, #tpu.memory_space<vmem>>, vector<1x4x256xf32>
    %2 = vector.shape_cast %1 : vector<1x4x256xf32> to vector<4x256xf32>
    %cst = arith.constant dense<0.000000e+00> : vector<8x256xf32>
    %3 = tpu.matmul %0, %2, %cst {dimension_numbers = #tpu.dot_dimension_numbers<[1], [0], [0], [1], [0, 0, 1, 1], [], []>} : vector<8x4xf32>, vector<4x256xf32>, vector<8x256xf32> -> vector<8x256xf32>
    %c0_4 = arith.constant 0 : index
    %c0_5 = arith.constant 0 : index
    %c0_6 = arith.constant 0 : index
    %4 = vector.load %arg4[%c0_4, %c0_5, %c0_6] : memref<1x8x256xbf16, #tpu.memory_space<vmem>>, vector<1x8x256xbf16>
    %5 = vector.shape_cast %4 : vector<1x8x256xbf16> to vector<8x256xbf16>
    %6 = arith.extf %5 : vector<8x256xbf16> to vector<8x256xf32>
    %7 = arith.addf %6, %3 : vector<8x256xf32>
    %8 = vector.shape_cast %7 : vector<8x256xf32> to vector<1x8x256xf32>
    %9 = arith.truncf %8 : vector<1x8x256xf32> to vector<1x8x256xbf16>
    %c0_7 = arith.constant 0 : index
    %c0_8 = arith.constant 0 : index
    %c0_9 = arith.constant 0 : index
    %10 = vector.load %arg5[%c0_7, %c0_8, %c0_9] : memref<1x8x256xbf16, #tpu.memory_space<vmem>>, vector<1x8x256xbf16>
    tpu.vector_store %arg5[%c0_7, %c0_8, %c0_9], %9 {strides = array<i32>} : memref<1x8x256xbf16, #tpu.memory_space<vmem>>, vector<1x8x256xbf16>,
    return
  }
  func.func @transform_0(%arg0: i32, %arg1: i32) -> (i32, i32) {
    %c0_i32 = arith.constant 0 : i32
    %c0_i32_0 = arith.constant 0 : i32
    return %arg1, %c0_i32 : i32, i32
  }
  func.func @transform_1(%arg0: i32, %arg1: i32) -> (i32, i32, i32) {
    %c0_i32 = arith.constant 0 : i32
    %c0_i32_0 = arith.constant 0 : i32
    %c0_i32_1 = arith.constant 0 : i32
    return %arg0, %c0_i32, %c0_i32_0 : i32, i32, i32
  }
  func.func @transform_2(%arg0: i32, %arg1: i32) -> (i32, i32, i32) {
    %c0_i32 = arith.constant 0 : i32
    %c0_i32_0 = arith.constant 0 : i32
    return %arg0, %arg1, %c0_i32 : i32, i32, i32
  }
  func.func @transform_3(%arg0: i32, %arg1: i32) -> (i32, i32, i32) {
    %c0_i32 = arith.constant 0 : i32
    %c0_i32_0 = arith.constant 0 : i32
    return %arg0, %arg1, %c0_i32 : i32, i32, i32
  }
}

module attributes {stable_mosaic.version = 11 : i64} {
  func.func @_upsample_add_kernel(%arg0: i32, %arg1: i32, %arg2: memref<16x8xf32, #tpu.memory_space<vmem>>, %arg3: memref<1x8x512xf32, #tpu.memory_space<vmem>>, %arg4: memref<1x16x512xbf16, #tpu.memory_space<vmem>>, %arg5: memref<1x16x512xbf16, #tpu.memory_space<vmem>>) attributes {dimension_semantics = [#tpu.dimension_semantics<parallel>, #tpu.dimension_semantics<parallel>], iteration_bounds = array<i64: 2, 1>, scalar_prefetch = 0 : i64, scratch_operands = 0 : i64, tpu.core_type = #tpu.core_type<tc>, window_params = [{transform_indices = @transform_0, window_bounds = array<i64: 16, 8>}, {transform_indices = @transform_1, window_bounds = array<i64: 1, 8, 512>}, {transform_indices = @transform_2, window_bounds = array<i64: 1, 16, 512>}, {transform_indices = @transform_3, window_bounds = array<i64: 1, 16, 512>}]} {
    %c0 = arith.constant 0 : index
    %c0_0 = arith.constant 0 : index
    %0 = vector.load %arg2[%c0, %c0_0] : memref<16x8xf32, #tpu.memory_space<vmem>>, vector<16x8xf32>
    %c0_1 = arith.constant 0 : index
    %c0_2 = arith.constant 0 : index
    %c0_3 = arith.constant 0 : index
    %1 = vector.load %arg3[%c0_1, %c0_2, %c0_3] : memref<1x8x512xf32, #tpu.memory_space<vmem>>, vector<1x8x512xf32>
    %2 = vector.shape_cast %1 : vector<1x8x512xf32> to vector<8x512xf32>
    %cst = arith.constant dense<0.000000e+00> : vector<16x512xf32>
    %3 = tpu.matmul %0, %2, %cst {dimension_numbers = #tpu.dot_dimension_numbers<[1], [0], [0], [1], [0, 0, 1, 1], [], []>} : vector<16x8xf32>, vector<8x512xf32>, vector<16x512xf32> -> vector<16x512xf32>
    %c0_4 = arith.constant 0 : index
    %c0_5 = arith.constant 0 : index
    %c0_6 = arith.constant 0 : index
    %4 = vector.load %arg4[%c0_4, %c0_5, %c0_6] : memref<1x16x512xbf16, #tpu.memory_space<vmem>>, vector<1x16x512xbf16>
    %5 = vector.shape_cast %4 : vector<1x16x512xbf16> to vector<16x512xbf16>
    %6 = arith.extf %5 : vector<16x512xbf16> to vector<16x512xf32>
    %7 = arith.addf %6, %3 : vector<16x512xf32>
    %8 = vector.shape_cast %7 : vector<16x512xf32> to vector<1x16x512xf32>
    %9 = arith.truncf %8 : vector<1x16x512xf32> to vector<1x16x512xbf16>
    %c0_7 = arith.constant 0 : index
    %c0_8 = arith.constant 0 : index
    %c0_9 = arith.constant 0 : index
    %10 = vector.load %arg5[%c0_7, %c0_8, %c0_9] : memref<1x16x512xbf16, #tpu.memory_space<vmem>>, vector<1x16x512xbf16>
    tpu.vector_store %arg5[%c0_7, %c0_8, %c0_9], %9 {strides = array<i32>} : memref<1x16x512xbf16, #tpu.memory_space<vmem>>, vector<1x16x512xbf16>,
    return
  }
  func.func @transform_0(%arg0: i32, %arg1: i32) -> (i32, i32) {
    %c0_i32 = arith.constant 0 : i32
    %c0_i32_0 = arith.constant 0 : i32
    return %arg1, %c0_i32 : i32, i32
  }
  func.func @transform_1(%arg0: i32, %arg1: i32) -> (i32, i32, i32) {
    %c0_i32 = arith.constant 0 : i32
    %c0_i32_0 = arith.constant 0 : i32
    %c0_i32_1 = arith.constant 0 : i32
    return %arg0, %c0_i32, %c0_i32_0 : i32, i32, i32
  }
  func.func @transform_2(%arg0: i32, %arg1: i32) -> (i32, i32, i32) {
    %c0_i32 = arith.constant 0 : i32
    %c0_i32_0 = arith.constant 0 : i32
    return %arg0, %arg1, %c0_i32 : i32, i32, i32
  }
  func.func @transform_3(%arg0: i32, %arg1: i32) -> (i32, i32, i32) {
    %c0_i32 = arith.constant 0 : i32
    %c0_i32_0 = arith.constant 0 : i32
    return %arg0, %arg1, %c0_i32 : i32, i32, i32
  }
}

module attributes {stable_mosaic.version = 11 : i64} {
  func.func @_upsample_add_kernel(%arg0: i32, %arg1: i32, %arg2: memref<16x16xf32, #tpu.memory_space<vmem>>, %arg3: memref<1x16x1024xf32, #tpu.memory_space<vmem>>, %arg4: memref<1x16x1024xbf16, #tpu.memory_space<vmem>>, %arg5: memref<1x16x1024xbf16, #tpu.memory_space<vmem>>) attributes {dimension_semantics = [#tpu.dimension_semantics<parallel>, #tpu.dimension_semantics<parallel>], iteration_bounds = array<i64: 2, 2>, scalar_prefetch = 0 : i64, scratch_operands = 0 : i64, tpu.core_type = #tpu.core_type<tc>, window_params = [{transform_indices = @transform_0, window_bounds = array<i64: 16, 16>}, {transform_indices = @transform_1, window_bounds = array<i64: 1, 16, 1024>}, {transform_indices = @transform_2, window_bounds = array<i64: 1, 16, 1024>}, {transform_indices = @transform_3, window_bounds = array<i64: 1, 16, 1024>}]} {
    %c0 = arith.constant 0 : index
    %c0_0 = arith.constant 0 : index
    %0 = vector.load %arg2[%c0, %c0_0] : memref<16x16xf32, #tpu.memory_space<vmem>>, vector<16x16xf32>
    %c0_1 = arith.constant 0 : index
    %c0_2 = arith.constant 0 : index
    %c0_3 = arith.constant 0 : index
    %1 = vector.load %arg3[%c0_1, %c0_2, %c0_3] : memref<1x16x1024xf32, #tpu.memory_space<vmem>>, vector<1x16x1024xf32>
    %2 = vector.shape_cast %1 : vector<1x16x1024xf32> to vector<16x1024xf32>
    %cst = arith.constant dense<0.000000e+00> : vector<16x1024xf32>
    %3 = tpu.matmul %0, %2, %cst {dimension_numbers = #tpu.dot_dimension_numbers<[1], [0], [0], [1], [0, 0, 1, 1], [], []>} : vector<16x16xf32>, vector<16x1024xf32>, vector<16x1024xf32> -> vector<16x1024xf32>
    %c0_4 = arith.constant 0 : index
    %c0_5 = arith.constant 0 : index
    %c0_6 = arith.constant 0 : index
    %4 = vector.load %arg4[%c0_4, %c0_5, %c0_6] : memref<1x16x1024xbf16, #tpu.memory_space<vmem>>, vector<1x16x1024xbf16>
    %5 = vector.shape_cast %4 : vector<1x16x1024xbf16> to vector<16x1024xbf16>
    %6 = arith.extf %5 : vector<16x1024xbf16> to vector<16x1024xf32>
    %7 = arith.addf %6, %3 : vector<16x1024xf32>
    %8 = vector.shape_cast %7 : vector<16x1024xf32> to vector<1x16x1024xf32>
    %9 = arith.truncf %8 : vector<1x16x1024xf32> to vector<1x16x1024xbf16>
    %c0_7 = arith.constant 0 : index
    %c0_8 = arith.constant 0 : index
    %c0_9 = arith.constant 0 : index
    %10 = vector.load %arg5[%c0_7, %c0_8, %c0_9] : memref<1x16x1024xbf16, #tpu.memory_space<vmem>>, vector<1x16x1024xbf16>
    tpu.vector_store %arg5[%c0_7, %c0_8, %c0_9], %9 {strides = array<i32>} : memref<1x16x1024xbf16, #tpu.memory_space<vmem>>, vector<1x16x1024xbf16>,
    return
  }
  func.func @transform_0(%arg0: i32, %arg1: i32) -> (i32, i32) {
    %c0_i32 = arith.constant 0 : i32
    %c0_i32_0 = arith.constant 0 : i32
    return %arg1, %c0_i32 : i32, i32
  }
  func.func @transform_1(%arg0: i32, %arg1: i32) -> (i32, i32, i32) {
    %c0_i32 = arith.constant 0 : i32
    %c0_i32_0 = arith.constant 0 : i32
    %c0_i32_1 = arith.constant 0 : i32
    return %arg0, %c0_i32, %c0_i32_0 : i32, i32, i32
  }
  func.func @transform_2(%arg0: i32, %arg1: i32) -> (i32, i32, i32) {
    %c0_i32 = arith.constant 0 : i32
    %c0_i32_0 = arith.constant 0 : i32
    return %arg0, %arg1, %c0_i32 : i32, i32, i32
  }
  func.func @transform_3(%arg0: i32, %arg1: i32) -> (i32, i32, i32) {
    %c0_i32 = arith.constant 0 : i32
    %c0_i32_0 = arith.constant 0 : i32
    return %arg0, %arg1, %c0_i32 : i32, i32, i32
  }
}

module attributes {stable_mosaic.version = 11 : i64} {
  func.func @_conv3x3_kernel(%arg0: i32, %arg1: i32, %arg2: memref<1x1x10x34x32xbf16, #tpu.memory_space<vmem>>, %arg3: memref<3x3x32x128xbf16, #tpu.memory_space<vmem>>, %arg4: memref<1x256x128xbf16, #tpu.memory_space<vmem>>) attributes {dimension_semantics = [#tpu.dimension_semantics<parallel>, #tpu.dimension_semantics<parallel>], iteration_bounds = array<i64: 2, 4>, scalar_prefetch = 0 : i64, scratch_operands = 0 : i64, tpu.core_type = #tpu.core_type<tc>, window_params = [{transform_indices = @transform_0, window_bounds = array<i64: 1, 1, 10, 34, 32>}, {pipeline_mode = #tpu.pipeline_mode<synchronous>, transform_indices = @transform_1, window_bounds = array<i64: 3, 3, 32, 128>}, {transform_indices = @transform_2, window_bounds = array<i64: 1, 256, 128>}]} {
    %c0 = arith.constant 0 : index
    %c0_0 = arith.constant 0 : index
    %c0_1 = arith.constant 0 : index
    %c0_2 = arith.constant 0 : index
    %c0_3 = arith.constant 0 : index
    %0 = vector.load %arg2[%c0, %c0_0, %c0_1, %c0_2, %c0_3] : memref<1x1x10x34x32xbf16, #tpu.memory_space<vmem>>, vector<1x1x8x32x32xbf16>
    %1 = vector.shape_cast %0 : vector<1x1x8x32x32xbf16> to vector<8x32x32xbf16>
    %2 = vector.shape_cast %1 : vector<8x32x32xbf16> to vector<256x32xbf16>
    %c0_4 = arith.constant 0 : index
    %c0_5 = arith.constant 0 : index
    %c0_6 = arith.constant 0 : index
    %c0_7 = arith.constant 0 : index
    %3 = vector.load %arg3[%c0_4, %c0_5, %c0_6, %c0_7] : memref<3x3x32x128xbf16, #tpu.memory_space<vmem>>, vector<1x1x32x128xbf16>
    %4 = vector.shape_cast %3 : vector<1x1x32x128xbf16> to vector<32x128xbf16>
    %cst = arith.constant dense<0.000000e+00> : vector<256x128xf32>
    %5 = tpu.matmul %2, %4, %cst {dimension_numbers = #tpu.dot_dimension_numbers<[1], [0], [0], [1], [0, 0, 1, 1], [], []>} : vector<256x32xbf16>, vector<32x128xbf16>, vector<256x128xf32> -> vector<256x128xf32>
    %c0_8 = arith.constant 0 : index
    %c0_9 = arith.constant 0 : index
    %c0_10 = arith.constant 0 : index
    %c1 = arith.constant 1 : index
    %c0_11 = arith.constant 0 : index
    %6 = vector.load %arg2[%c0_8, %c0_9, %c0_10, %c1, %c0_11] : memref<1x1x10x34x32xbf16, #tpu.memory_space<vmem>>, vector<1x1x8x32x32xbf16>
    %7 = vector.shape_cast %6 : vector<1x1x8x32x32xbf16> to vector<8x32x32xbf16>
    %8 = vector.shape_cast %7 : vector<8x32x32xbf16> to vector<256x32xbf16>
    %c0_12 = arith.constant 0 : index
    %c1_13 = arith.constant 1 : index
    %c0_14 = arith.constant 0 : index
    %c0_15 = arith.constant 0 : index
    %9 = vector.load %arg3[%c0_12, %c1_13, %c0_14, %c0_15] : memref<3x3x32x128xbf16, #tpu.memory_space<vmem>>, vector<1x1x32x128xbf16>
    %10 = vector.shape_cast %9 : vector<1x1x32x128xbf16> to vector<32x128xbf16>
    %cst_16 = arith.constant dense<0.000000e+00> : vector<256x128xf32>
    %11 = tpu.matmul %8, %10, %cst_16 {dimension_numbers = #tpu.dot_dimension_numbers<[1], [0], [0], [1], [0, 0, 1, 1], [], []>} : vector<256x32xbf16>, vector<32x128xbf16>, vector<256x128xf32> -> vector<256x128xf32>
    %12 = arith.addf %5, %11 : vector<256x128xf32>
    %c0_17 = arith.constant 0 : index
    %c0_18 = arith.constant 0 : index
    %c0_19 = arith.constant 0 : index
    %c2 = arith.constant 2 : index
    %c0_20 = arith.constant 0 : index
    %13 = vector.load %arg2[%c0_17, %c0_18, %c0_19, %c2, %c0_20] : memref<1x1x10x34x32xbf16, #tpu.memory_space<vmem>>, vector<1x1x8x32x32xbf16>
    %14 = vector.shape_cast %13 : vector<1x1x8x32x32xbf16> to vector<8x32x32xbf16>
    %15 = vector.shape_cast %14 : vector<8x32x32xbf16> to vector<256x32xbf16>
    %c0_21 = arith.constant 0 : index
    %c2_22 = arith.constant 2 : index
    %c0_23 = arith.constant 0 : index
    %c0_24 = arith.constant 0 : index
    %16 = vector.load %arg3[%c0_21, %c2_22, %c0_23, %c0_24] : memref<3x3x32x128xbf16, #tpu.memory_space<vmem>>, vector<1x1x32x128xbf16>
    %17 = vector.shape_cast %16 : vector<1x1x32x128xbf16> to vector<32x128xbf16>
    %cst_25 = arith.constant dense<0.000000e+00> : vector<256x128xf32>
    %18 = tpu.matmul %15, %17, %cst_25 {dimension_numbers = #tpu.dot_dimension_numbers<[1], [0], [0], [1], [0, 0, 1, 1], [], []>} : vector<256x32xbf16>, vector<32x128xbf16>, vector<256x128xf32> -> vector<256x128xf32>
    %19 = arith.addf %12, %18 : vector<256x128xf32>
    %c0_26 = arith.constant 0 : index
    %c0_27 = arith.constant 0 : index
    %c1_28 = arith.constant 1 : index
    %c0_29 = arith.constant 0 : index
    %c0_30 = arith.constant 0 : index
    %20 = vector.load %arg2[%c0_26, %c0_27, %c1_28, %c0_29, %c0_30] : memref<1x1x10x34x32xbf16, #tpu.memory_space<vmem>>, vector<1x1x8x32x32xbf16>
    %21 = vector.shape_cast %20 : vector<1x1x8x32x32xbf16> to vector<8x32x32xbf16>
    %22 = vector.shape_cast %21 : vector<8x32x32xbf16> to vector<256x32xbf16>
    %c1_31 = arith.constant 1 : index
    %c0_32 = arith.constant 0 : index
    %c0_33 = arith.constant 0 : index
    %c0_34 = arith.constant 0 : index
    %23 = vector.load %arg3[%c1_31, %c0_32, %c0_33, %c0_34] : memref<3x3x32x128xbf16, #tpu.memory_space<vmem>>, vector<1x1x32x128xbf16>
    %24 = vector.shape_cast %23 : vector<1x1x32x128xbf16> to vector<32x128xbf16>
    %cst_35 = arith.constant dense<0.000000e+00> : vector<256x128xf32>
    %25 = tpu.matmul %22, %24, %cst_35 {dimension_numbers = #tpu.dot_dimension_numbers<[1], [0], [0], [1], [0, 0, 1, 1], [], []>} : vector<256x32xbf16>, vector<32x128xbf16>, vector<256x128xf32> -> vector<256x128xf32>
    %26 = arith.addf %19, %25 : vector<256x128xf32>
    %c0_36 = arith.constant 0 : index
    %c0_37 = arith.constant 0 : index
    %c1_38 = arith.constant 1 : index
    %c1_39 = arith.constant 1 : index
    %c0_40 = arith.constant 0 : index
    %27 = vector.load %arg2[%c0_36, %c0_37, %c1_38, %c1_39, %c0_40] : memref<1x1x10x34x32xbf16, #tpu.memory_space<vmem>>, vector<1x1x8x32x32xbf16>
    %28 = vector.shape_cast %27 : vector<1x1x8x32x32xbf16> to vector<8x32x32xbf16>
    %29 = vector.shape_cast %28 : vector<8x32x32xbf16> to vector<256x32xbf16>
    %c1_41 = arith.constant 1 : index
    %c1_42 = arith.constant 1 : index
    %c0_43 = arith.constant 0 : index
    %c0_44 = arith.constant 0 : index
    %30 = vector.load %arg3[%c1_41, %c1_42, %c0_43, %c0_44] : memref<3x3x32x128xbf16, #tpu.memory_space<vmem>>, vector<1x1x32x128xbf16>
    %31 = vector.shape_cast %30 : vector<1x1x32x128xbf16> to vector<32x128xbf16>
    %cst_45 = arith.constant dense<0.000000e+00> : vector<256x128xf32>
    %32 = tpu.matmul %29, %31, %cst_45 {dimension_numbers = #tpu.dot_dimension_numbers<[1], [0], [0], [1], [0, 0, 1, 1], [], []>} : vector<256x32xbf16>, vector<32x128xbf16>, vector<256x128xf32> -> vector<256x128xf32>
    %33 = arith.addf %26, %32 : vector<256x128xf32>
    %c0_46 = arith.constant 0 : index
    %c0_47 = arith.constant 0 : index
    %c1_48 = arith.constant 1 : index
    %c2_49 = arith.constant 2 : index
    %c0_50 = arith.constant 0 : index
    %34 = vector.load %arg2[%c0_46, %c0_47, %c1_48, %c2_49, %c0_50] : memref<1x1x10x34x32xbf16, #tpu.memory_space<vmem>>, vector<1x1x8x32x32xbf16>
    %35 = vector.shape_cast %34 : vector<1x1x8x32x32xbf16> to vector<8x32x32xbf16>
    %36 = vector.shape_cast %35 : vector<8x32x32xbf16> to vector<256x32xbf16>
    %c1_51 = arith.constant 1 : index
    %c2_52 = arith.constant 2 : index
    %c0_53 = arith.constant 0 : index
    %c0_54 = arith.constant 0 : index
    %37 = vector.load %arg3[%c1_51, %c2_52, %c0_53, %c0_54] : memref<3x3x32x128xbf16, #tpu.memory_space<vmem>>, vector<1x1x32x128xbf16>
    %38 = vector.shape_cast %37 : vector<1x1x32x128xbf16> to vector<32x128xbf16>
    %cst_55 = arith.constant dense<0.000000e+00> : vector<256x128xf32>
    %39 = tpu.matmul %36, %38, %cst_55 {dimension_numbers = #tpu.dot_dimension_numbers<[1], [0], [0], [1], [0, 0, 1, 1], [], []>} : vector<256x32xbf16>, vector<32x128xbf16>, vector<256x128xf32> -> vector<256x128xf32>
    %40 = arith.addf %33, %39 : vector<256x128xf32>
    %c0_56 = arith.constant 0 : index
    %c0_57 = arith.constant 0 : index
    %c2_58 = arith.constant 2 : index
    %c0_59 = arith.constant 0 : index
    %c0_60 = arith.constant 0 : index
    %41 = vector.load %arg2[%c0_56, %c0_57, %c2_58, %c0_59, %c0_60] : memref<1x1x10x34x32xbf16, #tpu.memory_space<vmem>>, vector<1x1x8x32x32xbf16>
    %42 = vector.shape_cast %41 : vector<1x1x8x32x32xbf16> to vector<8x32x32xbf16>
    %43 = vector.shape_cast %42 : vector<8x32x32xbf16> to vector<256x32xbf16>
    %c2_61 = arith.constant 2 : index
    %c0_62 = arith.constant 0 : index
    %c0_63 = arith.constant 0 : index
    %c0_64 = arith.constant 0 : index
    %44 = vector.load %arg3[%c2_61, %c0_62, %c0_63, %c0_64] : memref<3x3x32x128xbf16, #tpu.memory_space<vmem>>, vector<1x1x32x128xbf16>
    %45 = vector.shape_cast %44 : vector<1x1x32x128xbf16> to vector<32x128xbf16>
    %cst_65 = arith.constant dense<0.000000e+00> : vector<256x128xf32>
    %46 = tpu.matmul %43, %45, %cst_65 {dimension_numbers = #tpu.dot_dimension_numbers<[1], [0], [0], [1], [0, 0, 1, 1], [], []>} : vector<256x32xbf16>, vector<32x128xbf16>, vector<256x128xf32> -> vector<256x128xf32>
    %47 = arith.addf %40, %46 : vector<256x128xf32>
    %c0_66 = arith.constant 0 : index
    %c0_67 = arith.constant 0 : index
    %c2_68 = arith.constant 2 : index
    %c1_69 = arith.constant 1 : index
    %c0_70 = arith.constant 0 : index
    %48 = vector.load %arg2[%c0_66, %c0_67, %c2_68, %c1_69, %c0_70] : memref<1x1x10x34x32xbf16, #tpu.memory_space<vmem>>, vector<1x1x8x32x32xbf16>
    %49 = vector.shape_cast %48 : vector<1x1x8x32x32xbf16> to vector<8x32x32xbf16>
    %50 = vector.shape_cast %49 : vector<8x32x32xbf16> to vector<256x32xbf16>
    %c2_71 = arith.constant 2 : index
    %c1_72 = arith.constant 1 : index
    %c0_73 = arith.constant 0 : index
    %c0_74 = arith.constant 0 : index
    %51 = vector.load %arg3[%c2_71, %c1_72, %c0_73, %c0_74] : memref<3x3x32x128xbf16, #tpu.memory_space<vmem>>, vector<1x1x32x128xbf16>
    %52 = vector.shape_cast %51 : vector<1x1x32x128xbf16> to vector<32x128xbf16>
    %cst_75 = arith.constant dense<0.000000e+00> : vector<256x128xf32>
    %53 = tpu.matmul %50, %52, %cst_75 {dimension_numbers = #tpu.dot_dimension_numbers<[1], [0], [0], [1], [0, 0, 1, 1], [], []>} : vector<256x32xbf16>, vector<32x128xbf16>, vector<256x128xf32> -> vector<256x128xf32>
    %54 = arith.addf %47, %53 : vector<256x128xf32>
    %c0_76 = arith.constant 0 : index
    %c0_77 = arith.constant 0 : index
    %c2_78 = arith.constant 2 : index
    %c2_79 = arith.constant 2 : index
    %c0_80 = arith.constant 0 : index
    %55 = vector.load %arg2[%c0_76, %c0_77, %c2_78, %c2_79, %c0_80] : memref<1x1x10x34x32xbf16, #tpu.memory_space<vmem>>, vector<1x1x8x32x32xbf16>
    %56 = vector.shape_cast %55 : vector<1x1x8x32x32xbf16> to vector<8x32x32xbf16>
    %57 = vector.shape_cast %56 : vector<8x32x32xbf16> to vector<256x32xbf16>
    %c2_81 = arith.constant 2 : index
    %c2_82 = arith.constant 2 : index
    %c0_83 = arith.constant 0 : index
    %c0_84 = arith.constant 0 : index
    %58 = vector.load %arg3[%c2_81, %c2_82, %c0_83, %c0_84] : memref<3x3x32x128xbf16, #tpu.memory_space<vmem>>, vector<1x1x32x128xbf16>
    %59 = vector.shape_cast %58 : vector<1x1x32x128xbf16> to vector<32x128xbf16>
    %cst_85 = arith.constant dense<0.000000e+00> : vector<256x128xf32>
    %60 = tpu.matmul %57, %59, %cst_85 {dimension_numbers = #tpu.dot_dimension_numbers<[1], [0], [0], [1], [0, 0, 1, 1], [], []>} : vector<256x32xbf16>, vector<32x128xbf16>, vector<256x128xf32> -> vector<256x128xf32>
    %61 = arith.addf %54, %60 : vector<256x128xf32>
    %62 = arith.truncf %61 : vector<256x128xf32> to vector<256x128xbf16>
    %63 = vector.shape_cast %62 : vector<256x128xbf16> to vector<1x256x128xbf16>
    %c0_86 = arith.constant 0 : index
    %c0_87 = arith.constant 0 : index
    %c0_88 = arith.constant 0 : index
    %64 = vector.load %arg4[%c0_86, %c0_87, %c0_88] : memref<1x256x128xbf16, #tpu.memory_space<vmem>>, vector<1x256x128xbf16>
    tpu.vector_store %arg4[%c0_86, %c0_87, %c0_88], %63 {strides = array<i32>} : memref<1x256x128xbf16, #tpu.memory_space<vmem>>, vector<1x256x128xbf16>,
    return
  }
  func.func @transform_0(%arg0: i32, %arg1: i32) -> (i32, i32, i32, i32, i32) {
    %c0_i32 = arith.constant 0 : i32
    %c0_i32_0 = arith.constant 0 : i32
    %c0_i32_1 = arith.constant 0 : i32
    %c0_i32_2 = arith.constant 0 : i32
    return %arg0, %arg1, %c0_i32, %c0_i32_0, %c0_i32_1 : i32, i32, i32, i32, i32
  }
  func.func @transform_1(%arg0: i32, %arg1: i32) -> (i32, i32, i32, i32) {
    %c0_i32 = arith.constant 0 : i32
    %c0_i32_0 = arith.constant 0 : i32
    %c0_i32_1 = arith.constant 0 : i32
    %c0_i32_2 = arith.constant 0 : i32
    %c0_i32_3 = arith.constant 0 : i32
    return %c0_i32, %c0_i32_0, %c0_i32_1, %c0_i32_2 : i32, i32, i32, i32
  }
  func.func @transform_2(%arg0: i32, %arg1: i32) -> (i32, i32, i32) {
    %c0_i32 = arith.constant 0 : i32
    %c0_i32_0 = arith.constant 0 : i32
    return %arg0, %arg1, %c0_i32 : i32, i32, i32
  }
}

module attributes {stable_mosaic.version = 11 : i64} {
  func.func @_conv3x3_kernel(%arg0: i32, %arg1: i32, %arg2: memref<1x1x18x18x32xbf16, #tpu.memory_space<vmem>>, %arg3: memref<3x3x32x128xbf16, #tpu.memory_space<vmem>>, %arg4: memref<1x256x128xbf16, #tpu.memory_space<vmem>>) attributes {dimension_semantics = [#tpu.dimension_semantics<parallel>, #tpu.dimension_semantics<parallel>], iteration_bounds = array<i64: 2, 1>, scalar_prefetch = 0 : i64, scratch_operands = 0 : i64, tpu.core_type = #tpu.core_type<tc>, window_params = [{transform_indices = @transform_0, window_bounds = array<i64: 1, 1, 18, 18, 32>}, {pipeline_mode = #tpu.pipeline_mode<synchronous>, transform_indices = @transform_1, window_bounds = array<i64: 3, 3, 32, 128>}, {transform_indices = @transform_2, window_bounds = array<i64: 1, 256, 128>}]} {
    %c0 = arith.constant 0 : index
    %c0_0 = arith.constant 0 : index
    %c0_1 = arith.constant 0 : index
    %c0_2 = arith.constant 0 : index
    %c0_3 = arith.constant 0 : index
    %0 = vector.load %arg2[%c0, %c0_0, %c0_1, %c0_2, %c0_3] : memref<1x1x18x18x32xbf16, #tpu.memory_space<vmem>>, vector<1x1x16x16x32xbf16>
    %1 = vector.shape_cast %0 : vector<1x1x16x16x32xbf16> to vector<16x16x32xbf16>
    %2 = vector.shape_cast %1 : vector<16x16x32xbf16> to vector<256x32xbf16>
    %c0_4 = arith.constant 0 : index
    %c0_5 = arith.constant 0 : index
    %c0_6 = arith.constant 0 : index
    %c0_7 = arith.constant 0 : index
    %3 = vector.load %arg3[%c0_4, %c0_5, %c0_6, %c0_7] : memref<3x3x32x128xbf16, #tpu.memory_space<vmem>>, vector<1x1x32x128xbf16>
    %4 = vector.shape_cast %3 : vector<1x1x32x128xbf16> to vector<32x128xbf16>
    %cst = arith.constant dense<0.000000e+00> : vector<256x128xf32>
    %5 = tpu.matmul %2, %4, %cst {dimension_numbers = #tpu.dot_dimension_numbers<[1], [0], [0], [1], [0, 0, 1, 1], [], []>} : vector<256x32xbf16>, vector<32x128xbf16>, vector<256x128xf32> -> vector<256x128xf32>
    %c0_8 = arith.constant 0 : index
    %c0_9 = arith.constant 0 : index
    %c0_10 = arith.constant 0 : index
    %c1 = arith.constant 1 : index
    %c0_11 = arith.constant 0 : index
    %6 = vector.load %arg2[%c0_8, %c0_9, %c0_10, %c1, %c0_11] : memref<1x1x18x18x32xbf16, #tpu.memory_space<vmem>>, vector<1x1x16x16x32xbf16>
    %7 = vector.shape_cast %6 : vector<1x1x16x16x32xbf16> to vector<16x16x32xbf16>
    %8 = vector.shape_cast %7 : vector<16x16x32xbf16> to vector<256x32xbf16>
    %c0_12 = arith.constant 0 : index
    %c1_13 = arith.constant 1 : index
    %c0_14 = arith.constant 0 : index
    %c0_15 = arith.constant 0 : index
    %9 = vector.load %arg3[%c0_12, %c1_13, %c0_14, %c0_15] : memref<3x3x32x128xbf16, #tpu.memory_space<vmem>>, vector<1x1x32x128xbf16>
    %10 = vector.shape_cast %9 : vector<1x1x32x128xbf16> to vector<32x128xbf16>
    %cst_16 = arith.constant dense<0.000000e+00> : vector<256x128xf32>
    %11 = tpu.matmul %8, %10, %cst_16 {dimension_numbers = #tpu.dot_dimension_numbers<[1], [0], [0], [1], [0, 0, 1, 1], [], []>} : vector<256x32xbf16>, vector<32x128xbf16>, vector<256x128xf32> -> vector<256x128xf32>
    %12 = arith.addf %5, %11 : vector<256x128xf32>
    %c0_17 = arith.constant 0 : index
    %c0_18 = arith.constant 0 : index
    %c0_19 = arith.constant 0 : index
    %c2 = arith.constant 2 : index
    %c0_20 = arith.constant 0 : index
    %13 = vector.load %arg2[%c0_17, %c0_18, %c0_19, %c2, %c0_20] : memref<1x1x18x18x32xbf16, #tpu.memory_space<vmem>>, vector<1x1x16x16x32xbf16>
    %14 = vector.shape_cast %13 : vector<1x1x16x16x32xbf16> to vector<16x16x32xbf16>
    %15 = vector.shape_cast %14 : vector<16x16x32xbf16> to vector<256x32xbf16>
    %c0_21 = arith.constant 0 : index
    %c2_22 = arith.constant 2 : index
    %c0_23 = arith.constant 0 : index
    %c0_24 = arith.constant 0 : index
    %16 = vector.load %arg3[%c0_21, %c2_22, %c0_23, %c0_24] : memref<3x3x32x128xbf16, #tpu.memory_space<vmem>>, vector<1x1x32x128xbf16>
    %17 = vector.shape_cast %16 : vector<1x1x32x128xbf16> to vector<32x128xbf16>
    %cst_25 = arith.constant dense<0.000000e+00> : vector<256x128xf32>
    %18 = tpu.matmul %15, %17, %cst_25 {dimension_numbers = #tpu.dot_dimension_numbers<[1], [0], [0], [1], [0, 0, 1, 1], [], []>} : vector<256x32xbf16>, vector<32x128xbf16>, vector<256x128xf32> -> vector<256x128xf32>
    %19 = arith.addf %12, %18 : vector<256x128xf32>
    %c0_26 = arith.constant 0 : index
    %c0_27 = arith.constant 0 : index
    %c1_28 = arith.constant 1 : index
    %c0_29 = arith.constant 0 : index
    %c0_30 = arith.constant 0 : index
    %20 = vector.load %arg2[%c0_26, %c0_27, %c1_28, %c0_29, %c0_30] : memref<1x1x18x18x32xbf16, #tpu.memory_space<vmem>>, vector<1x1x16x16x32xbf16>
    %21 = vector.shape_cast %20 : vector<1x1x16x16x32xbf16> to vector<16x16x32xbf16>
    %22 = vector.shape_cast %21 : vector<16x16x32xbf16> to vector<256x32xbf16>
    %c1_31 = arith.constant 1 : index
    %c0_32 = arith.constant 0 : index
    %c0_33 = arith.constant 0 : index
    %c0_34 = arith.constant 0 : index
    %23 = vector.load %arg3[%c1_31, %c0_32, %c0_33, %c0_34] : memref<3x3x32x128xbf16, #tpu.memory_space<vmem>>, vector<1x1x32x128xbf16>
    %24 = vector.shape_cast %23 : vector<1x1x32x128xbf16> to vector<32x128xbf16>
    %cst_35 = arith.constant dense<0.000000e+00> : vector<256x128xf32>
    %25 = tpu.matmul %22, %24, %cst_35 {dimension_numbers = #tpu.dot_dimension_numbers<[1], [0], [0], [1], [0, 0, 1, 1], [], []>} : vector<256x32xbf16>, vector<32x128xbf16>, vector<256x128xf32> -> vector<256x128xf32>
    %26 = arith.addf %19, %25 : vector<256x128xf32>
    %c0_36 = arith.constant 0 : index
    %c0_37 = arith.constant 0 : index
    %c1_38 = arith.constant 1 : index
    %c1_39 = arith.constant 1 : index
    %c0_40 = arith.constant 0 : index
    %27 = vector.load %arg2[%c0_36, %c0_37, %c1_38, %c1_39, %c0_40] : memref<1x1x18x18x32xbf16, #tpu.memory_space<vmem>>, vector<1x1x16x16x32xbf16>
    %28 = vector.shape_cast %27 : vector<1x1x16x16x32xbf16> to vector<16x16x32xbf16>
    %29 = vector.shape_cast %28 : vector<16x16x32xbf16> to vector<256x32xbf16>
    %c1_41 = arith.constant 1 : index
    %c1_42 = arith.constant 1 : index
    %c0_43 = arith.constant 0 : index
    %c0_44 = arith.constant 0 : index
    %30 = vector.load %arg3[%c1_41, %c1_42, %c0_43, %c0_44] : memref<3x3x32x128xbf16, #tpu.memory_space<vmem>>, vector<1x1x32x128xbf16>
    %31 = vector.shape_cast %30 : vector<1x1x32x128xbf16> to vector<32x128xbf16>
    %cst_45 = arith.constant dense<0.000000e+00> : vector<256x128xf32>
    %32 = tpu.matmul %29, %31, %cst_45 {dimension_numbers = #tpu.dot_dimension_numbers<[1], [0], [0], [1], [0, 0, 1, 1], [], []>} : vector<256x32xbf16>, vector<32x128xbf16>, vector<256x128xf32> -> vector<256x128xf32>
    %33 = arith.addf %26, %32 : vector<256x128xf32>
    %c0_46 = arith.constant 0 : index
    %c0_47 = arith.constant 0 : index
    %c1_48 = arith.constant 1 : index
    %c2_49 = arith.constant 2 : index
    %c0_50 = arith.constant 0 : index
    %34 = vector.load %arg2[%c0_46, %c0_47, %c1_48, %c2_49, %c0_50] : memref<1x1x18x18x32xbf16, #tpu.memory_space<vmem>>, vector<1x1x16x16x32xbf16>
    %35 = vector.shape_cast %34 : vector<1x1x16x16x32xbf16> to vector<16x16x32xbf16>
    %36 = vector.shape_cast %35 : vector<16x16x32xbf16> to vector<256x32xbf16>
    %c1_51 = arith.constant 1 : index
    %c2_52 = arith.constant 2 : index
    %c0_53 = arith.constant 0 : index
    %c0_54 = arith.constant 0 : index
    %37 = vector.load %arg3[%c1_51, %c2_52, %c0_53, %c0_54] : memref<3x3x32x128xbf16, #tpu.memory_space<vmem>>, vector<1x1x32x128xbf16>
    %38 = vector.shape_cast %37 : vector<1x1x32x128xbf16> to vector<32x128xbf16>
    %cst_55 = arith.constant dense<0.000000e+00> : vector<256x128xf32>
    %39 = tpu.matmul %36, %38, %cst_55 {dimension_numbers = #tpu.dot_dimension_numbers<[1], [0], [0], [1], [0, 0, 1, 1], [], []>} : vector<256x32xbf16>, vector<32x128xbf16>, vector<256x128xf32> -> vector<256x128xf32>
    %40 = arith.addf %33, %39 : vector<256x128xf32>
    %c0_56 = arith.constant 0 : index
    %c0_57 = arith.constant 0 : index
    %c2_58 = arith.constant 2 : index
    %c0_59 = arith.constant 0 : index
    %c0_60 = arith.constant 0 : index
    %41 = vector.load %arg2[%c0_56, %c0_57, %c2_58, %c0_59, %c0_60] : memref<1x1x18x18x32xbf16, #tpu.memory_space<vmem>>, vector<1x1x16x16x32xbf16>
    %42 = vector.shape_cast %41 : vector<1x1x16x16x32xbf16> to vector<16x16x32xbf16>
    %43 = vector.shape_cast %42 : vector<16x16x32xbf16> to vector<256x32xbf16>
    %c2_61 = arith.constant 2 : index
    %c0_62 = arith.constant 0 : index
    %c0_63 = arith.constant 0 : index
    %c0_64 = arith.constant 0 : index
    %44 = vector.load %arg3[%c2_61, %c0_62, %c0_63, %c0_64] : memref<3x3x32x128xbf16, #tpu.memory_space<vmem>>, vector<1x1x32x128xbf16>
    %45 = vector.shape_cast %44 : vector<1x1x32x128xbf16> to vector<32x128xbf16>
    %cst_65 = arith.constant dense<0.000000e+00> : vector<256x128xf32>
    %46 = tpu.matmul %43, %45, %cst_65 {dimension_numbers = #tpu.dot_dimension_numbers<[1], [0], [0], [1], [0, 0, 1, 1], [], []>} : vector<256x32xbf16>, vector<32x128xbf16>, vector<256x128xf32> -> vector<256x128xf32>
    %47 = arith.addf %40, %46 : vector<256x128xf32>
    %c0_66 = arith.constant 0 : index
    %c0_67 = arith.constant 0 : index
    %c2_68 = arith.constant 2 : index
    %c1_69 = arith.constant 1 : index
    %c0_70 = arith.constant 0 : index
    %48 = vector.load %arg2[%c0_66, %c0_67, %c2_68, %c1_69, %c0_70] : memref<1x1x18x18x32xbf16, #tpu.memory_space<vmem>>, vector<1x1x16x16x32xbf16>
    %49 = vector.shape_cast %48 : vector<1x1x16x16x32xbf16> to vector<16x16x32xbf16>
    %50 = vector.shape_cast %49 : vector<16x16x32xbf16> to vector<256x32xbf16>
    %c2_71 = arith.constant 2 : index
    %c1_72 = arith.constant 1 : index
    %c0_73 = arith.constant 0 : index
    %c0_74 = arith.constant 0 : index
    %51 = vector.load %arg3[%c2_71, %c1_72, %c0_73, %c0_74] : memref<3x3x32x128xbf16, #tpu.memory_space<vmem>>, vector<1x1x32x128xbf16>
    %52 = vector.shape_cast %51 : vector<1x1x32x128xbf16> to vector<32x128xbf16>
    %cst_75 = arith.constant dense<0.000000e+00> : vector<256x128xf32>
    %53 = tpu.matmul %50, %52, %cst_75 {dimension_numbers = #tpu.dot_dimension_numbers<[1], [0], [0], [1], [0, 0, 1, 1], [], []>} : vector<256x32xbf16>, vector<32x128xbf16>, vector<256x128xf32> -> vector<256x128xf32>
    %54 = arith.addf %47, %53 : vector<256x128xf32>
    %c0_76 = arith.constant 0 : index
    %c0_77 = arith.constant 0 : index
    %c2_78 = arith.constant 2 : index
    %c2_79 = arith.constant 2 : index
    %c0_80 = arith.constant 0 : index
    %55 = vector.load %arg2[%c0_76, %c0_77, %c2_78, %c2_79, %c0_80] : memref<1x1x18x18x32xbf16, #tpu.memory_space<vmem>>, vector<1x1x16x16x32xbf16>
    %56 = vector.shape_cast %55 : vector<1x1x16x16x32xbf16> to vector<16x16x32xbf16>
    %57 = vector.shape_cast %56 : vector<16x16x32xbf16> to vector<256x32xbf16>
    %c2_81 = arith.constant 2 : index
    %c2_82 = arith.constant 2 : index
    %c0_83 = arith.constant 0 : index
    %c0_84 = arith.constant 0 : index
    %58 = vector.load %arg3[%c2_81, %c2_82, %c0_83, %c0_84] : memref<3x3x32x128xbf16, #tpu.memory_space<vmem>>, vector<1x1x32x128xbf16>
    %59 = vector.shape_cast %58 : vector<1x1x32x128xbf16> to vector<32x128xbf16>
    %cst_85 = arith.constant dense<0.000000e+00> : vector<256x128xf32>
    %60 = tpu.matmul %57, %59, %cst_85 {dimension_numbers = #tpu.dot_dimension_numbers<[1], [0], [0], [1], [0, 0, 1, 1], [], []>} : vector<256x32xbf16>, vector<32x128xbf16>, vector<256x128xf32> -> vector<256x128xf32>
    %61 = arith.addf %54, %60 : vector<256x128xf32>
    %62 = arith.truncf %61 : vector<256x128xf32> to vector<256x128xbf16>
    %63 = vector.shape_cast %62 : vector<256x128xbf16> to vector<1x256x128xbf16>
    %c0_86 = arith.constant 0 : index
    %c0_87 = arith.constant 0 : index
    %c0_88 = arith.constant 0 : index
    %64 = vector.load %arg4[%c0_86, %c0_87, %c0_88] : memref<1x256x128xbf16, #tpu.memory_space<vmem>>, vector<1x256x128xbf16>
    tpu.vector_store %arg4[%c0_86, %c0_87, %c0_88], %63 {strides = array<i32>} : memref<1x256x128xbf16, #tpu.memory_space<vmem>>, vector<1x256x128xbf16>,
    return
  }
  func.func @transform_0(%arg0: i32, %arg1: i32) -> (i32, i32, i32, i32, i32) {
    %c0_i32 = arith.constant 0 : i32
    %c0_i32_0 = arith.constant 0 : i32
    %c0_i32_1 = arith.constant 0 : i32
    %c0_i32_2 = arith.constant 0 : i32
    return %arg0, %arg1, %c0_i32, %c0_i32_0, %c0_i32_1 : i32, i32, i32, i32, i32
  }
  func.func @transform_1(%arg0: i32, %arg1: i32) -> (i32, i32, i32, i32) {
    %c0_i32 = arith.constant 0 : i32
    %c0_i32_0 = arith.constant 0 : i32
    %c0_i32_1 = arith.constant 0 : i32
    %c0_i32_2 = arith.constant 0 : i32
    %c0_i32_3 = arith.constant 0 : i32
    return %c0_i32, %c0_i32_0, %c0_i32_1, %c0_i32_2 : i32, i32, i32, i32
  }
  func.func @transform_2(%arg0: i32, %arg1: i32) -> (i32, i32, i32) {
    %c0_i32 = arith.constant 0 : i32
    %c0_i32_0 = arith.constant 0 : i32
    return %arg0, %arg1, %c0_i32 : i32, i32, i32
  }
}

module attributes {stable_mosaic.version = 11 : i64} {
  func.func @_conv3x3_kernel(%arg0: i32, %arg1: i32, %arg2: memref<1x1x10x10x32xbf16, #tpu.memory_space<vmem>>, %arg3: memref<3x3x32x128xbf16, #tpu.memory_space<vmem>>, %arg4: memref<1x64x128xbf16, #tpu.memory_space<vmem>>) attributes {dimension_semantics = [#tpu.dimension_semantics<parallel>, #tpu.dimension_semantics<parallel>], iteration_bounds = array<i64: 2, 1>, scalar_prefetch = 0 : i64, scratch_operands = 0 : i64, tpu.core_type = #tpu.core_type<tc>, window_params = [{transform_indices = @transform_0, window_bounds = array<i64: 1, 1, 10, 10, 32>}, {pipeline_mode = #tpu.pipeline_mode<synchronous>, transform_indices = @transform_1, window_bounds = array<i64: 3, 3, 32, 128>}, {transform_indices = @transform_2, window_bounds = array<i64: 1, 64, 128>}]} {
    %c0 = arith.constant 0 : index
    %c0_0 = arith.constant 0 : index
    %c0_1 = arith.constant 0 : index
    %c0_2 = arith.constant 0 : index
    %c0_3 = arith.constant 0 : index
    %0 = vector.load %arg2[%c0, %c0_0, %c0_1, %c0_2, %c0_3] : memref<1x1x10x10x32xbf16, #tpu.memory_space<vmem>>, vector<1x1x8x8x32xbf16>
    %1 = vector.shape_cast %0 : vector<1x1x8x8x32xbf16> to vector<8x8x32xbf16>
    %2 = vector.shape_cast %1 : vector<8x8x32xbf16> to vector<64x32xbf16>
    %c0_4 = arith.constant 0 : index
    %c0_5 = arith.constant 0 : index
    %c0_6 = arith.constant 0 : index
    %c0_7 = arith.constant 0 : index
    %3 = vector.load %arg3[%c0_4, %c0_5, %c0_6, %c0_7] : memref<3x3x32x128xbf16, #tpu.memory_space<vmem>>, vector<1x1x32x128xbf16>
    %4 = vector.shape_cast %3 : vector<1x1x32x128xbf16> to vector<32x128xbf16>
    %cst = arith.constant dense<0.000000e+00> : vector<64x128xf32>
    %5 = tpu.matmul %2, %4, %cst {dimension_numbers = #tpu.dot_dimension_numbers<[1], [0], [0], [1], [0, 0, 1, 1], [], []>} : vector<64x32xbf16>, vector<32x128xbf16>, vector<64x128xf32> -> vector<64x128xf32>
    %c0_8 = arith.constant 0 : index
    %c0_9 = arith.constant 0 : index
    %c0_10 = arith.constant 0 : index
    %c1 = arith.constant 1 : index
    %c0_11 = arith.constant 0 : index
    %6 = vector.load %arg2[%c0_8, %c0_9, %c0_10, %c1, %c0_11] : memref<1x1x10x10x32xbf16, #tpu.memory_space<vmem>>, vector<1x1x8x8x32xbf16>
    %7 = vector.shape_cast %6 : vector<1x1x8x8x32xbf16> to vector<8x8x32xbf16>
    %8 = vector.shape_cast %7 : vector<8x8x32xbf16> to vector<64x32xbf16>
    %c0_12 = arith.constant 0 : index
    %c1_13 = arith.constant 1 : index
    %c0_14 = arith.constant 0 : index
    %c0_15 = arith.constant 0 : index
    %9 = vector.load %arg3[%c0_12, %c1_13, %c0_14, %c0_15] : memref<3x3x32x128xbf16, #tpu.memory_space<vmem>>, vector<1x1x32x128xbf16>
    %10 = vector.shape_cast %9 : vector<1x1x32x128xbf16> to vector<32x128xbf16>
    %cst_16 = arith.constant dense<0.000000e+00> : vector<64x128xf32>
    %11 = tpu.matmul %8, %10, %cst_16 {dimension_numbers = #tpu.dot_dimension_numbers<[1], [0], [0], [1], [0, 0, 1, 1], [], []>} : vector<64x32xbf16>, vector<32x128xbf16>, vector<64x128xf32> -> vector<64x128xf32>
    %12 = arith.addf %5, %11 : vector<64x128xf32>
    %c0_17 = arith.constant 0 : index
    %c0_18 = arith.constant 0 : index
    %c0_19 = arith.constant 0 : index
    %c2 = arith.constant 2 : index
    %c0_20 = arith.constant 0 : index
    %13 = vector.load %arg2[%c0_17, %c0_18, %c0_19, %c2, %c0_20] : memref<1x1x10x10x32xbf16, #tpu.memory_space<vmem>>, vector<1x1x8x8x32xbf16>
    %14 = vector.shape_cast %13 : vector<1x1x8x8x32xbf16> to vector<8x8x32xbf16>
    %15 = vector.shape_cast %14 : vector<8x8x32xbf16> to vector<64x32xbf16>
    %c0_21 = arith.constant 0 : index
    %c2_22 = arith.constant 2 : index
    %c0_23 = arith.constant 0 : index
    %c0_24 = arith.constant 0 : index
    %16 = vector.load %arg3[%c0_21, %c2_22, %c0_23, %c0_24] : memref<3x3x32x128xbf16, #tpu.memory_space<vmem>>, vector<1x1x32x128xbf16>
    %17 = vector.shape_cast %16 : vector<1x1x32x128xbf16> to vector<32x128xbf16>
    %cst_25 = arith.constant dense<0.000000e+00> : vector<64x128xf32>
    %18 = tpu.matmul %15, %17, %cst_25 {dimension_numbers = #tpu.dot_dimension_numbers<[1], [0], [0], [1], [0, 0, 1, 1], [], []>} : vector<64x32xbf16>, vector<32x128xbf16>, vector<64x128xf32> -> vector<64x128xf32>
    %19 = arith.addf %12, %18 : vector<64x128xf32>
    %c0_26 = arith.constant 0 : index
    %c0_27 = arith.constant 0 : index
    %c1_28 = arith.constant 1 : index
    %c0_29 = arith.constant 0 : index
    %c0_30 = arith.constant 0 : index
    %20 = vector.load %arg2[%c0_26, %c0_27, %c1_28, %c0_29, %c0_30] : memref<1x1x10x10x32xbf16, #tpu.memory_space<vmem>>, vector<1x1x8x8x32xbf16>
    %21 = vector.shape_cast %20 : vector<1x1x8x8x32xbf16> to vector<8x8x32xbf16>
    %22 = vector.shape_cast %21 : vector<8x8x32xbf16> to vector<64x32xbf16>
    %c1_31 = arith.constant 1 : index
    %c0_32 = arith.constant 0 : index
    %c0_33 = arith.constant 0 : index
    %c0_34 = arith.constant 0 : index
    %23 = vector.load %arg3[%c1_31, %c0_32, %c0_33, %c0_34] : memref<3x3x32x128xbf16, #tpu.memory_space<vmem>>, vector<1x1x32x128xbf16>
    %24 = vector.shape_cast %23 : vector<1x1x32x128xbf16> to vector<32x128xbf16>
    %cst_35 = arith.constant dense<0.000000e+00> : vector<64x128xf32>
    %25 = tpu.matmul %22, %24, %cst_35 {dimension_numbers = #tpu.dot_dimension_numbers<[1], [0], [0], [1], [0, 0, 1, 1], [], []>} : vector<64x32xbf16>, vector<32x128xbf16>, vector<64x128xf32> -> vector<64x128xf32>
    %26 = arith.addf %19, %25 : vector<64x128xf32>
    %c0_36 = arith.constant 0 : index
    %c0_37 = arith.constant 0 : index
    %c1_38 = arith.constant 1 : index
    %c1_39 = arith.constant 1 : index
    %c0_40 = arith.constant 0 : index
    %27 = vector.load %arg2[%c0_36, %c0_37, %c1_38, %c1_39, %c0_40] : memref<1x1x10x10x32xbf16, #tpu.memory_space<vmem>>, vector<1x1x8x8x32xbf16>
    %28 = vector.shape_cast %27 : vector<1x1x8x8x32xbf16> to vector<8x8x32xbf16>
    %29 = vector.shape_cast %28 : vector<8x8x32xbf16> to vector<64x32xbf16>
    %c1_41 = arith.constant 1 : index
    %c1_42 = arith.constant 1 : index
    %c0_43 = arith.constant 0 : index
    %c0_44 = arith.constant 0 : index
    %30 = vector.load %arg3[%c1_41, %c1_42, %c0_43, %c0_44] : memref<3x3x32x128xbf16, #tpu.memory_space<vmem>>, vector<1x1x32x128xbf16>
    %31 = vector.shape_cast %30 : vector<1x1x32x128xbf16> to vector<32x128xbf16>
    %cst_45 = arith.constant dense<0.000000e+00> : vector<64x128xf32>
    %32 = tpu.matmul %29, %31, %cst_45 {dimension_numbers = #tpu.dot_dimension_numbers<[1], [0], [0], [1], [0, 0, 1, 1], [], []>} : vector<64x32xbf16>, vector<32x128xbf16>, vector<64x128xf32> -> vector<64x128xf32>
    %33 = arith.addf %26, %32 : vector<64x128xf32>
    %c0_46 = arith.constant 0 : index
    %c0_47 = arith.constant 0 : index
    %c1_48 = arith.constant 1 : index
    %c2_49 = arith.constant 2 : index
    %c0_50 = arith.constant 0 : index
    %34 = vector.load %arg2[%c0_46, %c0_47, %c1_48, %c2_49, %c0_50] : memref<1x1x10x10x32xbf16, #tpu.memory_space<vmem>>, vector<1x1x8x8x32xbf16>
    %35 = vector.shape_cast %34 : vector<1x1x8x8x32xbf16> to vector<8x8x32xbf16>
    %36 = vector.shape_cast %35 : vector<8x8x32xbf16> to vector<64x32xbf16>
    %c1_51 = arith.constant 1 : index
    %c2_52 = arith.constant 2 : index
    %c0_53 = arith.constant 0 : index
    %c0_54 = arith.constant 0 : index
    %37 = vector.load %arg3[%c1_51, %c2_52, %c0_53, %c0_54] : memref<3x3x32x128xbf16, #tpu.memory_space<vmem>>, vector<1x1x32x128xbf16>
    %38 = vector.shape_cast %37 : vector<1x1x32x128xbf16> to vector<32x128xbf16>
    %cst_55 = arith.constant dense<0.000000e+00> : vector<64x128xf32>
    %39 = tpu.matmul %36, %38, %cst_55 {dimension_numbers = #tpu.dot_dimension_numbers<[1], [0], [0], [1], [0, 0, 1, 1], [], []>} : vector<64x32xbf16>, vector<32x128xbf16>, vector<64x128xf32> -> vector<64x128xf32>
    %40 = arith.addf %33, %39 : vector<64x128xf32>
    %c0_56 = arith.constant 0 : index
    %c0_57 = arith.constant 0 : index
    %c2_58 = arith.constant 2 : index
    %c0_59 = arith.constant 0 : index
    %c0_60 = arith.constant 0 : index
    %41 = vector.load %arg2[%c0_56, %c0_57, %c2_58, %c0_59, %c0_60] : memref<1x1x10x10x32xbf16, #tpu.memory_space<vmem>>, vector<1x1x8x8x32xbf16>
    %42 = vector.shape_cast %41 : vector<1x1x8x8x32xbf16> to vector<8x8x32xbf16>
    %43 = vector.shape_cast %42 : vector<8x8x32xbf16> to vector<64x32xbf16>
    %c2_61 = arith.constant 2 : index
    %c0_62 = arith.constant 0 : index
    %c0_63 = arith.constant 0 : index
    %c0_64 = arith.constant 0 : index
    %44 = vector.load %arg3[%c2_61, %c0_62, %c0_63, %c0_64] : memref<3x3x32x128xbf16, #tpu.memory_space<vmem>>, vector<1x1x32x128xbf16>
    %45 = vector.shape_cast %44 : vector<1x1x32x128xbf16> to vector<32x128xbf16>
    %cst_65 = arith.constant dense<0.000000e+00> : vector<64x128xf32>
    %46 = tpu.matmul %43, %45, %cst_65 {dimension_numbers = #tpu.dot_dimension_numbers<[1], [0], [0], [1], [0, 0, 1, 1], [], []>} : vector<64x32xbf16>, vector<32x128xbf16>, vector<64x128xf32> -> vector<64x128xf32>
    %47 = arith.addf %40, %46 : vector<64x128xf32>
    %c0_66 = arith.constant 0 : index
    %c0_67 = arith.constant 0 : index
    %c2_68 = arith.constant 2 : index
    %c1_69 = arith.constant 1 : index
    %c0_70 = arith.constant 0 : index
    %48 = vector.load %arg2[%c0_66, %c0_67, %c2_68, %c1_69, %c0_70] : memref<1x1x10x10x32xbf16, #tpu.memory_space<vmem>>, vector<1x1x8x8x32xbf16>
    %49 = vector.shape_cast %48 : vector<1x1x8x8x32xbf16> to vector<8x8x32xbf16>
    %50 = vector.shape_cast %49 : vector<8x8x32xbf16> to vector<64x32xbf16>
    %c2_71 = arith.constant 2 : index
    %c1_72 = arith.constant 1 : index
    %c0_73 = arith.constant 0 : index
    %c0_74 = arith.constant 0 : index
    %51 = vector.load %arg3[%c2_71, %c1_72, %c0_73, %c0_74] : memref<3x3x32x128xbf16, #tpu.memory_space<vmem>>, vector<1x1x32x128xbf16>
    %52 = vector.shape_cast %51 : vector<1x1x32x128xbf16> to vector<32x128xbf16>
    %cst_75 = arith.constant dense<0.000000e+00> : vector<64x128xf32>
    %53 = tpu.matmul %50, %52, %cst_75 {dimension_numbers = #tpu.dot_dimension_numbers<[1], [0], [0], [1], [0, 0, 1, 1], [], []>} : vector<64x32xbf16>, vector<32x128xbf16>, vector<64x128xf32> -> vector<64x128xf32>
    %54 = arith.addf %47, %53 : vector<64x128xf32>
    %c0_76 = arith.constant 0 : index
    %c0_77 = arith.constant 0 : index
    %c2_78 = arith.constant 2 : index
    %c2_79 = arith.constant 2 : index
    %c0_80 = arith.constant 0 : index
    %55 = vector.load %arg2[%c0_76, %c0_77, %c2_78, %c2_79, %c0_80] : memref<1x1x10x10x32xbf16, #tpu.memory_space<vmem>>, vector<1x1x8x8x32xbf16>
    %56 = vector.shape_cast %55 : vector<1x1x8x8x32xbf16> to vector<8x8x32xbf16>
    %57 = vector.shape_cast %56 : vector<8x8x32xbf16> to vector<64x32xbf16>
    %c2_81 = arith.constant 2 : index
    %c2_82 = arith.constant 2 : index
    %c0_83 = arith.constant 0 : index
    %c0_84 = arith.constant 0 : index
    %58 = vector.load %arg3[%c2_81, %c2_82, %c0_83, %c0_84] : memref<3x3x32x128xbf16, #tpu.memory_space<vmem>>, vector<1x1x32x128xbf16>
    %59 = vector.shape_cast %58 : vector<1x1x32x128xbf16> to vector<32x128xbf16>
    %cst_85 = arith.constant dense<0.000000e+00> : vector<64x128xf32>
    %60 = tpu.matmul %57, %59, %cst_85 {dimension_numbers = #tpu.dot_dimension_numbers<[1], [0], [0], [1], [0, 0, 1, 1], [], []>} : vector<64x32xbf16>, vector<32x128xbf16>, vector<64x128xf32> -> vector<64x128xf32>
    %61 = arith.addf %54, %60 : vector<64x128xf32>
    %62 = arith.truncf %61 : vector<64x128xf32> to vector<64x128xbf16>
    %63 = vector.shape_cast %62 : vector<64x128xbf16> to vector<1x64x128xbf16>
    %c0_86 = arith.constant 0 : index
    %c0_87 = arith.constant 0 : index
    %c0_88 = arith.constant 0 : index
    %64 = vector.load %arg4[%c0_86, %c0_87, %c0_88] : memref<1x64x128xbf16, #tpu.memory_space<vmem>>, vector<1x64x128xbf16>
    tpu.vector_store %arg4[%c0_86, %c0_87, %c0_88], %63 {strides = array<i32>} : memref<1x64x128xbf16, #tpu.memory_space<vmem>>, vector<1x64x128xbf16>,
    return
  }
  func.func @transform_0(%arg0: i32, %arg1: i32) -> (i32, i32, i32, i32, i32) {
    %c0_i32 = arith.constant 0 : i32
    %c0_i32_0 = arith.constant 0 : i32
    %c0_i32_1 = arith.constant 0 : i32
    %c0_i32_2 = arith.constant 0 : i32
    return %arg0, %arg1, %c0_i32, %c0_i32_0, %c0_i32_1 : i32, i32, i32, i32, i32
  }
  func.func @transform_1(%arg0: i32, %arg1: i32) -> (i32, i32, i32, i32) {
    %c0_i32 = arith.constant 0 : i32
    %c0_i32_0 = arith.constant 0 : i32
    %c0_i32_1 = arith.constant 0 : i32
    %c0_i32_2 = arith.constant 0 : i32
    %c0_i32_3 = arith.constant 0 : i32
    return %c0_i32, %c0_i32_0, %c0_i32_1, %c0_i32_2 : i32, i32, i32, i32
  }
  func.func @transform_2(%arg0: i32, %arg1: i32) -> (i32, i32, i32) {
    %c0_i32 = arith.constant 0 : i32
    %c0_i32_0 = arith.constant 0 : i32
    return %arg0, %arg1, %c0_i32 : i32, i32, i32
  }
}

module attributes {stable_mosaic.version = 11 : i64} {
  func.func @_conv3x3_kernel(%arg0: i32, %arg1: i32, %arg2: memref<1x1x6x6x32xbf16, #tpu.memory_space<vmem>>, %arg3: memref<3x3x32x128xbf16, #tpu.memory_space<vmem>>, %arg4: memref<1x16x128xbf16, #tpu.memory_space<vmem>>) attributes {dimension_semantics = [#tpu.dimension_semantics<parallel>, #tpu.dimension_semantics<parallel>], iteration_bounds = array<i64: 2, 1>, scalar_prefetch = 0 : i64, scratch_operands = 0 : i64, tpu.core_type = #tpu.core_type<tc>, window_params = [{transform_indices = @transform_0, window_bounds = array<i64: 1, 1, 6, 6, 32>}, {pipeline_mode = #tpu.pipeline_mode<synchronous>, transform_indices = @transform_1, window_bounds = array<i64: 3, 3, 32, 128>}, {transform_indices = @transform_2, window_bounds = array<i64: 1, 16, 128>}]} {
    %c0 = arith.constant 0 : index
    %c0_0 = arith.constant 0 : index
    %c0_1 = arith.constant 0 : index
    %c0_2 = arith.constant 0 : index
    %c0_3 = arith.constant 0 : index
    %0 = vector.load %arg2[%c0, %c0_0, %c0_1, %c0_2, %c0_3] : memref<1x1x6x6x32xbf16, #tpu.memory_space<vmem>>, vector<1x1x4x4x32xbf16>
    %1 = vector.shape_cast %0 : vector<1x1x4x4x32xbf16> to vector<4x4x32xbf16>
    %2 = vector.shape_cast %1 : vector<4x4x32xbf16> to vector<16x32xbf16>
    %c0_4 = arith.constant 0 : index
    %c0_5 = arith.constant 0 : index
    %c0_6 = arith.constant 0 : index
    %c0_7 = arith.constant 0 : index
    %3 = vector.load %arg3[%c0_4, %c0_5, %c0_6, %c0_7] : memref<3x3x32x128xbf16, #tpu.memory_space<vmem>>, vector<1x1x32x128xbf16>
    %4 = vector.shape_cast %3 : vector<1x1x32x128xbf16> to vector<32x128xbf16>
    %cst = arith.constant dense<0.000000e+00> : vector<16x128xf32>
    %5 = tpu.matmul %2, %4, %cst {dimension_numbers = #tpu.dot_dimension_numbers<[1], [0], [0], [1], [0, 0, 1, 1], [], []>} : vector<16x32xbf16>, vector<32x128xbf16>, vector<16x128xf32> -> vector<16x128xf32>
    %c0_8 = arith.constant 0 : index
    %c0_9 = arith.constant 0 : index
    %c0_10 = arith.constant 0 : index
    %c1 = arith.constant 1 : index
    %c0_11 = arith.constant 0 : index
    %6 = vector.load %arg2[%c0_8, %c0_9, %c0_10, %c1, %c0_11] : memref<1x1x6x6x32xbf16, #tpu.memory_space<vmem>>, vector<1x1x4x4x32xbf16>
    %7 = vector.shape_cast %6 : vector<1x1x4x4x32xbf16> to vector<4x4x32xbf16>
    %8 = vector.shape_cast %7 : vector<4x4x32xbf16> to vector<16x32xbf16>
    %c0_12 = arith.constant 0 : index
    %c1_13 = arith.constant 1 : index
    %c0_14 = arith.constant 0 : index
    %c0_15 = arith.constant 0 : index
    %9 = vector.load %arg3[%c0_12, %c1_13, %c0_14, %c0_15] : memref<3x3x32x128xbf16, #tpu.memory_space<vmem>>, vector<1x1x32x128xbf16>
    %10 = vector.shape_cast %9 : vector<1x1x32x128xbf16> to vector<32x128xbf16>
    %cst_16 = arith.constant dense<0.000000e+00> : vector<16x128xf32>
    %11 = tpu.matmul %8, %10, %cst_16 {dimension_numbers = #tpu.dot_dimension_numbers<[1], [0], [0], [1], [0, 0, 1, 1], [], []>} : vector<16x32xbf16>, vector<32x128xbf16>, vector<16x128xf32> -> vector<16x128xf32>
    %12 = arith.addf %5, %11 : vector<16x128xf32>
    %c0_17 = arith.constant 0 : index
    %c0_18 = arith.constant 0 : index
    %c0_19 = arith.constant 0 : index
    %c2 = arith.constant 2 : index
    %c0_20 = arith.constant 0 : index
    %13 = vector.load %arg2[%c0_17, %c0_18, %c0_19, %c2, %c0_20] : memref<1x1x6x6x32xbf16, #tpu.memory_space<vmem>>, vector<1x1x4x4x32xbf16>
    %14 = vector.shape_cast %13 : vector<1x1x4x4x32xbf16> to vector<4x4x32xbf16>
    %15 = vector.shape_cast %14 : vector<4x4x32xbf16> to vector<16x32xbf16>
    %c0_21 = arith.constant 0 : index
    %c2_22 = arith.constant 2 : index
    %c0_23 = arith.constant 0 : index
    %c0_24 = arith.constant 0 : index
    %16 = vector.load %arg3[%c0_21, %c2_22, %c0_23, %c0_24] : memref<3x3x32x128xbf16, #tpu.memory_space<vmem>>, vector<1x1x32x128xbf16>
    %17 = vector.shape_cast %16 : vector<1x1x32x128xbf16> to vector<32x128xbf16>
    %cst_25 = arith.constant dense<0.000000e+00> : vector<16x128xf32>
    %18 = tpu.matmul %15, %17, %cst_25 {dimension_numbers = #tpu.dot_dimension_numbers<[1], [0], [0], [1], [0, 0, 1, 1], [], []>} : vector<16x32xbf16>, vector<32x128xbf16>, vector<16x128xf32> -> vector<16x128xf32>
    %19 = arith.addf %12, %18 : vector<16x128xf32>
    %c0_26 = arith.constant 0 : index
    %c0_27 = arith.constant 0 : index
    %c1_28 = arith.constant 1 : index
    %c0_29 = arith.constant 0 : index
    %c0_30 = arith.constant 0 : index
    %20 = vector.load %arg2[%c0_26, %c0_27, %c1_28, %c0_29, %c0_30] : memref<1x1x6x6x32xbf16, #tpu.memory_space<vmem>>, vector<1x1x4x4x32xbf16>
    %21 = vector.shape_cast %20 : vector<1x1x4x4x32xbf16> to vector<4x4x32xbf16>
    %22 = vector.shape_cast %21 : vector<4x4x32xbf16> to vector<16x32xbf16>
    %c1_31 = arith.constant 1 : index
    %c0_32 = arith.constant 0 : index
    %c0_33 = arith.constant 0 : index
    %c0_34 = arith.constant 0 : index
    %23 = vector.load %arg3[%c1_31, %c0_32, %c0_33, %c0_34] : memref<3x3x32x128xbf16, #tpu.memory_space<vmem>>, vector<1x1x32x128xbf16>
    %24 = vector.shape_cast %23 : vector<1x1x32x128xbf16> to vector<32x128xbf16>
    %cst_35 = arith.constant dense<0.000000e+00> : vector<16x128xf32>
    %25 = tpu.matmul %22, %24, %cst_35 {dimension_numbers = #tpu.dot_dimension_numbers<[1], [0], [0], [1], [0, 0, 1, 1], [], []>} : vector<16x32xbf16>, vector<32x128xbf16>, vector<16x128xf32> -> vector<16x128xf32>
    %26 = arith.addf %19, %25 : vector<16x128xf32>
    %c0_36 = arith.constant 0 : index
    %c0_37 = arith.constant 0 : index
    %c1_38 = arith.constant 1 : index
    %c1_39 = arith.constant 1 : index
    %c0_40 = arith.constant 0 : index
    %27 = vector.load %arg2[%c0_36, %c0_37, %c1_38, %c1_39, %c0_40] : memref<1x1x6x6x32xbf16, #tpu.memory_space<vmem>>, vector<1x1x4x4x32xbf16>
    %28 = vector.shape_cast %27 : vector<1x1x4x4x32xbf16> to vector<4x4x32xbf16>
    %29 = vector.shape_cast %28 : vector<4x4x32xbf16> to vector<16x32xbf16>
    %c1_41 = arith.constant 1 : index
    %c1_42 = arith.constant 1 : index
    %c0_43 = arith.constant 0 : index
    %c0_44 = arith.constant 0 : index
    %30 = vector.load %arg3[%c1_41, %c1_42, %c0_43, %c0_44] : memref<3x3x32x128xbf16, #tpu.memory_space<vmem>>, vector<1x1x32x128xbf16>
    %31 = vector.shape_cast %30 : vector<1x1x32x128xbf16> to vector<32x128xbf16>
    %cst_45 = arith.constant dense<0.000000e+00> : vector<16x128xf32>
    %32 = tpu.matmul %29, %31, %cst_45 {dimension_numbers = #tpu.dot_dimension_numbers<[1], [0], [0], [1], [0, 0, 1, 1], [], []>} : vector<16x32xbf16>, vector<32x128xbf16>, vector<16x128xf32> -> vector<16x128xf32>
    %33 = arith.addf %26, %32 : vector<16x128xf32>
    %c0_46 = arith.constant 0 : index
    %c0_47 = arith.constant 0 : index
    %c1_48 = arith.constant 1 : index
    %c2_49 = arith.constant 2 : index
    %c0_50 = arith.constant 0 : index
    %34 = vector.load %arg2[%c0_46, %c0_47, %c1_48, %c2_49, %c0_50] : memref<1x1x6x6x32xbf16, #tpu.memory_space<vmem>>, vector<1x1x4x4x32xbf16>
    %35 = vector.shape_cast %34 : vector<1x1x4x4x32xbf16> to vector<4x4x32xbf16>
    %36 = vector.shape_cast %35 : vector<4x4x32xbf16> to vector<16x32xbf16>
    %c1_51 = arith.constant 1 : index
    %c2_52 = arith.constant 2 : index
    %c0_53 = arith.constant 0 : index
    %c0_54 = arith.constant 0 : index
    %37 = vector.load %arg3[%c1_51, %c2_52, %c0_53, %c0_54] : memref<3x3x32x128xbf16, #tpu.memory_space<vmem>>, vector<1x1x32x128xbf16>
    %38 = vector.shape_cast %37 : vector<1x1x32x128xbf16> to vector<32x128xbf16>
    %cst_55 = arith.constant dense<0.000000e+00> : vector<16x128xf32>
    %39 = tpu.matmul %36, %38, %cst_55 {dimension_numbers = #tpu.dot_dimension_numbers<[1], [0], [0], [1], [0, 0, 1, 1], [], []>} : vector<16x32xbf16>, vector<32x128xbf16>, vector<16x128xf32> -> vector<16x128xf32>
    %40 = arith.addf %33, %39 : vector<16x128xf32>
    %c0_56 = arith.constant 0 : index
    %c0_57 = arith.constant 0 : index
    %c2_58 = arith.constant 2 : index
    %c0_59 = arith.constant 0 : index
    %c0_60 = arith.constant 0 : index
    %41 = vector.load %arg2[%c0_56, %c0_57, %c2_58, %c0_59, %c0_60] : memref<1x1x6x6x32xbf16, #tpu.memory_space<vmem>>, vector<1x1x4x4x32xbf16>
    %42 = vector.shape_cast %41 : vector<1x1x4x4x32xbf16> to vector<4x4x32xbf16>
    %43 = vector.shape_cast %42 : vector<4x4x32xbf16> to vector<16x32xbf16>
    %c2_61 = arith.constant 2 : index
    %c0_62 = arith.constant 0 : index
    %c0_63 = arith.constant 0 : index
    %c0_64 = arith.constant 0 : index
    %44 = vector.load %arg3[%c2_61, %c0_62, %c0_63, %c0_64] : memref<3x3x32x128xbf16, #tpu.memory_space<vmem>>, vector<1x1x32x128xbf16>
    %45 = vector.shape_cast %44 : vector<1x1x32x128xbf16> to vector<32x128xbf16>
    %cst_65 = arith.constant dense<0.000000e+00> : vector<16x128xf32>
    %46 = tpu.matmul %43, %45, %cst_65 {dimension_numbers = #tpu.dot_dimension_numbers<[1], [0], [0], [1], [0, 0, 1, 1], [], []>} : vector<16x32xbf16>, vector<32x128xbf16>, vector<16x128xf32> -> vector<16x128xf32>
    %47 = arith.addf %40, %46 : vector<16x128xf32>
    %c0_66 = arith.constant 0 : index
    %c0_67 = arith.constant 0 : index
    %c2_68 = arith.constant 2 : index
    %c1_69 = arith.constant 1 : index
    %c0_70 = arith.constant 0 : index
    %48 = vector.load %arg2[%c0_66, %c0_67, %c2_68, %c1_69, %c0_70] : memref<1x1x6x6x32xbf16, #tpu.memory_space<vmem>>, vector<1x1x4x4x32xbf16>
    %49 = vector.shape_cast %48 : vector<1x1x4x4x32xbf16> to vector<4x4x32xbf16>
    %50 = vector.shape_cast %49 : vector<4x4x32xbf16> to vector<16x32xbf16>
    %c2_71 = arith.constant 2 : index
    %c1_72 = arith.constant 1 : index
    %c0_73 = arith.constant 0 : index
    %c0_74 = arith.constant 0 : index
    %51 = vector.load %arg3[%c2_71, %c1_72, %c0_73, %c0_74] : memref<3x3x32x128xbf16, #tpu.memory_space<vmem>>, vector<1x1x32x128xbf16>
    %52 = vector.shape_cast %51 : vector<1x1x32x128xbf16> to vector<32x128xbf16>
    %cst_75 = arith.constant dense<0.000000e+00> : vector<16x128xf32>
    %53 = tpu.matmul %50, %52, %cst_75 {dimension_numbers = #tpu.dot_dimension_numbers<[1], [0], [0], [1], [0, 0, 1, 1], [], []>} : vector<16x32xbf16>, vector<32x128xbf16>, vector<16x128xf32> -> vector<16x128xf32>
    %54 = arith.addf %47, %53 : vector<16x128xf32>
    %c0_76 = arith.constant 0 : index
    %c0_77 = arith.constant 0 : index
    %c2_78 = arith.constant 2 : index
    %c2_79 = arith.constant 2 : index
    %c0_80 = arith.constant 0 : index
    %55 = vector.load %arg2[%c0_76, %c0_77, %c2_78, %c2_79, %c0_80] : memref<1x1x6x6x32xbf16, #tpu.memory_space<vmem>>, vector<1x1x4x4x32xbf16>
    %56 = vector.shape_cast %55 : vector<1x1x4x4x32xbf16> to vector<4x4x32xbf16>
    %57 = vector.shape_cast %56 : vector<4x4x32xbf16> to vector<16x32xbf16>
    %c2_81 = arith.constant 2 : index
    %c2_82 = arith.constant 2 : index
    %c0_83 = arith.constant 0 : index
    %c0_84 = arith.constant 0 : index
    %58 = vector.load %arg3[%c2_81, %c2_82, %c0_83, %c0_84] : memref<3x3x32x128xbf16, #tpu.memory_space<vmem>>, vector<1x1x32x128xbf16>
    %59 = vector.shape_cast %58 : vector<1x1x32x128xbf16> to vector<32x128xbf16>
    %cst_85 = arith.constant dense<0.000000e+00> : vector<16x128xf32>
    %60 = tpu.matmul %57, %59, %cst_85 {dimension_numbers = #tpu.dot_dimension_numbers<[1], [0], [0], [1], [0, 0, 1, 1], [], []>} : vector<16x32xbf16>, vector<32x128xbf16>, vector<16x128xf32> -> vector<16x128xf32>
    %61 = arith.addf %54, %60 : vector<16x128xf32>
    %62 = arith.truncf %61 : vector<16x128xf32> to vector<16x128xbf16>
    %63 = vector.shape_cast %62 : vector<16x128xbf16> to vector<1x16x128xbf16>
    %c0_86 = arith.constant 0 : index
    %c0_87 = arith.constant 0 : index
    %c0_88 = arith.constant 0 : index
    %64 = vector.load %arg4[%c0_86, %c0_87, %c0_88] : memref<1x16x128xbf16, #tpu.memory_space<vmem>>, vector<1x16x128xbf16>
    tpu.vector_store %arg4[%c0_86, %c0_87, %c0_88], %63 {strides = array<i32>} : memref<1x16x128xbf16, #tpu.memory_space<vmem>>, vector<1x16x128xbf16>,
    return
  }
  func.func @transform_0(%arg0: i32, %arg1: i32) -> (i32, i32, i32, i32, i32) {
    %c0_i32 = arith.constant 0 : i32
    %c0_i32_0 = arith.constant 0 : i32
    %c0_i32_1 = arith.constant 0 : i32
    %c0_i32_2 = arith.constant 0 : i32
    return %arg0, %arg1, %c0_i32, %c0_i32_0, %c0_i32_1 : i32, i32, i32, i32, i32
  }
  func.func @transform_1(%arg0: i32, %arg1: i32) -> (i32, i32, i32, i32) {
    %c0_i32 = arith.constant 0 : i32
    %c0_i32_0 = arith.constant 0 : i32
    %c0_i32_1 = arith.constant 0 : i32
    %c0_i32_2 = arith.constant 0 : i32
    %c0_i32_3 = arith.constant 0 : i32
    return %c0_i32, %c0_i32_0, %c0_i32_1, %c0_i32_2 : i32, i32, i32, i32
  }
  func.func @transform_2(%arg0: i32, %arg1: i32) -> (i32, i32, i32) {
    %c0_i32 = arith.constant 0 : i32
    %c0_i32_0 = arith.constant 0 : i32
    return %arg0, %arg1, %c0_i32 : i32, i32, i32
  }
}

</mosaic_0001>

<bundles_post_ra>
// kernel: sparse_rcnn_forward.7
= control target key start
LH: loop header
LB: loop body
LE: loop exit
PB: predicated region body
PF: predicated region fallthrough
CT: control target
= control target key end

     0   :  { %s515_s12 = smov 0   ;;  %s517_s13 = smov 0   ;;  %s554_s0 = inlined_call_operand.vmem [shape: f32[8,4], index: 0, kind: input, shape index: {}]   ;;  %s555_s1 = inlined_call_operand.vmem [shape: f32[2,4,256], index: 1, kind: input, shape index: {}]   ;;  %s556_s2 = inlined_call_operand.vmem [shape: bf16[2,8,256], index: 2, kind: input, shape index: {}]   ;;  %s557_s3 = inlined_call_operand.vmem [shape: bf16[2,8,256], index: 3, kind: output, shape index: {}]  }
   0x1   :  { %s519_s14 = smov 0  }
   0x2 LB: > { %s25_s15 = sadd.s32 1, %s489_s13  ;;  %p431_p0 = scmp.ge.s32.totalorder %s493_s14, 1  ;;  %s493_s14 = sphi %s519_s14, %s13_s14   ;;  %s489_s13 = sphi %s517_s13, %s559_s13   ;;  %s485_s12 = sphi %s515_s12, %s558_s12  }
   0x3   : > { %p27_p1 = scmp.ge.s32.totalorder %s25_s15, 2  ;;  %p176_p2 = scmp.lt.s32.totalorder %s493_s14, 3 }
   0x5   : > { %s561_s15 = smov (%p27_p1, %s25_s15), 0  ;;  %p177_p3 = pnand %p431_p0, %p176_p2 }
   0x6   : > { %p221_p4 = scmp.lt.s32.totalorder (!%p177_p3), %s485_s12, 1 }
   0x7   : > { %180 = sbr.rel (%p177_p3) target bundleno = 156 (0x9c), region = 32 }
   0xc   : > { %s563_s12 = smov (!%p221_p4, %s485_s12), 1  ;;  %vm254_vm0 = vcmask 1043456   ;;  %v244_v1 = vld [vmem:[%s554_s0] sm:$0xff]  ;;  %vm250_vm1 = vcmask 31744  }
   0xd   : > { %s444_s16 = sshll.u32 %s563_s12, 3 }
   0xe   : > { %s225_s19 = scalar_lea.vmem %s555_s1, %s444_s16  ;;  %s234_s24 = scalar_lea.vmem %s556_s2, %s444_s16 }
   0xf   : > { %v245_v0 = vld [vmem:[%s225_s19] sm:$0xff]  ;;  %s243_s27 = scalar_lea.vmem %s557_s3, %s444_s16 }
  0x10   : > { %247 = vst [vmem:[#allocation1] ss:$2 sm:$0xff] %v245_v0  ;;  %v299_v4 = vld [vmem:[%s234_s24] sm:$0xff] }
  0x11   : > { %v300_v5 = vunpack.c.l.bf16 %v299_v4  ;;  %v301_v6 = vunpack.c.h.bf16 %v299_v4 }
  0x17   : > { %v248_v2 = vld.sshfl [vmem:[#allocation1] sm:$0xff pattern:$0x75316420]  ;;  %v249_v3 = vld.sshfl [vmem:[#allocation1 + $0x8] sm:$0xff pattern:$0x75316420] }
  0x18   : > { %438 = vmatpush.msk.msra.mxu0 %vm254_vm0, %v248_v2  ;;  %440 = vmatpush.msk.msra.mxu1 %vm254_vm0, %v249_v3 }
  0x19   : > { %439 = vmatmul.msk.f32.vlgmr.msra.gmra.mxu0 %vm250_vm1, %v244_v1  ;;  %441 = vmatmul.msk.f32.vlgmr.msra.gmra.mxu1 %vm250_vm1, %v244_v1 }
  0x96   : > { %v276_v7 = vpop.f32.mrf.mxu0  ;;  %v296_v8 = vpop.f32.mrf.mxu1 }
  0x97   : > { %v302_v9 = vadd.f32 %v300_v5, %v276_v7  ;;  %v303_v10 = vadd.f32 %v301_v6, %v296_v8 }
  0x99   : > { %v304_v11 = vpack.c.bf16 %v303_v10, %v302_v9 }
  0x9b   : > { %305 = vst [vmem:[%s243_s27] sm:$0xff] %v304_v11 }
  0x9c PF: > { %s13_s14 = sadd.s32 1, %s493_s14   ;;  %s558_s12 = smov %s489_s13 }
  0x9d   : > { %p10_p5 = scmp.ge.s32.totalorder %s13_s14, 4   ;;  %s559_s13 = smov %s561_s15 }
  0x9f   :  { %12 = sbr.rel (!%p10_p5) target bundleno = 2 (0x2), region = 68 }

// kernel: sparse_rcnn_forward.8
= control target key start
LH: loop header
LB: loop body
LE: loop exit
PB: predicated region body
PF: predicated region fallthrough
CT: control target
= control target key end

     0   :  { %s606_s12 = smov 0   ;;  %s608_s13 = smov 0   ;;  %s661_s0 = inlined_call_operand.vmem [shape: f32[16,8], index: 0, kind: input, shape index: {}]   ;;  %s662_s1 = inlined_call_operand.vmem [shape: f32[2,8,512], index: 1, kind: input, shape index: {}]   ;;  %s663_s2 = inlined_call_operand.vmem [shape: bf16[2,16,512], index: 2, kind: input, shape index: {}]   ;;  %s664_s3 = inlined_call_operand.vmem [shape: bf16[2,16,512], index: 3, kind: output, shape index: {}]  }
   0x1   :  { %s610_s14 = smov 0  }
   0x2 LB: > { %s25_s15 = sadd.s32 1, %s580_s13  ;;  %p518_p0 = scmp.ge.s32.totalorder %s584_s14, 1  ;;  %s584_s14 = sphi %s610_s14, %s13_s14   ;;  %s580_s13 = sphi %s608_s13, %s666_s13   ;;  %s576_s12 = sphi %s606_s12, %s665_s12  }
   0x3   : > { %p27_p1 = scmp.ge.s32.totalorder %s25_s15, 2  ;;  %p180_p2 = scmp.lt.s32.totalorder %s584_s14, 3 }
   0x5   : > { %s668_s15 = smov (%p27_p1, %s25_s15), 0  ;;  %p181_p3 = pnand %p518_p0, %p180_p2 }
   0x6   : > { %p230_p4 = scmp.lt.s32.totalorder (!%p181_p3), %s576_s12, 1 }
   0x7   : > { %184 = sbr.rel (%p181_p3) target bundleno = 162 (0xa2), region = 32 }
   0xc   : > { %s670_s12 = smov (!%p230_p4, %s576_s12), 1  ;;  %v257_v0 = vld [vmem:[%s661_s0] sm:$0xff]  ;;  %vm263_vm0 = vcmask 64512   ;;  %v258_v5 = vld [vmem:[%s661_s0 + $0x8] sm:$0xff] }
   0xd   : > { %s624_s16 = sshll.u32 %s670_s12, 5 }
   0xe   : > { %s234_s19 = scalar_lea.vmem %s662_s1, %s624_s16  ;;  %s244_s26 = scalar_lea.vmem %s663_s2, %s624_s16 }
   0xf   : > { %v261_v1 = vld [vmem:[%s234_s19 + $0x10] sm:$0xff]  ;;  %v262_v2 = vld [vmem:[%s234_s19 + $0x18] sm:$0xff]  ;;  %v259_v3 = vld [vmem:[%s234_s19] sm:$0xff]  ;;  %s255_s29 = scalar_lea.vmem %s664_s3, %s624_s16 }
  0x10   : > { %331 = vmatpush.msra.mxu2 %v261_v1  ;;  %354 = vmatpush.msra.mxu3 %v262_v2  ;;  %v260_v4 = vld [vmem:[%s234_s19 + $0x8] sm:$0xff]  ;;  %v362_v6 = vld [vmem:[%s244_s26] sm:$0xff]  ;;  %v364_v16 = vld [vmem:[%s244_s26 + $0x10] sm:$0xff] }
  0x11   : > { %529 = vmatmul.msk.f32.vlgmr.msra.gmra.mxu2 %vm263_vm0, %v257_v0  ;;  %531 = vmatmul.msk.f32.vlgmr.msra.gmra.mxu3 %vm263_vm0, %v257_v0  ;;  %v366_v7 = vunpack.c.l.bf16 %v362_v6  ;;  %v367_v8 = vunpack.c.h.bf16 %v362_v6  ;;  %v363_v9 = vld [vmem:[%s244_s26 + $0x8] sm:$0xff]  ;;  %v370_v22 = vunpack.c.l.bf16 %v364_v16  ;;  %v371_v23 = vunpack.c.h.bf16 %v364_v16  ;;  %v365_v24 = vld [vmem:[%s244_s26 + $0x18] sm:$0xff] }
  0x12   : > { %285 = vmatpush.msra.mxu0 %v259_v3  ;;  %308 = vmatpush.msra.mxu1 %v260_v4  ;;  %v368_v14 = vunpack.c.l.bf16 %v363_v9  ;;  %v369_v15 = vunpack.c.h.bf16 %v363_v9  ;;  %v372_v30 = vunpack.c.l.bf16 %v365_v24  ;;  %v373_v31 = vunpack.c.h.bf16 %v365_v24 }
  0x13   : > { %525 = vmatmul.msk.f32.vlgmr.msra.gmra.mxu0 %vm263_vm0, %v257_v0  ;;  %527 = vmatmul.msk.f32.vlgmr.msra.gmra.mxu1 %vm263_vm0, %v257_v0 }
  0x19   : > { %530 = vmatmul.msk.f32.gmra.mxu2 %vm263_vm0, %v258_v5  ;;  %532 = vmatmul.msk.f32.gmra.mxu3 %vm263_vm0, %v258_v5 }
  0x1b   : > { %526 = vmatmul.msk.f32.gmra.mxu0 %vm263_vm0, %v258_v5  ;;  %528 = vmatmul.msk.f32.gmra.mxu1 %vm263_vm0, %v258_v5 }
  0x90   : > { %v287_v10 = vpop.f32.mrf.mxu0  ;;  %v310_v11 = vpop.f32.mrf.mxu1 }
  0x91   : > { %v374_v12 = vadd.f32 %v366_v7, %v287_v10  ;;  %v375_v13 = vadd.f32 %v367_v8, %v310_v11 }
  0x93   : > { %v382_v17 = vpack.c.bf16 %v375_v13, %v374_v12 }
  0x94   : > { %v333_v18 = vpop.f32.mrf.mxu2  ;;  %v356_v19 = vpop.f32.mrf.mxu3 }
  0x95   : > { %386 = vst [vmem:[%s255_s29] sm:$0xff] %v382_v17  ;;  %v376_v20 = vadd.f32 %v368_v14, %v333_v18  ;;  %v377_v21 = vadd.f32 %v369_v15, %v356_v19 }
  0x97   : > { %v383_v25 = vpack.c.bf16 %v377_v21, %v376_v20 }
  0x98   : > { %v290_v26 = vpop.f32.mrf.mxu0  ;;  %v313_v27 = vpop.f32.mrf.mxu1 }
  0x99   : > { %387 = vst [vmem:[%s255_s29 + $0x8] sm:$0xff] %v383_v25  ;;  %v378_v28 = vadd.f32 %v370_v22, %v290_v26  ;;  %v379_v29 = vadd.f32 %v371_v23, %v313_v27 }
  0x9b   : > { %v384_v32 = vpack.c.bf16 %v379_v29, %v378_v28 }
  0x9c   : > { %v336_v33 = vpop.f32.mrf.mxu2  ;;  %v359_v34 = vpop.f32.mrf.mxu3 }
  0x9d   : > { %388 = vst [vmem:[%s255_s29 + $0x10] sm:$0xff] %v384_v32  ;;  %v380_v35 = vadd.f32 %v372_v30, %v336_v33  ;;  %v381_v36 = vadd.f32 %v373_v31, %v359_v34 }
  0x9f   : > { %v385_v37 = vpack.c.bf16 %v381_v36, %v380_v35 }
  0xa1   : > { %389 = vst [vmem:[%s255_s29 + $0x18] sm:$0xff] %v385_v37 }
  0xa2 PF: > { %s13_s14 = sadd.s32 1, %s584_s14   ;;  %s665_s12 = smov %s580_s13 }
  0xa3   : > { %p10_p5 = scmp.ge.s32.totalorder %s13_s14, 4   ;;  %s666_s13 = smov %s668_s15 }
  0xa5   :  { %12 = sbr.rel (!%p10_p5) target bundleno = 2 (0x2), region = 68 }

// kernel: sparse_rcnn_forward.9
= control target key start
LH: loop header
LB: loop body
LE: loop exit
PB: predicated region body
PF: predicated region fallthrough
CT: control target
= control target key end

     0   :  { %s781_s12 = smov 0   ;;  %s783_s13 = smov 0   ;;  %s899_s0 = inlined_call_operand.vmem [shape: f32[32,16], index: 0, kind: input, shape index: {}]   ;;  %s900_s1 = inlined_call_operand.vmem [shape: f32[2,16,1024], index: 1, kind: input, shape index: {}]   ;;  %s901_s2 = inlined_call_operand.vmem [shape: bf16[2,32,1024], index: 2, kind: input, shape index: {}]   ;;  %s902_s3 = inlined_call_operand.vmem [shape: bf16[2,32,1024], index: 3, kind: output, shape index: {}]  }
   0x1   :  { %s785_s14 = smov 0   ;;  %s787_s15 = smov 0  }
   0x2   :  { %s789_s16 = smov 0  }
   0x3 LB: > { %s22_s17 = sadd.s32 1, %s751_s14  ;;  %s25_s18 = sadd.s32 1, %s755_s15  ;;  %s759_s16 = sphi %s789_s16, %s13_s16   ;;  %s755_s15 = sphi %s787_s15, %s906_s15   ;;  %s751_s14 = sphi %s785_s14, %s905_s14   ;;  %s747_s13 = sphi %s783_s13, %s904_s13   ;;  %s743_s12 = sphi %s781_s12, %s903_s12  }
   0x4   : > { %p23_p0 = scmp.ge.s32.totalorder %s22_s17, 2  ;;  %p649_p1 = scmp.ge.s32.totalorder %s759_s16, 1 }
   0x5   : > { %p180_p2 = scmp.lt.s32.totalorder %s759_s16, 5 }
   0x6   : > { %s908_s17 = smov (%p23_p0, %s22_s17), 0  ;;  %s910_s18 = smov (!%p23_p0, %s25_s18), %s755_s15 }
   0x7   : > { %p181_p3 = pnand %p649_p1, %p180_p2  ;;  %p27_p4 = scmp.ge.s32.totalorder %s910_s18, 2 }
   0x8   : > { %p230_p5 = scmp.lt.s32.totalorder (!%p181_p3), %s747_s13, 1  ;;  %s650_s19 = sshll.u32 (!%p181_p3), %s743_s12, 1 }
   0x9   : > { %s912_s18 = smov (%p27_p4, %s910_s18), 0  ;;  %184 = sbr.rel (%p181_p3) target bundleno = 182 (0xb6), region = 32 }
   0xa   : > { %p225_p6 = scmp.lt.s32.totalorder (!%p181_p3), %s650_s19, 3 }
   0xe   : > { %s914_s13 = smov (!%p230_p5, %s747_s13), 1  ;;  %s916_s19 = smov (!%p225_p6, %s650_s19), 3  ;;  %vm275_vm0 = vcmask 130048  }
   0xf   : > { %s680_s20 = sshll.u32 %s914_s13, 7  ;;  %s656_s21 = sshll.u32 %s914_s13, 5 }
  0x10   : > { %s814_s24 = scalar_lea.vmem %s900_s1, %s680_s20  ;;  %s651_s25 = sshll.u32 %s916_s19, 3 }
  0x11   : > { %v269_v0 = vld [vmem:[%s814_s24 + $0x50] sm:$0xff]  ;;  %v270_v1 = vld [vmem:[%s814_s24 + $0x58] sm:$0xff]  ;;  %s822_s28 = scalar_lea.vmem %s899_s0, %s651_s25  ;;  %s824_s29 = sadd.s32 %s656_s21, %s651_s25  ;;  %v267_v7 = vld [vmem:[%s814_s24 + $0x40] sm:$0xff] }
  0x12   : > { %v261_v2 = vld [vmem:[%s814_s24 + $0x10] sm:$0xff]  ;;  %342 = vmatpush.msra.mxu2 %v269_v0  ;;  %365 = vmatpush.msra.mxu3 %v270_v1  ;;  %v262_v3 = vld [vmem:[%s814_s24 + $0x18] sm:$0xff]  ;;  %v257_v4 = vld [vmem:[%s822_s28] sm:$0xff]  ;;  %s657_s30 = sshll.u32 %s824_s29, 2 }
  0x13   : > { %v273_v5 = vld [vmem:[%s814_s24 + $0x70] sm:$0xff]  ;;  %v274_v6 = vld [vmem:[%s814_s24 + $0x78] sm:$0xff]  ;;  %v268_v8 = vld [vmem:[%s814_s24 + $0x48] sm:$0xff]  ;;  %296 = vmatpush.msra.mxu0 %v267_v7  ;;  %s861_s6 = scalar_lea.vmem %s901_s2, %s657_s30  ;;  %s868_s9 = scalar_lea.vmem %s902_s3, %s657_s30 }
  0x14   : > { %343 = vmatpush.msra.mxu2 %v261_v2  ;;  %366 = vmatpush.msra.mxu3 %v262_v3  ;;  %v265_v9 = vld [vmem:[%s814_s24 + $0x30] sm:$0xff]  ;;  %v259_v10 = vld [vmem:[%s814_s24] sm:$0xff]  ;;  %v260_v11 = vld [vmem:[%s814_s24 + $0x8] sm:$0xff] }
  0x15   : > { %666 = vmatmul.msk.f32.vlgmr.msra.gmra.mxu2 %vm275_vm0, %v257_v4  ;;  %668 = vmatmul.msk.f32.vlgmr.msra.gmra.mxu3 %vm275_vm0, %v257_v4  ;;  %v266_v12 = vld [vmem:[%s814_s24 + $0x38] sm:$0xff]  ;;  %v271_v13 = vld [vmem:[%s814_s24 + $0x60] sm:$0xff]  ;;  %v272_v14 = vld [vmem:[%s814_s24 + $0x68] sm:$0xff] }
  0x16   : > { %434 = vmatpush.msrb.mxu2 %v273_v5  ;;  %457 = vmatpush.msrb.mxu3 %v274_v6  ;;  %v258_v15 = vld [vmem:[%s822_s28 + $0x8] sm:$0xff]  ;;  %v263_v16 = vld [vmem:[%s814_s24 + $0x20] sm:$0xff]  ;;  %v468_v48 = vld [vmem:[%s861_s6 + $0x10] sm:$0xff] }
  0x17   : > { %319 = vmatpush.msra.mxu1 %v268_v8  ;;  %297 = vmatpush.msra.mxu0 %v259_v10  ;;  %v264_v17 = vld [vmem:[%s814_s24 + $0x28] sm:$0xff]  ;;  %v466_v18 = vld [vmem:[%s861_s6] sm:$0xff]  ;;  %v469_v50 = vld [vmem:[%s861_s6 + $0x18] sm:$0xff]  ;;  %v478_v52 = vunpack.c.l.bf16 %v468_v48  ;;  %v479_v53 = vunpack.c.h.bf16 %v468_v48 }
  0x18   : > { %435 = vmatpush.msrb.mxu2 %v265_v9  ;;  %458 = vmatpush.msrb.mxu3 %v266_v12  ;;  %v467_v19 = vld [vmem:[%s861_s6 + $0x8] sm:$0xff]  ;;  %v474_v20 = vunpack.c.l.bf16 %v466_v18  ;;  %v475_v21 = vunpack.c.h.bf16 %v466_v18  ;;  %v470_v32 = vld [vmem:[%s861_s6 + $0x20] sm:$0xff]  ;;  %v480_v54 = vunpack.c.l.bf16 %v469_v50  ;;  %v481_v55 = vunpack.c.h.bf16 %v469_v50  ;;  %v472_v0 = vld [vmem:[%s861_s6 + $0x30] sm:$0xff] }
  0x19   : > { %320 = vmatpush.msra.mxu1 %v260_v11  ;;  %662 = vmatmul.msk.f32.vlgmr.msra.gmra.mxu0 %vm275_vm0, %v257_v4  ;;  %v476_v22 = vunpack.c.l.bf16 %v467_v19  ;;  %v477_v23 = vunpack.c.h.bf16 %v467_v19  ;;  %v471_v34 = vld [vmem:[%s861_s6 + $0x28] sm:$0xff]  ;;  %v482_v36 = vunpack.c.l.bf16 %v470_v32  ;;  %v483_v37 = vunpack.c.h.bf16 %v470_v32  ;;  %v473_v2 = vld [vmem:[%s861_s6 + $0x38] sm:$0xff] }
  0x1a   : > { %664 = vmatmul.msk.f32.vlgmr.msra.gmra.mxu1 %vm275_vm0, %v257_v4  ;;  %388 = vmatpush.msrb.mxu0 %v271_v13  ;;  %v484_v38 = vunpack.c.l.bf16 %v471_v34  ;;  %v485_v39 = vunpack.c.h.bf16 %v471_v34  ;;  %v487_v5 = vunpack.c.h.bf16 %v472_v0  ;;  %v488_v6 = vunpack.c.l.bf16 %v473_v2 }
  0x1b   : > { %411 = vmatpush.msrb.mxu1 %v272_v14  ;;  %v489_v7 = vunpack.c.h.bf16 %v473_v2 }
  0x1c   : > { %389 = vmatpush.msrb.mxu0 %v263_v16 }
  0x1d   : > { %667 = vmatmul.msk.f32.gmra.mxu2 %vm275_vm0, %v258_v15  ;;  %669 = vmatmul.msk.f32.gmra.mxu3 %vm275_vm0, %v258_v15 }
  0x1e   : > { %412 = vmatpush.msrb.mxu1 %v264_v17 }
  0x21   : > { %663 = vmatmul.msk.f32.gmra.mxu0 %vm275_vm0, %v258_v15 }
  0x22   : > { %665 = vmatmul.msk.f32.gmra.mxu1 %vm275_vm0, %v258_v15 }
  0x25   : > { %674 = vmatmul.msk.f32.vlgmr.msrb.gmra.mxu2 %vm275_vm0, %v257_v4  ;;  %676 = vmatmul.msk.f32.vlgmr.msrb.gmra.mxu3 %vm275_vm0, %v257_v4 }
  0x29   : > { %670 = vmatmul.msk.f32.vlgmr.msrb.gmra.mxu0 %vm275_vm0, %v257_v4 }
  0x2a   : > { %672 = vmatmul.msk.f32.vlgmr.msrb.gmra.mxu1 %vm275_vm0, %v257_v4  ;;  %v486_v4 = vunpack.c.l.bf16 %v472_v0 }
  0x2d   : > { %675 = vmatmul.msk.f32.gmra.mxu2 %vm275_vm0, %v258_v15  ;;  %677 = vmatmul.msk.f32.gmra.mxu3 %vm275_vm0, %v258_v15 }
  0x31   : > { %671 = vmatmul.msk.f32.gmra.mxu0 %vm275_vm0, %v258_v15 }
  0x32   : > { %673 = vmatmul.msk.f32.gmra.mxu1 %vm275_vm0, %v258_v15 }
  0x96   : > { %v299_v24 = vpop.f32.mrf.mxu0 }
  0x97   : > { %v322_v25 = vpop.f32.mrf.mxu1  ;;  %v490_v26 = vadd.f32 %v474_v20, %v299_v24 }
  0x98   : > { %v491_v27 = vadd.f32 %v475_v21, %v322_v25  ;;  %v345_v28 = vpop.f32.mrf.mxu2  ;;  %v368_v29 = vpop.f32.mrf.mxu3 }
  0x99   : > { %v492_v30 = vadd.f32 %v476_v22, %v345_v28  ;;  %v493_v31 = vadd.f32 %v477_v23, %v368_v29 }
  0x9a   : > { %v506_v33 = vpack.c.bf16 %v491_v27, %v490_v26 }
  0x9b   : > { %v507_v35 = vpack.c.bf16 %v493_v31, %v492_v30 }
  0x9c   : > { %514 = vst [vmem:[%s868_s9] sm:$0xff] %v506_v33 }
  0x9d   : > { %515 = vst [vmem:[%s868_s9 + $0x8] sm:$0xff] %v507_v35 }
  0x9e   : > { %v302_v40 = vpop.f32.mrf.mxu0 }
  0x9f   : > { %v325_v41 = vpop.f32.mrf.mxu1  ;;  %v498_v42 = vadd.f32 %v482_v36, %v302_v40 }
  0xa0   : > { %v499_v43 = vadd.f32 %v483_v37, %v325_v41  ;;  %v348_v44 = vpop.f32.mrf.mxu2  ;;  %v371_v45 = vpop.f32.mrf.mxu3 }
  0xa1   : > { %v500_v46 = vadd.f32 %v484_v38, %v348_v44  ;;  %v501_v47 = vadd.f32 %v485_v39, %v371_v45 }
  0xa2   : > { %v510_v49 = vpack.c.bf16 %v499_v43, %v498_v42 }
  0xa3   : > { %v511_v51 = vpack.c.bf16 %v501_v47, %v500_v46 }
  0xa4   : > { %518 = vst [vmem:[%s868_s9 + $0x20] sm:$0xff] %v510_v49 }
  0xa5   : > { %519 = vst [vmem:[%s868_s9 + $0x28] sm:$0xff] %v511_v51 }
  0xa6   : > { %v391_v56 = vpop.f32.mrf.mxu0 }
  0xa7   : > { %v414_v57 = vpop.f32.mrf.mxu1  ;;  %v494_v58 = vadd.f32 %v478_v52, %v391_v56 }
  0xa8   : > { %v495_v59 = vadd.f32 %v479_v53, %v414_v57  ;;  %v437_v60 = vpop.f32.mrf.mxu2  ;;  %v460_v61 = vpop.f32.mrf.mxu3 }
  0xa9   : > { %v496_v62 = vadd.f32 %v480_v54, %v437_v60  ;;  %v497_v63 = vadd.f32 %v481_v55, %v460_v61 }
  0xaa   : > { %v508_v1 = vpack.c.bf16 %v495_v59, %v494_v58 }
  0xab   : > { %v509_v3 = vpack.c.bf16 %v497_v63, %v496_v62 }
  0xac   : > { %516 = vst [vmem:[%s868_s9 + $0x10] sm:$0xff] %v508_v1 }
  0xad   : > { %517 = vst [vmem:[%s868_s9 + $0x18] sm:$0xff] %v509_v3 }
  0xae   : > { %v394_v8 = vpop.f32.mrf.mxu0 }
  0xaf   : > { %v417_v9 = vpop.f32.mrf.mxu1  ;;  %v502_v10 = vadd.f32 %v486_v4, %v394_v8 }
  0xb0   : > { %v503_v11 = vadd.f32 %v487_v5, %v417_v9  ;;  %v440_v12 = vpop.f32.mrf.mxu2  ;;  %v463_v13 = vpop.f32.mrf.mxu3 }
  0xb1   : > { %v504_v14 = vadd.f32 %v488_v6, %v440_v12  ;;  %v505_v15 = vadd.f32 %v489_v7, %v463_v13 }
  0xb2   : > { %v512_v16 = vpack.c.bf16 %v503_v11, %v502_v10 }
  0xb3   : > { %v513_v17 = vpack.c.bf16 %v505_v15, %v504_v14 }
  0xb4   : > { %520 = vst [vmem:[%s868_s9 + $0x30] sm:$0xff] %v512_v16 }
  0xb5   : > { %521 = vst [vmem:[%s868_s9 + $0x38] sm:$0xff] %v513_v17 }
  0xb6 PF: > { %s13_s16 = sadd.s32 1, %s759_s16   ;;  %s903_s12 = smov %s751_s14 }
  0xb7   : > { %p10_p7 = scmp.ge.s32.totalorder %s13_s16, 6   ;;  %s904_s13 = smov %s755_s15 }
  0xb8   : > { %s905_s14 = smov %s908_s17  ;;  %s906_s15 = smov %s912_s18 }
  0xb9   :  { %12 = sbr.rel (!%p10_p7) target bundleno = 3 (0x3), region = 68 }

// kernel: sparse_rcnn_forward.10
= control target key start
LH: loop header
LB: loop body
LE: loop exit
PB: predicated region body
PF: predicated region fallthrough
CT: control target
= control target key end

     0   :  { %7 = vsyncpa [#allocation3], 0  ;;  %s6696_s0 = inlined_call_operand.vmem [shape: bf16[2,4,10,34,32], index: 0, kind: input, shape index: {}]   ;;  %s6697_s1 = inlined_call_operand.vmem [shape: bf16[3,3,32,128], index: 1, kind: input, shape index: {}]   ;;  %s6698_s2 = inlined_call_operand.hbm [shape: bf16[2,1024,128], index: 2, kind: output, shape index: {}]  }
   0x1   :  { %9 = vsyncpa [#allocation3 + $0x1], 0  ;;  %s5198_s9 = smov 0   ;;  %s5200_s10 = smov 0  }
   0x2   :  { %s5202_s11 = smov 0   ;;  %s5204_s12 = smov 0  }
   0x3   :  { %s5206_s13 = smov 0   ;;  %s5208_s14 = smov 0  }
   0x4   :  { %s5210_s15 = smov 0   ;;  %s5212_s16 = smov 0  }
   0x5 LB: > { %s4157_s17 = sadd.s32 4294967295, %s5179_s16   ;;  %s4158_s18 = sadd.s32 4294967294, %s5179_s16   ;;  %s5179_s16 = sphi %s5212_s16, %s15_s16   ;;  %s5175_s15 = sphi %s5210_s15, %s6717_s15   ;;  %s5171_s14 = sphi %s5208_s14, %s6716_s14   ;;  %s5167_s13 = sphi %s5206_s13, %s6715_s13   ;;  %s5163_s12 = sphi %s5204_s12, %s6714_s12   ;;  %s5159_s11 = sphi %s5202_s11, %s6713_s11   ;;  %s5155_s10 = sphi %s5200_s10, %s6712_s10   ;;  %s5151_s9 = sphi %s5198_s9, %s6711_s9  }
   0x6   : > { %s24_s19 = sadd.s32 1, %s5171_s14  ;;  %s27_s20 = sadd.s32 1, %s5175_s15 }
   0x7   : > { %p25_p0 = scmp.ge.s32.totalorder %s24_s19, 4  ;;  %p95_p1 = scmp.ne.s32.totalorder %s5159_s11, %s5155_s10 }
   0x8   : > { %p96_p2 = scmp.eq.s32.totalorder %s4157_s17, 7  ;;  %p101_p5 = scmp.ne.s32.totalorder %s5155_s10, %s5151_s9 }
   0x9   : > { %s6719_s19 = smov (%p25_p0, %s24_s19), 0  ;;  %s6721_s20 = smov (!%p25_p0, %s27_s20), %s5175_s15 }
   0xa   : > { %s81_s21 = ssub.s32 %s5171_s14, %s6719_s19  ;;  %p5249_p3 = por %p96_p2, %p95_p1 }
   0xb   : > { %p29_p4 = scmp.ge.s32.totalorder %s6721_s20, 2  ;;  %p102_p6 = scmp.eq.s32.totalorder %s4158_s18, 7 }
   0xc   : > { %p4161_p7 = scmp.ge.s32.totalorder %s5179_s16, 1  ;;  %p135_p9 = scmp.lt.s32.totalorder %s5179_s16, 9 }
   0xd   : > { %s6723_s20 = smov (%p29_p4, %s6721_s20), 0  ;;  %p5258_p8 = por %p102_p6, %p101_p5 }
   0xe   : > { %s80_s24 = ssub.s32 %s5175_s15, %s6723_s20  ;;  %s85_s25 = sadd.s32 1, %s5159_s11 }
   0xf   : > { %s82_s26 = sor.u32 %s81_s21, %s80_s24  ;;  %p136_p10 = pnand %p4161_p7, %p135_p9 }
  0x10   : > { %p83_p11 = scmp.eq.s32.totalorder %s82_s26, 0 }
  0x11   : > { %139 = sbr.rel (%p136_p10) target bundleno = 770 (0x302), region = 28 }
  0x12   : > { %s5267_s27 = scalar_select %p83_p11, %s5159_s11, %s85_s25  }
  0x16   : > { %v4813_v0 = vld [vmem:[%s6697_s1 + $0x18] sm:$0xff]  ;;  %p161_p12 = scmp.lt.s32.totalorder %s5167_s13, 1  ;;  %p163_p13 = scmp.lt.s32.totalorder %s5163_s12, 3  ;;  %v4812_v1 = vld [vmem:[%s6697_s1 + $0x10] sm:$0xff]  ;;  %v4815_v2 = vld [vmem:[%s6697_s1 + $0x28] sm:$0xff]  ;;  %vm636_vm2 = vcmask 261120  }
  0x17   : > { %4955 = vmatpush.bf16.msra.mxu1 %v4813_v0  ;;  %4956 = vmatpush.bf16.msra.mxu2 %v4813_v0  ;;  %v4833_v3 = vld [vmem:[%s6697_s1 + $0x38] sm:$0xff]  ;;  %v4811_v4 = vld [vmem:[%s6697_s1 + $0x8] sm:$0xff]  ;;  %vm216_vm0 = vsmask.f32 3328  ;;  %vm217_vm1 = vsmask.f32 7440 }
  0x18   : > { %s162_s4 = scalar_select %p161_p12, %s5167_s13, 1  ;;  %4957 = vmatpush.bf16.msra.mxu3 %v4813_v0  ;;  %691 = vmatpush.bf16.msra.mxu0 %v4813_v0  ;;  %v4835_v5 = vld [vmem:[%s6697_s1 + $0x48] sm:$0xff]  ;;  %vm5318_vm3 = vmor %vm216_vm0, %vm217_vm1  ;;  %vm1027_vm4 = vcmask 1042432   ;;  %vm1028_vm5 = vcmask 1046532  }
  0x19   : > { %s164_s5 = scalar_select %p163_p13, %s5163_s12, 3  ;;  %vm5554_vm6 = vmor %vm1027_vm4, %vm1028_vm5 }
  0x1a   : > { %s4962_s6 = smul.u32 200, %s162_s4  ;;  %s4790_s4 = sshll.u32 %s5167_s13, 7 }
  0x1b   : > { %s4961_s17 = smul.u32 50, %s164_s5  ;;  %4958 = vmatpush.bf16.msra.mxu1 %v4812_v1  ;;  %4959 = vmatpush.bf16.msra.mxu2 %v4812_v1 }
  0x1c   : > { %4960 = vmatpush.bf16.msra.mxu3 %v4812_v1  ;;  %692 = vmatpush.bf16.msra.mxu0 %v4812_v1 }
  0x1d   : > { %s167_s29 = sadd.s32 %s4962_s6, %s4961_s17 }
  0x1e   : > { %s4163_s30 = sshll.u32 %s167_s29, 2  ;;  %s158_s29 = sand.u32 1, %s5155_s10  }
  0x1f   : > { %1253 = vmatpush.bf16.msrb.mxu2 %v4815_v2  ;;  %s5294_s5 = scalar_lea.vmem %s6696_s0, %s4163_s30  ;;  %920 = vmatpush.bf16.msrb.mxu1 %v4811_v4  ;;  %s4162_s30 = sshll.u32 %s158_s29, 7 }
  0x20   : > { %1552 = vmatpush.bf16.msrb.mxu3 %v4833_v3  ;;  %2178 = vmatpush.bf16.msrb.mxu0 %v4835_v5  ;;  %v180_v6 = vld [vmem:[%s5294_s5 + $0x28] sm:$0xf]  ;;  %v5298_v7 = vld [vmem:[%s5294_s5 + $0x2c] sm:$0xf]  ;;  %v5301_v8 = vld [vmem:[%s5294_s5 + $0x30] sm:$0xf] }
  0x21   : > { %v308_v9 = vshrl.u32 %v180_v6, 16  ;;  %v311_v10 = vshll.u32 %v180_v6, 16  ;;  %v317_v11 = vshll.u32 %v5298_v7, 16  ;;  %v321_v12 = vshrl.u32 %v5298_v7, 16  ;;  %v188_v13 = vld [vmem:[%s5294_s5 + $0x50] sm:$0xf] }
  0x22   : > { %v327_v14 = vshll.u32 %v5301_v8, 16  ;;  %v189_v15 = vld [vmem:[%s5294_s5 + $0x54] sm:$0xf]  ;;  %v5309_v16 = vld [vmem:[%s5294_s5 + $0x58] sm:$0xf]  ;;  %v396_v17 = vshrl.u32 %v188_v13, 16 }
  0x23   : > { %v310_v18 = vrot.slane %v308_v9, 4  ;;  %v313_v19 = vrot.slane %v311_v10, 5  ;;  %v319_v20 = vrot.slane %v317_v11, 5  ;;  %v323_v21 = vrot.slane %v321_v12, 4  ;;  %v196_v22 = vld [vmem:[%s5294_s5 + $0x78] sm:$0xf] }
  0x24   : > { %v5312_v23 = vrot.slane %v327_v14, 5  ;;  %v398_v24 = vrot.slane %v396_v17, 4  ;;  %v399_v25 = vshll.u32 %v188_v13, 16  ;;  %v405_v26 = vshll.u32 %v189_v15, 16  ;;  %v197_v31 = vld [vmem:[%s5294_s5 + $0x7c] sm:$0xf] }
  0x25   : > { %v314_v27 = vor.u32 %v313_v19, %v310_v18  ;;  %v324_v28 = vor.u32 %v323_v21, %v319_v20  ;;  %v409_v29 = vshrl.u32 %v189_v15, 16  ;;  %v415_v30 = vshll.u32 %v5309_v16, 16  ;;  %v5325_v42 = vld [vmem:[%s5294_s5 + $0x80] sm:$0xf]  ;;  %v5337_v62 = vld [vmem:[%s5294_s5 + $0x4] sm:$0xf] }
  0x26   : > { %v401_v33 = vrot.slane %v399_v25, 5  ;;  %v407_v34 = vrot.slane %v405_v26, 5  ;;  %v484_v35 = vshrl.u32 %v196_v22, 16  ;;  %v487_v36 = vshll.u32 %v196_v22, 16  ;;  %v172_v50 = vld [vmem:[%s5294_s5] sm:$0xf] }
  0x27   : > { %v315_v37 = vrot.slane %v314_v27, 4  ;;  %v325_v38 = vrot.slane %v324_v28, 4  ;;  %v411_v39 = vrot.slane %v409_v29, 4  ;;  %v5322_v40 = vrot.slane %v415_v30, 5  ;;  %v5345_v4 = vld [vmem:[%s5294_s5 + $0x8] sm:$0xf] }
  0x28   : > { %v402_v41 = vor.u32 %v401_v33, %v398_v24  ;;  %v486_v43 = vrot.slane %v484_v35, 4  ;;  %v489_v44 = vrot.slane %v487_v36, 5  ;;  %v493_v45 = vshll.u32 %v197_v31, 16  ;;  %v5351_v11 = vld [vmem:[%s5294_s5 + $0x34] sm:$0xf]  ;;  %s6418_s3 = scalar_lea.vmem [#allocation2], %s4162_s30 }
  0x29   : > { %v320_v46 = vsel %vm5318_vm3, %v315_v37, %v319_v20  ;;  %v330_v47 = vsel %vm5318_vm3, %v325_v38, %v5312_v23  ;;  %v412_v48 = vor.u32 %v411_v39, %v407_v34  ;;  %v497_v49 = vshrl.u32 %v197_v31, 16  ;;  %v5357_v20 = vld [vmem:[%s5294_s5 + $0x38] sm:$0x1]  ;;  %v191_v31 = vld [vmem:[%s5294_s5 + $0x5c] sm:$0xf]  ;;  %s4069_s17 = sshll.u32 %s6418_s3, 4  ;;  %s4070_s17 = int_to_ptr.vmem [resolvable:$true] %s4069_s17 }
  0x2a   : > { %v584_v51 = vunpack.c.l.b16 %v320_v46  ;;  %v585_v52 = vunpack.c.l.b16 %v330_v47  ;;  %v403_v53 = vrot.slane %v402_v41, 4  ;;  %v490_v54 = vor.u32 %v489_v44, %v486_v43  ;;  %s4055_s21 = scalar_lea.sflag [#allocation3], %s158_s29  ;;  %s5105_s30 = scalar_lea.hbm %s6698_s2, 1024 }
  0x2b   : > { %v413_v55 = vrot.slane %v412_v48, 4  ;;  %v495_v56 = vrot.slane %v493_v45, 5  ;;  %v499_v57 = vrot.slane %v497_v49, 4  ;;  %v503_v58 = vshll.u32 %v5325_v42, 16  ;;  %v212_v48 = vld [vmem:[%s5294_s5 + $0x60] sm:$0x1] }
  0x2c   : > { %v612_v59 = vpack.c.b16 %v585_v52, %v584_v51  ;;  %v408_v60 = vsel %vm5318_vm3, %v403_v53, %v407_v34  ;;  %v491_v61 = vrot.slane %v490_v54, 4  ;;  %v220_v63 = vshrl.u32 %v172_v50, 16 }
  0x2d   : > { %v418_v0 = vsel %vm5318_vm3, %v413_v55, %v5322_v40  ;;  %v592_v1 = vunpack.c.l.b16 %v408_v60  ;;  %v500_v2 = vor.u32 %v499_v57, %v495_v56  ;;  %v5342_v3 = vrot.slane %v503_v58, 5  ;;  %v199_v57 = vld [vmem:[%s5294_s5 + $0x84] sm:$0xf] }
  0x2e   : > { %4180 = vmatmul.msk.bf16.vlgmr.msra.gmra.mxu1 %vm636_vm2, %v612_v59  ;;  %v593_v5 = vunpack.c.l.b16 %v418_v0  ;;  %v496_v6 = vsel %vm5318_vm3, %v491_v61, %v495_v56  ;;  %v222_v9 = vrot.slane %v220_v63, 4  ;;  %v223_v10 = vshll.u32 %v172_v50, 16 }
  0x2f   : > { %v501_v12 = vrot.slane %v500_v2, 4  ;;  %v600_v13 = vunpack.c.l.b16 %v496_v6  ;;  %v229_v14 = vshll.u32 %v5337_v62, 16  ;;  %v233_v15 = vshrl.u32 %v5337_v62, 16 }
  0x30   : > { %v616_v17 = vpack.c.b16 %v593_v5, %v592_v1  ;;  %v225_v18 = vrot.slane %v223_v10, 5  ;;  %v239_v19 = vshll.u32 %v5345_v4, 16  ;;  %v331_v21 = vshrl.u32 %v5301_v8, 16  ;;  %v214_v1 = vld [vmem:[%s5294_s5 + $0x88] sm:$0x1] }
  0x31   : > { %v506_v22 = vsel %vm5318_vm3, %v501_v12, %v5342_v3  ;;  %v231_v24 = vrot.slane %v229_v14, 5  ;;  %v235_v25 = vrot.slane %v233_v15, 4  ;;  %v337_v26 = vshll.u32 %v5351_v11, 16  ;;  %v5394_v15 = vld [vmem:[%s5294_s5 + $0xc] sm:$0xf] }
  0x32   : > { %4184 = vmatmul.msk.bf16.vlgmr.msra.gmra.mxu2 %vm636_vm2, %v616_v17  ;;  %v601_v27 = vunpack.c.l.b16 %v506_v22  ;;  %v226_v28 = vor.u32 %v225_v18, %v222_v9  ;;  %v5365_v29 = vrot.slane %v239_v19, 5  ;;  %v333_v30 = vrot.slane %v331_v21, 4  ;;  %v5397_v22 = vld [vmem:[%s5294_s5 + $0x10] sm:$0x1] }
  0x33   : > { %v236_v33 = vor.u32 %v235_v25, %v231_v24  ;;  %v339_v34 = vrot.slane %v337_v26, 5  ;;  %v341_v8 = vshrl.u32 %v5351_v11, 16  ;;  %v347_v35 = vshll.u32 %v5357_v20, 16 }
  0x34   : > { %v620_v36 = vpack.c.b16 %v601_v27, %v600_v13  ;;  %v227_v37 = vrot.slane %v226_v28, 4  ;;  %v334_v38 = vor.u32 %v333_v30, %v5312_v23  ;;  %v419_v39 = vshrl.u32 %v5309_v16, 16  ;;  %v184_v27 = vld [vmem:[%s5294_s5 + $0x3c] sm:$0xf] }
  0x35   : > { %v237_v41 = vrot.slane %v236_v33, 4  ;;  %v343_v43 = vrot.slane %v341_v8, 4  ;;  %v349_v44 = vrot.slane %v347_v35, 5  ;;  %v425_v45 = vshll.u32 %v191_v31, 16 }
  0x36   : > { %4188 = vmatmul.msk.bf16.vlgmr.msra.gmra.mxu3 %vm636_vm2, %v620_v36  ;;  %v232_v46 = vsel %vm5318_vm3, %v227_v37, %v231_v24  ;;  %v335_v47 = vrot.slane %v334_v38, 4  ;;  %v421_v49 = vrot.slane %v419_v39, 4  ;;  %v429_v50 = vshrl.u32 %v191_v31, 16  ;;  %v4810_v38 = vld [vmem:[%s6697_s1] sm:$0xff] }
  0x37   : > { %v242_v23 = vsel %vm5318_vm3, %v237_v41, %v5365_v29  ;;  %v576_v16 = vunpack.c.l.b16 %v232_v46  ;;  %v344_v51 = vor.u32 %v343_v43, %v339_v34  ;;  %v427_v52 = vrot.slane %v425_v45, 5  ;;  %v4834_v46 = vld [vmem:[%s6697_s1 + $0x40] sm:$0xff]  ;;  %921 = vmatpush.bf16.msrb.mxu1 %v4810_v38  ;;  %v5452_v38 = vld [vmem:[%s5294_s5 + $0x94] sm:$0xf] }
  0x38   : > { %v577_v53 = vunpack.c.l.b16 %v242_v23  ;;  %v340_v54 = vsel %vm5318_vm3, %v335_v47, %v339_v34  ;;  %v422_v55 = vor.u32 %v421_v49, %v5322_v40  ;;  %v431_v56 = vrot.slane %v429_v50, 4  ;;  %v4814_v40 = vld [vmem:[%s6697_s1 + $0x20] sm:$0xff]  ;;  %2179 = vmatpush.bf16.msrb.mxu0 %v4834_v46 }
  0x39   : > { %v345_v58 = vrot.slane %v344_v51, 4  ;;  %v586_v59 = vunpack.c.l.b16 %v340_v54  ;;  %v435_v60 = vshll.u32 %v212_v48, 16  ;;  %v507_v2 = vshrl.u32 %v5325_v42, 16  ;;  %1254 = vmatpush.bf16.msrb.mxu2 %v4814_v40  ;;  %v5405_v34 = vld [vmem:[%s5294_s5 + $0x40] sm:$0xf] }
  0x3a   : > { %v608_v61 = vpack.c.b16 %v577_v53, %v576_v16  ;;  %v423_v63 = vrot.slane %v422_v55, 4  ;;  %v432_v0 = vor.u32 %v431_v56, %v427_v52  ;;  %v513_v9 = vshll.u32 %v199_v57, 16  ;;  %v192_v23 = vld [vmem:[%s5294_s5 + $0x64] sm:$0xf]  ;;  %v5440_v40 = vld [vmem:[%s5294_s5 + $0x6c] sm:$0xf] }
  0x3b   : > { %v350_v5 = vsel %vm5318_vm3, %v345_v58, %v349_v44  ;;  %v437_v6 = vrot.slane %v435_v60, 5  ;;  %v517_v10 = vshrl.u32 %v199_v57, 16  ;;  %v509_v42 = vrot.slane %v507_v2, 4  ;;  %v5418_v44 = vld [vmem:[%s5294_s5 + $0x44] sm:$0xf] }
  0x3c   : > { %4176 = vmatmul.msk.bf16.vlgmr.msra.gmra.mxu0 %vm636_vm2, %v608_v61  ;;  %v587_v12 = vunpack.c.l.b16 %v350_v5  ;;  %v428_v13 = vsel %vm5318_vm3, %v423_v63, %v427_v52  ;;  %v433_v14 = vrot.slane %v432_v0, 4  ;;  %v515_v18 = vrot.slane %v513_v9, 5  ;;  %v193_v61 = vld [vmem:[%s5294_s5 + $0x68] sm:$0xf]  ;;  %v200_v5 = vld [vmem:[%s5294_s5 + $0x8c] sm:$0xf] }
  0x3d   : > { %v594_v17 = vunpack.c.l.b16 %v428_v13  ;;  %v519_v19 = vrot.slane %v517_v10, 4  ;;  %v523_v21 = vshll.u32 %v214_v1, 16  ;;  %v510_v26 = vor.u32 %v509_v42, %v5342_v3  ;;  %v4832_v3 = vld [vmem:[%s6697_s1 + $0x30] sm:$0xff] }
  0x3e   : > { %v613_v24 = vpack.c.b16 %v587_v12, %v586_v59  ;;  %v438_v25 = vsel %vm5318_vm3, %v433_v14, %v437_v6  ;;  %v243_v33 = vshrl.u32 %v5345_v4, 16  ;;  %v249_v35 = vshll.u32 %v5394_v15, 16  ;;  %1553 = vmatpush.bf16.msrb.mxu3 %v4832_v3 }
  0x3f   : > { %v595_v28 = vunpack.c.l.b16 %v438_v25  ;;  %v520_v30 = vor.u32 %v519_v19, %v515_v18  ;;  %v525_v31 = vrot.slane %v523_v21, 5  ;;  %v511_v8 = vrot.slane %v510_v26, 4 }
  0x40   : > { %4181 = vmatmul.msk.bf16.gmra.mxu1 %vm636_vm2, %v613_v24  ;;  %v253_v36 = vshrl.u32 %v5394_v15, 16  ;;  %v259_v37 = vshll.u32 %v5397_v22, 16  ;;  %v245_v43 = vrot.slane %v243_v33, 4  ;;  %v352_v45 = vshrl.u32 %v184_v27, 16 }
  0x41   : > { %v617_v39 = vpack.c.b16 %v595_v28, %v594_v17  ;;  %v521_v41 = vrot.slane %v520_v30, 4  ;;  %v516_v47 = vsel %vm5318_vm3, %v511_v8, %v515_v18  ;;  %v251_v48 = vrot.slane %v249_v35, 5  ;;  %v201_v35 = vld [vmem:[%s5294_s5 + $0x90] sm:$0xf] }
  0x42   : > { %v255_v49 = vrot.slane %v253_v36, 4  ;;  %v261_v50 = vrot.slane %v259_v37, 5  ;;  %v602_v51 = vunpack.c.l.b16 %v516_v47  ;;  %v246_v52 = vor.u32 %v245_v43, %v5365_v29 }
  0x43   : > { %4185 = vmatmul.msk.bf16.gmra.mxu2 %vm636_vm2, %v617_v39  ;;  %v526_v16 = vsel %vm5318_vm3, %v521_v41, %v525_v31  ;;  %v354_v53 = vrot.slane %v352_v45, 4  ;;  %v355_v56 = vshll.u32 %v184_v27, 16  ;;  %v361_v57 = vshll.u32 %v5405_v34, 16  ;;  %v176_v41 = vld [vmem:[%s5294_s5 + $0x14] sm:$0xf] }
  0x44   : > { %v603_v54 = vunpack.c.l.b16 %v526_v16  ;;  %v256_v55 = vor.u32 %v255_v49, %v251_v48  ;;  %v247_v58 = vrot.slane %v246_v52, 4  ;;  %v365_v59 = vshrl.u32 %v5405_v34, 16 }
  0x45   : > { %v371_v60 = vshll.u32 %v5418_v44, 16  ;;  %v440_v63 = vshrl.u32 %v192_v23, 16  ;;  %v357_v2 = vrot.slane %v355_v56, 5  ;;  %v363_v29 = vrot.slane %v361_v57, 5 }
  0x46   : > { %v621_v0 = vpack.c.b16 %v603_v54, %v602_v51  ;;  %v257_v1 = vrot.slane %v256_v55, 4  ;;  %v252_v6 = vsel %vm5318_vm3, %v247_v58, %v251_v48  ;;  %v367_v9 = vrot.slane %v365_v59, 4  ;;  %v5463_v58 = vld [vmem:[%s5294_s5 + $0x18] sm:$0xf]  ;;  %v5466_v59 = vld [vmem:[%s5294_s5 + $0x1c] sm:$0xf] }
  0x47   : > { %v5437_v10 = vrot.slane %v371_v60, 5  ;;  %v442_v12 = vrot.slane %v440_v63, 4  ;;  %v578_v14 = vunpack.c.l.b16 %v252_v6  ;;  %v358_v42 = vor.u32 %v357_v2, %v354_v53 }
  0x48   : > { %4189 = vmatmul.msk.bf16.gmra.mxu3 %vm636_vm2, %v621_v0  ;;  %v262_v13 = vsel %vm5318_vm3, %v257_v1, %v261_v50  ;;  %v443_v17 = vshll.u32 %v192_v23, 16  ;;  %v368_v19 = vor.u32 %v367_v9, %v363_v29  ;;  %v449_v21 = vshll.u32 %v193_v61, 16 }
  0x49   : > { %v579_v18 = vunpack.c.l.b16 %v262_v13  ;;  %v453_v24 = vshrl.u32 %v193_v61, 16  ;;  %v359_v25 = vrot.slane %v358_v42, 4  ;;  %v459_v27 = vshll.u32 %v5440_v40, 16 }
  0x4a   : > { %v445_v26 = vrot.slane %v443_v17, 5  ;;  %v528_v28 = vshrl.u32 %v200_v5, 16  ;;  %v369_v31 = vrot.slane %v368_v19, 4  ;;  %v451_v33 = vrot.slane %v449_v21, 5 }
  0x4b   : > { %v609_v30 = vpack.c.b16 %v579_v18, %v578_v14  ;;  %v455_v8 = vrot.slane %v453_v24, 4  ;;  %v364_v36 = vsel %vm5318_vm3, %v359_v25, %v363_v29  ;;  %v5449_v3 = vrot.slane %v459_v27, 5  ;;  %v5478_v18 = vld [vmem:[%s5294_s5 + $0x48] sm:$0xf]  ;;  %v5486_v27 = vld [vmem:[%s5294_s5 + $0x4c] sm:$0x1] }
  0x4c   : > { %v446_v37 = vor.u32 %v445_v26, %v442_v12  ;;  %v530_v39 = vrot.slane %v528_v28, 4  ;;  %v374_v43 = vsel %vm5318_vm3, %v369_v31, %v5437_v10  ;;  %v588_v45 = vunpack.c.l.b16 %v364_v36 }
  0x4d   : > { %4177 = vmatmul.msk.bf16.gmra.mxu0 %vm636_vm2, %v609_v30  ;;  %v456_v46 = vor.u32 %v455_v8, %v451_v33  ;;  %v531_v47 = vshll.u32 %v200_v5, 16  ;;  %v589_v48 = vunpack.c.l.b16 %v374_v43  ;;  %v537_v50 = vshll.u32 %v201_v35, 16 }
  0x4e   : > { %v447_v49 = vrot.slane %v446_v37, 4  ;;  %v541_v23 = vshrl.u32 %v201_v35, 16  ;;  %v547_v52 = vshll.u32 %v5452_v38, 16  ;;  %v264_v53 = vshrl.u32 %v176_v41, 16 }
  0x4f   : > { %v457_v16 = vrot.slane %v456_v46, 4  ;;  %v533_v51 = vrot.slane %v531_v47, 5  ;;  %v614_v54 = vpack.c.b16 %v589_v48, %v588_v45  ;;  %v539_v56 = vrot.slane %v537_v50, 5  ;;  %v195_v45 = vld [vmem:[%s5294_s5 + $0x70] sm:$0xf] }
  0x50   : > { %v452_v55 = vsel %vm5318_vm3, %v447_v49, %v451_v33  ;;  %v543_v57 = vrot.slane %v541_v23, 4  ;;  %v5471_v0 = vrot.slane %v547_v52, 5  ;;  %v266_v29 = vrot.slane %v264_v53, 4  ;;  %v213_v52 = vld [vmem:[%s5294_s5 + $0x74] sm:$0x1] }
  0x51   : > { %v462_v60 = vsel %vm5318_vm3, %v457_v16, %v5449_v3  ;;  %v596_v61 = vunpack.c.l.b16 %v452_v55  ;;  %v534_v63 = vor.u32 %v533_v51, %v530_v39  ;;  %4182 = vmatmul.msk.bf16.gmra.mxu1 %vm636_vm2, %v614_v54  ;;  %v267_v5 = vshll.u32 %v176_v41, 16 }
  0x52   : > { %v597_v1 = vunpack.c.l.b16 %v462_v60  ;;  %v544_v2 = vor.u32 %v543_v57, %v539_v56  ;;  %v273_v9 = vshll.u32 %v5463_v58, 16  ;;  %v277_v12 = vshrl.u32 %v5463_v58, 16 }
  0x53   : > { %v535_v6 = vrot.slane %v534_v63, 4  ;;  %v283_v13 = vshll.u32 %v5466_v59, 16  ;;  %v269_v17 = vrot.slane %v267_v5, 5  ;;  %v375_v19 = vshrl.u32 %v5418_v44, 16  ;;  %v203_v63 = vld [vmem:[%s5294_s5 + $0x98] sm:$0xf] }
  0x54   : > { %v618_v14 = vpack.c.b16 %v597_v1, %v596_v61  ;;  %v545_v42 = vrot.slane %v544_v2, 4  ;;  %v275_v24 = vrot.slane %v273_v9, 5  ;;  %v279_v25 = vrot.slane %v277_v12, 4  ;;  %v4855_v5 = vld [vmem:[%s6697_s1 + $0x68] sm:$0xff] }
  0x55   : > { %v540_v21 = vsel %vm5318_vm3, %v535_v6, %v539_v56  ;;  %v5483_v26 = vrot.slane %v283_v13, 5  ;;  %v270_v31 = vor.u32 %v269_v17, %v266_v29  ;;  %v377_v33 = vrot.slane %v375_v19, 4  ;;  %2863 = vmatpush.bf16.msra.mxu2 %v4855_v5 }
  0x56   : > { %4186 = vmatmul.msk.bf16.gmra.mxu2 %vm636_vm2, %v618_v14  ;;  %v550_v28 = vsel %vm5318_vm3, %v545_v42, %v5471_v0  ;;  %v604_v30 = vunpack.c.l.b16 %v540_v21  ;;  %v280_v35 = vor.u32 %v279_v25, %v275_v24  ;;  %v381_v36 = vshll.u32 %v5478_v18, 16  ;;  %v215_v14 = vld [vmem:[%s5294_s5 + $0x9c] sm:$0x1] }
  0x57   : > { %v605_v8 = vunpack.c.l.b16 %v550_v28  ;;  %v385_v37 = vshrl.u32 %v5478_v18, 16  ;;  %v271_v39 = vrot.slane %v270_v31, 4  ;;  %v378_v41 = vor.u32 %v377_v33, %v5437_v10  ;;  %v5523_v31 = vld [vmem:[%s5294_s5 + $0x24] sm:$0x1] }
  0x58   : > { %v391_v43 = vshll.u32 %v5486_v27, 16  ;;  %v463_v46 = vshrl.u32 %v5440_v40, 16  ;;  %v281_v48 = vrot.slane %v280_v35, 4  ;;  %v383_v49 = vrot.slane %v381_v36, 5  ;;  %v4837_v36 = vld [vmem:[%s6697_s1 + $0x58] sm:$0xff] }
  0x59   : > { %v622_v47 = vpack.c.b16 %v605_v8, %v604_v30  ;;  %v387_v50 = vrot.slane %v385_v37, 4  ;;  %v276_v23 = vsel %vm5318_vm3, %v271_v39, %v275_v24  ;;  %v379_v16 = vrot.slane %v378_v41, 4  ;;  %v5520_v30 = vld [vmem:[%s5294_s5 + $0x20] sm:$0xf]  ;;  %v4859_v37 = vld [vmem:[%s6697_s1 + $0x88] sm:$0xff]  ;;  %2564 = vmatpush.bf16.msra.mxu1 %v4837_v36 }
  0x5a   : > { %v393_v51 = vrot.slane %v391_v43, 5  ;;  %v465_v53 = vrot.slane %v463_v46, 4  ;;  %v286_v10 = vsel %vm5318_vm3, %v281_v48, %v5483_v26  ;;  %v580_v54 = vunpack.c.l.b16 %v276_v23  ;;  %3875 = vmatpush.bf16.msra.mxu0 %v4859_v37 }
  0x5b   : > { %4190 = vmatmul.msk.bf16.gmra.mxu3 %vm636_vm2, %v622_v47  ;;  %v388_v40 = vor.u32 %v387_v50, %v383_v49  ;;  %v469_v55 = vshll.u32 %v195_v45, 16  ;;  %v581_v56 = vunpack.c.l.b16 %v286_v10  ;;  %v384_v57 = vsel %vm5318_vm3, %v379_v16, %v383_v49 }
  0x5c   : > { %v466_v60 = vor.u32 %v465_v53, %v5449_v3  ;;  %v473_v61 = vshrl.u32 %v195_v45, 16  ;;  %v479_v29 = vshll.u32 %v213_v52, 16  ;;  %v590_v9 = vunpack.c.l.b16 %v384_v57 }
  0x5d   : > { %v389_v1 = vrot.slane %v388_v40, 4  ;;  %v471_v2 = vrot.slane %v469_v55, 5  ;;  %v610_v6 = vpack.c.b16 %v581_v56, %v580_v54  ;;  %v551_v17 = vshrl.u32 %v5452_v38, 16  ;;  %v4857_v38 = vld [vmem:[%s6697_s1 + $0x78] sm:$0xff]  ;;  %v1003_v54 = vld [vmem:[%s5294_s5] sm:$0xe] }
  0x5e   : > { %v467_v12 = vrot.slane %v466_v60, 4  ;;  %v475_v13 = vrot.slane %v473_v61, 4  ;;  %v481_v3 = vrot.slane %v479_v29, 5  ;;  %v557_v19 = vshll.u32 %v203_v63, 16  ;;  %3489 = vmatpush.bf16.msra.mxu3 %v4857_v38 }
  0x5f   : > { %v394_v42 = vsel %vm5318_vm3, %v389_v1, %v393_v51  ;;  %4178 = vmatmul.msk.bf16.gmra.mxu0 %vm636_vm2, %v610_v6  ;;  %v561_v28 = vshrl.u32 %v203_v63, 16  ;;  %v553_v33 = vrot.slane %v551_v17, 4  ;;  %v567_v35 = vshll.u32 %v215_v14, 16  ;;  %v4440_v63 = vld [vmem:[%s5294_s5 + $0x14] sm:$0xf] }
  0x60   : > { %v591_v21 = vunpack.c.l.b16 %v394_v42  ;;  %v472_v24 = vsel %vm5318_vm3, %v467_v12, %v471_v2  ;;  %v476_v25 = vor.u32 %v475_v13, %v471_v2  ;;  %v559_v8 = vrot.slane %v557_v19, 5  ;;  %v4441_v1 = vld [vmem:[%s5294_s5 + $0x18] sm:$0xf] }
  0x61   : > { %v598_v43 = vunpack.c.l.b16 %v472_v24  ;;  %v563_v45 = vrot.slane %v561_v28, 4  ;;  %v554_v46 = vor.u32 %v553_v33, %v5471_v0  ;;  %v569_v47 = vrot.slane %v567_v35, 5  ;;  %v4442_v28 = vld [vmem:[%s5294_s5 + $0x1c] sm:$0xf] }
  0x62   : > { %v615_v39 = vpack.c.b16 %v591_v21, %v590_v9  ;;  %v477_v41 = vrot.slane %v476_v25, 4  ;;  %v287_v48 = vshrl.u32 %v5466_v59, 16  ;;  %v293_v49 = vshll.u32 %v5520_v30, 16 }
  0x63   : > { %v564_v23 = vor.u32 %v563_v45, %v559_v8  ;;  %v297_v16 = vshrl.u32 %v5520_v30, 16  ;;  %v303_v51 = vshll.u32 %v5523_v31, 16  ;;  %v555_v52 = vrot.slane %v554_v46, 4  ;;  %v4794_v46 = vld [vmem:[%s5294_s5] sm:$0xff] }
  0x64   : > { %4183 = vmatmul.msk.bf16.gmra.mxu1 %vm636_vm2, %v615_v39  ;;  %v482_v50 = vsel %vm5318_vm3, %v477_v41, %v481_v3  ;;  %v289_v53 = vrot.slane %v287_v48, 4  ;;  %v295_v10 = vrot.slane %v293_v49, 5  ;;  %v4280_v6 = vrot.slane %v1003_v54, 9 }
  0x65   : > { %v599_v0 = vunpack.c.l.b16 %v482_v50  ;;  %v565_v40 = vrot.slane %v564_v23, 4  ;;  %v299_v55 = vrot.slane %v297_v16, 4  ;;  %v305_v56 = vrot.slane %v303_v51, 5  ;;  %v4443_v51 = vld [vmem:[%s5294_s5 + $0x20] sm:$0xf] }
  0x66   : > { %v560_v60 = vsel %vm5318_vm3, %v555_v52, %v559_v8  ;;  %v290_v61 = vor.u32 %v289_v53, %v5483_v26  ;;  %v1032_v13 = vrot.slane %v5337_v62, 5  ;;  %v1035_v14 = vrot.slane %v5345_v4, 5 }
  0x67   : > { %v619_v57 = vpack.c.b16 %v599_v0, %v598_v43  ;;  %v570_v2 = vsel %vm5318_vm3, %v565_v40, %v569_v47  ;;  %v606_v29 = vunpack.c.l.b16 %v560_v60  ;;  %v300_v5 = vor.u32 %v299_v55, %v295_v10 }
  0x68   : > { %v607_v9 = vunpack.c.l.b16 %v570_v2  ;;  %v291_v12 = vrot.slane %v290_v61, 4  ;;  %v1708_v3 = vshrl.u32 %v4440_v63, 16  ;;  %v1711_v17 = vshll.u32 %v4440_v63, 16  ;;  %v4816_v61 = vld [vmem:[%s5294_s5 + $0x14] sm:$0xff] }
  0x69   : > { %4187 = vmatmul.msk.bf16.gmra.mxu2 %vm636_vm2, %v619_v57  ;;  %v301_v42 = vrot.slane %v300_v5, 4  ;;  %v1717_v19 = vshll.u32 %v4441_v1, 16  ;;  %v1034_v25 = vrot.slane %v1032_v13, 4  ;;  %v1033_v35 = vsel %vm5554_vm6, %v4280_v6, %v1032_v13  ;;  %v4444_v6 = vld [vmem:[%s5294_s5 + $0x24] sm:$0x1] }
  0x6a   : > { %v623_v21 = vpack.c.b16 %v607_v9, %v606_v29  ;;  %v296_v24 = vsel %vm5318_vm3, %v291_v12, %v295_v10  ;;  %v1710_v33 = vrot.slane %v1708_v3, 4  ;;  %v1713_v38 = vrot.slane %v1711_v17, 5  ;;  %v4795_v3 = vld [vmem:[%s5294_s5 + $0x8] sm:$0xff] }
  0x6b   : > { %v306_v62 = vsel %vm5318_vm3, %v301_v42, %v305_v56  ;;  %v582_v4 = vunpack.c.l.b16 %v296_v24  ;;  %v1036_v36 = vsel %vm5554_vm6, %v1034_v25, %v1035_v14  ;;  %v1719_v37 = vrot.slane %v1717_v19, 5  ;;  %v4445_v24 = vld [vmem:[%s5294_s5 + $0x28] sm:$0xf] }
  0x6c   : > { %4191 = vmatmul.msk.bf16.gmra.mxu3 %vm636_vm2, %v623_v21  ;;  %v583_v8 = vunpack.c.l.b16 %v306_v62  ;;  %v1721_v39 = vshrl.u32 %v4441_v1, 16  ;;  %v1727_v41 = vshll.u32 %v4442_v28, 16  ;;  %v1714_v45 = vor.u32 %v1713_v38, %v1710_v33  ;;  %v4446_v62 = vld [vmem:[%s5294_s5 + $0x2c] sm:$0xf]  ;;  %v1004_v33 = vld [vmem:[%s5294_s5 + $0x14] sm:$0xe] }
  0x6d   : > { %v1139_v48 = vunpack.c.l.b16 %v1033_v35  ;;  %v1140_v49 = vunpack.c.l.b16 %v1036_v36  ;;  %v1038_v53 = vrot.slane %v5394_v15, 5  ;;  %v1731_v10 = vshrl.u32 %v4442_v28, 16 }
  0x6e   : > { %v611_v43 = vpack.c.b16 %v583_v8, %v582_v4  ;;  %v1723_v47 = vrot.slane %v1721_v39, 4  ;;  %v1715_v50 = vrot.slane %v1714_v45, 4  ;;  %v1729_v16 = vrot.slane %v1727_v41, 5 }
  0x6f   : > { %v1171_v52 = vpack.c.b16 %v1140_v49, %v1139_v48  ;;  %v1737_v55 = vshll.u32 %v4443_v51, 16  ;;  %v1741_v56 = vshrl.u32 %v4443_v51, 16  ;;  %v1037_v57 = vrot.slane %v1035_v14, 4  ;;  %v4447_v51 = vld [vmem:[%s5294_s5 + $0x30] sm:$0xf] }
  0x70   : > { %4179 = vmatmul.msk.bf16.gmra.mxu0 %vm636_vm2, %v611_v43  ;;  %v1724_v23 = vor.u32 %v1723_v47, %v1719_v37  ;;  %v1720_v54 = vsel %vm5318_vm3, %v1715_v50, %v1719_v37  ;;  %v1041_v60 = vrot.slane %v5397_v22, 5  ;;  %v1040_v15 = vrot.slane %v1038_v53, 4 }
  0x71   : > { %v2064_v63 = vunpack.c.l.b16 %v1720_v54  ;;  %v1733_v2 = vrot.slane %v1731_v10, 4  ;;  %v1739_v29 = vrot.slane %v1737_v55, 5  ;;  %v1743_v5 = vrot.slane %v1741_v56, 4 }
  0x72   : > { %v1725_v0 = vrot.slane %v1724_v23, 4  ;;  %v1039_v12 = vsel %vm5554_vm6, %v1037_v57, %v1038_v53  ;;  %v1042_v22 = vsel %vm5554_vm6, %v1040_v15, %v1041_v60  ;;  %v1747_v42 = vshll.u32 %v4444_v6, 16 }
  0x73   : > { %v1734_v13 = vor.u32 %v1733_v2, %v1729_v16  ;;  %v1744_v14 = vor.u32 %v1743_v5, %v1739_v29  ;;  %v1141_v17 = vunpack.c.l.b16 %v1039_v12  ;;  %v1142_v19 = vunpack.c.l.b16 %v1042_v22 }
  0x74   : > { %4264 = vmatmul.msk.bf16.vlgmr.msrb.gmra.mxu1 %vm636_vm2, %v4794_v46  ;;  %v1730_v40 = vsel %vm5318_vm3, %v1725_v0, %v1729_v16  ;;  %v1749_v28 = vrot.slane %v1747_v42, 5  ;;  %v1045_v8 = vrot.slane %v5463_v58, 5  ;;  %v1752_v35 = vshrl.u32 %v4445_v24, 16  ;;  %v4817_v58 = vld [vmem:[%s5294_s5 + $0x1c] sm:$0xff] }
  0x75   : > { %v2065_v1 = vunpack.c.l.b16 %v1730_v40  ;;  %v1735_v21 = vrot.slane %v1734_v13, 4  ;;  %v1745_v25 = vrot.slane %v1744_v14, 4  ;;  %v1172_v4 = vpack.c.b16 %v1142_v19, %v1141_v17  ;;  %v4796_v40 = vld [vmem:[%s5294_s5 + $0x14] sm:$0xff]  ;;  %v4818_v13 = vld [vmem:[%s5294_s5 + $0x28] sm:$0xff] }
  0x76   : > { %v1755_v36 = vshll.u32 %v4445_v24, 16  ;;  %v1761_v37 = vshll.u32 %v4446_v62, 16  ;;  %v1765_v39 = vshrl.u32 %v4446_v62, 16  ;;  %v4281_v43 = vrot.slane %v1004_v33, 9  ;;  %v4449_v24 = vld [vmem:[%s5294_s5 + $0x38] sm:$0x1] }
  0x77   : > { %v2096_v9 = vpack.c.b16 %v2065_v1, %v2064_v63  ;;  %v1740_v38 = vsel %vm5318_vm3, %v1735_v21, %v1739_v29  ;;  %v1750_v41 = vsel %vm5318_vm3, %v1745_v25, %v1749_v28  ;;  %v1047_v46 = vrot.slane %v1045_v8, 4  ;;  %v4448_v63 = vld [vmem:[%s5294_s5 + $0x34] sm:$0xf] }
  0x78   : > { %v2066_v45 = vunpack.c.l.b16 %v1740_v38  ;;  %v1048_v47 = vrot.slane %v5466_v59, 5  ;;  %v1754_v48 = vrot.slane %v1752_v35, 4  ;;  %v2067_v49 = vunpack.c.l.b16 %v1750_v41  ;;  %v4451_v41 = vld [vmem:[%s5294_s5 + $0x40] sm:$0xf] }
  0x79   : > { %4300 = vmatmul.msk.bf16.vlgmr.msrb.gmra.mxu2 %vm636_vm2, %v1171_v52  ;;  %v1757_v50 = vrot.slane %v1755_v36, 5  ;;  %v1763_v23 = vrot.slane %v1761_v37, 5  ;;  %v1767_v16 = vrot.slane %v1765_v39, 4  ;;  %v1046_v0 = vsel %vm5554_vm6, %v4281_v43, %v1045_v8  ;;  %v4797_v8 = vld [vmem:[%s5294_s5 + $0x1c] sm:$0xff] }
  0x7a   : > { %v1049_v52 = vsel %vm5554_vm6, %v1047_v46, %v1048_v47  ;;  %v2097_v59 = vpack.c.b16 %v2067_v49, %v2066_v45  ;;  %v1771_v54 = vshll.u32 %v4447_v51, 16  ;;  %v1143_v55 = vunpack.c.l.b16 %v1046_v0  ;;  %v4450_v39 = vld [vmem:[%s5294_s5 + $0x3c] sm:$0xf] }
  0x7b   : > { %v1758_v53 = vor.u32 %v1757_v50, %v1754_v48  ;;  %v1768_v10 = vor.u32 %v1767_v16, %v1763_v23  ;;  %v1144_v56 = vunpack.c.l.b16 %v1049_v52  ;;  %v1051_v29 = vrot.slane %v5520_v30, 5 }
  0x7c   : > { %4424 = vmatmul.msk.bf16.vlgmr.msrb.gmra.mxu3 %vm636_vm2, %v4816_v61  ;;  %v1773_v61 = vrot.slane %v1771_v54, 5  ;;  %v1775_v5 = vshrl.u32 %v4447_v51, 16  ;;  %v1781_v6 = vshll.u32 %v4448_v63, 16  ;;  %v1050_v14 = vrot.slane %v1048_v47, 4  ;;  %v4819_v51 = vld [vmem:[%s5294_s5 + $0x30] sm:$0xff] }
  0x7d   : > { %v1759_v57 = vrot.slane %v1758_v53, 4  ;;  %v1769_v60 = vrot.slane %v1768_v10, 4  ;;  %v1173_v1 = vpack.c.b16 %v1144_v56, %v1143_v55  ;;  %v1053_v42 = vrot.slane %v1051_v29, 4 }
  0x7e   : > { %v1777_v17 = vrot.slane %v1775_v5, 4  ;;  %v1783_v19 = vrot.slane %v1781_v6, 5  ;;  %v1052_v25 = vsel %vm5554_vm6, %v1050_v14, %v1051_v29  ;;  %v1791_v33 = vshll.u32 %v4449_v24, 16  ;;  %v4798_v29 = vld [vmem:[%s5294_s5 + $0x28] sm:$0xff] }
  0x7f   : > { %v1764_v15 = vsel %vm5318_vm3, %v1759_v57, %v1763_v23  ;;  %v1774_v2 = vsel %vm5318_vm3, %v1769_v60, %v1773_v61  ;;  %v1796_v46 = vshrl.u32 %v4450_v39, 16  ;;  %v1799_v47 = vshll.u32 %v4450_v39, 16  ;;  %v1005_v23 = vld [vmem:[%s5294_s5 + $0x28] sm:$0xe] }
  0x80   : > { %4492 = vmatmul.msk.bf16.vlgmr.msrb.gmra.mxu0 %vm636_vm2, %v2096_v9  ;;  %v1785_v9 = vshrl.u32 %v4448_v63, 16  ;;  %v2068_v12 = vunpack.c.l.b16 %v1764_v15  ;;  %v2069_v22 = vunpack.c.l.b16 %v1774_v2  ;;  %v1778_v62 = vor.u32 %v1777_v17, %v1773_v61 }
  0x81   : > { %v1793_v37 = vrot.slane %v1791_v33, 5  ;;  %v1805_v48 = vshll.u32 %v4451_v41, 16  ;;  %v1058_v49 = vrot.slane %v5298_v7, 5  ;;  %v1809_v50 = vshrl.u32 %v4451_v41, 16  ;;  %v4452_v7 = vld [vmem:[%s5294_s5 + $0x44] sm:$0xf] }
  0x82   : > { %v1787_v21 = vrot.slane %v1785_v9, 4  ;;  %v2098_v30 = vpack.c.b16 %v2069_v22, %v2068_v12  ;;  %v1779_v38 = vrot.slane %v1778_v62, 4  ;;  %v1798_v52 = vrot.slane %v1796_v46, 4  ;;  %v4454_v41 = vld [vmem:[%s5294_s5 + $0x4c] sm:$0x1] }
  0x83   : > { %v1807_v53 = vrot.slane %v1805_v48, 5  ;;  %v4282_v10 = vrot.slane %v1005_v23, 9  ;;  %v1060_v54 = vrot.slane %v1058_v49, 4  ;;  %v1811_v56 = vrot.slane %v1809_v50, 4 }
  0x84   : > { %4265 = vmatmul.msk.bf16.gmra.mxu1 %vm636_vm2, %v4795_v3  ;;  %v1054_v3 = vrot.slane %v5523_v31, 5  ;;  %v1145_v31 = vunpack.c.l.b16 %v1052_v25  ;;  %v1784_v45 = vsel %vm5318_vm3, %v1779_v38, %v1783_v19  ;;  %v1815_v2 = vshll.u32 %v4452_v7, 16 }
  0x85   : > { %v2070_v16 = vunpack.c.l.b16 %v1784_v45  ;;  %v1059_v63 = vsel %vm5554_vm6, %v4282_v10, %v1058_v49  ;;  %v1812_v15 = vor.u32 %v1811_v56, %v1807_v53  ;;  %v4799_v49 = vld [vmem:[%s5294_s5 + $0x30] sm:$0xff] }
  0x86   : > { %v1055_v28 = vsel %vm5554_vm6, %v1053_v42, %v1054_v3  ;;  %v1147_v5 = vunpack.c.l.b16 %v1059_v63  ;;  %v1817_v22 = vrot.slane %v1815_v2, 5  ;;  %v1819_v42 = vshrl.u32 %v4452_v7, 16  ;;  %v4456_v10 = vld [vmem:[%s5294_s5 + $0x54] sm:$0xf]  ;;  %v1006_v2 = vld [vmem:[%s5294_s5 + $0x3c] sm:$0xe] }
  0x87   : > { %v1146_v35 = vunpack.c.l.b16 %v1055_v28  ;;  %v1813_v12 = vrot.slane %v1812_v15, 4  ;;  %v1853_v15 = vshrl.u32 %v4456_v10, 16 }
  0x88   : > { %v1821_v28 = vrot.slane %v1819_v42, 4  ;;  %v4283_v42 = vrot.slane %v1006_v2, 9  ;;  %v4459_v2 = vld [vmem:[%s5294_s5 + $0x60] sm:$0x1] }
  0x89   : > { %4301 = vmatmul.msk.bf16.gmra.mxu2 %vm636_vm2, %v1172_v4  ;;  %v1788_v4 = vor.u32 %v1787_v21, %v1783_v19  ;;  %v1174_v43 = vpack.c.b16 %v1146_v35, %v1145_v31  ;;  %v1818_v24 = vsel %vm5318_vm3, %v1813_v12, %v1817_v22 }
  0x8b   : > { %v1789_v36 = vrot.slane %v1788_v4, 4  ;;  %v4820_v4 = vld [vmem:[%s5294_s5 + $0x3c] sm:$0xff] }
  0x8c   : > { %4425 = vmatmul.msk.bf16.gmra.mxu3 %vm636_vm2, %v4817_v58 }
  0x8d   : > { %v1794_v58 = vsel %vm5318_vm3, %v1789_v36, %v1793_v37  ;;  %v1067_v37 = vrot.slane %v5357_v20, 5  ;;  %v1835_v20 = vshll.u32 %v4454_v41, 16 }
  0x8e   : > { %v2071_v0 = vunpack.c.l.b16 %v1794_v58 }
  0x90   : > { %4493 = vmatmul.msk.bf16.gmra.mxu0 %vm636_vm2, %v2097_v59  ;;  %v1801_v59 = vrot.slane %v1799_v47, 5  ;;  %v2099_v60 = vpack.c.b16 %v2071_v0, %v2070_v16 }
  0x92   : > { %v1802_v61 = vor.u32 %v1801_v59, %v1798_v52  ;;  %v1837_v59 = vrot.slane %v1835_v20, 5 }
  0x94   : > { %4266 = vmatmul.msk.bf16.gmra.mxu1 %vm636_vm2, %v4796_v40  ;;  %v5036_v40 = vld [vmem:[%s5294_s5 + $0x30] sm:$0xf]  ;;  %v1803_v9 = vrot.slane %v1802_v61, 4 }
  0x95   : > { %v1061_v55 = vrot.slane %v5036_v40, 5 }
  0x96   : > { %v1808_v21 = vsel %vm5318_vm3, %v1803_v9, %v1807_v53  ;;  %v4455_v53 = vld [vmem:[%s5294_s5 + $0x50] sm:$0xf] }
  0x97   : > { %v2072_v33 = vunpack.c.l.b16 %v1808_v21  ;;  %v1063_v38 = vrot.slane %v1061_v55, 4  ;;  %v1840_v56 = vshrl.u32 %v4455_v53, 16  ;;  %v1843_v7 = vshll.u32 %v4455_v53, 16 }
  0x98   : > { %v1855_v21 = vrot.slane %v1853_v15, 4 }
  0x99   : > { %4302 = vmatmul.msk.bf16.gmra.mxu2 %vm636_vm2, %v1173_v1  ;;  %v1062_v1 = vsel %vm5554_vm6, %v1060_v54, %v1061_v55  ;;  %v1842_v9 = vrot.slane %v1840_v56, 4  ;;  %v1845_v12 = vrot.slane %v1843_v7, 5 }
  0x9a   : > { %v1148_v6 = vunpack.c.l.b16 %v1062_v1  ;;  %v1071_v1 = vrot.slane %v5405_v34, 5 }
  0x9c   : > { %4426 = vmatmul.msk.bf16.gmra.mxu3 %vm636_vm2, %v4818_v13  ;;  %v4453_v13 = vld [vmem:[%s5294_s5 + $0x48] sm:$0xf]  ;;  %v1175_v3 = vpack.c.b16 %v1148_v6, %v1147_v5 }
  0x9d   : > { %v1825_v19 = vshll.u32 %v4453_v13, 16  ;;  %v1829_v25 = vshrl.u32 %v4453_v13, 16  ;;  %v4821_v5 = vld [vmem:[%s5294_s5 + $0x44] sm:$0xff] }
  0x9f   : > { %v1827_v35 = vrot.slane %v1825_v19, 5  ;;  %v1831_v39 = vrot.slane %v1829_v25, 4  ;;  %v1074_v19 = vrot.slane %v5418_v44, 5  ;;  %v1846_v25 = vor.u32 %v1845_v12, %v1842_v9 }
  0xa0   : > { %4494 = vmatmul.msk.bf16.gmra.mxu0 %vm636_vm2, %v2098_v30  ;;  %v1064_v30 = vrot.slane %v5351_v11, 5  ;;  %v1822_v11 = vor.u32 %v1821_v28, %v1817_v22  ;;  %v1072_v28 = vsel %vm5554_vm6, %v4283_v42, %v1071_v1  ;;  %v4854_v42 = vld [vmem:[%s6697_s1 + $0x60] sm:$0xff] }
  0xa1   : > { %v1832_v58 = vor.u32 %v1831_v39, %v1827_v35  ;;  %v1847_v39 = vrot.slane %v1846_v25, 4  ;;  %2864 = vmatpush.bf16.msra.mxu2 %v4854_v42  ;;  %v4856_v25 = vld [vmem:[%s6697_s1 + $0x70] sm:$0xff] }
  0xa2   : > { %v1066_v36 = vrot.slane %v1064_v30, 4  ;;  %v1065_v47 = vsel %vm5554_vm6, %v1063_v38, %v1064_v30  ;;  %v1823_v50 = vrot.slane %v1822_v11, 4  ;;  %v4800_v38 = vld [vmem:[%s5294_s5 + $0x3c] sm:$0xff]  ;;  %3490 = vmatpush.bf16.msra.mxu3 %v4856_v25 }
  0xa3   : > { %v1833_v52 = vrot.slane %v1832_v58, 4 }
  0xa4   : > { %4267 = vmatmul.msk.bf16.gmra.mxu1 %vm636_vm2, %v4797_v8  ;;  %v2073_v8 = vunpack.c.l.b16 %v1818_v24  ;;  %v1068_v48 = vsel %vm5554_vm6, %v1066_v36, %v1067_v37  ;;  %v1828_v54 = vsel %vm5318_vm3, %v1823_v50, %v1827_v35  ;;  %v4457_v24 = vld [vmem:[%s5294_s5 + $0x58] sm:$0xf]  ;;  %v1151_v36 = vunpack.c.l.b16 %v1072_v28  ;;  %v4836_v28 = vld [vmem:[%s6697_s1 + $0x50] sm:$0xff] }
  0xa5   : > { %v1150_v0 = vunpack.c.l.b16 %v1068_v48  ;;  %v1838_v61 = vsel %vm5318_vm3, %v1833_v52, %v1837_v59  ;;  %v1863_v58 = vshrl.u32 %v4457_v24, 16  ;;  %2565 = vmatpush.bf16.msra.mxu1 %v4836_v28 }
  0xa6   : > { %v2075_v6 = vunpack.c.l.b16 %v1838_v61 }
  0xa7   : > { %v1865_v53 = vrot.slane %v1863_v58, 4 }
  0xa9   : > { %4303 = vmatmul.msk.bf16.gmra.mxu2 %vm636_vm2, %v1174_v43  ;;  %v2100_v43 = vpack.c.b16 %v2073_v8, %v2072_v33  ;;  %v1859_v8 = vshll.u32 %v4457_v24, 16 }
  0xab   : > { %v5638_v57 = vpop.f32.mrf.mxu1  ;;  %v1861_v11 = vrot.slane %v1859_v8, 5 }
  0xac   : > { %4427 = vmatmul.msk.bf16.gmra.mxu3 %vm636_vm2, %v4819_v51  ;;  %v1149_v51 = vunpack.c.l.b16 %v1065_v47 }
  0xae   : > { %v1176_v40 = vpack.c.b16 %v1150_v0, %v1149_v51  ;;  %v1077_v0 = vrot.slane %v5478_v18, 5  ;;  %v1866_v18 = vor.u32 %v1865_v53, %v1861_v11  ;;  %v1007_v53 = vld [vmem:[%s5294_s5 + $0x50] sm:$0xe] }
  0xb0   : > { %4495 = vmatmul.msk.bf16.gmra.mxu0 %vm636_vm2, %v2099_v60  ;;  %v1849_v60 = vshll.u32 %v4456_v10, 16  ;;  %v4822_v10 = vld [vmem:[%s5294_s5 + $0x50] sm:$0xff]  ;;  %v1079_v61 = vrot.slane %v1077_v0, 4 }
  0xb2   : > { %v1851_v22 = vrot.slane %v1849_v60, 5  ;;  %v1076_v60 = vrot.slane %v1074_v19, 4 }
  0xb3   : > { %v5649_v14 = vpop.f32.mrf.mxu1 }
  0xb4   : > { %4268 = vmatmul.msk.bf16.gmra.mxu1 %vm636_vm2, %v4798_v29  ;;  %v2074_v29 = vunpack.c.l.b16 %v1828_v54  ;;  %v1856_v33 = vor.u32 %v1855_v21, %v1851_v22  ;;  %v1852_v50 = vsel %vm5318_vm3, %v1847_v39, %v1851_v22  ;;  %v1078_v9 = vsel %vm5554_vm6, %v1076_v60, %v1077_v0 }
  0xb5   : > { %v5652_v17 = vpop.f32.mrf.mxu2  ;;  %v2076_v54 = vunpack.c.l.b16 %v1852_v50  ;;  %v1153_v24 = vunpack.c.l.b16 %v1078_v9  ;;  %v5037_v50 = vld [vmem:[%s5294_s5 + $0x54] sm:$0xf] }
  0xb6   : > { %v2101_v30 = vpack.c.b16 %v2075_v6, %v2074_v29  ;;  %v1857_v41 = vrot.slane %v1856_v33, 4 }
  0xb8   : > { %v1862_v51 = vsel %vm5318_vm3, %v1857_v41, %v1861_v11 }
  0xb9   : > { %v5659_v62 = vpop.f32.mrf.mxu0  ;;  %4304 = vmatmul.msk.bf16.gmra.mxu2 %vm636_vm2, %v1175_v3  ;;  %v5663_v31 = vpop.f32.mrf.mxu3  ;;  %v1073_v3 = vrot.slane %v1071_v1, 4  ;;  %v1080_v1 = vrot.slane %v5486_v27, 5  ;;  %v1879_v27 = vshll.u32 %v4459_v2, 16 }
  0xbb   : > { %v1081_v12 = vsel %vm5554_vm6, %v1079_v61, %v1080_v1  ;;  %v1881_v8 = vrot.slane %v1879_v27, 5 }
  0xbc   : > { %4428 = vmatmul.msk.bf16.gmra.mxu3 %vm636_vm2, %v4820_v4  ;;  %v1075_v4 = vsel %vm5554_vm6, %v1073_v3, %v1074_v19  ;;  %v4801_v3 = vld [vmem:[%s5294_s5 + $0x44] sm:$0xff]  ;;  %v1867_v19 = vrot.slane %v1866_v18, 4  ;;  %v5038_v18 = vld [vmem:[%s5294_s5 + $0x58] sm:$0xf] }
  0xbd   : > { %v5668_v45 = vpop.f32.mrf.mxu2  ;;  %v5670_v46 = vpop.f32.mrf.mxu1  ;;  %v1152_v37 = vunpack.c.l.b16 %v1075_v4 }
  0xbf   : > { %v1177_v20 = vpack.c.b16 %v1152_v37, %v1151_v36  ;;  %v4461_v36 = vld [vmem:[%s5294_s5 + $0x68] sm:$0xf] }
  0xc0   : > { %4496 = vmatmul.msk.bf16.gmra.mxu0 %vm636_vm2, %v2100_v43  ;;  %v4458_v43 = vld [vmem:[%s5294_s5 + $0x5c] sm:$0xf]  ;;  %v1893_v58 = vshll.u32 %v4461_v36, 16  ;;  %v1897_v0 = vshrl.u32 %v4461_v36, 16 }
  0xc1   : > { %v5678_v23 = vpop.f32.mrf.mxu0  ;;  %v5680_v16 = vpop.f32.mrf.mxu3  ;;  %v1873_v52 = vshrl.u32 %v4458_v43, 16 }
  0xc2   : > { %v1895_v1 = vrot.slane %v1893_v58, 5  ;;  %v1899_v9 = vrot.slane %v1897_v0, 4 }
  0xc3   : > { %v1875_v15 = vrot.slane %v1873_v52, 4  ;;  %v4858_v52 = vld [vmem:[%s6697_s1 + $0x80] sm:$0xff] }
  0xc4   : > { %4269 = vmatmul.msk.bf16.gmra.mxu1 %vm636_vm2, %v4799_v49  ;;  %v1869_v49 = vshll.u32 %v4458_v43, 16  ;;  %3876 = vmatpush.bf16.msra.mxu0 %v4858_v52 }
  0xc5   : > { %v5687_v55 = vpop.f32.mrf.mxu1 }
  0xc6   : > { %v5691_v63 = vpop.f32.mrf.mxu2  ;;  %v1871_v7 = vrot.slane %v1869_v49, 5 }
  0xc8   : > { %v1876_v22 = vor.u32 %v1875_v15, %v1871_v7  ;;  %v1872_v37 = vsel %vm5318_vm3, %v1867_v19, %v1871_v7  ;;  %v4284_v15 = vrot.slane %v1007_v53, 9  ;;  %v5039_v53 = vld [vmem:[%s5294_s5 + $0x5c] sm:$0xf] }
  0xc9   : > { %4305 = vmatmul.msk.bf16.gmra.mxu2 %vm636_vm2, %v1176_v40  ;;  %v2077_v40 = vunpack.c.l.b16 %v1862_v51  ;;  %v1084_v51 = vrot.slane %v5037_v50, 5 }
  0xca   : > { %v5697_v13 = vpop.f32.mrf.mxu0  ;;  %v1877_v33 = vrot.slane %v1876_v22, 4 }
  0xcb   : > { %v5700_v34 = vpop.f32.mrf.mxu3  ;;  %v1086_v2 = vrot.slane %v1084_v51, 4  ;;  %v1085_v19 = vsel %vm5554_vm6, %v4284_v15, %v1084_v51 }
  0xcc   : > { %4429 = vmatmul.msk.bf16.gmra.mxu3 %vm636_vm2, %v4821_v5  ;;  %v2102_v5 = vpack.c.b16 %v2077_v40, %v2076_v54  ;;  %v1882_v49 = vsel %vm5318_vm3, %v1877_v33, %v1881_v8  ;;  %v4823_v54 = vld [vmem:[%s5294_s5 + $0x58] sm:$0xff]  ;;  %v4802_v33 = vld [vmem:[%s5294_s5 + $0x50] sm:$0xff] }
  0xcd   : > { %v2079_v40 = vunpack.c.l.b16 %v1882_v49 }
  0xce   : > { %v5708_v35 = vpop.f32.mrf.mxu2  ;;  %v5710_v44 = vpop.f32.mrf.mxu1 }
  0xd0   : > { %4497 = vmatmul.msk.bf16.gmra.mxu0 %vm636_vm2, %v2101_v30  ;;  %v1154_v30 = vunpack.c.l.b16 %v1081_v12  ;;  %v4462_v12 = vld [vmem:[%s5294_s5 + $0x6c] sm:$0xf] }
  0xd1   : > { %v1903_v25 = vshll.u32 %v4462_v12, 16  ;;  %v1907_v49 = vshrl.u32 %v4462_v12, 16  ;;  %v4824_v12 = vld [vmem:[%s5294_s5 + $0x64] sm:$0xff] }
  0xd2   : > { %v5715_v47 = vpop.f32.mrf.mxu0  ;;  %v1178_v41 = vpack.c.b16 %v1154_v30, %v1153_v24  ;;  %v1900_v30 = vor.u32 %v1899_v9, %v1895_v1 }
  0xd3   : > { %v5717_v48 = vpop.f32.mrf.mxu3  ;;  %v1905_v58 = vrot.slane %v1903_v25, 5 }
  0xd4   : > { %4270 = vmatmul.msk.bf16.gmra.mxu1 %vm636_vm2, %v4800_v38  ;;  %v4460_v38 = vld [vmem:[%s5294_s5 + $0x64] sm:$0xf] }
  0xd5   : > { %v1884_v11 = vshrl.u32 %v4460_v38, 16  ;;  %v1887_v43 = vshll.u32 %v4460_v38, 16  ;;  %v1155_v38 = vunpack.c.l.b16 %v1085_v19 }
  0xd6   : > { %v5725_v59 = vpop.f32.mrf.mxu1 }
  0xd7   : > { %v1886_v60 = vrot.slane %v1884_v11, 4  ;;  %v1889_v61 = vrot.slane %v1887_v43, 5  ;;  %v1901_v43 = vrot.slane %v1900_v30, 4 }
  0xd9   : > { %4306 = vmatmul.msk.bf16.gmra.mxu2 %vm636_vm2, %v1177_v20  ;;  %v5729_v56 = vpop.f32.mrf.mxu2  ;;  %v1890_v42 = vor.u32 %v1889_v61, %v1886_v60  ;;  %v1909_v60 = vrot.slane %v1907_v49, 4  ;;  %v5040_v61 = vld [vmem:[%s5294_s5 + $0x60] sm:$0x1] }
  0xda   : > { %v1093_v15 = vrot.slane %v5040_v61, 5 }
  0xdb   : > { %v1891_v11 = vrot.slane %v1890_v42, 4 }
  0xdc   : > { %v5733_v29 = vpop.f32.mrf.mxu0  ;;  %4430 = vmatmul.msk.bf16.gmra.mxu3 %vm636_vm2, %v4822_v10  ;;  %v2078_v10 = vunpack.c.l.b16 %v1872_v37  ;;  %v4463_v37 = vld [vmem:[%s5294_s5 + $0x70] sm:$0xf] }
  0xdd   : > { %v1913_v51 = vshll.u32 %v4463_v37, 16  ;;  %v1917_v0 = vshrl.u32 %v4463_v37, 16 }
  0xde   : > { %v5736_v6 = vpop.f32.mrf.mxu3  ;;  %v2103_v27 = vpack.c.b16 %v2079_v40, %v2078_v10  ;;  %v1090_v10 = vrot.slane %v5039_v53, 5  ;;  %v1906_v40 = vsel %vm5318_vm3, %v1901_v43, %v1905_v58 }
  0xdf   : > { %v1919_v9 = vrot.slane %v1917_v0, 4  ;;  %v2081_v42 = vunpack.c.l.b16 %v1906_v40 }
  0xe0   : > { %4498 = vmatmul.msk.bf16.gmra.mxu0 %vm636_vm2, %v2102_v5  ;;  %v1087_v5 = vrot.slane %v5038_v18, 5  ;;  %v1915_v18 = vrot.slane %v1913_v51, 5  ;;  %v1092_v30 = vrot.slane %v1090_v10, 4 }
  0xe1   : > { %v5747_v21 = vpop.f32.mrf.mxu1  ;;  %v5755_v4 = vpop.f32.mrf.mxu2 }
  0xe2   : > { %v1088_v24 = vsel %vm5554_vm6, %v1086_v2, %v1087_v5 }
  0xe3   : > { %v1156_v36 = vunpack.c.l.b16 %v1088_v24  ;;  %v1089_v24 = vrot.slane %v1087_v5, 4  ;;  %v1094_v5 = vsel %vm5554_vm6, %v1092_v30, %v1093_v15 }
  0xe4   : > { %4271 = vmatmul.msk.bf16.gmra.mxu1 %vm636_vm2, %v4801_v3  ;;  %v5762_v39 = vpop.f32.mrf.mxu0 }
  0xe5   : > { %v1179_v52 = vpack.c.b16 %v1156_v36, %v1155_v38  ;;  %v1920_v38 = vor.u32 %v1919_v9, %v1915_v18  ;;  %v1091_v43 = vsel %vm5554_vm6, %v1089_v24, %v1090_v10  ;;  %v4466_v10 = vld [vmem:[%s5294_s5 + $0x7c] sm:$0xf] }
  0xe6   : > { %v5764_v20 = vpop.f32.mrf.mxu3 }
  0xe7   : > { %v1921_v53 = vrot.slane %v1920_v38, 4 }
  0xe9   : > { %4307 = vmatmul.msk.bf16.gmra.mxu2 %vm636_vm2, %v1178_v41  ;;  %v5775_v7 = vpop.f32.mrf.mxu1 }
  0xec   : > { %v5779_v22 = vpop.f32.mrf.mxu2  ;;  %4431 = vmatmul.msk.bf16.gmra.mxu3 %vm636_vm2, %v4823_v54 }
  0xed   : > { %v5782_v3 = vpop.f32.mrf.mxu0 }
  0xef   : > { %v5788_v28 = vpop.f32.mrf.mxu3 }
  0xf0   : > { %4499 = vmatmul.msk.bf16.gmra.mxu0 %vm636_vm2, %v2103_v27 }
  0xf1   : > { %v923_v8 = vpop.f32.mrf.mxu1 }
  0xf2   : > { %v924_v41 = vadd.f32 %v923_v8, %v5659_v62  ;;  %v1896_v62 = vsel %vm5318_vm3, %v1891_v11, %v1895_v1  ;;  %v4464_v1 = vld [vmem:[%s5294_s5 + $0x74] sm:$0x1] }
  0xf3   : > { %v2080_v27 = vunpack.c.l.b16 %v1896_v62  ;;  %v1923_v36 = vshll.u32 %v4464_v1, 16  ;;  %v1937_v1 = vshll.u32 %v4466_v10, 16 }
  0xf4   : > { %v5794_v50 = vpop.f32.mrf.mxu2  ;;  %4272 = vmatmul.msk.bf16.gmra.mxu1 %vm636_vm2, %v4802_v33  ;;  %v1910_v33 = vor.u32 %v1909_v60, %v1905_v58  ;;  %v1157_v58 = vunpack.c.l.b16 %v1091_v43 }
  0xf5   : > { %v5798_v54 = vpop.f32.mrf.mxu0  ;;  %v2104_v37 = vpack.c.b16 %v2081_v42, %v2080_v27  ;;  %v1925_v62 = vrot.slane %v1923_v36, 5  ;;  %v1008_v36 = vld [vmem:[%s5294_s5 + $0x64] sm:$0xe] }
  0xf6   : > { %v1911_v51 = vrot.slane %v1910_v33, 4 }
  0xf7   : > { %v5805_v2 = vpop.f32.mrf.mxu3  ;;  %v1926_v42 = vsel %vm5318_vm3, %v1921_v53, %v1925_v62  ;;  %v5042_v62 = vld [vmem:[%s5294_s5 + $0x6c] sm:$0xf] }
  0xf8   : > { %v1916_v27 = vsel %vm5318_vm3, %v1911_v51, %v1915_v18  ;;  %v2083_v43 = vunpack.c.l.b16 %v1926_v42 }
  0xf9   : > { %4308 = vmatmul.msk.bf16.gmra.mxu2 %vm636_vm2, %v1179_v52  ;;  %v925_v19 = vpop.f32.mrf.mxu1  ;;  %v1158_v52 = vunpack.c.l.b16 %v1094_v5 }
  0xfa   : > { %v926_v25 = vadd.f32 %v925_v19, %v5678_v23  ;;  %v4803_v23 = vld [vmem:[%s5294_s5 + $0x58] sm:$0xff] }
  0xfc   : > { %v1256_v8 = vpop.f32.mrf.mxu2  ;;  %4432 = vmatmul.msk.bf16.gmra.mxu3 %vm636_vm2, %v4824_v12  ;;  %v1180_v12 = vpack.c.b16 %v1158_v52, %v1157_v58  ;;  %v4285_v52 = vrot.slane %v1008_v36, 9 }
  0xfd   : > { %v1336_v11 = vadd.f32 %v1256_v8, %v924_v41  ;;  %v2181_v49 = vpop.f32.mrf.mxu0  ;;  %v4465_v41 = vld [vmem:[%s5294_s5 + $0x78] sm:$0xf]  ;;  %v5041_v8 = vld [vmem:[%s5294_s5 + $0x68] sm:$0xf] }
  0xfe   : > { %v1928_v19 = vshrl.u32 %v4465_v41, 16  ;;  %v1931_v30 = vshll.u32 %v4465_v41, 16  ;;  %v1097_v38 = vrot.slane %v5041_v8, 5 }
  0xff   : > { %v1555_v0 = vpop.f32.mrf.mxu3 }
 0x100   : > { %4500 = vmatmul.msk.bf16.gmra.mxu0 %vm636_vm2, %v2104_v37  ;;  %v1635_v40 = vadd.f32 %v1555_v0, %v1336_v11  ;;  %v2082_v11 = vunpack.c.l.b16 %v1916_v27  ;;  %v1930_v5 = vrot.slane %v1928_v19, 4  ;;  %v1933_v0 = vrot.slane %v1931_v30, 5 }
 0x101   : > { %v928_v60 = vpop.f32.mrf.mxu1  ;;  %v1099_v53 = vrot.slane %v1097_v38, 4  ;;  %v1098_v19 = vsel %vm5554_vm6, %v4285_v52, %v1097_v38 }
 0x102   : > { %v929_v61 = vadd.f32 %v928_v60, %v5697_v13  ;;  %v5821_v9 = vadd.f32 %v2181_v49, %v1635_v40  ;;  %v1941_v13 = vshrl.u32 %v4466_v10, 16  ;;  %v4825_v49 = vld [vmem:[%s5294_s5 + $0x6c] sm:$0xff]  ;;  %v1100_v40 = vrot.slane %v5042_v62, 5  ;;  %v4467_v60 = vld [vmem:[%s5294_s5 + $0x80] sm:$0xf] }
 0x103   : > { %v1934_v27 = vor.u32 %v1933_v0, %v1930_v5  ;;  %v1947_v30 = vshll.u32 %v4467_v60, 16  ;;  %v1159_v36 = vunpack.c.l.b16 %v1098_v19 }
 0x104   : > { %v1258_v15 = vpop.f32.mrf.mxu2  ;;  %4273 = vmatmul.msk.bf16.gmra.mxu1 %vm636_vm2, %v4803_v23  ;;  %v1943_v23 = vrot.slane %v1941_v13, 4  ;;  %v4804_v13 = vld [vmem:[%s5294_s5 + $0x64] sm:$0xff] }
 0x105   : > { %v1337_v24 = vadd.f32 %v1258_v15, %v926_v25  ;;  %v2183_v33 = vpop.f32.mrf.mxu0  ;;  %v1939_v25 = vrot.slane %v1937_v1, 5  ;;  %v2105_v15 = vpack.c.b16 %v2083_v43, %v2082_v11  ;;  %v4468_v11 = vld [vmem:[%s5294_s5 + $0x84] sm:$0xf]  ;;  %v1949_v38 = vrot.slane %v1947_v30, 5 }
 0x106   : > { %v1957_v0 = vshll.u32 %v4468_v11, 16 }
 0x107   : > { %v1557_v37 = vpop.f32.mrf.mxu3 }
 0x108   : > { %v1636_v18 = vadd.f32 %v1557_v37, %v1337_v24  ;;  %v1944_v24 = vor.u32 %v1943_v23, %v1939_v25  ;;  %v1961_v23 = vshrl.u32 %v4468_v11, 16 }
 0x109   : > { %4309 = vmatmul.msk.bf16.gmra.mxu2 %vm636_vm2, %v1180_v12  ;;  %v930_v51 = vpop.f32.mrf.mxu1 }
 0x10a   : > { %v931_v58 = vadd.f32 %v930_v51, %v5715_v47  ;;  %v5835_v10 = vadd.f32 %v2183_v33, %v1636_v18  ;;  %v1101_v47 = vsel %vm5554_vm6, %v1099_v53, %v1100_v40  ;;  %v1945_v5 = vrot.slane %v1944_v24, 4 }
 0x10b   : > { %v1160_v37 = vunpack.c.l.b16 %v1101_v47  ;;  %v1951_v18 = vshrl.u32 %v4467_v60, 16  ;;  %v1959_v24 = vrot.slane %v1957_v0, 5  ;;  %v1963_v30 = vrot.slane %v1961_v23, 4 }
 0x10c   : > { %v1261_v41 = vpop.f32.mrf.mxu2  ;;  %4433 = vmatmul.msk.bf16.gmra.mxu3 %vm636_vm2, %v4825_v49  ;;  %v1950_v60 = vsel %vm5318_vm3, %v1945_v5, %v1949_v38 }
 0x10d   : > { %v1338_v12 = vadd.f32 %v1261_v41, %v929_v61  ;;  %v2186_v42 = vpop.f32.mrf.mxu0  ;;  %v1935_v61 = vrot.slane %v1934_v27, 4  ;;  %v1181_v53 = vpack.c.b16 %v1160_v37, %v1159_v36  ;;  %v5043_v41 = vld [vmem:[%s5294_s5 + $0x70] sm:$0xf]  ;;  %v5044_v27 = vld [vmem:[%s5294_s5 + $0x74] sm:$0x1]  ;;  %v1964_v5 = vor.u32 %v1963_v30, %v1959_v24 }
 0x10e   : > { %v4469_v36 = vld [vmem:[%s5294_s5 + $0x88] sm:$0x1] }
 0x10f   : > { %v1560_v1 = vpop.f32.mrf.mxu3  ;;  %v1940_v62 = vsel %vm5318_vm3, %v1935_v61, %v1939_v25 }
 0x110   : > { %4501 = vmatmul.msk.bf16.gmra.mxu0 %vm636_vm2, %v2105_v15  ;;  %v1637_v33 = vadd.f32 %v1560_v1, %v1338_v12  ;;  %v1103_v15 = vrot.slane %v5043_v41, 5  ;;  %v1953_v12 = vrot.slane %v1951_v18, 4  ;;  %v2084_v47 = vunpack.c.l.b16 %v1940_v62  ;;  %v4826_v1 = vld [vmem:[%s5294_s5 + $0x78] sm:$0xff]  ;;  %v4805_v62 = vld [vmem:[%s5294_s5 + $0x6c] sm:$0xff] }
 0x111   : > { %v933_v8 = vpop.f32.mrf.mxu1  ;;  %v1967_v18 = vshll.u32 %v4469_v36, 16 }
 0x112   : > { %v934_v43 = vadd.f32 %v933_v8, %v5733_v29  ;;  %v5846_v49 = vadd.f32 %v2186_v42, %v1637_v33  ;;  %v1106_v42 = vrot.slane %v5044_v27, 5  ;;  %v1102_v33 = vrot.slane %v1100_v40, 4 }
 0x113   : > { %v1105_v8 = vrot.slane %v1103_v15, 4  ;;  %v1954_v61 = vor.u32 %v1953_v12, %v1949_v38  ;;  %v1969_v12 = vrot.slane %v1967_v18, 5  ;;  %v1009_v18 = vld [vmem:[%s5294_s5 + $0x78] sm:$0xe] }
 0x114   : > { %v1263_v51 = vpop.f32.mrf.mxu2  ;;  %4274 = vmatmul.msk.bf16.gmra.mxu1 %vm636_vm2, %v4804_v13  ;;  %v2085_v13 = vunpack.c.l.b16 %v1950_v60  ;;  %v1104_v40 = vsel %vm5554_vm6, %v1102_v33, %v1103_v15  ;;  %v4471_v15 = vld [vmem:[%s5294_s5 + $0x90] sm:$0xf] }
 0x115   : > { %v1339_v52 = vadd.f32 %v1263_v51, %v931_v58  ;;  %v2188_v29 = vpop.f32.mrf.mxu0  ;;  %v1161_v41 = vunpack.c.l.b16 %v1104_v40  ;;  %v1981_v36 = vshll.u32 %v4471_v15, 16 }
 0x116   : > { %v2106_v0 = vpack.c.b16 %v2085_v13, %v2084_v47 }
 0x117   : > { %v1562_v19 = vpop.f32.mrf.mxu3 }
 0x118   : > { %v1638_v58 = vadd.f32 %v1562_v19, %v1339_v52  ;;  %v1107_v52 = vsel %vm5554_vm6, %v1105_v8, %v1106_v42 }
 0x119   : > { %4310 = vmatmul.msk.bf16.gmra.mxu2 %vm636_vm2, %v1181_v53  ;;  %v935_v25 = vpop.f32.mrf.mxu1  ;;  %v1162_v60 = vunpack.c.l.b16 %v1107_v52 }
 0x11a   : > { %v936_v37 = vadd.f32 %v935_v25, %v5762_v39  ;;  %v5859_v51 = vadd.f32 %v2188_v29, %v1638_v58  ;;  %v1955_v39 = vrot.slane %v1954_v61, 4  ;;  %v1965_v29 = vrot.slane %v1964_v5, 4 }
 0x11b   : > { %v1182_v58 = vpack.c.b16 %v1162_v60, %v1161_v41  ;;  %v4286_v60 = vrot.slane %v1009_v18, 9 }
 0x11c   : > { %v1266_v11 = vpop.f32.mrf.mxu2  ;;  %4434 = vmatmul.msk.bf16.gmra.mxu3 %vm636_vm2, %v4826_v1  ;;  %v1960_v1 = vsel %vm5318_vm3, %v1955_v39, %v1959_v24  ;;  %v1970_v13 = vsel %vm5318_vm3, %v1965_v29, %v1969_v12  ;;  %v5046_v12 = vld [vmem:[%s5294_s5 + $0x80] sm:$0xf] }
 0x11d   : > { %v1340_v23 = vadd.f32 %v1266_v11, %v934_v43  ;;  %v2191_v53 = vpop.f32.mrf.mxu0  ;;  %v4470_v43 = vld [vmem:[%s5294_s5 + $0x8c] sm:$0xf]  ;;  %v5045_v11 = vld [vmem:[%s5294_s5 + $0x7c] sm:$0xf]  ;;  %v2087_v40 = vunpack.c.l.b16 %v1970_v13 }
 0x11e   : > { %v1972_v25 = vshrl.u32 %v4470_v43, 16  ;;  %v1975_v8 = vshll.u32 %v4470_v43, 16  ;;  %v1110_v5 = vrot.slane %v5045_v11, 5 }
 0x11f   : > { %v1565_v38 = vpop.f32.mrf.mxu3 }
 0x120   : > { %4502 = vmatmul.msk.bf16.gmra.mxu0 %vm636_vm2, %v2106_v0  ;;  %v1639_v27 = vadd.f32 %v1565_v38, %v1340_v23  ;;  %v2086_v23 = vunpack.c.l.b16 %v1960_v1  ;;  %v1974_v52 = vrot.slane %v1972_v25, 4  ;;  %v1977_v38 = vrot.slane %v1975_v8, 5 }
 0x121   : > { %v938_v19 = vpop.f32.mrf.mxu1  ;;  %v1112_v29 = vrot.slane %v1110_v5, 4  ;;  %v1111_v25 = vsel %vm5554_vm6, %v4286_v60, %v1110_v5 }
 0x122   : > { %v939_v47 = vadd.f32 %v938_v19, %v5782_v3  ;;  %v5871_v30 = vadd.f32 %v2191_v53, %v1639_v27  ;;  %v1985_v3 = vshrl.u32 %v4471_v15, 16  ;;  %v4827_v53 = vld [vmem:[%s5294_s5 + $0x80] sm:$0xff]  ;;  %v1113_v27 = vrot.slane %v5046_v12, 5  ;;  %v4472_v19 = vld [vmem:[%s5294_s5 + $0x94] sm:$0xf] }
 0x123   : > { %v1978_v1 = vor.u32 %v1977_v38, %v1974_v52  ;;  %v1991_v8 = vshll.u32 %v4472_v19, 16  ;;  %v1163_v18 = vunpack.c.l.b16 %v1111_v25  ;;  %v1995_v5 = vshrl.u32 %v4472_v19, 16  ;;  %v5047_v12 = vld [vmem:[%s5294_s5 + $0x84] sm:$0xf] }
 0x124   : > { %v1268_v42 = vpop.f32.mrf.mxu2  ;;  %4275 = vmatmul.msk.bf16.gmra.mxu1 %vm636_vm2, %v4805_v62  ;;  %v1987_v62 = vrot.slane %v1985_v3, 4  ;;  %v4806_v3 = vld [vmem:[%s5294_s5 + $0x78] sm:$0xff] }
 0x125   : > { %v1341_v33 = vadd.f32 %v1268_v42, %v936_v37  ;;  %v2193_v61 = vpop.f32.mrf.mxu0  ;;  %v1983_v37 = vrot.slane %v1981_v36, 5  ;;  %v2107_v42 = vpack.c.b16 %v2087_v40, %v2086_v23  ;;  %v4473_v23 = vld [vmem:[%s5294_s5 + $0x98] sm:$0xf]  ;;  %v1993_v52 = vrot.slane %v1991_v8, 5 }
 0x126   : > { %v2005_v38 = vshrl.u32 %v4473_v23, 16 }
 0x127   : > { %v1567_v0 = vpop.f32.mrf.mxu3 }
 0x128   : > { %v1640_v24 = vadd.f32 %v1567_v0, %v1341_v33  ;;  %v1988_v33 = vor.u32 %v1987_v62, %v1983_v37  ;;  %v2007_v8 = vrot.slane %v2005_v38, 4 }
 0x129   : > { %4311 = vmatmul.msk.bf16.gmra.mxu2 %vm636_vm2, %v1182_v58  ;;  %v940_v39 = vpop.f32.mrf.mxu1 }
 0x12a   : > { %v941_v41 = vadd.f32 %v940_v39, %v5798_v54  ;;  %v5885_v15 = vadd.f32 %v2193_v61, %v1640_v24  ;;  %v1114_v54 = vsel %vm5554_vm6, %v1112_v29, %v1113_v27  ;;  %v1989_v40 = vrot.slane %v1988_v33, 4 }
 0x12b   : > { %v1164_v0 = vunpack.c.l.b16 %v1114_v54  ;;  %v2001_v39 = vshll.u32 %v4473_v23, 16 }
 0x12c   : > { %v1271_v43 = vpop.f32.mrf.mxu2  ;;  %4435 = vmatmul.msk.bf16.gmra.mxu3 %vm636_vm2, %v4827_v53  ;;  %v1994_v19 = vsel %vm5318_vm3, %v1989_v40, %v1993_v52 }
 0x12d   : > { %v1342_v58 = vadd.f32 %v1271_v43, %v939_v47  ;;  %v2196_v13 = vpop.f32.mrf.mxu0  ;;  %v1979_v47 = vrot.slane %v1978_v1, 4  ;;  %v1183_v60 = vpack.c.b16 %v1164_v0, %v1163_v18  ;;  %v1116_v43 = vrot.slane %v5047_v12, 5  ;;  %v5048_v1 = vld [vmem:[%s5294_s5 + $0x88] sm:$0x1]  ;;  %v4474_v0 = vld [vmem:[%s5294_s5 + $0x9c] sm:$0x1] }
 0x12e   : > { %v2003_v33 = vrot.slane %v2001_v39, 5 }
 0x12f   : > { %v1570_v36 = vpop.f32.mrf.mxu3  ;;  %v1984_v29 = vsel %vm5318_vm3, %v1979_v47, %v1983_v37  ;;  %v1118_v18 = vrot.slane %v1116_v43, 4 }
 0x130   : > { %4503 = vmatmul.msk.bf16.gmra.mxu0 %vm636_vm2, %v2107_v42  ;;  %v1641_v61 = vadd.f32 %v1570_v36, %v1342_v58  ;;  %v1997_v58 = vrot.slane %v1995_v5, 4  ;;  %v2088_v54 = vunpack.c.l.b16 %v1984_v29  ;;  %v4828_v36 = vld [vmem:[%s5294_s5 + $0x8c] sm:$0xff]  ;;  %v2008_v5 = vor.u32 %v2007_v8, %v2003_v33  ;;  %v4476_v8 = vld [vmem:[%s5294_s5 + $0xa4] sm:$0xf] }
 0x131   : > { %v943_v11 = vpop.f32.mrf.mxu1 }
 0x132   : > { %v5895_v24 = vadd.f32 %v2196_v13, %v1641_v61  ;;  %v1119_v13 = vrot.slane %v5048_v1, 5  ;;  %v1115_v61 = vrot.slane %v1113_v27, 4  ;;  %v944_v47 = vadd.f32 %v943_v11, %v5638_v57 }
 0x133   : > { %v1998_v23 = vor.u32 %v1997_v58, %v1993_v52  ;;  %v4807_v52 = vld [vmem:[%s5294_s5 + $0x80] sm:$0xff] }
 0x134   : > { %v1273_v53 = vpop.f32.mrf.mxu2  ;;  %4276 = vmatmul.msk.bf16.gmra.mxu1 %vm636_vm2, %v4806_v3  ;;  %v2089_v3 = vunpack.c.l.b16 %v1994_v19  ;;  %v1117_v27 = vsel %vm5554_vm6, %v1115_v61, %v1116_v43 }
 0x135   : > { %v1343_v62 = vadd.f32 %v1273_v53, %v941_v41  ;;  %v2198_v42 = vpop.f32.mrf.mxu0  ;;  %v2011_v53 = vshll.u32 %v4474_v0, 16  ;;  %v1999_v57 = vrot.slane %v1998_v23, 4  ;;  %v1165_v29 = vunpack.c.l.b16 %v1117_v27 }
 0x136   : > { %v2108_v39 = vpack.c.b16 %v2089_v3, %v2088_v54  ;;  %v4475_v54 = vld [vmem:[%s5294_s5 + $0xa0] sm:$0xf]  ;;  %v2025_v23 = vshll.u32 %v4476_v8, 16 }
 0x137   : > { %v1572_v25 = vpop.f32.mrf.mxu3  ;;  %v2013_v58 = vrot.slane %v2011_v53, 5  ;;  %v2004_v3 = vsel %vm5318_vm3, %v1999_v57, %v2003_v33  ;;  %v2016_v0 = vshrl.u32 %v4475_v54, 16  ;;  %v1010_v53 = vld [vmem:[%s5294_s5 + $0x8c] sm:$0xe]  ;;  %v4829_v33 = vld [vmem:[%s5294_s5 + $0x94] sm:$0xff] }
 0x138   : > { %v1642_v41 = vadd.f32 %v1572_v25, %v1343_v62  ;;  %v1120_v62 = vsel %vm5554_vm6, %v1118_v18, %v1119_v13 }
 0x139   : > { %4312 = vmatmul.msk.bf16.gmra.mxu2 %vm636_vm2, %v1183_v60  ;;  %v945_v37 = vpop.f32.mrf.mxu1  ;;  %v1166_v19 = vunpack.c.l.b16 %v1120_v62  ;;  %v2018_v57 = vrot.slane %v2016_v0, 4 }
 0x13a   : > { %v5908_v12 = vadd.f32 %v2198_v42, %v1642_v41  ;;  %v2009_v42 = vrot.slane %v2008_v5, 4  ;;  %v946_v43 = vadd.f32 %v945_v37, %v5649_v14  ;;  %v5049_v5 = vld [vmem:[%s5294_s5 + $0x90] sm:$0xf]  ;;  %v2029_v37 = vshrl.u32 %v4476_v8, 16  ;;  %v4477_v8 = vld [vmem:[%s5294_s5 + $0xa8] sm:$0xf] }
 0x13b   : > { %v1123_v14 = vrot.slane %v5049_v5, 5  ;;  %v4808_v5 = vld [vmem:[%s5294_s5 + $0x8c] sm:$0xff] }
 0x13c   : > { %v1276_v40 = vpop.f32.mrf.mxu2  ;;  %4436 = vmatmul.msk.bf16.gmra.mxu3 %vm636_vm2, %v4828_v36  ;;  %v1184_v36 = vpack.c.b16 %v1166_v19, %v1165_v29  ;;  %v2014_v61 = vsel %vm5318_vm3, %v2009_v42, %v2013_v58  ;;  %v4287_v29 = vrot.slane %v1010_v53, 9  ;;  %v5050_v42 = vld [vmem:[%s5294_s5 + $0x94] sm:$0xf] }
 0x13d   : > { %v1344_v38 = vadd.f32 %v1276_v40, %v944_v47  ;;  %v2201_v60 = vpop.f32.mrf.mxu0  ;;  %v2019_v47 = vshll.u32 %v4475_v54, 16  ;;  %v2091_v27 = vunpack.c.l.b16 %v2014_v61  ;;  %v1125_v19 = vrot.slane %v1123_v14, 4 }
 0x13e   : > { %v1126_v58 = vrot.slane %v5050_v42, 5  ;;  %v1124_v0 = vsel %vm5554_vm6, %v4287_v29, %v1123_v14  ;;  %v2039_v29 = vshrl.u32 %v4477_v8, 16 }
 0x13f   : > { %v1575_v11 = vpop.f32.mrf.mxu3  ;;  %v1167_v53 = vunpack.c.l.b16 %v1124_v0 }
 0x140   : > { %4504 = vmatmul.msk.bf16.gmra.mxu0 %vm636_vm2, %v2108_v39  ;;  %v1643_v1 = vadd.f32 %v1575_v11, %v1344_v38  ;;  %v2090_v38 = vunpack.c.l.b16 %v2004_v3  ;;  %v2021_v11 = vrot.slane %v2019_v47, 5  ;;  %v1127_v47 = vsel %vm5554_vm6, %v1125_v19, %v1126_v58 }
 0x141   : > { %v948_v25 = vpop.f32.mrf.mxu1 }
 0x142   : > { %v5920_v41 = vadd.f32 %v2201_v60, %v1643_v1  ;;  %v2031_v1 = vrot.slane %v2029_v37, 4  ;;  %v949_v54 = vadd.f32 %v948_v25, %v5670_v46  ;;  %v2022_v61 = vor.u32 %v2021_v11, %v2018_v57 }
 0x143   : > { %v2035_v46 = vshll.u32 %v4477_v8, 16  ;;  %v5053_v8 = vld [vmem:[%s5294_s5 + $0x98] sm:$0xf] }
 0x144   : > { %v1278_v13 = vpop.f32.mrf.mxu2  ;;  %4277 = vmatmul.msk.bf16.gmra.mxu1 %vm636_vm2, %v4807_v52  ;;  %v2027_v52 = vrot.slane %v2025_v23, 5 }
 0x145   : > { %v1345_v18 = vadd.f32 %v1278_v13, %v946_v43  ;;  %v2203_v40 = vpop.f32.mrf.mxu0  ;;  %v2037_v14 = vrot.slane %v2035_v46, 5  ;;  %v4508_v46 = vld [vmem:[%s5294_s5 + $0x14] sm:$0xe] }
 0x146   : > { %v2032_v23 = vor.u32 %v2031_v1, %v2027_v52 }
 0x147   : > { %v1577_v39 = vpop.f32.mrf.mxu3 }
 0x148   : > { %v1644_v62 = vadd.f32 %v1577_v39, %v1345_v18  ;;  %v1168_v39 = vunpack.c.l.b16 %v1127_v47  ;;  %v2033_v57 = vrot.slane %v2032_v23, 4  ;;  %v2041_v23 = vrot.slane %v2039_v29, 4 }
 0x149   : > { %4313 = vmatmul.msk.bf16.gmra.mxu2 %vm636_vm2, %v1184_v36  ;;  %v950_v60 = vpop.f32.mrf.mxu1  ;;  %v2109_v36 = vpack.c.b16 %v2091_v27, %v2090_v38  ;;  %v4478_v38 = vld [vmem:[%s5294_s5 + $0xac] sm:$0xf]  ;;  %v5051_v27 = vld [vmem:[%s5294_s5 + $0x18] sm:$0xf] }
 0x14a   : > { %v5934_v13 = vadd.f32 %v2203_v40, %v1644_v62  ;;  %v2343_v62 = vrot.slane %v5051_v27, 5  ;;  %v951_v11 = vadd.f32 %v950_v60, %v5687_v55  ;;  %v2045_v1 = vshll.u32 %v4478_v38, 16  ;;  %v4830_v27 = vld [vmem:[%s5294_s5 + $0xa0] sm:$0xff] }
 0x14b   : > { %v2038_v60 = vsel %vm5318_vm3, %v2033_v57, %v2037_v14  ;;  %v4479_v57 = vld [vmem:[%s5294_s5 + $0xb0] sm:$0x1] }
 0x14c   : > { %v1281_v43 = vpop.f32.mrf.mxu2  ;;  %4437 = vmatmul.msk.bf16.gmra.mxu3 %vm636_vm2, %v4829_v33  ;;  %v2023_v33 = vrot.slane %v2022_v61, 4  ;;  %v1185_v61 = vpack.c.b16 %v1168_v39, %v1167_v53  ;;  %v2345_v0 = vrot.slane %v2343_v62, 4  ;;  %v4516_v39 = vrot.slane %v4508_v46, 9 }
 0x14d   : > { %v1346_v3 = vadd.f32 %v1281_v43, %v949_v54  ;;  %v2206_v18 = vpop.f32.mrf.mxu0  ;;  %v2049_v54 = vshrl.u32 %v4478_v38, 16  ;;  %v5950_v43 = vld [vmem:[%s5294_s5 + $0x1c] sm:$0xf] }
 0x14e   : > { %v2028_v55 = vsel %vm5318_vm3, %v2023_v33, %v2027_v52  ;;  %v2093_v33 = vunpack.c.l.b16 %v2038_v60  ;;  %v2344_v29 = vsel %vm5554_vm6, %v4516_v39, %v2343_v62 }
 0x14f   : > { %v1580_v25 = vpop.f32.mrf.mxu3  ;;  %v2051_v53 = vrot.slane %v2049_v54, 4  ;;  %v2092_v52 = vunpack.c.l.b16 %v2028_v55 }
 0x150   : > { %4505 = vmatmul.msk.bf16.gmra.mxu0 %vm636_vm2, %v2109_v36  ;;  %v1645_v40 = vadd.f32 %v1580_v25, %v1346_v3 }
 0x151   : > { %v953_v37 = vpop.f32.mrf.mxu1  ;;  %v2110_v62 = vpack.c.b16 %v2093_v33, %v2092_v52 }
 0x152   : > { %v5946_v19 = vadd.f32 %v2206_v18, %v1645_v40  ;;  %v1129_v18 = vrot.slane %v5053_v8, 5  ;;  %v5959_v40 = vrot.slane %v2045_v1, 5  ;;  %v954_v54 = vadd.f32 %v953_v37, %v5710_v44 }
 0x154   : > { %6705 = vst [vmem:[#allocation5_spill] sm:$0xff] %v5946_v19  ;;  %v1283_v42 = vpop.f32.mrf.mxu2  ;;  %4278 = vmatmul.msk.bf16.gmra.mxu1 %vm636_vm2, %v4808_v5  ;;  %v1128_v5 = vrot.slane %v1126_v58, 4  ;;  %v1131_v8 = vrot.slane %v1129_v18, 4  ;;  %v6706_v58 = vrot.slane %v5950_v43, 5 }
 0x155   : > { %v1347_v3 = vadd.f32 %v1283_v42, %v951_v11  ;;  %v2208_v47 = vpop.f32.mrf.mxu0  ;;  %v5054_v42 = vld [vmem:[%s5294_s5 + $0x9c] sm:$0x1] }
 0x156   : > { %v1132_v36 = vrot.slane %v5054_v42, 5  ;;  %v2347_v1 = vsel %vm5554_vm6, %v2345_v0, %v6706_v58  ;;  %v1130_v46 = vsel %vm5554_vm6, %v1128_v5, %v1129_v18  ;;  %v2055_v42 = vshll.u32 %v4479_v57, 16  ;;  %v4676_v0 = vld [vmem:[%s5294_s5 + $0x28] sm:$0xf] }
 0x157   : > { %v1582_v25 = vpop.f32.mrf.mxu3  ;;  %v2451_v55 = vunpack.c.l.b16 %v2347_v1  ;;  %v3022_v52 = vshll.u32 %v4676_v0, 16 }
 0x158   : > { %v1646_v38 = vadd.f32 %v1582_v25, %v1347_v3  ;;  %v2042_v3 = vor.u32 %v2041_v23, %v2037_v14  ;;  %v2052_v25 = vor.u32 %v2051_v53, %v5959_v40  ;;  %v1133_v14 = vsel %vm5554_vm6, %v1131_v8, %v1132_v36  ;;  %v5984_v23 = vld [vmem:[%s5294_s5 + $0x2c] sm:$0xf]  ;;  %v4809_v53 = vld [vmem:[%s5294_s5 + $0x94] sm:$0xff] }
 0x159   : > { %4314 = vmatmul.msk.bf16.gmra.mxu2 %vm636_vm2, %v1185_v61  ;;  %v955_v11 = vpop.f32.mrf.mxu1  ;;  %v2450_v61 = vunpack.c.l.b16 %v2344_v29  ;;  %v1169_v29 = vunpack.c.l.b16 %v1130_v46  ;;  %v2057_v58 = vrot.slane %v2055_v42, 5  ;;  %v3028_v1 = vshll.u32 %v5984_v23, 16 }
 0x15a   : > { %v5979_v44 = vadd.f32 %v2208_v47, %v1646_v38  ;;  %v2043_v18 = vrot.slane %v2042_v3, 4  ;;  %v2053_v57 = vrot.slane %v2052_v25, 4  ;;  %v1170_v38 = vunpack.c.l.b16 %v1133_v14  ;;  %v5056_v14 = vld [vmem:[%s5294_s5 + $0x20] sm:$0xf] }
 0x15b   : > { %v5976_v19 = vpack.c.b16 %v2451_v55, %v2450_v61  ;;  %v3032_v36 = vshrl.u32 %v5984_v23, 16  ;;  %v956_v8 = vadd.f32 %v955_v11, %v5725_v59  ;;  %v3024_v46 = vrot.slane %v3022_v52, 5 }
 0x15c   : > { %v1286_v60 = vpop.f32.mrf.mxu2  ;;  %4438 = vmatmul.msk.bf16.gmra.mxu3 %vm636_vm2, %v4830_v27  ;;  %v3019_v27 = vshrl.u32 %v4676_v0, 16  ;;  %v2048_v61 = vsel %vm5318_vm3, %v2043_v18, %v5959_v40  ;;  %v2058_v55 = vsel %vm5318_vm3, %v2053_v57, %v2057_v58  ;;  %v1186_v42 = vpack.c.b16 %v1170_v38, %v1169_v29  ;;  %v4831_v38 = vld [vmem:[%s5294_s5 + $0xa8] sm:$0xff] }
 0x15d   : > { %v1348_v39 = vadd.f32 %v1286_v60, %v954_v54  ;;  %v2211_v37 = vpop.f32.mrf.mxu0  ;;  %v3030_v59 = vrot.slane %v3028_v1, 5  ;;  %v3034_v11 = vrot.slane %v3032_v36, 4  ;;  %v6707_v58 = vrot.slane %v5950_v43, 5 }
 0x15e   : > { %v3021_v60 = vrot.slane %v3019_v27, 4 }
 0x15f   : > { %v1585_v5 = vpop.f32.mrf.mxu3  ;;  %v2348_v27 = vrot.slane %v6707_v58, 4  ;;  %v3035_v36 = vor.u32 %v3034_v11, %v3030_v59  ;;  %v4744_v58 = vld [vmem:[%s5294_s5 + $0x28] sm:$0xe] }
 0x160   : > { %4506 = vmatmul.msk.bf16.gmra.mxu0 %vm636_vm2, %v2110_v62  ;;  %v1647_v33 = vadd.f32 %v1585_v5, %v1348_v39  ;;  %v6000_v62 = vld [vmem:[%s5294_s5 + $0x30] sm:$0xf]  ;;  %v5055_v39 = vld [vmem:[%s5294_s5 + $0x24] sm:$0x1]  ;;  %v2349_v5 = vrot.slane %v5056_v14, 5  ;;  %v3025_v18 = vor.u32 %v3024_v46, %v3021_v60 }
 0x161   : > { %v958_v47 = vpop.f32.mrf.mxu1  ;;  %v2352_v0 = vrot.slane %v5055_v39, 5  ;;  %v3038_v57 = vshll.u32 %v6000_v62, 16  ;;  %v6015_v14 = vld [vmem:[%s5294_s5 + $0x34] sm:$0xf]  ;;  %v3036_v11 = vrot.slane %v3035_v36, 4 }
 0x162   : > { %v5991_v54 = vadd.f32 %v2211_v37, %v1647_v33  ;;  %v2095_v33 = vunpack.c.l.b16 %v2058_v55  ;;  %v2351_v29 = vrot.slane %v2349_v5, 4  ;;  %v3026_v39 = vrot.slane %v3025_v18, 4 }
 0x164   : > { %v1288_v3 = vpop.f32.mrf.mxu2  ;;  %4279 = vmatmul.msk.bf16.gmra.mxu1 %vm636_vm2, %v4809_v53  ;;  %v2094_v53 = vunpack.c.l.b16 %v2048_v61  ;;  %v959_v61 = vadd.f32 %v958_v47, %v5747_v21  ;;  %v3654_v21 = vrot.slane %v5984_v23, 5  ;;  %v3042_v47 = vshrl.u32 %v6000_v62, 16 }
 0x165   : > { %v1349_v25 = vadd.f32 %v1288_v3, %v956_v8  ;;  %v2213_v37 = vpop.f32.mrf.mxu0  ;;  %v2350_v8 = vsel %vm5554_vm6, %v2348_v27, %v2349_v5  ;;  %v2353_v3 = vsel %vm5554_vm6, %v2351_v29, %v2352_v0  ;;  %v4752_v29 = vrot.slane %v4744_v58, 9 }
 0x166   : > { %v2452_v55 = vunpack.c.l.b16 %v2350_v8  ;;  %v2453_v43 = vunpack.c.l.b16 %v2353_v3  ;;  %v2111_v60 = vpack.c.b16 %v2095_v33, %v2094_v53  ;;  %v3048_v53 = vshll.u32 %v6015_v14, 16 }
 0x167   : > { %v1587_v40 = vpop.f32.mrf.mxu3  ;;  %v3052_v33 = vshrl.u32 %v6015_v14, 16  ;;  %v3044_v36 = vrot.slane %v3042_v47, 4 }
 0x168   : > { %v1648_v52 = vadd.f32 %v1587_v40, %v1349_v25  ;;  %v3040_v25 = vrot.slane %v3038_v57, 5  ;;  %v6018_v40 = vpack.c.b16 %v2453_v43, %v2452_v55  ;;  %v3050_v3 = vrot.slane %v3048_v53, 5 }
 0x169   : > { %4315 = vmatmul.msk.bf16.gmra.mxu2 %vm636_vm2, %v1186_v42  ;;  %v960_v1 = vpop.f32.mrf.mxu1 }
 0x16a   : > { %v6020_v5 = vadd.f32 %v2213_v37, %v1648_v52  ;;  %v3031_v37 = vsel %vm5318_vm3, %v3026_v39, %v3030_v59  ;;  %v3041_v23 = vsel %vm5318_vm3, %v3036_v11, %v3040_v25  ;;  %v3656_v52 = vrot.slane %v3654_v21, 4 }
 0x16b   : > { %v961_v8 = vadd.f32 %v960_v1, %v5775_v7  ;;  %v3375_v39 = vunpack.c.l.b16 %v3031_v37  ;;  %v3045_v1 = vor.u32 %v3044_v36, %v3040_v25 }
 0x16c   : > { %v1291_v46 = vpop.f32.mrf.mxu2  ;;  %4439 = vmatmul.msk.bf16.gmra.mxu3 %vm636_vm2, %v4831_v38  ;;  %v3657_v38 = vrot.slane %v6000_v62, 5  ;;  %v3655_v62 = vsel %vm5554_vm6, %v4752_v29, %v3654_v21 }
 0x16d   : > { %v1350_v42 = vadd.f32 %v1291_v46, %v959_v61  ;;  %v2216_v0 = vpop.f32.mrf.mxu0  ;;  %v3054_v61 = vrot.slane %v3052_v33, 4  ;;  %v4838_v46 = vld [vmem:[%s5294_s5 + $0x28] sm:$0xff]  ;;  %v3761_v33 = vunpack.c.l.b16 %v3655_v62  ;;  %v3046_v37 = vrot.slane %v3045_v1, 4 }
 0x16e   : > { %v3658_v7 = vsel %vm5554_vm6, %v3656_v52, %v3657_v38  ;;  %v3660_v52 = vrot.slane %v6015_v14, 5  ;;  %v3659_v14 = vrot.slane %v3657_v38, 4  ;;  %v4509_v38 = vld [vmem:[%s5294_s5 + $0x28] sm:$0xe] }
 0x16f   : > { %v1590_v18 = vpop.f32.mrf.mxu3  ;;  %v3055_v47 = vor.u32 %v3054_v61, %v3050_v3  ;;  %v4681_v61 = vld [vmem:[%s5294_s5 + $0x3c] sm:$0xf] }
 0x170   : > { %4507 = vmatmul.msk.bf16.gmra.mxu0 %vm636_vm2, %v2111_v60  ;;  %v1649_v57 = vadd.f32 %v1590_v18, %v1350_v42  ;;  %v4680_v60 = vld [vmem:[%s5294_s5 + $0x38] sm:$0x1]  ;;  %v3376_v42 = vunpack.c.l.b16 %v3041_v23  ;;  %v3762_v18 = vunpack.c.l.b16 %v3658_v7  ;;  %v3063_v7 = vshrl.u32 %v4681_v61, 16 }
 0x171   : > { %v963_v27 = vpop.f32.mrf.mxu1  ;;  %v3056_v21 = vrot.slane %v3055_v47, 4  ;;  %v3066_v1 = vshll.u32 %v4681_v61, 16 }
 0x172   : > { %v6034_v55 = vadd.f32 %v2216_v0, %v1649_v57  ;;  %v3058_v0 = vshll.u32 %v4680_v60, 16  ;;  %v964_v23 = vadd.f32 %v963_v27, %v5652_v17  ;;  %v3793_v36 = vpack.c.b16 %v3762_v18, %v3761_v33 }
 0x173   : > { %v3662_v27 = vrot.slane %v3660_v52, 4  ;;  %v3661_v18 = vsel %vm5554_vm6, %v3659_v14, %v3660_v52  ;;  %v5058_v52 = vld [vmem:[%s5294_s5 + $0x30] sm:$0xf] }
 0x174   : > { %v1293_v43 = vpop.f32.mrf.mxu2  ;;  %4536 = vmatmul.msk.bf16.vlgmr.msra.gmra.mxu1 %vm636_vm2, %v5976_v19  ;;  %v3407_v19 = vpack.c.b16 %v3376_v42, %v3375_v39  ;;  %v3060_v29 = vrot.slane %v3058_v0, 5  ;;  %v3051_v39 = vsel %vm5318_vm3, %v3046_v37, %v3050_v3  ;;  %v3663_v42 = vrot.slane %v4680_v60, 5 }
 0x175   : > { %v1351_v59 = vadd.f32 %v1293_v43, %v961_v8  ;;  %v2218_v11 = vpop.f32.mrf.mxu0  ;;  %v6050_v43 = vld [vmem:[%s5294_s5 + $0x40] sm:$0xf] }
 0x176   : > { %v3061_v17 = vsel %vm5318_vm3, %v3056_v21, %v3060_v29  ;;  %v3072_v47 = vshll.u32 %v6050_v43, 16  ;;  %v3076_v0 = vshrl.u32 %v6050_v43, 16  ;;  %v3664_v37 = vsel %vm5554_vm6, %v3662_v27, %v3663_v42  ;;  %v6077_v27 = vld [vmem:[%s5294_s5 + $0x44] sm:$0xf] }
 0x177   : > { %v1592_v58 = vpop.f32.mrf.mxu3  ;;  %v3378_v33 = vunpack.c.l.b16 %v3061_v17  ;;  %v3065_v29 = vrot.slane %v3063_v7, 4  ;;  %v2359_v17 = vrot.slane %v5058_v52, 5  ;;  %v3764_v42 = vunpack.c.l.b16 %v3664_v37 }
 0x178   : > { %v1650_v53 = vadd.f32 %v1592_v58, %v1351_v59 }
 0x179   : > { %4660 = vmatmul.msk.bf16.vlgmr.msra.gmra.mxu2 %vm636_vm2, %v4838_v46  ;;  %v965_v57 = vpop.f32.mrf.mxu1 }
 0x17a   : > { %v6052_v59 = vadd.f32 %v2218_v11, %v1650_v53  ;;  %v5057_v53 = vld [vmem:[%s5294_s5 + $0x2c] sm:$0xf]  ;;  %v966_v60 = vadd.f32 %v965_v57, %v5668_v45  ;;  %v4839_v45 = vld [vmem:[%s5294_s5 + $0x30] sm:$0xff]  ;;  %v4517_v57 = vrot.slane %v4509_v38, 9  ;;  %v3082_v38 = vshll.u32 %v6077_v27, 16 }
 0x17b   : > { %v2356_v3 = vrot.slane %v5057_v53, 5 }
 0x17c   : > { %v1296_v25 = vpop.f32.mrf.mxu2  ;;  %4728 = vmatmul.msk.bf16.vlgmr.msra.gmra.mxu3 %vm636_vm2, %v3407_v19  ;;  %v3377_v19 = vunpack.c.l.b16 %v3051_v39 }
 0x17d   : > { %v1352_v8 = vadd.f32 %v1296_v25, %v964_v23  ;;  %v2221_v46 = vpop.f32.mrf.mxu0  ;;  %v3068_v25 = vrot.slane %v3066_v1, 5  ;;  %v2358_v39 = vrot.slane %v2356_v3, 4 }
 0x17f   : > { %v1595_v62 = vpop.f32.mrf.mxu3  ;;  %v2360_v53 = vsel %vm5554_vm6, %v2358_v39, %v2359_v17  ;;  %v4745_v39 = vld [vmem:[%s5294_s5 + $0x3c] sm:$0xe] }
 0x180   : > { %4772 = vmatmul.msk.bf16.vlgmr.msra.gmra.mxu0 %vm636_vm2, %v3793_v36  ;;  %v1651_v11 = vadd.f32 %v1595_v62, %v1352_v8  ;;  %v6072_v36 = vrot.slane %v3072_v47, 5  ;;  %v3078_v8 = vrot.slane %v3076_v0, 4  ;;  %v2357_v0 = vsel %vm5554_vm6, %v4517_v57, %v2356_v3 }
 0x181   : > { %v968_v58 = vpop.f32.mrf.mxu1  ;;  %v2454_v37 = vunpack.c.l.b16 %v2357_v0 }
 0x182   : > { %v6068_v23 = vadd.f32 %v2221_v46, %v1651_v11  ;;  %v3763_v46 = vunpack.c.l.b16 %v3661_v18  ;;  %v3408_v11 = vpack.c.b16 %v3378_v33, %v3377_v19  ;;  %v3079_v7 = vor.u32 %v3078_v8, %v6072_v36  ;;  %v6088_v19 = vld [vmem:[%s5294_s5 + $0x48] sm:$0xf] }
 0x183   : > { %v3084_v8 = vrot.slane %v3082_v38, 5  ;;  %v3096_v52 = vshrl.u32 %v6088_v19, 16 }
 0x184   : > { %v1298_v21 = vpop.f32.mrf.mxu2  ;;  %4537 = vmatmul.msk.bf16.gmra.mxu1 %vm636_vm2, %v6018_v40  ;;  %v3069_v40 = vor.u32 %v3068_v25, %v3065_v29  ;;  %v3794_v18 = vpack.c.b16 %v3764_v42, %v3763_v46  ;;  %v3080_v25 = vrot.slane %v3079_v7, 4 }
 0x185   : > { %v1353_v61 = vadd.f32 %v1298_v21, %v966_v60  ;;  %v2223_v14 = vpop.f32.mrf.mxu0  ;;  %v969_v60 = vadd.f32 %v968_v58, %v5691_v63  ;;  %v2455_v21 = vunpack.c.l.b16 %v2360_v53  ;;  %v3086_v63 = vshrl.u32 %v6077_v27, 16 }
 0x186   : > { %v3070_v29 = vrot.slane %v3069_v40, 4  ;;  %v3092_v58 = vshll.u32 %v6088_v19, 16  ;;  %v3085_v7 = vsel %vm5318_vm3, %v3080_v25, %v3084_v8  ;;  %v3670_v53 = vrot.slane %v6077_v27, 5 }
 0x187   : > { %v1597_v62 = vpop.f32.mrf.mxu3  ;;  %v2484_v42 = vpack.c.b16 %v2455_v21, %v2454_v37  ;;  %v3088_v38 = vrot.slane %v3086_v63, 4  ;;  %v6108_v37 = vld [vmem:[%s5294_s5 + $0x4c] sm:$0x1]  ;;  %v2361_v25 = vrot.slane %v2359_v17, 4  ;;  %v3380_v27 = vunpack.c.l.b16 %v3085_v7 }
 0x188   : > { %v1652_v1 = vadd.f32 %v1597_v62, %v1353_v61  ;;  %v3667_v61 = vrot.slane %v6050_v43, 5  ;;  %v3075_v62 = vsel %vm5318_vm3, %v3070_v29, %v6072_v36 }
 0x189   : > { %4661 = vmatmul.msk.bf16.gmra.mxu2 %vm636_vm2, %v4839_v45  ;;  %v970_v47 = vpop.f32.mrf.mxu1 }
 0x18a   : > { %v6092_v45 = vadd.f32 %v2223_v14, %v1652_v1  ;;  %v4753_v1 = vrot.slane %v4745_v39, 9  ;;  %v3669_v0 = vrot.slane %v3667_v61, 4  ;;  %v971_v36 = vadd.f32 %v970_v47, %v5708_v35 }
 0x18b   : > { %v3089_v47 = vor.u32 %v3088_v38, %v3084_v8 }
 0x18c   : > { %v1301_v33 = vpop.f32.mrf.mxu2  ;;  %4729 = vmatmul.msk.bf16.gmra.mxu3 %vm636_vm2, %v3408_v11  ;;  %6708 = vst [vmem:[#allocation6_spill] sm:$0xff] %v6092_v45  ;;  %v5059_v11 = vld [vmem:[%s5294_s5 + $0x34] sm:$0xf]  ;;  %v3379_v45 = vunpack.c.l.b16 %v3075_v62  ;;  %v3668_v63 = vsel %vm5554_vm6, %v4753_v1, %v3667_v61  ;;  %v3671_v35 = vsel %vm5554_vm6, %v3669_v0, %v3670_v53 }
 0x18d   : > { %v1354_v3 = vadd.f32 %v1301_v33, %v969_v60  ;;  %v2226_v57 = vpop.f32.mrf.mxu0  ;;  %v2362_v43 = vrot.slane %v5059_v11, 5  ;;  %v3094_v60 = vrot.slane %v3092_v58, 5  ;;  %v3098_v33 = vrot.slane %v3096_v52, 4  ;;  %v4840_v11 = vld [vmem:[%s5294_s5 + $0x3c] sm:$0xff] }
 0x18e   : > { %v3102_v52 = vshll.u32 %v6108_v37, 16  ;;  %v3409_v61 = vpack.c.b16 %v3380_v27, %v3379_v45  ;;  %v3765_v7 = vunpack.c.l.b16 %v3668_v63  ;;  %v3766_v1 = vunpack.c.l.b16 %v3671_v35  ;;  %v6130_v45 = vld [vmem:[%s5294_s5 + $0x54] sm:$0xf] }
 0x18f   : > { %v1600_v46 = vpop.f32.mrf.mxu3  ;;  %v2364_v39 = vrot.slane %v2362_v43, 4  ;;  %v2363_v17 = vsel %vm5554_vm6, %v2361_v25, %v2362_v43  ;;  %v3090_v8 = vrot.slane %v3089_v47, 4  ;;  %v3673_v43 = vrot.slane %v6088_v19, 5 }
 0x190   : > { %4773 = vmatmul.msk.bf16.gmra.mxu0 %vm636_vm2, %v3794_v18  ;;  %v1653_v14 = vadd.f32 %v1600_v46, %v1354_v3  ;;  %v5060_v18 = vld [vmem:[%s5294_s5 + $0x38] sm:$0x1]  ;;  %v3672_v19 = vrot.slane %v3670_v53, 4  ;;  %v3676_v47 = vrot.slane %v6108_v37, 5  ;;  %v4510_v53 = vld [vmem:[%s5294_s5 + $0x3c] sm:$0xe] }
 0x191   : > { %v973_v40 = vpop.f32.mrf.mxu1  ;;  %v2365_v29 = vrot.slane %v5060_v18, 5  ;;  %v2456_v18 = vunpack.c.l.b16 %v2363_v17  ;;  %v3095_v63 = vsel %vm5318_vm3, %v3090_v8, %v3094_v60  ;;  %v3675_v35 = vrot.slane %v3673_v43, 4 }
 0x192   : > { %v6110_v21 = vadd.f32 %v2226_v57, %v1653_v14  ;;  %v3099_v57 = vor.u32 %v3098_v33, %v3094_v60  ;;  %v3104_v33 = vrot.slane %v3102_v52, 5  ;;  %v3120_v17 = vshrl.u32 %v6130_v45, 16 }
 0x193   : > { %v3674_v8 = vsel %vm5554_vm6, %v3672_v19, %v3673_v43  ;;  %v6157_v19 = vld [vmem:[%s5294_s5 + $0x58] sm:$0xf] }
 0x194   : > { %v1303_v3 = vpop.f32.mrf.mxu2  ;;  %4538 = vmatmul.msk.bf16.gmra.mxu1 %vm636_vm2, %v2484_v42  ;;  %v2366_v42 = vsel %vm5554_vm6, %v2364_v39, %v2365_v29  ;;  %v3100_v38 = vrot.slane %v3099_v57, 4  ;;  %v3795_v29 = vpack.c.b16 %v3766_v1, %v3765_v7  ;;  %v3381_v7 = vunpack.c.l.b16 %v3095_v63  ;;  %v5062_v63 = vld [vmem:[%s5294_s5 + $0x44] sm:$0xf] }
 0x195   : > { %v1355_v46 = vadd.f32 %v1303_v3, %v971_v36  ;;  %v2228_v58 = vpop.f32.mrf.mxu0  ;;  %v974_v36 = vadd.f32 %v973_v40, %v5729_v56  ;;  %v2457_v3 = vunpack.c.l.b16 %v2366_v42  ;;  %v2372_v43 = vrot.slane %v5062_v63, 5 }
 0x196   : > { %v3105_v56 = vsel %vm5318_vm3, %v3100_v38, %v3104_v33  ;;  %v3677_v38 = vsel %vm5554_vm6, %v3675_v35, %v3676_v47 }
 0x197   : > { %v1602_v14 = vpop.f32.mrf.mxu3  ;;  %v2485_v40 = vpack.c.b16 %v2457_v3, %v2456_v18  ;;  %v3382_v1 = vunpack.c.l.b16 %v3105_v56  ;;  %v3768_v35 = vunpack.c.l.b16 %v3677_v38 }
 0x198   : > { %v1654_v62 = vadd.f32 %v1602_v14, %v1355_v46  ;;  %v4686_v46 = vld [vmem:[%s5294_s5 + $0x50] sm:$0xf] }
 0x199   : > { %4662 = vmatmul.msk.bf16.gmra.mxu2 %vm636_vm2, %v4840_v11  ;;  %v975_v0 = vpop.f32.mrf.mxu1  ;;  %v3107_v52 = vshrl.u32 %v4686_v46, 16  ;;  %v3110_v14 = vshll.u32 %v4686_v46, 16  ;;  %v4841_v46 = vld [vmem:[%s5294_s5 + $0x44] sm:$0xff] }
 0x19a   : > { %v6132_v11 = vadd.f32 %v2228_v58, %v1654_v62  ;;  %v3116_v58 = vshll.u32 %v6130_v45, 16  ;;  %v5061_v62 = vld [vmem:[%s5294_s5 + $0x40] sm:$0xf]  ;;  %v976_v37 = vadd.f32 %v975_v0, %v5755_v4  ;;  %v4518_v4 = vrot.slane %v4510_v53, 9 }
 0x19b   : > { %v3109_v18 = vrot.slane %v3107_v52, 4  ;;  %v3112_v3 = vrot.slane %v3110_v14, 5 }
 0x19c   : > { %v1306_v25 = vpop.f32.mrf.mxu2  ;;  %4730 = vmatmul.msk.bf16.gmra.mxu3 %vm636_vm2, %v3409_v61  ;;  %v2369_v61 = vrot.slane %v5061_v62, 5  ;;  %v3126_v62 = vshll.u32 %v6157_v19, 16 }
 0x19d   : > { %v1356_v39 = vadd.f32 %v1306_v25, %v974_v36  ;;  %v2231_v27 = vpop.f32.mrf.mxu0  ;;  %v6152_v25 = vrot.slane %v3116_v58, 5 }
 0x19e   : > { %v2371_v0 = vrot.slane %v2369_v61, 4 }
 0x19f   : > { %v1605_v57 = vpop.f32.mrf.mxu3 }
 0x1a0   : > { %4774 = vmatmul.msk.bf16.gmra.mxu0 %vm636_vm2, %v3795_v29  ;;  %v1655_v42 = vadd.f32 %v1605_v57, %v1356_v39  ;;  %v3122_v29 = vrot.slane %v3120_v17, 4  ;;  %v3410_v57 = vpack.c.b16 %v3382_v1, %v3381_v7  ;;  %v2370_v17 = vsel %vm5554_vm6, %v4518_v4, %v2369_v61  ;;  %v6168_v7 = vld [vmem:[%s5294_s5 + $0x5c] sm:$0xf]  ;;  %v4746_v4 = vld [vmem:[%s5294_s5 + $0x50] sm:$0xe] }
 0x1a1   : > { %v978_v60 = vpop.f32.mrf.mxu1 }
 0x1a2   : > { %v6149_v33 = vadd.f32 %v2231_v27, %v1655_v42  ;;  %v3767_v27 = vunpack.c.l.b16 %v3674_v8  ;;  %v3123_v52 = vor.u32 %v3122_v29, %v6152_v25  ;;  %v2373_v42 = vsel %vm5554_vm6, %v2371_v0, %v2372_v43 }
 0x1a3   : > { %v979_v53 = vadd.f32 %v978_v60, %v5779_v22  ;;  %v2458_v8 = vunpack.c.l.b16 %v2370_v17  ;;  %v2459_v38 = vunpack.c.l.b16 %v2373_v42  ;;  %v3680_v29 = vrot.slane %v6130_v45, 5 }
 0x1a4   : > { %v1308_v36 = vpop.f32.mrf.mxu2  ;;  %4539 = vmatmul.msk.bf16.gmra.mxu1 %vm636_vm2, %v2485_v40  ;;  %v3113_v40 = vor.u32 %v3112_v3, %v3109_v18  ;;  %v3124_v18 = vrot.slane %v3123_v52, 4  ;;  %v3128_v3 = vrot.slane %v3126_v62, 5  ;;  %v3130_v22 = vshrl.u32 %v6157_v19, 16 }
 0x1a5   : > { %v1357_v39 = vadd.f32 %v1308_v36, %v976_v37  ;;  %v2233_v56 = vpop.f32.mrf.mxu0  ;;  %v3796_v37 = vpack.c.b16 %v3768_v35, %v3767_v27  ;;  %v3136_v60 = vshll.u32 %v6168_v7, 16  ;;  %v3140_v0 = vshrl.u32 %v6168_v7, 16 }
 0x1a6   : > { %v3114_v36 = vrot.slane %v3113_v40, 4  ;;  %v2486_v27 = vpack.c.b16 %v2459_v38, %v2458_v8  ;;  %v3129_v40 = vsel %vm5318_vm3, %v3124_v18, %v3128_v3  ;;  %v4754_v52 = vrot.slane %v4746_v4, 9 }
 0x1a7   : > { %v1607_v47 = vpop.f32.mrf.mxu3  ;;  %v3683_v17 = vrot.slane %v6157_v19, 5  ;;  %v3132_v42 = vrot.slane %v3130_v22, 4  ;;  %v3138_v62 = vrot.slane %v3136_v60, 5  ;;  %v2374_v18 = vrot.slane %v2372_v43, 4 }
 0x1a8   : > { %v1656_v14 = vadd.f32 %v1607_v47, %v1357_v39  ;;  %v3119_v35 = vsel %vm5318_vm3, %v3114_v36, %v6152_v25  ;;  %v5063_v47 = vld [vmem:[%s5294_s5 + $0x48] sm:$0xf]  ;;  %v3384_v19 = vunpack.c.l.b16 %v3129_v40  ;;  %v3681_v22 = vsel %vm5554_vm6, %v4754_v52, %v3680_v29 }
 0x1a9   : > { %4663 = vmatmul.msk.bf16.gmra.mxu2 %vm636_vm2, %v4841_v46  ;;  %v980_v58 = vpop.f32.mrf.mxu1  ;;  %v2375_v45 = vrot.slane %v5063_v47, 5  ;;  %v3383_v47 = vunpack.c.l.b16 %v3119_v35  ;;  %v3769_v40 = vunpack.c.l.b16 %v3681_v22 }
 0x1aa   : > { %v6172_v39 = vadd.f32 %v2233_v56, %v1656_v14  ;;  %v3682_v14 = vrot.slane %v3680_v29, 4  ;;  %v981_v25 = vadd.f32 %v980_v58, %v5794_v50  ;;  %v3133_v58 = vor.u32 %v3132_v42, %v3128_v3 }
 0x1ab   : > { %v2376_v43 = vsel %vm5554_vm6, %v2374_v18, %v2375_v45  ;;  %v3411_v29 = vpack.c.b16 %v3384_v19, %v3383_v47 }
 0x1ac   : > { %v1311_v1 = vpop.f32.mrf.mxu2  ;;  %4731 = vmatmul.msk.bf16.gmra.mxu3 %vm636_vm2, %v3410_v57  ;;  %v3684_v50 = vsel %vm5554_vm6, %v3682_v14, %v3683_v17  ;;  %v3134_v3 = vrot.slane %v3133_v58, 4 }
 0x1ad   : > { %v1358_v61 = vadd.f32 %v1311_v1, %v979_v53  ;;  %v2236_v46 = vpop.f32.mrf.mxu0  ;;  %v3142_v53 = vrot.slane %v3140_v0, 4  ;;  %v6188_v1 = vld [vmem:[%s5294_s5 + $0x60] sm:$0x1]  ;;  %v3770_v52 = vunpack.c.l.b16 %v3684_v50 }
 0x1ae   : > { %v3146_v0 = vshll.u32 %v6188_v1, 16  ;;  %v3139_v22 = vsel %vm5318_vm3, %v3134_v3, %v3138_v62  ;;  %v3689_v58 = vrot.slane %v6188_v1, 5 }
 0x1af   : > { %v1610_v63 = vpop.f32.mrf.mxu3 }
 0x1b0   : > { %4775 = vmatmul.msk.bf16.gmra.mxu0 %vm636_vm2, %v3796_v37  ;;  %v1657_v56 = vadd.f32 %v1610_v63, %v1358_v61  ;;  %v5064_v37 = vld [vmem:[%s5294_s5 + $0x4c] sm:$0x1]  ;;  %v2377_v61 = vrot.slane %v2375_v45, 4  ;;  %v4842_v63 = vld [vmem:[%s5294_s5 + $0x50] sm:$0xff]  ;;  %v3686_v45 = vrot.slane %v6168_v7, 5  ;;  %v3685_v7 = vrot.slane %v3683_v17, 4 }
 0x1b1   : > { %v983_v57 = vpop.f32.mrf.mxu1  ;;  %v2378_v38 = vrot.slane %v5064_v37, 5  ;;  %v2460_v37 = vunpack.c.l.b16 %v2376_v43  ;;  %v4511_v17 = vld [vmem:[%s5294_s5 + $0x50] sm:$0xe] }
 0x1b2   : > { %v6190_v8 = vadd.f32 %v2236_v46, %v1657_v56  ;;  %v3143_v46 = vor.u32 %v3142_v53, %v3138_v62  ;;  %v3148_v53 = vrot.slane %v3146_v0, 5  ;;  %v3688_v50 = vrot.slane %v3686_v45, 4 }
 0x1b3   : > { %v3687_v3 = vsel %vm5554_vm6, %v3685_v7, %v3686_v45  ;;  %v6237_v7 = vld [vmem:[%s5294_s5 + $0x6c] sm:$0xf] }
 0x1b4   : > { %v1313_v36 = vpop.f32.mrf.mxu2  ;;  %4540 = vmatmul.msk.bf16.gmra.mxu1 %vm636_vm2, %v2486_v27  ;;  %v2379_v27 = vsel %vm5554_vm6, %v2377_v61, %v2378_v38  ;;  %v3144_v42 = vrot.slane %v3143_v46, 4  ;;  %v3797_v38 = vpack.c.b16 %v3770_v52, %v3769_v40  ;;  %v3385_v40 = vunpack.c.l.b16 %v3139_v22  ;;  %v5066_v22 = vld [vmem:[%s5294_s5 + $0x58] sm:$0xf] }
 0x1b5   : > { %v1359_v4 = vadd.f32 %v1313_v36, %v981_v25  ;;  %v2238_v60 = vpop.f32.mrf.mxu0  ;;  %v984_v25 = vadd.f32 %v983_v57, %v5663_v31  ;;  %v2461_v36 = vunpack.c.l.b16 %v2379_v27  ;;  %v2385_v45 = vrot.slane %v5066_v22, 5 }
 0x1b6   : > { %v3149_v31 = vsel %vm5318_vm3, %v3144_v42, %v3148_v53  ;;  %v3690_v42 = vsel %vm5554_vm6, %v3688_v50, %v3689_v58 }
 0x1b7   : > { %v1612_v56 = vpop.f32.mrf.mxu3  ;;  %v2487_v57 = vpack.c.b16 %v2461_v36, %v2460_v37  ;;  %v3386_v52 = vunpack.c.l.b16 %v3149_v31  ;;  %v3772_v50 = vunpack.c.l.b16 %v3690_v42 }
 0x1b8   : > { %v1658_v35 = vadd.f32 %v1612_v56, %v1359_v4  ;;  %v4691_v4 = vld [vmem:[%s5294_s5 + $0x64] sm:$0xf] }
 0x1b9   : > { %4664 = vmatmul.msk.bf16.gmra.mxu2 %vm636_vm2, %v4842_v63  ;;  %v985_v14 = vpop.f32.mrf.mxu1  ;;  %v6210_v63 = vld [vmem:[%s5294_s5 + $0x68] sm:$0xf]  ;;  %v3151_v0 = vshrl.u32 %v4691_v4, 16  ;;  %v3154_v56 = vshll.u32 %v4691_v4, 16  ;;  %v4843_v4 = vld [vmem:[%s5294_s5 + $0x58] sm:$0xff] }
 0x1ba   : > { %v6212_v47 = vadd.f32 %v2238_v60, %v1658_v35  ;;  %v3160_v60 = vshll.u32 %v6210_v63, 16  ;;  %v3164_v43 = vshrl.u32 %v6210_v63, 16  ;;  %v5065_v35 = vld [vmem:[%s5294_s5 + $0x54] sm:$0xf]  ;;  %v986_v1 = vadd.f32 %v985_v14, %v5680_v16 }
 0x1bb   : > { %v3153_v37 = vrot.slane %v3151_v0, 4  ;;  %v3156_v36 = vrot.slane %v3154_v56, 5  ;;  %v4519_v16 = vrot.slane %v4511_v17, 9 }
 0x1bc   : > { %v1316_v18 = vpop.f32.mrf.mxu2  ;;  %4732 = vmatmul.msk.bf16.gmra.mxu3 %vm636_vm2, %v3411_v29  ;;  %v2382_v29 = vrot.slane %v5065_v35, 5  ;;  %v3170_v35 = vshll.u32 %v6237_v7, 16 }
 0x1bd   : > { %v1360_v61 = vadd.f32 %v1316_v18, %v984_v25  ;;  %v2241_v19 = vpop.f32.mrf.mxu0  ;;  %v6232_v18 = vrot.slane %v3160_v60, 5 }
 0x1be   : > { %v2384_v14 = vrot.slane %v2382_v29, 4 }
 0x1bf   : > { %v1615_v46 = vpop.f32.mrf.mxu3 }
 0x1c0   : > { %4776 = vmatmul.msk.bf16.gmra.mxu0 %vm636_vm2, %v3797_v38  ;;  %v1659_v27 = vadd.f32 %v1615_v46, %v1360_v61  ;;  %v3166_v38 = vrot.slane %v3164_v43, 4  ;;  %v3412_v46 = vpack.c.b16 %v3386_v52, %v3385_v40  ;;  %v2383_v43 = vsel %vm5554_vm6, %v4519_v16, %v2382_v29  ;;  %v6248_v40 = vld [vmem:[%s5294_s5 + $0x70] sm:$0xf]  ;;  %v4747_v16 = vld [vmem:[%s5294_s5 + $0x64] sm:$0xe] }
 0x1c1   : > { %v988_v62 = vpop.f32.mrf.mxu1 }
 0x1c2   : > { %v6229_v53 = vadd.f32 %v2241_v19, %v1659_v27  ;;  %v3771_v19 = vunpack.c.l.b16 %v3687_v3  ;;  %v3167_v0 = vor.u32 %v3166_v38, %v6232_v18  ;;  %v2386_v27 = vsel %vm5554_vm6, %v2384_v14, %v2385_v45 }
 0x1c3   : > { %v989_v17 = vadd.f32 %v988_v62, %v5700_v34  ;;  %v2462_v3 = vunpack.c.l.b16 %v2383_v43  ;;  %v2463_v42 = vunpack.c.l.b16 %v2386_v27  ;;  %v3693_v38 = vrot.slane %v6210_v63, 5 }
 0x1c4   : > { %v1318_v25 = vpop.f32.mrf.mxu2  ;;  %4541 = vmatmul.msk.bf16.gmra.mxu1 %vm636_vm2, %v2487_v57  ;;  %v3157_v57 = vor.u32 %v3156_v36, %v3153_v37  ;;  %v3168_v37 = vrot.slane %v3167_v0, 4  ;;  %v3172_v36 = vrot.slane %v3170_v35, 5  ;;  %v3174_v34 = vshrl.u32 %v6237_v7, 16 }
 0x1c5   : > { %v1361_v61 = vadd.f32 %v1318_v25, %v986_v1  ;;  %v2243_v31 = vpop.f32.mrf.mxu0  ;;  %v3798_v1 = vpack.c.b16 %v3772_v50, %v3771_v19  ;;  %v3180_v62 = vshll.u32 %v6248_v40, 16  ;;  %v3184_v14 = vshrl.u32 %v6248_v40, 16 }
 0x1c6   : > { %v3158_v25 = vrot.slane %v3157_v57, 4  ;;  %v2488_v19 = vpack.c.b16 %v2463_v42, %v2462_v3  ;;  %v3173_v57 = vsel %vm5318_vm3, %v3168_v37, %v3172_v36  ;;  %v4755_v0 = vrot.slane %v4747_v16, 9 }
 0x1c7   : > { %v1617_v58 = vpop.f32.mrf.mxu3  ;;  %v3696_v43 = vrot.slane %v6237_v7, 5  ;;  %v3176_v27 = vrot.slane %v3174_v34, 4  ;;  %v3182_v35 = vrot.slane %v3180_v62, 5  ;;  %v2387_v37 = vrot.slane %v2385_v45, 4 }
 0x1c8   : > { %v1660_v56 = vadd.f32 %v1617_v58, %v1361_v61  ;;  %v3163_v50 = vsel %vm5318_vm3, %v3158_v25, %v6232_v18  ;;  %v5067_v58 = vld [vmem:[%s5294_s5 + $0x5c] sm:$0xf]  ;;  %v3388_v7 = vunpack.c.l.b16 %v3173_v57  ;;  %v3694_v34 = vsel %vm5554_vm6, %v4755_v0, %v3693_v38 }
 0x1c9   : > { %4665 = vmatmul.msk.bf16.gmra.mxu2 %vm636_vm2, %v4843_v4  ;;  %v990_v60 = vpop.f32.mrf.mxu1  ;;  %v2388_v63 = vrot.slane %v5067_v58, 5  ;;  %v3387_v58 = vunpack.c.l.b16 %v3163_v50  ;;  %v3773_v57 = vunpack.c.l.b16 %v3694_v34 }
 0x1ca   : > { %v6252_v61 = vadd.f32 %v2243_v31, %v1660_v56  ;;  %v3695_v56 = vrot.slane %v3693_v38, 4  ;;  %v991_v18 = vadd.f32 %v990_v60, %v5717_v48  ;;  %v3177_v60 = vor.u32 %v3176_v27, %v3172_v36 }
 0x1cb   : > { %v2389_v45 = vsel %vm5554_vm6, %v2387_v37, %v2388_v63  ;;  %v3413_v38 = vpack.c.b16 %v3388_v7, %v3387_v58 }
 0x1cc   : > { %v1321_v52 = vpop.f32.mrf.mxu2  ;;  %4733 = vmatmul.msk.bf16.gmra.mxu3 %vm636_vm2, %v3412_v46  ;;  %v3697_v48 = vsel %vm5554_vm6, %v3695_v56, %v3696_v43  ;;  %v3178_v36 = vrot.slane %v3177_v60, 4 }
 0x1cd   : > { %v1362_v29 = vadd.f32 %v1321_v52, %v989_v17  ;;  %v2246_v4 = vpop.f32.mrf.mxu0  ;;  %v3186_v17 = vrot.slane %v3184_v14, 4  ;;  %v6268_v52 = vld [vmem:[%s5294_s5 + $0x74] sm:$0x1]  ;;  %v3774_v0 = vunpack.c.l.b16 %v3697_v48 }
 0x1ce   : > { %v3190_v14 = vshll.u32 %v6268_v52, 16  ;;  %v3183_v34 = vsel %vm5318_vm3, %v3178_v36, %v3182_v35  ;;  %v3702_v60 = vrot.slane %v6268_v52, 5 }
 0x1cf   : > { %v1620_v22 = vpop.f32.mrf.mxu3 }
 0x1d0   : > { %4777 = vmatmul.msk.bf16.gmra.mxu0 %vm636_vm2, %v3798_v1  ;;  %v1661_v31 = vadd.f32 %v1620_v22, %v1362_v29  ;;  %v5068_v1 = vld [vmem:[%s5294_s5 + $0x60] sm:$0x1]  ;;  %v2390_v29 = vrot.slane %v2388_v63, 4  ;;  %v4844_v22 = vld [vmem:[%s5294_s5 + $0x64] sm:$0xff]  ;;  %v3699_v63 = vrot.slane %v6248_v40, 5  ;;  %v3698_v40 = vrot.slane %v3696_v43, 4 }
 0x1d1   : > { %v993_v46 = vpop.f32.mrf.mxu1  ;;  %v2391_v42 = vrot.slane %v5068_v1, 5  ;;  %v2464_v1 = vunpack.c.l.b16 %v2389_v45  ;;  %v4512_v43 = vld [vmem:[%s5294_s5 + $0x64] sm:$0xe] }
 0x1d2   : > { %v6270_v3 = vadd.f32 %v2246_v4, %v1661_v31  ;;  %v3187_v4 = vor.u32 %v3186_v17, %v3182_v35  ;;  %v3192_v17 = vrot.slane %v3190_v14, 5  ;;  %v3701_v48 = vrot.slane %v3699_v63, 4 }
 0x1d3   : > { %v3700_v36 = vsel %vm5554_vm6, %v3698_v40, %v3699_v63  ;;  %v6317_v40 = vld [vmem:[%s5294_s5 + $0x80] sm:$0xf] }
 0x1d4   : > { %v1323_v25 = vpop.f32.mrf.mxu2  ;;  %4542 = vmatmul.msk.bf16.gmra.mxu1 %vm636_vm2, %v2488_v19  ;;  %v2392_v19 = vsel %vm5554_vm6, %v2390_v29, %v2391_v42  ;;  %v3188_v27 = vrot.slane %v3187_v4, 4  ;;  %v3799_v42 = vpack.c.b16 %v3774_v0, %v3773_v57  ;;  %v3389_v57 = vunpack.c.l.b16 %v3183_v34  ;;  %v5070_v34 = vld [vmem:[%s5294_s5 + $0x6c] sm:$0xf] }
 0x1d5   : > { %v1363_v16 = vadd.f32 %v1323_v25, %v991_v18  ;;  %v2248_v62 = vpop.f32.mrf.mxu0  ;;  %v994_v18 = vadd.f32 %v993_v46, %v5736_v6  ;;  %v2465_v25 = vunpack.c.l.b16 %v2392_v19  ;;  %v2398_v63 = vrot.slane %v5070_v34, 5 }
 0x1d6   : > { %v3193_v6 = vsel %vm5318_vm3, %v3188_v27, %v3192_v17  ;;  %v3703_v27 = vsel %vm5554_vm6, %v3701_v48, %v3702_v60 }
 0x1d7   : > { %v1622_v31 = vpop.f32.mrf.mxu3  ;;  %v2489_v46 = vpack.c.b16 %v2465_v25, %v2464_v1  ;;  %v3390_v0 = vunpack.c.l.b16 %v3193_v6  ;;  %v3776_v48 = vunpack.c.l.b16 %v3703_v27 }
 0x1d8   : > { %v1662_v50 = vadd.f32 %v1622_v31, %v1363_v16  ;;  %v4696_v16 = vld [vmem:[%s5294_s5 + $0x78] sm:$0xf] }
 0x1d9   : > { %4666 = vmatmul.msk.bf16.gmra.mxu2 %vm636_vm2, %v4844_v22  ;;  %v995_v56 = vpop.f32.mrf.mxu1  ;;  %v6290_v22 = vld [vmem:[%s5294_s5 + $0x7c] sm:$0xf]  ;;  %v3195_v14 = vshrl.u32 %v4696_v16, 16  ;;  %v3198_v31 = vshll.u32 %v4696_v16, 16  ;;  %v4845_v16 = vld [vmem:[%s5294_s5 + $0x6c] sm:$0xff] }
 0x1da   : > { %v6292_v58 = vadd.f32 %v2248_v62, %v1662_v50  ;;  %v3204_v62 = vshll.u32 %v6290_v22, 16  ;;  %v3208_v45 = vshrl.u32 %v6290_v22, 16  ;;  %v5069_v50 = vld [vmem:[%s5294_s5 + $0x68] sm:$0xf]  ;;  %v996_v52 = vadd.f32 %v995_v56, %v5764_v20 }
 0x1db   : > { %v3197_v1 = vrot.slane %v3195_v14, 4  ;;  %v3200_v25 = vrot.slane %v3198_v31, 5  ;;  %v4520_v20 = vrot.slane %v4512_v43, 9 }
 0x1dc   : > { %v1326_v37 = vpop.f32.mrf.mxu2  ;;  %4734 = vmatmul.msk.bf16.gmra.mxu3 %vm636_vm2, %v3413_v38  ;;  %v2395_v38 = vrot.slane %v5069_v50, 5  ;;  %v3214_v50 = vshll.u32 %v6317_v40, 16 }
 0x1dd   : > { %v1364_v29 = vadd.f32 %v1326_v37, %v994_v18  ;;  %v2251_v7 = vpop.f32.mrf.mxu0  ;;  %v6312_v37 = vrot.slane %v3204_v62, 5 }
 0x1de   : > { %v2397_v56 = vrot.slane %v2395_v38, 4 }
 0x1df   : > { %v1625_v4 = vpop.f32.mrf.mxu3 }
 0x1e0   : > { %4778 = vmatmul.msk.bf16.gmra.mxu0 %vm636_vm2, %v3799_v42  ;;  %v1663_v19 = vadd.f32 %v1625_v4, %v1364_v29  ;;  %v3210_v42 = vrot.slane %v3208_v45, 4  ;;  %v3414_v4 = vpack.c.b16 %v3390_v0, %v3389_v57  ;;  %v2396_v45 = vsel %vm5554_vm6, %v4520_v20, %v2395_v38  ;;  %v6328_v57 = vld [vmem:[%s5294_s5 + $0x84] sm:$0xf]  ;;  %v4748_v20 = vld [vmem:[%s5294_s5 + $0x78] sm:$0xe] }
 0x1e1   : > { %v998_v35 = vpop.f32.mrf.mxu1 }
 0x1e2   : > { %v6309_v17 = vadd.f32 %v2251_v7, %v1663_v19  ;;  %v3775_v7 = vunpack.c.l.b16 %v3700_v36  ;;  %v3211_v14 = vor.u32 %v3210_v42, %v6312_v37  ;;  %v2399_v19 = vsel %vm5554_vm6, %v2397_v56, %v2398_v63 }
 0x1e3   : > { %v999_v43 = vadd.f32 %v998_v35, %v5788_v28  ;;  %v2466_v36 = vunpack.c.l.b16 %v2396_v45  ;;  %v2467_v27 = vunpack.c.l.b16 %v2399_v19  ;;  %v3706_v42 = vrot.slane %v6290_v22, 5 }
 0x1e4   : > { %v1328_v18 = vpop.f32.mrf.mxu2  ;;  %4543 = vmatmul.msk.bf16.gmra.mxu1 %vm636_vm2, %v2489_v46  ;;  %v3201_v46 = vor.u32 %v3200_v25, %v3197_v1  ;;  %v3212_v1 = vrot.slane %v3211_v14, 4  ;;  %v3216_v25 = vrot.slane %v3214_v50, 5  ;;  %v3218_v28 = vshrl.u32 %v6317_v40, 16 }
 0x1e5   : > { %v1365_v29 = vadd.f32 %v1328_v18, %v996_v52  ;;  %v2253_v6 = vpop.f32.mrf.mxu0  ;;  %v3800_v52 = vpack.c.b16 %v3776_v48, %v3775_v7  ;;  %v3224_v35 = vshll.u32 %v6328_v57, 16  ;;  %v3228_v56 = vshrl.u32 %v6328_v57, 16 }
 0x1e6   : > { %v3202_v18 = vrot.slane %v3201_v46, 4  ;;  %v2490_v7 = vpack.c.b16 %v2467_v27, %v2466_v36  ;;  %v3217_v46 = vsel %vm5318_vm3, %v3212_v1, %v3216_v25  ;;  %v4756_v14 = vrot.slane %v4748_v20, 9  ;;  %v5072_v1 = vld [vmem:[%s5294_s5 + $0x74] sm:$0x1] }
 0x1e7   : > { %v1627_v60 = vpop.f32.mrf.mxu3  ;;  %v3709_v45 = vrot.slane %v6317_v40, 5  ;;  %v3220_v19 = vrot.slane %v3218_v28, 4  ;;  %v3226_v50 = vrot.slane %v3224_v35, 5  ;;  %v2400_v27 = vrot.slane %v2398_v63, 4 }
 0x1e8   : > { %v1664_v31 = vadd.f32 %v1627_v60, %v1365_v29  ;;  %v3207_v48 = vsel %vm5318_vm3, %v3202_v18, %v6312_v37  ;;  %v5071_v60 = vld [vmem:[%s5294_s5 + $0x70] sm:$0xf]  ;;  %v3392_v40 = vunpack.c.l.b16 %v3217_v46  ;;  %v3707_v28 = vsel %vm5554_vm6, %v4756_v14, %v3706_v42 }
 0x1e9   : > { %4667 = vmatmul.msk.bf16.gmra.mxu2 %vm636_vm2, %v4845_v16  ;;  %v1000_v62 = vpop.f32.mrf.mxu1  ;;  %v3777_v46 = vunpack.c.l.b16 %v3707_v28 }
 0x1ea   : > { %v6332_v29 = vadd.f32 %v2253_v6, %v1664_v31  ;;  %v3708_v31 = vrot.slane %v3706_v42, 4  ;;  %v1001_v37 = vadd.f32 %v1000_v62, %v5805_v2  ;;  %v3221_v62 = vor.u32 %v3220_v19, %v3216_v25 }
 0x1ec   : > { %v1331_v0 = vpop.f32.mrf.mxu2  ;;  %4735 = vmatmul.msk.bf16.gmra.mxu3 %vm636_vm2, %v3414_v4  ;;  %v2401_v4 = vrot.slane %v5071_v60, 5  ;;  %v3391_v60 = vunpack.c.l.b16 %v3207_v48  ;;  %v3710_v2 = vsel %vm5554_vm6, %v3708_v31, %v3709_v45  ;;  %v3222_v25 = vrot.slane %v3221_v62, 4 }
 0x1ed   : > { %v1366_v38 = vadd.f32 %v1331_v0, %v999_v43  ;;  %v2256_v16 = vpop.f32.mrf.mxu0  ;;  %v3230_v43 = vrot.slane %v3228_v56, 4  ;;  %v6348_v0 = vld [vmem:[%s5294_s5 + $0x88] sm:$0x1]  ;;  %v3778_v14 = vunpack.c.l.b16 %v3710_v2 }
 0x1ee   : > { %v2403_v18 = vrot.slane %v2401_v4, 4  ;;  %v3234_v56 = vshll.u32 %v6348_v0, 16  ;;  %v2402_v63 = vsel %vm5554_vm6, %v2400_v27, %v2401_v4  ;;  %v3415_v42 = vpack.c.b16 %v3392_v40, %v3391_v60 }
 0x1ef   : > { %v1630_v34 = vpop.f32.mrf.mxu3  ;;  %v3801_v27 = vpack.c.b16 %v3778_v14, %v3777_v46  ;;  %v3227_v60 = vsel %vm5318_vm3, %v3222_v25, %v3226_v50  ;;  %v3715_v62 = vrot.slane %v6348_v0, 5  ;;  %v4513_v0 = vld [vmem:[%s5294_s5 + $0x78] sm:$0xe] }
 0x1f0   : > { %4779 = vmatmul.msk.bf16.gmra.mxu0 %vm636_vm2, %v3800_v52  ;;  %v1665_v22 = vadd.f32 %v1630_v34, %v1366_v38  ;;  %v2404_v38 = vrot.slane %v5072_v1, 5  ;;  %v4846_v34 = vld [vmem:[%s5294_s5 + $0x78] sm:$0xff]  ;;  %v3712_v1 = vrot.slane %v6328_v57, 5  ;;  %v3711_v57 = vrot.slane %v3709_v45, 4 }
 0x1f1   : > { %v2567_v6 = vpop.f32.mrf.mxu1  ;;  %v3393_v45 = vunpack.c.l.b16 %v3227_v60  ;;  %v4521_v60 = vrot.slane %v4513_v0, 9 }
 0x1f2   : > { %v6350_v36 = vadd.f32 %v2256_v16, %v1665_v22  ;;  %v3231_v16 = vor.u32 %v3230_v43, %v3226_v50  ;;  %v2405_v22 = vsel %vm5554_vm6, %v2403_v18, %v2404_v38  ;;  %v3236_v43 = vrot.slane %v3234_v56, 5  ;;  %v4701_v18 = vld [vmem:[%s5294_s5 + $0x8c] sm:$0xf]  ;;  %v6369_v38 = vld [vmem:[%s5294_s5 + $0x90] sm:$0xf] }
 0x1f3   : > { %v3714_v2 = vrot.slane %v3712_v1, 4  ;;  %v3239_v56 = vshrl.u32 %v4701_v18, 16 }
 0x1f4   : > { %v1333_v52 = vpop.f32.mrf.mxu2  ;;  %4544 = vmatmul.msk.bf16.gmra.mxu1 %vm636_vm2, %v2490_v7  ;;  %v3232_v19 = vrot.slane %v3231_v16, 4 }
 0x1f5   : > { %v1367_v20 = vadd.f32 %v1333_v52, %v1001_v37  ;;  %v2258_v35 = vpop.f32.mrf.mxu0  ;;  %v2468_v37 = vunpack.c.l.b16 %v2402_v63  ;;  %v2469_v52 = vunpack.c.l.b16 %v2405_v22  ;;  %v3252_v63 = vshrl.u32 %v6369_v38, 16 }
 0x1f6   : > { %v3237_v40 = vsel %vm5318_vm3, %v3232_v19, %v3236_v43  ;;  %v2647_v22 = vadd.f32 %v2567_v6, %v5821_v9  ;;  %v3713_v19 = vsel %vm5554_vm6, %v3711_v57, %v3712_v1  ;;  %v3716_v9 = vsel %vm5554_vm6, %v3714_v2, %v3715_v62  ;;  %v6397_v1 = vld [vmem:[%s5294_s5 + $0x94] sm:$0xf] }
 0x1f7   : > { %v1632_v7 = vpop.f32.mrf.mxu3  ;;  %v2491_v28 = vpack.c.b16 %v2469_v52, %v2468_v37  ;;  %v3394_v46 = vunpack.c.l.b16 %v3237_v40  ;;  %v3241_v43 = vrot.slane %v3239_v56, 4  ;;  %v3779_v56 = vunpack.c.l.b16 %v3713_v19 }
 0x1f8   : > { %v1666_v48 = vadd.f32 %v1632_v7, %v1367_v20  ;;  %v3242_v7 = vshll.u32 %v4701_v18, 16 }
 0x1f9   : > { %4668 = vmatmul.msk.bf16.gmra.mxu2 %vm636_vm2, %v4846_v34  ;;  %v2569_v31 = vpop.f32.mrf.mxu1  ;;  %v3416_v62 = vpack.c.b16 %v3394_v46, %v3393_v45 }
 0x1fa   : > { %v6371_v20 = vadd.f32 %v2258_v35, %v1666_v48  ;;  %v3248_v35 = vshll.u32 %v6369_v38, 16  ;;  %v5073_v48 = vld [vmem:[%s5294_s5 + $0x7c] sm:$0xf]  ;;  %v2648_v25 = vadd.f32 %v2569_v31, %v5835_v10  ;;  %v3244_v37 = vrot.slane %v3242_v7, 5  ;;  %v5074_v31 = vld [vmem:[%s5294_s5 + $0x80] sm:$0xf] }
 0x1fb   : > { %v2411_v40 = vrot.slane %v5074_v31, 5  ;;  %v3780_v7 = vunpack.c.l.b16 %v3716_v9  ;;  %v4749_v31 = vld [vmem:[%s5294_s5 + $0x8c] sm:$0xe] }
 0x1fc   : > { %v2866_v4 = vpop.f32.mrf.mxu2  ;;  %4736 = vmatmul.msk.bf16.gmra.mxu3 %vm636_vm2, %v3415_v42  ;;  %v2408_v42 = vrot.slane %v5073_v48, 5  ;;  %v6392_v52 = vrot.slane %v3248_v35, 5  ;;  %v3245_v35 = vor.u32 %v3244_v37, %v3241_v43 }
 0x1fd   : > { %v3878_v34 = vpop.f32.mrf.mxu0  ;;  %v2946_v14 = vadd.f32 %v2866_v4, %v2647_v22  ;;  %v4847_v4 = vld [vmem:[%s5294_s5 + $0x80] sm:$0xff]  ;;  %v3802_v19 = vpack.c.b16 %v3780_v7, %v3779_v56 }
 0x1fe   : > { %v2410_v10 = vrot.slane %v2408_v42, 4  ;;  %v2409_v0 = vsel %vm5554_vm6, %v4521_v60, %v2408_v42  ;;  %v3246_v37 = vrot.slane %v3245_v35, 4  ;;  %v3719_v60 = vrot.slane %v6369_v38, 5  ;;  %v5075_v38 = vld [vmem:[%s5294_s5 + $0x84] sm:$0xf] }
 0x1ff   : > { %v3492_v16 = vpop.f32.mrf.mxu3  ;;  %v2414_v56 = vrot.slane %v5075_v38, 5 }
 0x200   : > { %4780 = vmatmul.msk.bf16.gmra.mxu0 %vm636_vm2, %v3801_v27  ;;  %v3254_v27 = vrot.slane %v3252_v63, 4  ;;  %v3572_v2 = vadd.f32 %v3492_v16, %v2946_v14  ;;  %v3258_v63 = vshll.u32 %v6397_v1, 16  ;;  %v2412_v16 = vsel %vm5554_vm6, %v2410_v10, %v2411_v40 }
 0x201   : > { %v6382_v50 = vpop.f32.mrf.mxu1  ;;  %v2471_v43 = vunpack.c.l.b16 %v2412_v16  ;;  %v3722_v16 = vrot.slane %v6397_v1, 5 }
 0x202   : > { %v3255_v45 = vor.u32 %v3254_v27, %v6392_v52  ;;  %v3958_v46 = vadd.f32 %v3878_v34, %v3572_v2  ;;  %v3262_v34 = vshrl.u32 %v6397_v1, 16  ;;  %v2649_v7 = vadd.f32 %v6382_v50, %v5846_v49  ;;  %v6437_v50 = vld [vmem:[%s5294_s5 + $0x9c] sm:$0x1] }
 0x204   : > { %v2868_v6 = vpop.f32.mrf.mxu2  ;;  %4545 = vmatmul.msk.bf16.gmra.mxu1 %vm636_vm2, %v2491_v28  ;;  %v3256_v42 = vrot.slane %v3255_v45, 4  ;;  %v3264_v45 = vrot.slane %v3262_v34, 4 }
 0x205   : > { %v2947_v18 = vadd.f32 %v2868_v6, %v2648_v25  ;;  %v3880_v57 = vpop.f32.mrf.mxu0  ;;  %v6410_v25 = vld [vmem:[%s5294_s5 + $0x98] sm:$0xf]  ;;  %v2470_v6 = vunpack.c.l.b16 %v2409_v0  ;;  %v3721_v0 = vrot.slane %v3719_v60, 4 }
 0x206   : > { %v3268_v27 = vshll.u32 %v6410_v25, 16 }
 0x207   : > { %v3494_v28 = vpop.f32.mrf.mxu3 }
 0x208   : > { %v3573_v22 = vadd.f32 %v3494_v28, %v2947_v18  ;;  %v2492_v28 = vpack.c.b16 %v2471_v43, %v2470_v6  ;;  %v2413_v6 = vrot.slane %v2411_v40, 4  ;;  %v2416_v43 = vrot.slane %v2414_v56, 4 }
 0x209   : > { %4669 = vmatmul.msk.bf16.gmra.mxu2 %vm636_vm2, %v4847_v4  ;;  %v2574_v48 = vpop.f32.mrf.mxu1  ;;  %v3260_v4 = vrot.slane %v3258_v63, 5 }
 0x20a   : > { %v3959_v14 = vadd.f32 %v3880_v57, %v3573_v22  ;;  %v3272_v57 = vshrl.u32 %v6410_v25, 16  ;;  %v4757_v22 = vrot.slane %v4749_v31, 9  ;;  %v2650_v49 = vadd.f32 %v2574_v48, %v5859_v51  ;;  %v4848_v31 = vld [vmem:[%s5294_s5 + $0x8c] sm:$0xff] }
 0x20b   : > { %v3261_v63 = vsel %vm5318_vm3, %v3256_v42, %v3260_v4  ;;  %v3723_v51 = vsel %vm5554_vm6, %v3721_v0, %v3722_v16  ;;  %v3265_v48 = vor.u32 %v3264_v45, %v3260_v4 }
 0x20c   : > { %v2871_v9 = vpop.f32.mrf.mxu2  ;;  %v4863_v18 = vpack.c.bf16 %v3959_v14, %v3958_v46  ;;  %4737 = vmatmul.msk.bf16.gmra.mxu3 %vm636_vm2, %v3416_v62  ;;  %v3251_v62 = vsel %vm5318_vm3, %v3246_v37, %v6392_v52  ;;  %v6433_v52 = vrot.slane %v3268_v27, 5  ;;  %v3274_v46 = vrot.slane %v3272_v57, 4  ;;  %v5076_v37 = vld [vmem:[%s5294_s5 + $0x88] sm:$0x1] }
 0x20d   : > { %v3883_v10 = vpop.f32.mrf.mxu0  ;;  %v2948_v14 = vadd.f32 %v2871_v9, %v2649_v7  ;;  %v3395_v38 = vunpack.c.l.b16 %v3251_v62  ;;  %v3396_v1 = vunpack.c.l.b16 %v3261_v63  ;;  %v3720_v34 = vsel %vm5554_vm6, %v4757_v22, %v3719_v60 }
 0x20e   : > { %4864 = vst [vmem:[%s6418_s3] sm:$0xff] %v4863_v18   ;;  %v2417_v18 = vrot.slane %v5076_v37, 5  ;;  %v3275_v9 = vor.u32 %v3274_v46, %v6433_v52  ;;  %v3278_v57 = vshll.u32 %v6437_v50, 16  ;;  %v2415_v7 = vsel %vm5554_vm6, %v2413_v6, %v2414_v56 }
 0x20f   : > { %v3497_v2 = vpop.f32.mrf.mxu3  ;;  %v3417_v60 = vpack.c.b16 %v3396_v1, %v3395_v38  ;;  %v3781_v22 = vunpack.c.l.b16 %v3720_v34  ;;  %v3782_v4 = vunpack.c.l.b16 %v3723_v51  ;;  %v3266_v45 = vrot.slane %v3265_v48, 4 }
 0x210   : > { %4781 = vmatmul.msk.bf16.gmra.mxu0 %vm636_vm2, %v3802_v19  ;;  %v3574_v40 = vadd.f32 %v3497_v2, %v2948_v14  ;;  %v2418_v62 = vsel %vm5554_vm6, %v2416_v43, %v2417_v18  ;;  %v3276_v46 = vrot.slane %v3275_v9, 4  ;;  %v3280_v2 = vrot.slane %v3278_v57, 5 }
 0x211   : > { %v6428_v35 = vpop.f32.mrf.mxu1  ;;  %v3725_v14 = vrot.slane %v6410_v25, 5  ;;  %v2473_v6 = vunpack.c.l.b16 %v2418_v62  ;;  %v3803_v18 = vpack.c.b16 %v3782_v4, %v3781_v22  ;;  %v3271_v1 = vsel %vm5318_vm3, %v3266_v45, %v6433_v52  ;;  %v5077_v62 = vld [vmem:[%s5294_s5 + $0x90] sm:$0xf] }
 0x212   : > { %v3281_v25 = vsel %vm5318_vm3, %v3276_v46, %v3280_v2  ;;  %v3724_v34 = vrot.slane %v3722_v16, 4  ;;  %v3728_v51 = vrot.slane %v6437_v50, 5  ;;  %v2651_v52 = vadd.f32 %v6428_v35, %v5871_v30  ;;  %v4514_v50 = vld [vmem:[%s5294_s5 + $0x8c] sm:$0xe] }
 0x213   : > { %v3397_v16 = vunpack.c.l.b16 %v3271_v1 }
 0x214   : > { %v2873_v19 = vpop.f32.mrf.mxu2  ;;  %4546 = vmatmul.msk.bf16.gmra.mxu1 %vm636_vm2, %v2492_v28  ;;  %v3726_v45 = vsel %vm5554_vm6, %v3724_v34, %v3725_v14 }
 0x215   : > { %v2949_v42 = vadd.f32 %v2873_v19, %v2650_v49  ;;  %v3885_v27 = vpop.f32.mrf.mxu0  ;;  %v3960_v49 = vadd.f32 %v3883_v10, %v3574_v40  ;;  %v2472_v19 = vunpack.c.l.b16 %v2415_v7  ;;  %v3783_v34 = vunpack.c.l.b16 %v3726_v45 }
 0x217   : > { %v3499_v28 = vpop.f32.mrf.mxu3  ;;  %v2493_v10 = vpack.c.b16 %v2473_v6, %v2472_v19  ;;  %v4849_v6 = vld [vmem:[%s5294_s5 + $0x94] sm:$0xff] }
 0x218   : > { %v3575_v63 = vadd.f32 %v3499_v28, %v2949_v42  ;;  %v4706_v42 = vld [vmem:[%s5294_s5 + $0xa0] sm:$0xf] }
 0x219   : > { %4670 = vmatmul.msk.bf16.gmra.mxu2 %vm636_vm2, %v4848_v31  ;;  %v2579_v0 = vpop.f32.mrf.mxu1  ;;  %v6457_v31 = vld [vmem:[%s5294_s5 + $0xa4] sm:$0xf]  ;;  %v3283_v9 = vshrl.u32 %v4706_v42, 16  ;;  %v3286_v57 = vshll.u32 %v4706_v42, 16 }
 0x21a   : > { %v3961_v56 = vadd.f32 %v3885_v27, %v3575_v63  ;;  %v3727_v27 = vrot.slane %v3725_v14, 4  ;;  %v3292_v40 = vshll.u32 %v6457_v31, 16  ;;  %v3296_v28 = vshrl.u32 %v6457_v31, 16 }
 0x21b   : > { %v2421_v63 = vrot.slane %v5077_v62, 5  ;;  %v2652_v4 = vadd.f32 %v2579_v0, %v5885_v15  ;;  %v3285_v46 = vrot.slane %v3283_v9, 4  ;;  %v3288_v2 = vrot.slane %v3286_v57, 5  ;;  %v6482_v15 = vld [vmem:[%s5294_s5 + $0xa8] sm:$0xf] }
 0x21c   : > { %v2876_v43 = vpop.f32.mrf.mxu2  ;;  %v4868_v37 = vpack.c.bf16 %v3961_v56, %v3960_v49  ;;  %4738 = vmatmul.msk.bf16.gmra.mxu3 %vm636_vm2, %v3417_v60  ;;  %v3398_v60 = vunpack.c.l.b16 %v3281_v25  ;;  %v3729_v30 = vsel %vm5554_vm6, %v3727_v27, %v3728_v51  ;;  %v3294_v49 = vrot.slane %v3292_v40, 5 }
 0x21d   : > { %v3888_v38 = vpop.f32.mrf.mxu0  ;;  %v2950_v22 = vadd.f32 %v2876_v43, %v2651_v52  ;;  %v3298_v56 = vrot.slane %v3296_v28, 4  ;;  %v2423_v43 = vrot.slane %v2421_v63, 4  ;;  %v3784_v27 = vunpack.c.l.b16 %v3729_v30 }
 0x21e   : > { %4940 = vst [vmem:[%s6418_s3 + $0x8] sm:$0xff] %v4868_v37   ;;  %v4522_v37 = vrot.slane %v4514_v50, 9  ;;  %v3418_v1 = vpack.c.b16 %v3398_v60, %v3397_v16  ;;  %v3302_v51 = vshll.u32 %v6482_v15, 16  ;;  %v6491_v16 = vld [vmem:[%s5294_s5 + $0xac] sm:$0xf] }
 0x21f   : > { %v3502_v48 = vpop.f32.mrf.mxu3  ;;  %v3299_v52 = vor.u32 %v3298_v56, %v3294_v49  ;;  %v3804_v60 = vpack.c.b16 %v3784_v27, %v3783_v34  ;;  %v5079_v34 = vld [vmem:[%s5294_s5 + $0x98] sm:$0xf] }
 0x220   : > { %4782 = vmatmul.msk.bf16.gmra.mxu0 %vm636_vm2, %v3803_v18  ;;  %v5078_v18 = vld [vmem:[%s5294_s5 + $0x94] sm:$0xf]  ;;  %v3576_v14 = vadd.f32 %v3502_v48, %v2950_v22  ;;  %v2422_v40 = vsel %vm5554_vm6, %v4522_v37, %v2421_v63  ;;  %v4750_v63 = vld [vmem:[%s5294_s5 + $0xa0] sm:$0xe]  ;;  %v2427_v27 = vrot.slane %v5079_v34, 5 }
 0x221   : > { %v2582_v7 = vpop.f32.mrf.mxu1  ;;  %v2424_v42 = vrot.slane %v5078_v18, 5  ;;  %v2474_v22 = vunpack.c.l.b16 %v2422_v40 }
 0x222   : > { %v3962_v48 = vadd.f32 %v3888_v38, %v3576_v14  ;;  %v3306_v38 = vshrl.u32 %v6482_v15, 16  ;;  %v2653_v14 = vadd.f32 %v2582_v7, %v5895_v24  ;;  %v6514_v7 = vld [vmem:[%s5294_s5 + $0xb0] sm:$0x1] }
 0x223   : > { %v2425_v28 = vsel %vm5554_vm6, %v2423_v43, %v2424_v42 }
 0x224   : > { %v2878_v35 = vpop.f32.mrf.mxu2  ;;  %4547 = vmatmul.msk.bf16.gmra.mxu1 %vm636_vm2, %v2493_v10  ;;  %v3289_v10 = vor.u32 %v3288_v2, %v3285_v46  ;;  %v3304_v46 = vrot.slane %v3302_v51, 5  ;;  %v3732_v2 = vrot.slane %v6457_v31, 5  ;;  %v3308_v51 = vrot.slane %v3306_v38, 4 }
 0x225   : > { %v2951_v19 = vadd.f32 %v2878_v35, %v2652_v4  ;;  %v3890_v0 = vpop.f32.mrf.mxu0  ;;  %v2475_v4 = vunpack.c.l.b16 %v2425_v28  ;;  %v3300_v35 = vrot.slane %v3299_v52, 4 }
 0x226   : > { %v3290_v45 = vrot.slane %v3289_v10, 4  ;;  %v3735_v10 = vrot.slane %v6482_v15, 5  ;;  %v4850_v15 = vld [vmem:[%s5294_s5 + $0xa0] sm:$0xff] }
 0x227   : > { %v3504_v25 = vpop.f32.mrf.mxu3  ;;  %v2494_v43 = vpack.c.b16 %v2475_v4, %v2474_v22  ;;  %v2426_v22 = vrot.slane %v2424_v42, 4  ;;  %v2429_v4 = vrot.slane %v2427_v27, 4 }
 0x228   : > { %v3577_v9 = vadd.f32 %v3504_v25, %v2951_v19  ;;  %v3312_v19 = vshll.u32 %v6491_v16, 16  ;;  %v3295_v18 = vsel %vm5318_vm3, %v3290_v45, %v3294_v49  ;;  %v3734_v25 = vrot.slane %v3732_v2, 4  ;;  %v5080_v45 = vld [vmem:[%s5294_s5 + $0x9c] sm:$0x1] }
 0x229   : > { %4671 = vmatmul.msk.bf16.gmra.mxu2 %vm636_vm2, %v4849_v6  ;;  %v2584_v57 = vpop.f32.mrf.mxu1  ;;  %v3316_v6 = vshrl.u32 %v6491_v16, 16  ;;  %v3399_v52 = vunpack.c.l.b16 %v3295_v18 }
 0x22a   : > { %v3963_v62 = vadd.f32 %v3890_v0, %v3577_v9  ;;  %v4758_v0 = vrot.slane %v4750_v63, 9  ;;  %v6510_v9 = vrot.slane %v3312_v19, 5  ;;  %v2654_v24 = vadd.f32 %v2584_v57, %v5908_v12 }
 0x22b   : > { %v3318_v49 = vrot.slane %v3316_v6, 4  ;;  %v3736_v12 = vsel %vm5554_vm6, %v3734_v25, %v3735_v10  ;;  %v3309_v57 = vor.u32 %v3308_v51, %v3304_v46  ;;  %v3322_v63 = vshll.u32 %v6514_v7, 16 }
 0x22c   : > { %v2881_v50 = vpop.f32.mrf.mxu2  ;;  %v4873_v30 = vpack.c.bf16 %v3963_v62, %v3962_v48  ;;  %4739 = vmatmul.msk.bf16.gmra.mxu3 %vm636_vm2, %v3418_v1  ;;  %v3305_v1 = vsel %vm5318_vm3, %v3300_v35, %v3304_v46  ;;  %v3733_v62 = vsel %vm5554_vm6, %v4758_v0, %v3732_v2  ;;  %v3786_v42 = vunpack.c.l.b16 %v3736_v12 }
 0x22d   : > { %v3893_v56 = vpop.f32.mrf.mxu0  ;;  %v2952_v40 = vadd.f32 %v2881_v50, %v2653_v14  ;;  %v3400_v48 = vunpack.c.l.b16 %v3305_v1  ;;  %v3319_v50 = vor.u32 %v3318_v49, %v6510_v9  ;;  %v2428_v0 = vsel %vm5554_vm6, %v2426_v22, %v2427_v27  ;;  %v6534_v27 = vld [vmem:[%s5294_s5 + $0xb8] sm:$0xf] }
 0x22e   : > { %4941 = vst [vmem:[%s6418_s3 + $0x10] sm:$0xff] %v4873_v30   ;;  %v2430_v30 = vrot.slane %v5080_v45, 5  ;;  %v3310_v14 = vrot.slane %v3309_v57, 4  ;;  %v3738_v51 = vrot.slane %v6491_v16, 5  ;;  %v3737_v16 = vrot.slane %v3735_v10, 4 }
 0x22f   : > { %v3507_v37 = vpop.f32.mrf.mxu3  ;;  %v3419_v6 = vpack.c.b16 %v3400_v48, %v3399_v52  ;;  %v3320_v1 = vrot.slane %v3319_v50, 4  ;;  %v3336_v12 = vshll.u32 %v6534_v27, 16  ;;  %v3340_v57 = vshrl.u32 %v6534_v27, 16 }
 0x230   : > { %4783 = vmatmul.msk.bf16.gmra.mxu0 %vm636_vm2, %v3804_v60  ;;  %v3578_v38 = vadd.f32 %v3507_v37, %v2952_v40  ;;  %v2431_v46 = vsel %vm5554_vm6, %v2429_v4, %v2430_v30  ;;  %v3324_v37 = vrot.slane %v3322_v63, 5  ;;  %v2476_v40 = vunpack.c.l.b16 %v2428_v0  ;;  %v5081_v63 = vld [vmem:[%s5294_s5 + $0xa4] sm:$0xf] }
 0x231   : > { %v6504_v31 = vpop.f32.mrf.mxu1  ;;  %v2434_v10 = vrot.slane %v5081_v63, 5 }
 0x232   : > { %v3964_v25 = vadd.f32 %v3893_v56, %v3578_v38  ;;  %v3325_v56 = vsel %vm5318_vm3, %v3320_v1, %v3324_v37  ;;  %v4851_v37 = vld [vmem:[%s5294_s5 + $0xa8] sm:$0xff] }
 0x234   : > { %v2883_v28 = vpop.f32.mrf.mxu2  ;;  %4548 = vmatmul.msk.bf16.gmra.mxu1 %vm636_vm2, %v2494_v43  ;;  %v3785_v43 = vunpack.c.l.b16 %v3733_v62 }
 0x235   : > { %v2953_v60 = vadd.f32 %v2883_v28, %v2654_v24  ;;  %v3895_v35 = vpop.f32.mrf.mxu0  ;;  %v2477_v24 = vunpack.c.l.b16 %v2431_v46  ;;  %v4711_v28 = vld [vmem:[%s5294_s5 + $0xb4] sm:$0xf]  ;;  %v3338_v46 = vrot.slane %v3336_v12, 5 }
 0x236   : > { %v3805_v48 = vpack.c.b16 %v3786_v42, %v3785_v43  ;;  %v3327_v22 = vshrl.u32 %v4711_v28, 16  ;;  %v3330_v4 = vshll.u32 %v4711_v28, 16 }
 0x237   : > { %v3509_v19 = vpop.f32.mrf.mxu3  ;;  %v2495_v30 = vpack.c.b16 %v2477_v24, %v2476_v40 }
 0x238   : > { %v3579_v2 = vadd.f32 %v3509_v19, %v2953_v60  ;;  %v3315_v60 = vsel %vm5318_vm3, %v3310_v14, %v6510_v9  ;;  %v2655_v9 = vadd.f32 %v6504_v31, %v5920_v41  ;;  %v3402_v19 = vunpack.c.l.b16 %v3325_v56 }
 0x239   : > { %4672 = vmatmul.msk.bf16.gmra.mxu2 %vm636_vm2, %v4850_v15  ;;  %v2589_v18 = vpop.f32.mrf.mxu1  ;;  %v3740_v15 = vrot.slane %v3738_v51, 4  ;;  %v3401_v38 = vunpack.c.l.b16 %v3315_v60  ;;  %v3332_v42 = vrot.slane %v3330_v4, 5  ;;  %v3739_v41 = vsel %vm5554_vm6, %v3737_v16, %v3738_v51 }
 0x23a   : > { %v3965_v34 = vadd.f32 %v3895_v35, %v3579_v2  ;;  %v3741_v35 = vrot.slane %v6514_v7, 5  ;;  %v2656_v7 = vadd.f32 %v2589_v18, %v5934_v13  ;;  %v3329_v2 = vrot.slane %v3327_v22, 4  ;;  %v6559_v13 = vld [vmem:[%s5294_s5 + $0xbc] sm:$0xf] }
 0x23b   : > { %v3342_v14 = vrot.slane %v3340_v57, 4  ;;  %v3787_v51 = vunpack.c.l.b16 %v3739_v41  ;;  %v3346_v56 = vshll.u32 %v6559_v13, 16 }
 0x23c   : > { %v2886_v49 = vpop.f32.mrf.mxu2  ;;  %v4878_v52 = vpack.c.bf16 %v3965_v34, %v3964_v25  ;;  %4740 = vmatmul.msk.bf16.gmra.mxu3 %vm636_vm2, %v3419_v6  ;;  %v4515_v6 = vld [vmem:[%s5294_s5 + $0xa0] sm:$0xe]  ;;  %v3742_v31 = vsel %vm5554_vm6, %v3740_v15, %v3741_v35  ;;  %v2436_v34 = vrot.slane %v2434_v10, 4  ;;  %v3333_v28 = vor.u32 %v3332_v42, %v3329_v2 }
 0x23d   : > { %v3898_v62 = vpop.f32.mrf.mxu0  ;;  %v2954_v43 = vadd.f32 %v2886_v49, %v2655_v9  ;;  %v4523_v25 = vrot.slane %v4515_v6, 9  ;;  %v5082_v49 = vld [vmem:[%s5294_s5 + $0xa8] sm:$0xf]  ;;  %v3788_v60 = vunpack.c.l.b16 %v3742_v31 }
 0x23e   : > { %4942 = vst [vmem:[%s6418_s3 + $0x18] sm:$0xff] %v4878_v52   ;;  %v2437_v40 = vrot.slane %v5082_v49, 5  ;;  %v3334_v12 = vrot.slane %v3333_v28, 4 }
 0x23f   : > { %v3512_v45 = vpop.f32.mrf.mxu3  ;;  %v2435_v22 = vsel %vm5554_vm6, %v4523_v25, %v2434_v10 }
 0x240   : > { %4784 = vmatmul.msk.bf16.gmra.mxu0 %vm636_vm2, %v3805_v48  ;;  %v3580_v24 = vadd.f32 %v3512_v45, %v2954_v43  ;;  %v3420_v48 = vpack.c.b16 %v3402_v19, %v3401_v38  ;;  %v2438_v4 = vsel %vm5554_vm6, %v2436_v34, %v2437_v40  ;;  %v3343_v45 = vor.u32 %v3342_v14, %v3338_v46  ;;  %v4751_v38 = vld [vmem:[%s5294_s5 + $0xb4] sm:$0xe] }
 0x241   : > { %v2592_v50 = vpop.f32.mrf.mxu1  ;;  %v2478_v9 = vunpack.c.l.b16 %v2435_v22  ;;  %v2479_v63 = vunpack.c.l.b16 %v2438_v4  ;;  %v3745_v19 = vrot.slane %v6534_v27, 5  ;;  %v3806_v43 = vpack.c.b16 %v3788_v60, %v3787_v51 }
 0x242   : > { %v3344_v10 = vrot.slane %v3343_v45, 4  ;;  %v4759_v42 = vrot.slane %v4751_v38, 9  ;;  %v3748_v27 = vrot.slane %v6559_v13, 5  ;;  %v4852_v45 = vld [vmem:[%s5294_s5 + $0xb4] sm:$0xff]  ;;  %v4715_v38 = vld [vmem:[%s5294_s5 + $0xc4] sm:$0x1] }
 0x243   : > { %v2496_v31 = vpack.c.b16 %v2479_v63, %v2478_v9  ;;  %v3747_v14 = vrot.slane %v3745_v19, 4 }
 0x244   : > { %v2888_v0 = vpop.f32.mrf.mxu2  ;;  %4549 = vmatmul.msk.bf16.gmra.mxu1 %vm636_vm2, %v2495_v30  ;;  %v3966_v30 = vadd.f32 %v3898_v62, %v3580_v24  ;;  %v3339_v62 = vsel %vm5318_vm3, %v3334_v12, %v3338_v46  ;;  %v5083_v46 = vld [vmem:[%s5294_s5 + $0xac] sm:$0xf] }
 0x245   : > { %v2955_v1 = vadd.f32 %v2888_v0, %v2656_v7  ;;  %v3900_v18 = vpop.f32.mrf.mxu0  ;;  %v3348_v7 = vrot.slane %v3346_v56, 5  ;;  %v6574_v0 = vld [vmem:[%s5294_s5 + $0xc0] sm:$0xf]  ;;  %v3403_v51 = vunpack.c.l.b16 %v3339_v62  ;;  %v3746_v56 = vsel %vm5554_vm6, %v4759_v42, %v3745_v19 }
 0x246   : > { %v3356_v24 = vshll.u32 %v6574_v0, 16  ;;  %v3360_v28 = vshrl.u32 %v6574_v0, 16  ;;  %v3789_v19 = vunpack.c.l.b16 %v3746_v56 }
 0x247   : > { %v3514_v52 = vpop.f32.mrf.mxu3  ;;  %v3349_v49 = vsel %vm5318_vm3, %v3344_v10, %v3348_v7 }
 0x248   : > { %v3581_v16 = vadd.f32 %v3514_v52, %v2955_v1  ;;  %v3350_v1 = vshrl.u32 %v6559_v13, 16  ;;  %v3362_v9 = vrot.slane %v3360_v28, 4 }
 0x249   : > { %4673 = vmatmul.msk.bf16.gmra.mxu2 %vm636_vm2, %v4851_v37  ;;  %v2594_v15 = vpop.f32.mrf.mxu1  ;;  %v6709_v37 = vld [vmem:[#allocation5_spill] sm:$0xff] }
 0x24a   : > { %v3967_v35 = vadd.f32 %v3900_v18, %v3581_v16  ;;  %v2657_v25 = vadd.f32 %v2592_v50, %v6709_v37  ;;  %v2440_v18 = vrot.slane %v5083_v46, 5  ;;  %v3404_v50 = vunpack.c.l.b16 %v3349_v49 }
 0x24b   : > { %v3749_v16 = vsel %vm5554_vm6, %v3747_v14, %v3748_v27  ;;  %v3352_v22 = vrot.slane %v3350_v1, 4  ;;  %v3366_v37 = vshll.u32 %v4715_v38, 16 }
 0x24c   : > { %v2891_v57 = vpop.f32.mrf.mxu2  ;;  %v4883_v6 = vpack.c.bf16 %v3967_v35, %v3966_v30  ;;  %4741 = vmatmul.msk.bf16.gmra.mxu3 %vm636_vm2, %v3420_v48  ;;  %v2658_v48 = vadd.f32 %v2594_v15, %v5979_v44  ;;  %v2439_v30 = vrot.slane %v2437_v40, 4  ;;  %v2442_v35 = vrot.slane %v2440_v18, 4  ;;  %v5084_v44 = vld [vmem:[%s5294_s5 + $0xb0] sm:$0x1] }
 0x24d   : > { %v3903_v2 = vpop.f32.mrf.mxu0  ;;  %v2956_v52 = vadd.f32 %v2891_v57, %v2657_v25  ;;  %v2443_v15 = vrot.slane %v5084_v44, 5  ;;  %v3358_v57 = vrot.slane %v3356_v24, 5  ;;  %v3790_v10 = vunpack.c.l.b16 %v3749_v16 }
 0x24e   : > { %4943 = vst [vmem:[%s6418_s3 + $0x20] sm:$0xff] %v4883_v6   ;;  %v3353_v14 = vor.u32 %v3352_v22, %v3348_v7 }
 0x24f   : > { %v3517_v41 = vpop.f32.mrf.mxu3  ;;  %v2444_v40 = vsel %vm5554_vm6, %v2442_v35, %v2443_v15  ;;  %v3363_v1 = vor.u32 %v3362_v9, %v3358_v57 }
 0x250   : > { %4785 = vmatmul.msk.bf16.gmra.mxu0 %vm636_vm2, %v3806_v43  ;;  %v3582_v63 = vadd.f32 %v3517_v41, %v2956_v52  ;;  %v3421_v43 = vpack.c.b16 %v3404_v50, %v3403_v51  ;;  %v2481_v24 = vunpack.c.l.b16 %v2444_v40  ;;  %v3807_v52 = vpack.c.b16 %v3790_v10, %v3789_v19 }
 0x251   : > { %v2597_v34 = vpop.f32.mrf.mxu1  ;;  %v3751_v50 = vrot.slane %v6574_v0, 5  ;;  %v3754_v0 = vrot.slane %v4715_v38, 5 }
 0x252   : > { %v3968_v41 = vadd.f32 %v3903_v2, %v3582_v63  ;;  %v2659_v2 = vadd.f32 %v2597_v34, %v5991_v54  ;;  %v4853_v34 = vld [vmem:[%s5294_s5 + $0xbc] sm:$0xff]  ;;  %s4789_s5 = sshll.u32 %s5163_s12, 5 }
 0x253   : > { %s4066_s6 = sadd.s32 %s4790_s4, %s4789_s5 }
 0x254   : > { %v2893_v60 = vpop.f32.mrf.mxu2  ;;  %4550 = vmatmul.msk.bf16.gmra.mxu1 %vm636_vm2, %v2496_v31  ;;  %v2441_v31 = vsel %vm5554_vm6, %v2439_v30, %v2440_v18  ;;  %v3368_v18 = vrot.slane %v3366_v37, 5  ;;  %v3753_v30 = vrot.slane %v3751_v50, 4  ;;  %s4791_s7 = sshll.u32 %s4066_s6, 2 }
 0x255   : > { %v2957_v4 = vadd.f32 %v2893_v60, %v2658_v48  ;;  %v3905_v12 = vpop.f32.mrf.mxu0  ;;  %v2480_v46 = vunpack.c.l.b16 %v2441_v31  ;;  %v3354_v48 = vrot.slane %v3353_v14, 4  ;;  %v3364_v60 = vrot.slane %v3363_v1, 4  ;;  %s4068_s13 = scalar_lea.hbm %s6698_s2, %s4791_s7 }
 0x256   : > { %v3755_v13 = vsel %vm5554_vm6, %v3753_v30, %v3754_v0  ;;  %s4071_s18 = sshll.u32 %s4068_s13, 4  ;;  %s4072_s18 = int_to_ptr.hbm [resolvable:$true] %s4071_s18 }
 0x257   : > { %v3519_v6 = vpop.f32.mrf.mxu3  ;;  %v2497_v56 = vpack.c.b16 %v2481_v24, %v2480_v46  ;;  %v3359_v22 = vsel %vm5318_vm3, %v3354_v48, %v3358_v57  ;;  %s5099_s24 = sshra.s32 %s4072_s18, 4  ;;  %s5100_s24 = int_to_ptr.hbm [resolvable:$true] %s5099_s24 }
 0x258   : > { %v3583_v62 = vadd.f32 %v3519_v6, %v2957_v4  ;;  %v3369_v4 = vsel %vm5318_vm3, %v3364_v60, %v3368_v18  ;;  %s5101_s25 = scalar_lea.hbm %s5100_s24, 128  ;;  %p5106_p4 = scmp.lt.s32.totalorder %s5100_s24, %s6698_s2 }
 0x259   : > { %4674 = vmatmul.msk.bf16.gmra.mxu2 %vm636_vm2, %v4852_v45  ;;  %v2599_v42 = vpop.f32.mrf.mxu1  ;;  %v3750_v45 = vrot.slane %v3748_v27, 4  ;;  %v3406_v9 = vunpack.c.l.b16 %v3369_v4  ;;  %p5102_p0 = scmp.ne.s32.totalorder %s5100_s24, %s5101_s25  ;;  %p5107_p5 = scmp.lt.s32.totalorder %s5105_s30, %s5101_s25 }
 0x25a   : > { %v3969_v25 = vadd.f32 %v3905_v12, %v3583_v62  ;;  %v2660_v44 = vadd.f32 %v2599_v42, %v6020_v5  ;;  %v3405_v12 = vunpack.c.l.b16 %v3359_v22 }
 0x25b   : > { %v3752_v32 = vsel %vm5554_vm6, %v3750_v45, %v3751_v50  ;;  %p5103_p1 = pnand %p5102_p0, %p5249_p3  ;;  %p5108_p6 = por %p5107_p5, %p5106_p4 }
 0x25c   : > { %v2896_v49 = vpop.f32.mrf.mxu2  ;;  %v4888_v28 = vpack.c.bf16 %v3969_v25, %v3968_v41  ;;  %4742 = vmatmul.msk.bf16.gmra.mxu3 %vm636_vm2, %v3421_v43  ;;  %v3422_v5 = vpack.c.b16 %v3406_v9, %v3405_v12  ;;  %v3791_v6 = vunpack.c.l.b16 %v3752_v32  ;;  %v3792_v43 = vunpack.c.l.b16 %v3755_v13 }
 0x25d   : > { %v3908_v51 = vpop.f32.mrf.mxu0  ;;  %v2958_v35 = vadd.f32 %v2896_v49, %v2659_v2  ;;  %p5104_p2 = pneg %p5103_p1 }
 0x25e   : > { %4944 = vst [vmem:[%s6418_s3 + $0x28] sm:$0xff] %v4888_v28   ;;  %v3808_v40 = vpack.c.b16 %v3792_v43, %v3791_v6 }
 0x25f   : > { %v3522_v7 = vpop.f32.mrf.mxu3  ;;  %p5109_p7 = pnand %p5108_p6, %p5104_p2 }
 0x260   : > { %4786 = vmatmul.msk.bf16.gmra.mxu0 %vm636_vm2, %v3807_v52  ;;  %v3584_v27 = vadd.f32 %v3522_v7, %v2958_v35 }
 0x261   : > { %v2602_v16 = vpop.f32.mrf.mxu1 }
 0x262   : > { %v3970_v10 = vadd.f32 %v3908_v51, %v3584_v27  ;;  %v2661_v1 = vadd.f32 %v2602_v16, %v6034_v55 }
 0x264   : > { %v2898_v15 = vpop.f32.mrf.mxu2  ;;  %4551 = vmatmul.msk.bf16.gmra.mxu1 %vm636_vm2, %v2497_v56 }
 0x265   : > { %v2959_v54 = vadd.f32 %v2898_v15, %v2660_v44  ;;  %v3910_v63 = vpop.f32.mrf.mxu0 }
 0x267   : > { %v3524_v57 = vpop.f32.mrf.mxu3 }
 0x268   : > { %v3585_v38 = vadd.f32 %v3524_v57, %v2959_v54 }
 0x269   : > { %4675 = vmatmul.msk.bf16.gmra.mxu2 %vm636_vm2, %v4853_v34  ;;  %v2604_v19 = vpop.f32.mrf.mxu1 }
 0x26a   : > { %v3971_v62 = vadd.f32 %v3910_v63, %v3585_v38  ;;  %v2662_v25 = vadd.f32 %v2604_v19, %v6052_v59  ;;  %v6710_v59 = vld [vmem:[#allocation6_spill] sm:$0xff] }
 0x26c   : > { %v2901_v42 = vpop.f32.mrf.mxu2  ;;  %v4893_v31 = vpack.c.bf16 %v3971_v62, %v3970_v10  ;;  %4743 = vmatmul.msk.bf16.gmra.mxu3 %vm636_vm2, %v3422_v5 }
 0x26d   : > { %v3913_v14 = vpop.f32.mrf.mxu0  ;;  %v2960_v41 = vadd.f32 %v2901_v42, %v2661_v1 }
 0x26e   : > { %4945 = vst [vmem:[%s6418_s3 + $0x30] sm:$0xff] %v4893_v31  }
 0x26f   : > { %v3527_v26 = vpop.f32.mrf.mxu3 }
 0x270   : > { %4787 = vmatmul.msk.bf16.gmra.mxu0 %vm636_vm2, %v3808_v40  ;;  %v3586_v28 = vadd.f32 %v3527_v26, %v2960_v41 }
 0x271   : > { %v2607_v37 = vpop.f32.mrf.mxu1 }
 0x272   : > { %v3972_v60 = vadd.f32 %v3913_v14, %v3586_v28  ;;  %v2663_v2 = vadd.f32 %v2607_v37, %v6068_v23 }
 0x274   : > { %v2903_v49 = vpop.f32.mrf.mxu2 }
 0x275   : > { %v2961_v46 = vadd.f32 %v2903_v49, %v2662_v25  ;;  %v3915_v24 = vpop.f32.mrf.mxu0 }
 0x277   : > { %v3529_v52 = vpop.f32.mrf.mxu3 }
 0x278   : > { %v3587_v48 = vadd.f32 %v3529_v52, %v2961_v46 }
 0x279   : > { %v2609_v51 = vpop.f32.mrf.mxu1 }
 0x27a   : > { %v3973_v18 = vadd.f32 %v3915_v24, %v3587_v48  ;;  %v2664_v4 = vadd.f32 %v2609_v51, %v6710_v59 }
 0x27c   : > { %v2906_v50 = vpop.f32.mrf.mxu2  ;;  %v4898_v7 = vpack.c.bf16 %v3973_v18, %v3972_v60 }
 0x27d   : > { %v3918_v56 = vpop.f32.mrf.mxu0  ;;  %v2962_v22 = vadd.f32 %v2906_v50, %v2663_v2 }
 0x27e   : > { %4946 = vst [vmem:[%s6418_s3 + $0x38] sm:$0xff] %v4898_v7  }
 0x27f   : > { %v3532_v55 = vpop.f32.mrf.mxu3 }
 0x280   : > { %v3588_v35 = vadd.f32 %v3532_v55, %v2962_v22 }
 0x281   : > { %v2612_v16 = vpop.f32.mrf.mxu1 }
 0x282   : > { %v3974_v34 = vadd.f32 %v3918_v56, %v3588_v35  ;;  %v2665_v23 = vadd.f32 %v2612_v16, %v6110_v21 }
 0x284   : > { %v2908_v45 = vpop.f32.mrf.mxu2 }
 0x285   : > { %v2963_v30 = vadd.f32 %v2908_v45, %v2664_v4  ;;  %v3920_v0 = vpop.f32.mrf.mxu0 }
 0x287   : > { %v3534_v44 = vpop.f32.mrf.mxu3 }
 0x288   : > { %v3589_v15 = vadd.f32 %v3534_v44, %v2963_v30 }
 0x289   : > { %v2614_v54 = vpop.f32.mrf.mxu1 }
 0x28a   : > { %v3975_v12 = vadd.f32 %v3920_v0, %v3589_v15  ;;  %v2666_v38 = vadd.f32 %v2614_v54, %v6132_v11 }
 0x28c   : > { %v2911_v9 = vpop.f32.mrf.mxu2  ;;  %v4903_v63 = vpack.c.bf16 %v3975_v12, %v3974_v34 }
 0x28d   : > { %v3923_v32 = vpop.f32.mrf.mxu0  ;;  %v2964_v57 = vadd.f32 %v2911_v9, %v2665_v23 }
 0x28e   : > { %4947 = vst [vmem:[%s6418_s3 + $0x40] sm:$0xff] %v4903_v63  }
 0x28f   : > { %v3537_v13 = vpop.f32.mrf.mxu3 }
 0x290   : > { %v3590_v19 = vadd.f32 %v3537_v13, %v2964_v57 }
 0x291   : > { %v2617_v27 = vpop.f32.mrf.mxu1 }
 0x292   : > { %v3976_v31 = vadd.f32 %v3923_v32, %v3590_v19  ;;  %v2667_v21 = vadd.f32 %v2617_v27, %v6149_v33 }
 0x294   : > { %v2913_v5 = vpop.f32.mrf.mxu2 }
 0x295   : > { %v2965_v6 = vadd.f32 %v2913_v5, %v2666_v38  ;;  %v3925_v43 = vpop.f32.mrf.mxu0 }
 0x297   : > { %v3539_v10 = vpop.f32.mrf.mxu3 }
 0x298   : > { %v3591_v62 = vadd.f32 %v3539_v10, %v2965_v6 }
 0x299   : > { %v2619_v42 = vpop.f32.mrf.mxu1 }
 0x29a   : > { %v3977_v40 = vadd.f32 %v3925_v43, %v3591_v62  ;;  %v2668_v11 = vadd.f32 %v2619_v42, %v6172_v39 }
 0x29c   : > { %v2916_v14 = vpop.f32.mrf.mxu2  ;;  %v4908_v26 = vpack.c.bf16 %v3977_v40, %v3976_v31 }
 0x29d   : > { %v3928_v1 = vpop.f32.mrf.mxu0  ;;  %v2966_v25 = vadd.f32 %v2916_v14, %v2667_v21 }
 0x29e   : > { %4948 = vst [vmem:[%s6418_s3 + $0x48] sm:$0xff] %v4908_v26  }
 0x29f   : > { %v3542_v37 = vpop.f32.mrf.mxu3 }
 0x2a0   : > { %v3592_v28 = vadd.f32 %v3542_v37, %v2966_v25 }
 0x2a1   : > { %v2622_v41 = vpop.f32.mrf.mxu1 }
 0x2a2   : > { %v3978_v60 = vadd.f32 %v3928_v1, %v3592_v28  ;;  %v2669_v33 = vadd.f32 %v2622_v41, %v6190_v8 }
 0x2a4   : > { %v2918_v49 = vpop.f32.mrf.mxu2 }
 0x2a5   : > { %v2967_v46 = vadd.f32 %v2918_v49, %v2668_v11  ;;  %v3930_v24 = vpop.f32.mrf.mxu0 }
 0x2a7   : > { %v3544_v52 = vpop.f32.mrf.mxu3 }
 0x2a8   : > { %v3593_v48 = vadd.f32 %v3544_v52, %v2967_v46 }
 0x2a9   : > { %v2624_v51 = vpop.f32.mrf.mxu1 }
 0x2aa   : > { %v3979_v18 = vadd.f32 %v3930_v24, %v3593_v48  ;;  %v2670_v39 = vadd.f32 %v2624_v51, %v6212_v47 }
 0x2ac   : > { %v2921_v50 = vpop.f32.mrf.mxu2  ;;  %v4913_v7 = vpack.c.bf16 %v3979_v18, %v3978_v60 }
 0x2ad   : > { %v3933_v56 = vpop.f32.mrf.mxu0  ;;  %v2968_v16 = vadd.f32 %v2921_v50, %v2669_v33 }
 0x2ae   : > { %4949 = vst [vmem:[%s6418_s3 + $0x50] sm:$0xff] %v4913_v7  }
 0x2af   : > { %v3547_v55 = vpop.f32.mrf.mxu3 }
 0x2b0   : > { %v3594_v45 = vadd.f32 %v3547_v55, %v2968_v16 }
 0x2b1   : > { %v2627_v2 = vpop.f32.mrf.mxu1 }
 0x2b2   : > { %v3980_v44 = vadd.f32 %v3933_v56, %v3594_v45  ;;  %v2671_v8 = vadd.f32 %v2627_v2, %v6229_v53 }
 0x2b4   : > { %v2923_v22 = vpop.f32.mrf.mxu2 }
 0x2b5   : > { %v2969_v59 = vadd.f32 %v2923_v22, %v2670_v39  ;;  %v3935_v4 = vpop.f32.mrf.mxu0 }
 0x2b7   : > { %v3549_v30 = vpop.f32.mrf.mxu3 }
 0x2b8   : > { %v3595_v0 = vadd.f32 %v3549_v30, %v2969_v59 }
 0x2b9   : > { %v2629_v35 = vpop.f32.mrf.mxu1 }
 0x2ba   : > { %v3981_v15 = vadd.f32 %v3935_v4, %v3595_v0  ;;  %v2672_v47 = vadd.f32 %v2629_v35, %v6252_v61 }
 0x2bc   : > { %v2926_v54 = vpop.f32.mrf.mxu2  ;;  %v4918_v34 = vpack.c.bf16 %v3981_v15, %v3980_v44 }
 0x2bd   : > { %v3938_v12 = vpop.f32.mrf.mxu0  ;;  %v2970_v32 = vadd.f32 %v2926_v54, %v2671_v8 }
 0x2be   : > { %4950 = vst [vmem:[%s6418_s3 + $0x58] sm:$0xff] %v4918_v34  }
 0x2bf   : > { %v3552_v9 = vpop.f32.mrf.mxu3 }
 0x2c0   : > { %v3596_v57 = vadd.f32 %v3552_v9, %v2970_v32 }
 0x2c1   : > { %v2632_v63 = vpop.f32.mrf.mxu1 }
 0x2c2   : > { %v3982_v43 = vadd.f32 %v3938_v12, %v3596_v57  ;;  %v2673_v53 = vadd.f32 %v2632_v63, %v6270_v3 }
 0x2c4   : > { %v2928_v13 = vpop.f32.mrf.mxu2 }
 0x2c5   : > { %v2971_v23 = vadd.f32 %v2928_v13, %v2672_v47  ;;  %v3940_v27 = vpop.f32.mrf.mxu0 }
 0x2c7   : > { %v3554_v38 = vpop.f32.mrf.mxu3 }
 0x2c8   : > { %v3597_v5 = vadd.f32 %v3554_v38, %v2971_v23 }
 0x2c9   : > { %v2634_v6 = vpop.f32.mrf.mxu1 }
 0x2ca   : > { %v3983_v19 = vadd.f32 %v3940_v27, %v3597_v5  ;;  %v2674_v61 = vadd.f32 %v2634_v6, %v6292_v58 }
 0x2cc   : > { %v2931_v10 = vpop.f32.mrf.mxu2  ;;  %v4923_v62 = vpack.c.bf16 %v3983_v19, %v3982_v43 }
 0x2cd   : > { %v3943_v42 = vpop.f32.mrf.mxu0  ;;  %v2972_v14 = vadd.f32 %v2931_v10, %v2673_v53 }
 0x2ce   : > { %4951 = vst [vmem:[%s6418_s3 + $0x60] sm:$0xff] %v4923_v62  }
 0x2cf   : > { %v3557_v31 = vpop.f32.mrf.mxu3 }
 0x2d0   : > { %v3598_v21 = vadd.f32 %v3557_v31, %v2972_v14 }
 0x2d1   : > { %v2637_v40 = vpop.f32.mrf.mxu1 }
 0x2d2   : > { %v3984_v11 = vadd.f32 %v3943_v42, %v3598_v21  ;;  %v2675_v48 = vadd.f32 %v2637_v40, %v6309_v17 }
 0x2d4   : > { %v2933_v26 = vpop.f32.mrf.mxu2 }
 0x2d5   : > { %v2973_v1 = vadd.f32 %v2933_v26, %v2674_v61  ;;  %v3945_v37 = vpop.f32.mrf.mxu0 }
 0x2d7   : > { %v3559_v41 = vpop.f32.mrf.mxu3 }
 0x2d8   : > { %v3599_v25 = vadd.f32 %v3559_v41, %v2973_v1 }
 0x2d9   : > { %v2639_v46 = vpop.f32.mrf.mxu1 }
 0x2da   : > { %v3985_v49 = vadd.f32 %v3945_v37, %v3599_v25  ;;  %v2676_v51 = vadd.f32 %v2639_v46, %v6332_v29 }
 0x2dc   : > { %v2936_v24 = vpop.f32.mrf.mxu2  ;;  %v4928_v28 = vpack.c.bf16 %v3985_v49, %v3984_v11 }
 0x2dd   : > { %v3948_v52 = vpop.f32.mrf.mxu0  ;;  %v2974_v58 = vadd.f32 %v2936_v24, %v2675_v48 }
 0x2de   : > { %4952 = vst [vmem:[%s6418_s3 + $0x68] sm:$0xff] %v4928_v28  }
 0x2df   : > { %v3562_v3 = vpop.f32.mrf.mxu3 }
 0x2e0   : > { %v3600_v56 = vadd.f32 %v3562_v3, %v2974_v58 }
 0x2e1   : > { %v2642_v50 = vpop.f32.mrf.mxu1 }
 0x2e2   : > { %v3986_v2 = vadd.f32 %v3948_v52, %v3600_v56  ;;  %v2677_v29 = vadd.f32 %v2642_v50, %v6350_v36 }
 0x2e4   : > { %v2938_v60 = vpop.f32.mrf.mxu2 }
 0x2e5   : > { %v2975_v18 = vadd.f32 %v2938_v60, %v2676_v51  ;;  %v3950_v7 = vpop.f32.mrf.mxu0 }
 0x2e7   : > { %v3564_v55 = vpop.f32.mrf.mxu3 }
 0x2e8   : > { %v3601_v33 = vadd.f32 %v3564_v55, %v2975_v18 }
 0x2e9   : > { %v2644_v17 = vpop.f32.mrf.mxu1 }
 0x2ea   : > { %v3987_v16 = vadd.f32 %v3950_v7, %v3601_v33  ;;  %v2678_v30 = vadd.f32 %v2644_v17, %v6371_v20 }
 0x2ec   : > { %v2941_v39 = vpop.f32.mrf.mxu2  ;;  %v4933_v22 = vpack.c.bf16 %v3987_v16, %v3986_v2 }
 0x2ed   : > { %v3953_v59 = vpop.f32.mrf.mxu0  ;;  %v2976_v45 = vadd.f32 %v2941_v39, %v2677_v29 }
 0x2ee   : > { %4953 = vst [vmem:[%s6418_s3 + $0x70] sm:$0xff] %v4933_v22  }
 0x2ef   : > { %v3567_v4 = vpop.f32.mrf.mxu3 }
 0x2f0   : > { %v3602_v44 = vadd.f32 %v3567_v4, %v2976_v45 }
 0x2f2   : > { %v3988_v36 = vadd.f32 %v3953_v59, %v3602_v44 }
 0x2f4   : > { %v2943_v0 = vpop.f32.mrf.mxu2 }
 0x2f5   : > { %v2977_v35 = vadd.f32 %v2943_v0, %v2678_v30  ;;  %v3955_v34 = vpop.f32.mrf.mxu0 }
 0x2f7   : > { %v3569_v15 = vpop.f32.mrf.mxu3 }
 0x2f8   : > { %v3603_v54 = vadd.f32 %v3569_v15, %v2977_v35 }
 0x2fa   : > { %v3989_v12 = vadd.f32 %v3955_v34, %v3603_v54 }
 0x2fc   : > { %v4938_v20 = vpack.c.bf16 %v3989_v12, %v3988_v36 }
 0x2fe   : > { %4954 = vst [vmem:[%s6418_s3 + $0x78] sm:$0xff] %v4938_v20  }
 0x2ff   : > { %5112 = shalt.err (!%p5109_p7)
}
 0x300   : > { %s5181_s29 = smov 64   ;;  %s5182_s3 = smov 4  }
 0x301   : > { %4963 = dma.vmem_to_hbm [thread:$0]  (%p5249_p3), %s4070_s17, 2048, %s4072_s18, %s4055_s21, %s5181_s29, %s5181_s29, %s5182_s3  }
 0x302 PF: > { %p4969_p9 = scmp.ge.s32.totalorder %s5179_s16, 2  ;;  %s4086_s6 = sand.u32 1, %s5151_s9  }
 0x303   : > { %s4087_s7 = scalar_lea.sflag [#allocation3], %s4086_s6 }
 0x304   : > { %p4966_p10 = pnand %p4969_p9, %p5258_p8 }
 0x306   : > { %p4967_p11 = pneg %p4966_p10 }
 0x308   : > { %5146 = dma.done.wait (%p4967_p11), %s4087_s7, 2048  }
 0x309   : > { %5148 = vsyncadd (%p4967_p11), %s4087_s7, 4294965248  ;;  %s15_s16 = sadd.s32 1, %s5179_s16   ;;  %s6711_s9 = smov %s5155_s10 }
 0x30a   : > { %p12_p12 = scmp.ge.s32.totalorder %s15_s16, 10   ;;  %s6712_s10 = smov %s5159_s11 }
 0x30b   : > { %s6713_s11 = smov %s5267_s27  ;;  %s6714_s12 = smov %s5171_s14 }
 0x30c   : > { %s6715_s13 = smov %s5175_s15  ;;  %s6716_s14 = smov %s6719_s19 }
 0x30d   : > { %s6717_s15 = smov %s6723_s20  ;;  %14 = sbr.rel (!%p12_p12) target bundleno = 5 (0x5), region = 73 }
 0x312   :  { %4093 = vsyncpa [#allocation3], 1 }
 0x313   :  { %4095 = vsyncpa [#allocation3 + $0x1], 1 }

// kernel: sparse_rcnn_forward.13
= control target key start
LH: loop header
LB: loop body
LE: loop exit
PB: predicated region body
PF: predicated region fallthrough
CT: control target
= control target key end

     0   :  { %7 = vsyncpa [#allocation3], 0  ;;  %s1816_s0 = inlined_call_operand.vmem [shape: bf16[2,1,6,6,32], index: 0, kind: input, shape index: {}]   ;;  %s1817_s1 = inlined_call_operand.vmem [shape: bf16[3,3,32,128], index: 1, kind: input, shape index: {}]   ;;  %s1818_s2 = inlined_call_operand.hbm [shape: bf16[2,16,128], index: 2, kind: output, shape index: {}]  }
   0x1   :  { %9 = vsyncpa [#allocation3 + $0x1], 0  ;;  %s1509_s9 = smov 0   ;;  %s1511_s10 = smov 0  }
   0x2   :  { %s1513_s11 = smov 0   ;;  %s1515_s12 = smov 0  }
   0x3   :  { %s1517_s13 = smov 0   ;;  %s1519_s14 = smov 0  }
   0x4 LB: > { %s1157_s15 = sadd.s32 4294967295, %s1490_s14   ;;  %s1158_s16 = sadd.s32 4294967294, %s1490_s14   ;;  %s1490_s14 = sphi %s1519_s14, %s15_s14   ;;  %s1486_s13 = sphi %s1517_s13, %s1829_s13   ;;  %s1482_s12 = sphi %s1515_s12, %s1828_s12   ;;  %s1478_s11 = sphi %s1513_s11, %s1827_s11   ;;  %s1474_s10 = sphi %s1511_s10, %s1826_s10   ;;  %s1470_s9 = sphi %s1509_s9, %s1825_s9  }
   0x5   : > { %s27_s17 = sadd.s32 1, %s1486_s13  ;;  %s85_s18 = sadd.s32 1, %s1478_s11 }
   0x6   : > { %p29_p0 = scmp.ge.s32.totalorder %s27_s17, 2  ;;  %p95_p1 = scmp.ne.s32.totalorder %s1478_s11, %s1474_s10 }
   0x7   : > { %p96_p2 = scmp.eq.s32.totalorder %s1157_s15, 1  ;;  %p101_p3 = scmp.ne.s32.totalorder %s1474_s10, %s1470_s9 }
   0x8   : > { %s1831_s17 = smov (%p29_p0, %s27_s17), 0  ;;  %p102_p5 = scmp.eq.s32.totalorder %s1158_s16, 1 }
   0x9   : > { %p1549_p4 = por %p96_p2, %p95_p1  ;;  %s80_s20 = ssub.s32 %s1486_s13, %s1831_s17 }
   0xa   : > { %p1161_p6 = scmp.ge.s32.totalorder %s1490_s14, 1  ;;  %p83_p7 = scmp.eq.s32.totalorder %s80_s20, 0 }
   0xb   : > { %p1556_p8 = por %p102_p5, %p101_p3  ;;  %p135_p9 = scmp.lt.s32.totalorder %s1490_s14, 3 }
   0xc   : > { %s1562_s22 = scalar_select %p83_p7, %s1478_s11, %s85_s18  }
   0xd   : > { %p136_p10 = pnand %p1161_p6, %p135_p9 }
   0xe   : > { %p161_p11 = scmp.lt.s32.totalorder (!%p136_p10), %s1482_s12, 1  ;;  %s1348_s30 = sshll.u32 (!%p136_p10), %s1482_s12, 3 }
   0xf   : > { %139 = sbr.rel (%p136_p10) target bundleno = 282 (0x11a), region = 28  ;;  %s1071_s5 = scalar_lea.hbm (!%p136_p10), %s1818_s2, %s1348_s30 }
  0x10   : > { %s1432_s24 = scalar_lea.hbm (!%p136_p10), %s1818_s2, 16 }
  0x14   : > { %v1333_v0 = vld [vmem:[%s1817_s1 + $0x18] sm:$0xff]  ;;  %v1335_v1 = vld [vmem:[%s1817_s1 + $0x28] sm:$0xff]  ;;  %v1332_v2 = vld [vmem:[%s1817_s1 + $0x10] sm:$0xff]  ;;  %s162_s29 = scalar_select %p161_p11, %s1482_s12, 1  ;;  %vm192_vm0 = vcmask 1041408   ;;  %vm196_vm1 = vcmask 1043458  }
  0x15   : > { %315 = vmatpush.bf16.msra.mxu0 %v1333_v0  ;;  %463 = vmatpush.bf16.msra.mxu2 %v1335_v1  ;;  %v1331_v3 = vld [vmem:[%s1817_s1 + $0x8] sm:$0xff]  ;;  %v1334_v4 = vld [vmem:[%s1817_s1 + $0x20] sm:$0xff]  ;;  %v1337_v5 = vld [vmem:[%s1817_s1 + $0x38] sm:$0xff]  ;;  %vm218_vm2 = vsmask.f32 1280  ;;  %vm403_vm9 = vcmask 1040384  }
  0x16   : > { %s1354_s8 = smul.u32 24, %s162_s29  ;;  %355 = vmatpush.bf16.msra.mxu1 %v1331_v3  ;;  %515 = vmatpush.bf16.msra.mxu3 %v1337_v5  ;;  %vm219_vm3 = vsmask.f32 3336  ;;  %vm221_vm4 = vsmask.f32 5392  ;;  %v1330_v62 = vld [vmem:[%s1817_s1] sm:$0xff] }
  0x17   : > { %vm220_vm5 = vmor %vm218_vm2, %vm219_vm3  ;;  %vm223_vm7 = vsmask.f32 7448  ;;  %v1336_v63 = vld [vmem:[%s1817_s1 + $0x30] sm:$0xff]  ;;  %vm404_vm10 = vcmask 1042434   ;;  %vm306_vm11 = vcmask 261120   ;;  %vm406_vm13 = vcmask 1044484  }
  0x18   : > { %s1587_s18 = scalar_lea.vmem %s1816_s0, %s1354_s8  ;;  %vm222_vm6 = vmor %vm220_vm5, %vm221_vm4  ;;  %vm408_vm15 = vcmask 1046534   ;;  %s1074_s8 = sshll.u32 %s1071_s5, 4  ;;  %s1075_s8 = int_to_ptr.hbm [resolvable:$true] %s1074_s8 }
  0x19   : > { %316 = vmatpush.bf16.msra.mxu0 %v1332_v2  ;;  %464 = vmatpush.bf16.msra.mxu2 %v1334_v4  ;;  %v180_v6 = vld [vmem:[%s1587_s18] sm:$0x7]  ;;  %v181_v7 = vld [vmem:[%s1587_s18 + $0x4] sm:$0x7]  ;;  %v182_v8 = vld [vmem:[%s1587_s18 + $0x8] sm:$0x7] }
  0x1a   : > { %v183_v9 = vld [vmem:[%s1587_s18 + $0xc] sm:$0x7]  ;;  %v188_v10 = vrot.slane %v180_v6, 2  ;;  %v189_v11 = vrot.slane %v181_v7, 2  ;;  %v190_v12 = vrot.slane %v182_v8, 2  ;;  %vm1603_vm8 = vmor %vm222_vm6, %vm223_vm7  ;;  %356 = vmatpush.bf16.msra.mxu1 %v1330_v62  ;;  %516 = vmatpush.bf16.msra.mxu3 %v1336_v63  ;;  %s1426_s15 = sshra.s32 %s1075_s8, 4  ;;  %s1427_s15 = int_to_ptr.hbm [resolvable:$true] %s1426_s15 }
  0x1b   : > { %v191_v13 = vrot.slane %v183_v9, 2  ;;  %v363_v1 = vld [vmem:[%s1587_s18] sm:$0x6]  ;;  %v364_v2 = vld [vmem:[%s1587_s18 + $0x4] sm:$0x6]  ;;  %vm405_vm12 = vmor %vm403_vm9, %vm404_vm10  ;;  %s1428_s16 = scalar_lea.hbm %s1427_s15, 8  ;;  %p1433_p1 = scmp.lt.s32.totalorder %s1427_s15, %s1818_s2 }
  0x1c   : > { %v195_v14 = vsel %vm192_vm0, %v180_v6, %v188_v10  ;;  %v197_v15 = vsel %vm196_vm1, %v180_v6, %v188_v10  ;;  %v202_v16 = vsel %vm192_vm0, %v181_v7, %v189_v11  ;;  %v203_v17 = vsel %vm196_vm1, %v181_v7, %v189_v11  ;;  %v365_v3 = vld [vmem:[%s1587_s18 + $0x8] sm:$0x6]  ;;  %v172_v4 = vld [vmem:[%s1587_s18] sm:$0x3]  ;;  %v366_v5 = vld [vmem:[%s1587_s18 + $0xc] sm:$0x6]  ;;  %p1429_p12 = scmp.ne.s32.totalorder %s1427_s15, %s1428_s16  ;;  %p1434_p2 = scmp.lt.s32.totalorder %s1432_s24, %s1428_s16 }
  0x1d   : > { %v199_v18 = vrot.slane %v197_v15, 2  ;;  %v205_v19 = vrot.slane %v203_v17, 2  ;;  %v208_v20 = vsel %vm192_vm0, %v182_v8, %v190_v12  ;;  %v209_v21 = vsel %vm196_vm1, %v182_v8, %v190_v12  ;;  %v173_v7 = vld [vmem:[%s1587_s18 + $0x4] sm:$0x3]  ;;  %v174_v8 = vld [vmem:[%s1587_s18 + $0x8] sm:$0x3]  ;;  %vm407_vm14 = vmor %vm405_vm12, %vm406_vm13 }
  0x1e   : > { %v211_v22 = vrot.slane %v209_v21, 2  ;;  %v214_v23 = vsel %vm192_vm0, %v183_v9, %v191_v13  ;;  %v215_v24 = vsel %vm196_vm1, %v183_v9, %v191_v13  ;;  %v225_v25 = vshrl.u32 %v195_v14, 16  ;;  %v175_v12 = vld [vmem:[%s1587_s18 + $0xc] sm:$0x3]  ;;  %vm1645_vm2 = vmor %vm407_vm14, %vm408_vm15  ;;  %p1430_p13 = pnand %p1429_p12, %p1549_p4  ;;  %p1435_p3 = por %p1434_p2, %p1433_p1 }
  0x1f   : > { %v217_v26 = vrot.slane %v215_v24, 2  ;;  %v228_v27 = vshll.u32 %v195_v14, 16  ;;  %v234_v28 = vshll.u32 %v199_v18, 16  ;;  %v238_v29 = vshrl.u32 %v202_v16, 16  ;;  %v1339_v14 = vld [vmem:[%s1817_s1 + $0x48] sm:$0xff] }
  0x20   : > { %v227_v30 = vrot.slane %v225_v25, 6  ;;  %v241_v31 = vshll.u32 %v202_v16, 16  ;;  %v247_v32 = vshll.u32 %v205_v19, 16  ;;  %v251_v33 = vshrl.u32 %v208_v20, 16  ;;  %650 = vmatpush.bf16.msrb.mxu0 %v1339_v14  ;;  %v1338_v19 = vld [vmem:[%s1817_s1 + $0x40] sm:$0xff]  ;;  %p1431_p0 = pneg %p1430_p13 }
  0x21   : > { %v230_v34 = vrot.slane %v228_v27, 7  ;;  %v240_v35 = vrot.slane %v238_v29, 6  ;;  %v254_v36 = vshll.u32 %v208_v20, 16  ;;  %v236_v37 = vrot.slane %v234_v28, 7 }
  0x22   : > { %v243_v38 = vrot.slane %v241_v31, 7  ;;  %v253_v39 = vrot.slane %v251_v33, 6  ;;  %v260_v40 = vshll.u32 %v211_v22, 16  ;;  %v264_v43 = vshrl.u32 %v214_v23, 16  ;;  %v1226_v33 = vld [vmem:[%s1587_s18 + $0xc] sm:$0x7]  ;;  %p1436_p5 = pnand %p1435_p3, %p1431_p0 }
  0x23   : > { %v231_v41 = vor.u32 %v230_v34, %v227_v30  ;;  %v256_v42 = vrot.slane %v254_v36, 7  ;;  %v267_v44 = vshll.u32 %v214_v23, 16  ;;  %v249_v47 = vrot.slane %v247_v32, 7  ;;  %v1225_v30 = vld [vmem:[%s1587_s18 + $0x8] sm:$0x7] }
  0x24   : > { %v244_v46 = vor.u32 %v243_v38, %v240_v35  ;;  %v262_v48 = vrot.slane %v260_v40, 7  ;;  %v273_v49 = vshll.u32 %v217_v26, 16  ;;  %v266_v52 = vrot.slane %v264_v43, 6  ;;  %v1224_v26 = vld [vmem:[%s1587_s18 + $0x4] sm:$0x7]  ;;  %651 = vmatpush.bf16.msrb.mxu0 %v1338_v19 }
  0x25   : > { %v232_v50 = vrot.slane %v231_v41, 2  ;;  %v257_v51 = vor.u32 %v256_v42, %v253_v39  ;;  %v269_v53 = vrot.slane %v267_v44, 7  ;;  %v371_v6 = vrot.slane %v363_v1, 2  ;;  %v1227_v36 = vld [vmem:[%s1587_s18 + $0x10] sm:$0x7] }
  0x26   : > { %v245_v54 = vrot.slane %v244_v46, 2  ;;  %v275_v58 = vrot.slane %v273_v49, 7  ;;  %v372_v9 = vrot.slane %v364_v2, 2  ;;  %v373_v11 = vrot.slane %v365_v3, 2 }
  0x27   : > { %v237_v55 = vsel %vm1603_vm8, %v232_v50, %v236_v37  ;;  %v258_v56 = vrot.slane %v257_v51, 2  ;;  %v270_v57 = vor.u32 %v269_v53, %v266_v52  ;;  %v374_v13 = vrot.slane %v366_v5, 2  ;;  %v1343_v50 = vld [vmem:[%s1817_s1 + $0x68] sm:$0xff]  ;;  %v1340_v52 = vld [vmem:[%s1817_s1 + $0x50] sm:$0xff] }
  0x28   : > { %v250_v59 = vsel %vm1603_vm8, %v245_v54, %v249_v47  ;;  %283 = vst [vmem:[#allocation1] ss:$4 sm:$0xff] %v237_v55  ;;  %v377_v15 = vsel %vm192_vm0, %v363_v1, %v371_v6  ;;  %v379_v16 = vsel %vm196_vm1, %v363_v1, %v371_v6  ;;  %v384_v17 = vsel %vm192_vm0, %v364_v2, %v372_v9  ;;  %v1207_v1 = vld [vmem:[%s1587_s18 + $0x4] sm:$0x3]  ;;  %v1208_v6 = vld [vmem:[%s1587_s18 + $0x8] sm:$0x3] }
  0x29   : > { %v263_v60 = vsel %vm1603_vm8, %v258_v56, %v262_v48  ;;  %v271_v61 = vrot.slane %v270_v57, 2  ;;  %286 = vst [vmem:[#allocation1 + $0x1] ss:$4 sm:$0xff] %v250_v59  ;;  %v386_v18 = vsel %vm196_vm1, %v364_v2, %v372_v9  ;;  %v391_v20 = vsel %vm192_vm0, %v365_v3, %v373_v11  ;;  %v1341_v48 = vld [vmem:[%s1817_s1 + $0x58] sm:$0xff]  ;;  %805 = vmatpush.bf16.msrb.mxu2 %v1343_v50 }
  0x2a   : > { %289 = vst [vmem:[#allocation1 + $0x2] ss:$4 sm:$0xff] %v263_v60  ;;  %v393_v21 = vsel %vm196_vm1, %v365_v3, %v373_v11  ;;  %v398_v22 = vsel %vm192_vm0, %v366_v5, %v374_v13  ;;  %v400_v23 = vsel %vm196_vm1, %v366_v5, %v374_v13  ;;  %v1186_v24 = vrot.slane %v377_v15, 9  ;;  %753 = vmatpush.bf16.msrb.mxu1 %v1341_v48 }
  0x2b   : > { %v276_v0 = vsel %vm1603_vm8, %v271_v61, %v275_v58  ;;  %v1187_v25 = vrot.slane %v379_v16, 9  ;;  %v1188_v28 = vrot.slane %v384_v17, 9  ;;  %v1189_v29 = vrot.slane %v386_v18, 9  ;;  %v1210_v18 = vld [vmem:[%s1587_s18 + $0x10] sm:$0x3] }
  0x2c   : > { %292 = vst [vmem:[#allocation1 + $0x3] ss:$4 sm:$0xff] %v276_v0  ;;  %v1190_v31 = vrot.slane %v391_v20, 9  ;;  %v1191_v32 = vrot.slane %v393_v21, 9  ;;  %v1192_v34 = vrot.slane %v398_v22, 9  ;;  %v1193_v35 = vrot.slane %v400_v23, 9 }
  0x2d   : > { %v533_v37 = vrot.slane %v1224_v26, 2  ;;  %v413_v38 = vsel %vm1645_vm2, %v1186_v24, %v1187_v25  ;;  %v534_v39 = vrot.slane %v1225_v30, 2  ;;  %v417_v40 = vsel %vm1645_vm2, %v1188_v28, %v1189_v29  ;;  %v1345_v23 = vld [vmem:[%s1817_s1 + $0x78] sm:$0xff]  ;;  %v1342_v24 = vld [vmem:[%s1817_s1 + $0x60] sm:$0xff] }
  0x2e   : > { %v535_v41 = vrot.slane %v1226_v33, 2  ;;  %v421_v43 = vsel %vm1645_vm2, %v1190_v31, %v1191_v32  ;;  %v536_v44 = vrot.slane %v1227_v36, 2  ;;  %v425_v46 = vsel %vm1645_vm2, %v1192_v34, %v1193_v35  ;;  %754 = vmatpush.bf16.msrb.mxu1 %v1340_v52  ;;  %940 = vmatpush.bf16.msrb.mxu3 %v1345_v23  ;;  %v1241_v34 = vld [vmem:[%s1587_s18 + $0x4] sm:$0x6] }
  0x2f   : > { %v539_v47 = vsel %vm192_vm0, %v1224_v26, %v533_v37  ;;  %v545_v49 = vsel %vm192_vm0, %v1225_v30, %v534_v39  ;;  %v540_v56 = vsel %vm196_vm1, %v1224_v26, %v533_v37  ;;  %v546_v59 = vsel %vm196_vm1, %v1225_v30, %v534_v39  ;;  %806 = vmatpush.bf16.msrb.mxu2 %v1342_v24  ;;  %v1242_v37 = vld [vmem:[%s1587_s18 + $0x8] sm:$0x6] }
  0x30   : > { %v551_v51 = vsel %vm192_vm0, %v1226_v33, %v535_v41  ;;  %v557_v53 = vsel %vm192_vm0, %v1227_v36, %v536_v44  ;;  %v561_v54 = vshrl.u32 %v539_v47, 16  ;;  %v564_v55 = vshll.u32 %v539_v47, 16 }
  0x31   : > { %v574_v57 = vshrl.u32 %v545_v49, 16  ;;  %v577_v58 = vshll.u32 %v545_v49, 16  ;;  %v587_v60 = vshrl.u32 %v551_v51, 16  ;;  %v590_v61 = vshll.u32 %v551_v51, 16 }
  0x32   : > { %v552_v62 = vsel %vm196_vm1, %v1226_v33, %v535_v41  ;;  %v600_v63 = vshrl.u32 %v557_v53, 16  ;;  %v603_v0 = vshll.u32 %v557_v53, 16  ;;  %v542_v2 = vrot.slane %v540_v56, 2 }
  0x33   : > { %v293_v10 = vld.sshfl [vmem:[#allocation1] sm:$0xff pattern:$0x73625140]  ;;  %v558_v3 = vsel %vm196_vm1, %v1227_v36, %v536_v44  ;;  %v566_v5 = vrot.slane %v564_v55, 7  ;;  %v579_v9 = vrot.slane %v577_v58, 7  ;;  %v554_v11 = vrot.slane %v552_v62, 2 }
  0x34   : > { %1176 = vmatmul.msk.bf16.vlgmr.msra.gmra.mxu0 %vm306_vm11, %v293_v10  ;;  %324 = vst [vmem:[#allocation1] ss:$4 sm:$0xff] %v172_v4  ;;  %v563_v4 = vrot.slane %v561_v54, 6  ;;  %v1209_v10 = vld [vmem:[%s1587_s18 + $0xc] sm:$0x3]  ;;  %v592_v13 = vrot.slane %v590_v61, 7 }
  0x35   : > { %327 = vst [vmem:[#allocation1 + $0x1] ss:$4 sm:$0xff] %v173_v7  ;;  %v548_v7 = vrot.slane %v546_v59, 2  ;;  %v560_v15 = vrot.slane %v558_v3, 2  ;;  %v602_v16 = vrot.slane %v600_v63, 6  ;;  %v605_v17 = vrot.slane %v603_v0, 7 }
  0x36   : > { %330 = vst [vmem:[#allocation1 + $0x2] ss:$4 sm:$0xff] %v174_v8  ;;  %v576_v8 = vrot.slane %v574_v57, 6  ;;  %v567_v19 = vor.u32 %v566_v5, %v563_v4  ;;  %v570_v20 = vshll.u32 %v542_v2, 16  ;;  %v596_v26 = vshll.u32 %v554_v11, 16  ;;  %v1344_v54 = vld [vmem:[%s1817_s1 + $0x70] sm:$0xff] }
  0x37   : > { %333 = vst [vmem:[#allocation1 + $0x3] ss:$4 sm:$0xff] %v175_v12  ;;  %v589_v12 = vrot.slane %v587_v60, 6  ;;  %v583_v22 = vshll.u32 %v548_v7, 16  ;;  %v606_v28 = vor.u32 %v605_v17, %v602_v16  ;;  %v609_v29 = vshll.u32 %v560_v15, 16  ;;  %v1347_v55 = vld [vmem:[%s1817_s1 + $0x88] sm:$0xff]  ;;  %941 = vmatpush.bf16.msrb.mxu3 %v1344_v54 }
  0x38   : > { %v580_v21 = vor.u32 %v579_v9, %v576_v8  ;;  %v568_v30 = vrot.slane %v567_v19, 2  ;;  %v572_v31 = vrot.slane %v570_v20, 7  ;;  %v598_v36 = vrot.slane %v596_v26, 7  ;;  %1043 = vmatpush.bf16.msra.mxu0 %v1347_v55  ;;  %v1283_v0 = vld [vmem:[%s1587_s18 + $0x8] sm:$0x7] }
  0x39   : > { %v593_v25 = vor.u32 %v592_v13, %v589_v12  ;;  %v585_v33 = vrot.slane %v583_v22, 7  ;;  %v611_v39 = vrot.slane %v609_v29, 7  ;;  %v1284_v3 = vld [vmem:[%s1587_s18 + $0xc] sm:$0x7]  ;;  %v1286_v9 = vld [vmem:[%s1587_s18 + $0x14] sm:$0x7] }
  0x3a   : > { %v581_v32 = vrot.slane %v580_v21, 2  ;;  %v573_v41 = vsel %vm1603_vm8, %v568_v30, %v572_v31  ;;  %v824_v12 = vrot.slane %v1284_v3, 2  ;;  %v826_v17 = vrot.slane %v1286_v9, 2  ;;  %v1346_v29 = vld [vmem:[%s1817_s1 + $0x80] sm:$0xff]  ;;  %v1269_v54 = vld [vmem:[%s1587_s18 + $0x14] sm:$0x3] }
  0x3b   : > { %v594_v35 = vrot.slane %v593_v25, 2 }
  0x3c   : > { %v586_v44 = vsel %vm1603_vm8, %v581_v32, %v585_v33  ;;  %v835_v20 = vsel %vm192_vm0, %v1284_v3, %v824_v12  ;;  %v847_v22 = vsel %vm192_vm0, %v1286_v9, %v826_v17  ;;  %v836_v30 = vsel %vm196_vm1, %v1284_v3, %v824_v12  ;;  %1044 = vmatpush.bf16.msra.mxu0 %v1346_v29  ;;  %v1300_v3 = vld [vmem:[%s1587_s18 + $0x8] sm:$0x6] }
  0x3d   : > { %v599_v48 = vsel %vm1603_vm8, %v594_v35, %v598_v36  ;;  %v864_v26 = vshrl.u32 %v835_v20, 16  ;;  %v893_v35 = vshll.u32 %v847_v22, 16  ;;  %v1266_v36 = vld [vmem:[%s1587_s18 + $0x8] sm:$0x3]  ;;  %v958_v12 = vrot.slane %v1300_v3, 2 }
  0x3e   : > { %v334_v42 = vld.sshfl [vmem:[#allocation1] sm:$0xff pattern:$0x73625140] }
  0x3f   : > { %432 = vst [vmem:[#allocation1] ss:$4 sm:$0xff] %v413_v38  ;;  %1185 = vmatmul.msk.bf16.vlgmr.msra.gmra.mxu1 %vm306_vm11, %v334_v42  ;;  %v607_v38 = vrot.slane %v606_v28, 2  ;;  %v1244_v42 = vld [vmem:[%s1587_s18 + $0x10] sm:$0x6]  ;;  %v867_v28 = vshll.u32 %v835_v20, 16  ;;  %v964_v20 = vsel %vm192_vm0, %v1300_v3, %v958_v12 }
  0x40   : > { %435 = vst [vmem:[#allocation1 + $0x1] ss:$4 sm:$0xff] %v417_v40  ;;  %v1243_v40 = vld [vmem:[%s1587_s18 + $0xc] sm:$0x6]  ;;  %v671_v51 = vrot.slane %v1244_v42, 2 }
  0x41   : > { %438 = vst [vmem:[#allocation1 + $0x2] ss:$4 sm:$0xff] %v421_v43  ;;  %v668_v43 = vrot.slane %v1241_v34, 2  ;;  %v670_v49 = vrot.slane %v1243_v40, 2  ;;  %v612_v50 = vsel %vm1603_vm8, %v607_v38, %v611_v39  ;;  %v848_v38 = vsel %vm196_vm1, %v1286_v9, %v826_v17  ;;  %v1302_v9 = vld [vmem:[%s1587_s18 + $0x10] sm:$0x6] }
  0x42   : > { %441 = vst [vmem:[#allocation1 + $0x3] ss:$4 sm:$0xff] %v425_v46  ;;  %v669_v46 = vrot.slane %v1242_v37, 2  ;;  %v695_v60 = vsel %vm192_vm0, %v1244_v42, %v671_v51  ;;  %v697_v61 = vsel %vm196_vm1, %v1244_v42, %v671_v51  ;;  %v838_v42 = vrot.slane %v836_v30, 2 }
  0x43   : > { %v674_v52 = vsel %vm192_vm0, %v1241_v34, %v668_v43  ;;  %v676_v53 = vsel %vm196_vm1, %v1241_v34, %v668_v43  ;;  %v688_v58 = vsel %vm192_vm0, %v1243_v40, %v670_v49  ;;  %v690_v59 = vsel %vm196_vm1, %v1243_v40, %v670_v49 }
  0x44   : > { %v681_v56 = vsel %vm192_vm0, %v1242_v37, %v669_v46  ;;  %v683_v57 = vsel %vm196_vm1, %v1242_v37, %v669_v46  ;;  %v1245_v62 = vrot.slane %v674_v52, 9  ;;  %v1246_v63 = vrot.slane %v676_v53, 9  ;;  %v1268_v46 = vld [vmem:[%s1587_s18 + $0x10] sm:$0x3] }
  0x45   : > { %v1248_v2 = vrot.slane %v683_v57, 9  ;;  %v1249_v4 = vrot.slane %v688_v58, 9  ;;  %v1250_v5 = vrot.slane %v690_v59, 9  ;;  %v1251_v7 = vrot.slane %v695_v60, 9 }
  0x46   : > { %v1252_v8 = vrot.slane %v697_v61, 9  ;;  %v703_v11 = vsel %vm1645_vm2, %v1245_v62, %v1246_v63  ;;  %v890_v34 = vshrl.u32 %v847_v22, 16  ;;  %v866_v43 = vrot.slane %v864_v26, 6 }
  0x47   : > { %v711_v16 = vsel %vm1645_vm2, %v1249_v4, %v1250_v5  ;;  %v850_v51 = vrot.slane %v848_v38, 2  ;;  %v895_v53 = vrot.slane %v893_v35, 7  ;;  %v873_v58 = vshll.u32 %v838_v42, 16 }
  0x48   : > { %v892_v52 = vrot.slane %v890_v34, 6  ;;  %v960_v17 = vrot.slane %v1302_v9, 2 }
  0x49   : > { %v442_v14 = vld.sshfl [vmem:[#allocation1] sm:$0xff pattern:$0x73625140]  ;;  %v899_v62 = vshll.u32 %v850_v51, 16 }
  0x4a   : > { %1206 = vmatmul.msk.bf16.vlgmr.msra.gmra.mxu2 %vm306_vm11, %v442_v14  ;;  %484 = vst [vmem:[#allocation1] ss:$4 sm:$0xff] %v1207_v1  ;;  %v1247_v1 = vrot.slane %v681_v56, 9  ;;  %v896_v61 = vor.u32 %v895_v53, %v892_v52 }
  0x4b   : > { %487 = vst [vmem:[#allocation1 + $0x1] ss:$4 sm:$0xff] %v1208_v6  ;;  %v1285_v6 = vld [vmem:[%s1587_s18 + $0x10] sm:$0x7] }
  0x4c   : > { %490 = vst [vmem:[#allocation1 + $0x2] ss:$4 sm:$0xff] %v1209_v10  ;;  %v823_v10 = vrot.slane %v1283_v0, 2  ;;  %v707_v13 = vsel %vm1645_vm2, %v1247_v1, %v1248_v2  ;;  %v825_v14 = vrot.slane %v1285_v6, 2  ;;  %v875_v2 = vrot.slane %v873_v58, 7 }
  0x4d   : > { %493 = vst [vmem:[#allocation1 + $0x3] ss:$4 sm:$0xff] %v1210_v18  ;;  %v715_v18 = vsel %vm1645_vm2, %v1251_v7, %v1252_v8  ;;  %v897_v7 = vrot.slane %v896_v61, 2  ;;  %v901_v8 = vrot.slane %v899_v62, 7 }
  0x4e   : > { %v829_v19 = vsel %vm192_vm0, %v1283_v0, %v823_v10  ;;  %v841_v21 = vsel %vm192_vm0, %v1285_v6, %v825_v14  ;;  %v830_v25 = vsel %vm196_vm1, %v1283_v0, %v823_v10  ;;  %v842_v33 = vsel %vm196_vm1, %v1285_v6, %v825_v14  ;;  %v1301_v6 = vld [vmem:[%s1587_s18 + $0xc] sm:$0x6] }
  0x4f   : > { %v851_v23 = vshrl.u32 %v829_v19, 16  ;;  %v854_v24 = vshll.u32 %v829_v19, 16  ;;  %v877_v31 = vshrl.u32 %v841_v21, 16  ;;  %v880_v32 = vshll.u32 %v841_v21, 16 }
  0x50   : > { %v832_v37 = vrot.slane %v830_v25, 2  ;;  %v959_v14 = vrot.slane %v1301_v6, 2  ;;  %v966_v21 = vsel %vm196_vm1, %v1300_v3, %v958_v12  ;;  %v980_v25 = vsel %vm196_vm1, %v1302_v9, %v960_v17 }
  0x51   : > { %v853_v39 = vrot.slane %v851_v23, 6  ;;  %v856_v40 = vrot.slane %v854_v24, 7  ;;  %v882_v49 = vrot.slane %v880_v32, 7  ;;  %v978_v24 = vsel %vm192_vm0, %v1302_v9, %v960_v17 }
  0x52   : > { %v860_v56 = vshll.u32 %v832_v37, 16  ;;  %v971_v22 = vsel %vm192_vm0, %v1301_v6, %v959_v14  ;;  %v973_v23 = vsel %vm196_vm1, %v1301_v6, %v959_v14  ;;  %v1305_v29 = vrot.slane %v966_v21, 9 }
  0x53   : > { %v857_v55 = vor.u32 %v856_v40, %v853_v39  ;;  %v1306_v30 = vrot.slane %v971_v22, 9  ;;  %v1308_v32 = vrot.slane %v978_v24, 9 }
  0x54   : > { %v494_v47 = vld.sshfl [vmem:[#allocation1] sm:$0xff pattern:$0x73625140]  ;;  %v862_v0 = vrot.slane %v860_v56, 7 }
  0x55   : > { %1223 = vmatmul.msk.bf16.vlgmr.msra.gmra.mxu3 %vm306_vm11, %v494_v47  ;;  %619 = vst [vmem:[#allocation1] ss:$4 sm:$0xff] %v573_v41  ;;  %v1267_v41 = vld [vmem:[%s1587_s18 + $0xc] sm:$0x3]  ;;  %v844_v47 = vrot.slane %v842_v33, 2  ;;  %v858_v63 = vrot.slane %v857_v55, 2 }
  0x56   : > { %622 = vst [vmem:[#allocation1 + $0x1] ss:$4 sm:$0xff] %v586_v44  ;;  %v869_v44 = vrot.slane %v867_v28, 7  ;;  %v1304_v28 = vrot.slane %v964_v20, 9  ;;  %v1309_v33 = vrot.slane %v980_v25, 9 }
  0x57   : > { %625 = vst [vmem:[#allocation1 + $0x2] ss:$4 sm:$0xff] %v599_v48  ;;  %v879_v48 = vrot.slane %v877_v31, 6  ;;  %v886_v60 = vshll.u32 %v844_v47, 16  ;;  %v863_v10 = vsel %vm1603_vm8, %v858_v63, %v862_v0  ;;  %v1307_v31 = vrot.slane %v973_v23, 9 }
  0x58   : > { %628 = vst [vmem:[#allocation1 + $0x3] ss:$4 sm:$0xff] %v612_v50  ;;  %v870_v57 = vor.u32 %v869_v44, %v866_v43  ;;  %v1001_v39 = vsel %vm1645_vm2, %v1308_v32, %v1309_v33 }
  0x59   : > { %v883_v59 = vor.u32 %v882_v49, %v879_v48  ;;  %v888_v5 = vrot.slane %v886_v60, 7  ;;  %v997_v37 = vsel %vm1645_vm2, %v1306_v30, %v1307_v31 }
  0x5a   : > { %v871_v1 = vrot.slane %v870_v57, 2 }
  0x5b   : > { %v884_v4 = vrot.slane %v883_v59, 2 }
  0x5f   : > { %v629_v15 = vld.sshfl [vmem:[#allocation1] sm:$0xff pattern:$0x73625140] }
  0x60   : > { %1240 = vmatmul.msk.bf16.vlgmr.msrb.gmra.mxu0 %vm306_vm11, %v629_v15  ;;  %722 = vst [vmem:[#allocation1] ss:$4 sm:$0xff] %v703_v11  ;;  %v1303_v11 = vld [vmem:[%s1587_s18 + $0x14] sm:$0x6]  ;;  %s158_s18 = sand.u32 1, %s1474_s10  }
  0x61   : > { %725 = vst [vmem:[#allocation1 + $0x1] ss:$4 sm:$0xff] %v707_v13  ;;  %v876_v13 = vsel %vm1603_vm8, %v871_v1, %v875_v2  ;;  %v961_v19 = vrot.slane %v1303_v11, 2  ;;  %s1162_s29 = sshll.u32 %s158_s18, 3  ;;  %s1058_s12 = scalar_lea.sflag [#allocation3], %s158_s18 }
  0x62   : > { %728 = vst [vmem:[#allocation1 + $0x2] ss:$4 sm:$0xff] %v711_v16  ;;  %v889_v16 = vsel %vm1603_vm8, %v884_v4, %v888_v5  ;;  %s160_s6 = scalar_lea.vmem [#allocation2], %s1162_s29 }
  0x63   : > { %731 = vst [vmem:[#allocation1 + $0x3] ss:$4 sm:$0xff] %v715_v18  ;;  %v902_v18 = vsel %vm1603_vm8, %v897_v7, %v901_v8  ;;  %v985_v45 = vsel %vm192_vm0, %v1303_v11, %v961_v19  ;;  %v987_v26 = vsel %vm196_vm1, %v1303_v11, %v961_v19  ;;  %s1781_s7 = sshll.u32 %s160_s6, 4  ;;  %s1073_s7 = int_to_ptr.vmem [resolvable:$true] %s1781_s7 }
  0x64   : > { %v1310_v34 = vrot.slane %v985_v45, 9  ;;  %v1311_v35 = vrot.slane %v987_v26, 9 }
  0x66   : > { %v1005_v40 = vsel %vm1645_vm2, %v1310_v34, %v1311_v35 }
  0x6a   : > { %v732_v50 = vld.sshfl [vmem:[#allocation1] sm:$0xff pattern:$0x73625140] }
  0x6b   : > { %1265 = vmatmul.msk.bf16.vlgmr.msrb.gmra.mxu1 %vm306_vm11, %v732_v50  ;;  %774 = vst [vmem:[#allocation1] ss:$4 sm:$0xff] %v1266_v36  ;;  %v993_v36 = vsel %vm1645_vm2, %v1304_v28, %v1305_v29 }
  0x6c   : > { %777 = vst [vmem:[#allocation1 + $0x1] ss:$4 sm:$0xff] %v1267_v41 }
  0x6d   : > { %780 = vst [vmem:[#allocation1 + $0x2] ss:$4 sm:$0xff] %v1268_v46 }
  0x6e   : > { %783 = vst [vmem:[#allocation1 + $0x3] ss:$4 sm:$0xff] %v1269_v54 }
  0x75   : > { %v784_v15 = vld.sshfl [vmem:[#allocation1] sm:$0xff pattern:$0x73625140] }
  0x76   : > { %1282 = vmatmul.msk.bf16.vlgmr.msrb.gmra.mxu2 %vm306_vm11, %v784_v15  ;;  %909 = vst [vmem:[#allocation1] ss:$4 sm:$0xff] %v863_v10 }
  0x77   : > { %912 = vst [vmem:[#allocation1 + $0x1] ss:$4 sm:$0xff] %v876_v13 }
  0x78   : > { %915 = vst [vmem:[#allocation1 + $0x2] ss:$4 sm:$0xff] %v889_v16 }
  0x79   : > { %918 = vst [vmem:[#allocation1 + $0x3] ss:$4 sm:$0xff] %v902_v18 }
  0x80   : > { %v919_v38 = vld.sshfl [vmem:[#allocation1] sm:$0xff pattern:$0x73625140] }
  0x81   : > { %1299 = vmatmul.msk.bf16.vlgmr.msrb.gmra.mxu3 %vm306_vm11, %v919_v38  ;;  %1012 = vst [vmem:[#allocation1] ss:$4 sm:$0xff] %v993_v36 }
  0x82   : > { %1015 = vst [vmem:[#allocation1 + $0x1] ss:$4 sm:$0xff] %v997_v37 }
  0x83   : > { %1018 = vst [vmem:[#allocation1 + $0x2] ss:$4 sm:$0xff] %v1001_v39 }
  0x84   : > { %1021 = vst [vmem:[#allocation1 + $0x3] ss:$4 sm:$0xff] %v1005_v40 }
  0x8b   : > { %v1022_v41 = vld.sshfl [vmem:[#allocation1] sm:$0xff pattern:$0x73625140] }
  0x8c   : > { %1324 = vmatmul.msk.bf16.vlgmr.msra.gmra.mxu0 %vm306_vm11, %v1022_v41 }
  0xb1   : > { %v318_v42 = vpop.f32.mrf.mxu0 }
  0xb9   : > { %v320_v44 = vpop.f32.mrf.mxu0 }
  0xbc   : > { %v358_v43 = vpop.f32.mrf.mxu1 }
  0xbd   : > { %v359_v51 = vadd.f32 %v358_v43, %v318_v42 }
  0xc4   : > { %v360_v48 = vpop.f32.mrf.mxu1 }
  0xc5   : > { %v361_v54 = vadd.f32 %v360_v48, %v320_v44 }
  0xcd   : > { %v466_v46 = vpop.f32.mrf.mxu2 }
  0xce   : > { %v471_v53 = vadd.f32 %v466_v46, %v359_v51 }
  0xd5   : > { %v468_v50 = vpop.f32.mrf.mxu2 }
  0xd6   : > { %v472_v58 = vadd.f32 %v468_v50, %v361_v54 }
  0xd8   : > { %v518_v47 = vpop.f32.mrf.mxu3 }
  0xd9   : > { %v523_v57 = vadd.f32 %v518_v47, %v471_v53 }
  0xdd   : > { %v653_v49 = vpop.f32.mrf.mxu0 }
  0xde   : > { %v658_v61 = vadd.f32 %v653_v49, %v523_v57 }
  0xe0   : > { %v520_v52 = vpop.f32.mrf.mxu3 }
  0xe1   : > { %v524_v59 = vadd.f32 %v520_v52, %v472_v58 }
  0xe5   : > { %v655_v56 = vpop.f32.mrf.mxu0 }
  0xe6   : > { %v659_v63 = vadd.f32 %v655_v56, %v524_v59 }
  0xe8   : > { %v756_v27 = vpop.f32.mrf.mxu1 }
  0xe9   : > { %v761_v2 = vadd.f32 %v756_v27, %v658_v61 }
  0xf0   : > { %v758_v62 = vpop.f32.mrf.mxu1 }
  0xf1   : > { %v762_v3 = vadd.f32 %v758_v62, %v659_v63 }
  0xf9   : > { %v808_v55 = vpop.f32.mrf.mxu2 }
  0xfa   : > { %v813_v4 = vadd.f32 %v808_v55, %v761_v2 }
 0x101   : > { %v810_v0 = vpop.f32.mrf.mxu2 }
 0x102   : > { %v814_v5 = vadd.f32 %v810_v0, %v762_v3 }
 0x104   : > { %v943_v60 = vpop.f32.mrf.mxu3 }
 0x105   : > { %v948_v7 = vadd.f32 %v943_v60, %v813_v4 }
 0x109   : > { %v1046_v1 = vpop.f32.mrf.mxu0 }
 0x10a   : > { %v1051_v10 = vadd.f32 %v1046_v1, %v948_v7 }
 0x10c   : > { %v945_v6 = vpop.f32.mrf.mxu3 }
 0x10d   : > { %v949_v8 = vadd.f32 %v945_v6, %v814_v5 }
 0x111   : > { %v1048_v9 = vpop.f32.mrf.mxu0 }
 0x112   : > { %v1052_v11 = vadd.f32 %v1048_v9, %v949_v8 }
 0x114   : > { %v1352_v12 = vpack.c.bf16 %v1052_v11, %v1051_v10 }
 0x116   : > { %1353 = vst [vmem:[%s160_s6] sm:$0xff] %v1352_v12  }
 0x117   : > { %1439 = shalt.err (!%p1436_p5)
}
 0x118   : > { %s1492_s27 = smov 64   ;;  %s1493_s28 = smov 4  }
 0x119   : > { %1355 = dma.vmem_to_hbm [thread:$0]  (%p1549_p4), %s1073_s7, 128, %s1075_s8, %s1058_s12, %s1492_s27, %s1492_s27, %s1493_s28  }
 0x11a PF: > { %p1361_p6 = scmp.ge.s32.totalorder %s1490_s14, 2  ;;  %s1089_s18 = sand.u32 1, %s1470_s9  }
 0x11b   : > { %s1090_s29 = scalar_lea.sflag [#allocation3], %s1089_s18 }
 0x11c   : > { %p1358_p7 = pnand %p1361_p6, %p1556_p8 }
 0x11e   : > { %p1359_p9 = pneg %p1358_p7 }
 0x120   : > { %1465 = dma.done.wait (%p1359_p9), %s1090_s29, 128  }
 0x121   : > { %1467 = vsyncadd (%p1359_p9), %s1090_s29, 4294967168  ;;  %s15_s14 = sadd.s32 1, %s1490_s14   ;;  %s1825_s9 = smov %s1474_s10 }
 0x122   : > { %p12_p10 = scmp.ge.s32.totalorder %s15_s14, 4   ;;  %s1826_s10 = smov %s1478_s11 }
 0x123   : > { %s1827_s11 = smov %s1562_s22  ;;  %s1828_s12 = smov %s1486_s13 }
 0x124   : > { %s1829_s13 = smov %s1831_s17  ;;  %14 = sbr.rel (!%p12_p10) target bundleno = 4 (0x4), region = 100 }
 0x129   :  { %1096 = vsyncpa [#allocation3], 1 }
 0x12a   :  { %1098 = vsyncpa [#allocation3 + $0x1], 1 }

// kernel: sparse_rcnn_forward.12
= control target key start
LH: loop header
LB: loop body
LE: loop exit
PB: predicated region body
PF: predicated region fallthrough
CT: control target
= control target key end

     0   :  { %7 = vsyncpa [#allocation3], 0  ;;  %s2570_s0 = inlined_call_operand.vmem [shape: bf16[2,1,10,10,32], index: 0, kind: input, shape index: {}]   ;;  %s2571_s1 = inlined_call_operand.vmem [shape: bf16[3,3,32,128], index: 1, kind: input, shape index: {}]   ;;  %s2572_s2 = inlined_call_operand.hbm [shape: bf16[2,64,128], index: 2, kind: output, shape index: {}]  }
   0x1   :  { %9 = vsyncpa [#allocation3 + $0x1], 0  ;;  %s2077_s9 = smov 0   ;;  %s2079_s10 = smov 0  }
   0x2   :  { %s2081_s11 = smov 0   ;;  %s2083_s12 = smov 0  }
   0x3   :  { %s2085_s13 = smov 0   ;;  %s2087_s14 = smov 0  }
   0x4 LB: > { %s1574_s15 = sadd.s32 4294967295, %s2058_s14   ;;  %s1575_s16 = sadd.s32 4294967294, %s2058_s14   ;;  %s2058_s14 = sphi %s2087_s14, %s15_s14   ;;  %s2054_s13 = sphi %s2085_s13, %s2583_s13   ;;  %s2050_s12 = sphi %s2083_s12, %s2582_s12   ;;  %s2046_s11 = sphi %s2081_s11, %s2581_s11   ;;  %s2042_s10 = sphi %s2079_s10, %s2580_s10   ;;  %s2038_s9 = sphi %s2077_s9, %s2579_s9  }
   0x5   : > { %s27_s17 = sadd.s32 1, %s2054_s13  ;;  %s85_s18 = sadd.s32 1, %s2046_s11 }
   0x6   : > { %p29_p0 = scmp.ge.s32.totalorder %s27_s17, 2  ;;  %p95_p1 = scmp.ne.s32.totalorder %s2046_s11, %s2042_s10 }
   0x7   : > { %p96_p2 = scmp.eq.s32.totalorder %s1574_s15, 1  ;;  %p101_p3 = scmp.ne.s32.totalorder %s2042_s10, %s2038_s9 }
   0x8   : > { %s2585_s17 = smov (%p29_p0, %s27_s17), 0  ;;  %p102_p5 = scmp.eq.s32.totalorder %s1575_s16, 1 }
   0x9   : > { %p2117_p4 = por %p96_p2, %p95_p1  ;;  %s80_s20 = ssub.s32 %s2054_s13, %s2585_s17 }
   0xa   : > { %p1578_p6 = scmp.ge.s32.totalorder %s2058_s14, 1  ;;  %p83_p7 = scmp.eq.s32.totalorder %s80_s20, 0 }
   0xb   : > { %p2124_p8 = por %p102_p5, %p101_p3  ;;  %p135_p9 = scmp.lt.s32.totalorder %s2058_s14, 3 }
   0xc   : > { %s2130_s22 = scalar_select %p83_p7, %s2046_s11, %s85_s18  }
   0xd   : > { %p136_p10 = pnand %p1578_p6, %p135_p9 }
   0xe   : > { %p161_p11 = scmp.lt.s32.totalorder (!%p136_p10), %s2050_s12, 1  ;;  %s1892_s3 = sshll.u32 (!%p136_p10), %s2050_s12, 5 }
   0xf   : > { %139 = sbr.rel (%p136_p10) target bundleno = 328 (0x148), region = 28  ;;  %s1488_s6 = scalar_lea.hbm (!%p136_p10), %s2572_s2, %s1892_s3 }
  0x10   : > { %s1491_s8 = sshll.u32 (!%p136_p10), %s1488_s6, 4  ;;  %s2000_s24 = scalar_lea.hbm (!%p136_p10), %s2572_s2, 64  ;;  %s1492_s8 = int_to_ptr.hbm [resolvable:$true] %s1491_s8 }
  0x11   : > { %s1994_s15 = sshra.s32 (!%p136_p10), %s1492_s8, 4  ;;  %s1995_s15 = int_to_ptr.hbm [resolvable:$true] %s1994_s15 }
  0x12   : > { %s1996_s16 = scalar_lea.hbm (!%p136_p10), %s1995_s15, 32  ;;  %p2001_p1 = scmp.lt.s32.totalorder (!%p136_p10), %s1995_s15, %s2572_s2 }
  0x13   : > { %p1997_p12 = scmp.ne.s32.totalorder (!%p136_p10), %s1995_s15, %s1996_s16  ;;  %p2002_p2 = scmp.lt.s32.totalorder (!%p136_p10), %s2000_s24, %s1996_s16 }
  0x14   : > { %v1869_v0 = vld [vmem:[%s2571_s1 + $0x18] sm:$0xff]  ;;  %v1868_v1 = vld [vmem:[%s2571_s1 + $0x10] sm:$0xff]  ;;  %s162_s27 = scalar_select %p161_p11, %s2050_s12, 1  ;;  %v1871_v2 = vld [vmem:[%s2571_s1 + $0x28] sm:$0xff]  ;;  %vm192_vm0 = vsmask.f32 3328 }
  0x15   : > { %1916 = vmatpush.bf16.msra.mxu1 %v1869_v0  ;;  %1917 = vmatpush.bf16.msra.mxu2 %v1869_v0  ;;  %v1877_v3 = vld [vmem:[%s2571_s1 + $0x38] sm:$0xff]  ;;  %v1867_v4 = vld [vmem:[%s2571_s1 + $0x8] sm:$0xff]  ;;  %vm193_vm1 = vsmask.f32 7440  ;;  %v1870_v6 = vld [vmem:[%s2571_s1 + $0x20] sm:$0xff]  ;;  %vm336_vm2 = vcmask 261120   ;;  %p1998_p13 = pnand %p1997_p12, %p2117_p4  ;;  %p2003_p3 = por %p2002_p2, %p2001_p1 }
  0x16   : > { %1918 = vmatpush.bf16.msra.mxu3 %v1869_v0  ;;  %355 = vmatpush.bf16.msra.mxu0 %v1869_v0  ;;  %s1922_s28 = smul.u32 80, %s162_s27  ;;  %v1879_v5 = vld [vmem:[%s2571_s1 + $0x48] sm:$0xff]  ;;  %v1876_v7 = vld [vmem:[%s2571_s1 + $0x30] sm:$0xff]  ;;  %v1866_v11 = vld [vmem:[%s2571_s1] sm:$0xff]  ;;  %vm475_vm4 = vcmask 1042432   ;;  %vm476_vm5 = vcmask 1046532  }
  0x17   : > { %v1878_v12 = vld [vmem:[%s2571_s1 + $0x40] sm:$0xff]  ;;  %vm2191_vm3 = vmor %vm192_vm0, %vm193_vm1  ;;  %p1999_p0 = pneg %p1998_p13 }
  0x18   : > { %s2155_s18 = scalar_lea.vmem %s2570_s0, %s1922_s28  ;;  %vm2231_vm6 = vmor %vm475_vm4, %vm476_vm5 }
  0x19   : > { %1919 = vmatpush.bf16.msra.mxu1 %v1868_v1  ;;  %1920 = vmatpush.bf16.msra.mxu2 %v1868_v1  ;;  %v174_v8 = vld [vmem:[%s2155_s18 + $0x10] sm:$0xf]  ;;  %v175_v9 = vld [vmem:[%s2155_s18 + $0x18] sm:$0xf]  ;;  %v2166_v10 = vld [vmem:[%s2155_s18 + $0x14] sm:$0x1]  ;;  %p2004_p5 = pnand %p2003_p3, %p1999_p0 }
  0x1a   : > { %1921 = vmatpush.bf16.msra.mxu3 %v1868_v1  ;;  %356 = vmatpush.bf16.msra.mxu0 %v1868_v1  ;;  %v2175_v13 = vld [vmem:[%s2155_s18 + $0x1c] sm:$0x1]  ;;  %v224_v14 = vshrl.u32 %v174_v8, 16  ;;  %v227_v15 = vshll.u32 %v174_v8, 16  ;;  %v233_v16 = vshll.u32 %v2166_v10, 16  ;;  %v238_v17 = vshrl.u32 %v175_v9, 16 }
  0x1b   : > { %v241_v18 = vshll.u32 %v175_v9, 16  ;;  %v247_v19 = vshll.u32 %v2175_v13, 16  ;;  %v176_v20 = vld [vmem:[%s2155_s18 + $0x20] sm:$0xf]  ;;  %v177_v21 = vld [vmem:[%s2155_s18 + $0x28] sm:$0xf] }
  0x1c   : > { %v226_v22 = vrot.slane %v224_v14, 4  ;;  %v229_v23 = vrot.slane %v227_v15, 5  ;;  %v235_v24 = vrot.slane %v233_v16, 5  ;;  %v240_v25 = vrot.slane %v238_v17, 4  ;;  %v2182_v26 = vld [vmem:[%s2155_s18 + $0x24] sm:$0x1] }
  0x1d   : > { %557 = vmatpush.bf16.msrb.mxu2 %v1871_v2  ;;  %428 = vmatpush.bf16.msrb.mxu1 %v1867_v4  ;;  %v243_v27 = vrot.slane %v241_v18, 5  ;;  %v249_v28 = vrot.slane %v247_v19, 5  ;;  %v2185_v29 = vld [vmem:[%s2155_s18 + $0x2c] sm:$0x1]  ;;  %v252_v30 = vshrl.u32 %v176_v20, 16  ;;  %v255_v31 = vshll.u32 %v176_v20, 16 }
  0x1e   : > { %652 = vmatpush.bf16.msrb.mxu3 %v1877_v3  ;;  %858 = vmatpush.bf16.msrb.mxu0 %v1879_v5  ;;  %v230_v32 = vor.u32 %v229_v23, %v226_v22  ;;  %v261_v33 = vshll.u32 %v2182_v26, 16  ;;  %v266_v34 = vshrl.u32 %v177_v21, 16  ;;  %v269_v35 = vshll.u32 %v177_v21, 16  ;;  %v178_v36 = vld [vmem:[%s2155_s18 + $0x30] sm:$0xf]  ;;  %v1887_v22 = vld [vmem:[%s2571_s1 + $0x68] sm:$0xff] }
  0x1f   : > { %v244_v38 = vor.u32 %v243_v27, %v240_v25  ;;  %v254_v39 = vrot.slane %v252_v30, 4  ;;  %v257_v40 = vrot.slane %v255_v31, 5  ;;  %v275_v41 = vshll.u32 %v2185_v29, 16  ;;  %v2197_v46 = vld [vmem:[%s2155_s18 + $0x34] sm:$0x1] }
  0x20   : > { %v231_v42 = vrot.slane %v230_v32, 4  ;;  %v263_v43 = vrot.slane %v261_v33, 5  ;;  %v268_v44 = vrot.slane %v266_v34, 4  ;;  %v271_v45 = vrot.slane %v269_v35, 5  ;;  %v179_v53 = vld [vmem:[%s2155_s18 + $0x38] sm:$0xf] }
  0x21   : > { %558 = vmatpush.bf16.msrb.mxu2 %v1870_v6  ;;  %429 = vmatpush.bf16.msrb.mxu1 %v1866_v11  ;;  %v245_v47 = vrot.slane %v244_v38, 4  ;;  %v258_v48 = vor.u32 %v257_v40, %v254_v39  ;;  %v277_v49 = vrot.slane %v275_v41, 5  ;;  %v280_v50 = vshrl.u32 %v178_v36, 16  ;;  %v2203_v54 = vld [vmem:[%s2155_s18 + $0x3c] sm:$0x1] }
  0x22   : > { %653 = vmatpush.bf16.msrb.mxu3 %v1876_v7  ;;  %859 = vmatpush.bf16.msrb.mxu0 %v1878_v12  ;;  %v236_v51 = vsel %vm2191_vm3, %v231_v42, %v235_v24  ;;  %v272_v52 = vor.u32 %v271_v45, %v268_v44  ;;  %v283_v55 = vshll.u32 %v178_v36, 16  ;;  %v289_v56 = vshll.u32 %v2197_v46, 16  ;;  %v172_v1 = vld [vmem:[%s2155_s18] sm:$0xf]  ;;  %v184_v6 = vld [vmem:[%s2155_s18 + $0x4] sm:$0x1] }
  0x23   : > { %v250_v57 = vsel %vm2191_vm3, %v245_v47, %v249_v28  ;;  %v314_v58 = vunpack.c.l.b16 %v236_v51  ;;  %v259_v59 = vrot.slane %v258_v48, 4  ;;  %v282_v60 = vrot.slane %v280_v50, 4  ;;  %v173_v12 = vld [vmem:[%s2155_s18 + $0x8] sm:$0xf]  ;;  %v185_v25 = vld [vmem:[%s2155_s18 + $0xc] sm:$0x1] }
  0x24   : > { %v315_v61 = vunpack.c.l.b16 %v250_v57  ;;  %v273_v62 = vrot.slane %v272_v52, 4  ;;  %v285_v63 = vrot.slane %v283_v55, 5  ;;  %v291_v0 = vrot.slane %v289_v56, 5  ;;  %v451_v34 = vld [vmem:[%s2155_s18] sm:$0xe]  ;;  %v1881_v35 = vld [vmem:[%s2571_s1 + $0x58] sm:$0xff] }
  0x25   : > { %v264_v2 = vsel %vm2191_vm3, %v259_v59, %v263_v43  ;;  %v294_v3 = vshrl.u32 %v179_v53, 16  ;;  %v297_v4 = vshll.u32 %v179_v53, 16  ;;  %v303_v5 = vshll.u32 %v2203_v54, 16  ;;  %v452_v41 = vld [vmem:[%s2155_s18 + $0x8] sm:$0xe] }
  0x26   : > { %v321_v7 = vpack.c.b16 %v315_v61, %v314_v58  ;;  %v278_v8 = vsel %vm2191_vm3, %v273_v62, %v277_v49  ;;  %v316_v9 = vunpack.c.l.b16 %v264_v2  ;;  %v286_v11 = vor.u32 %v285_v63, %v282_v60  ;;  %v1689_v48 = vld [vmem:[%s2155_s18 + $0x8] sm:$0xf]  ;;  %v1691_v59 = vld [vmem:[%s2155_s18 + $0x10] sm:$0xf]  ;;  %v1889_v61 = vld [vmem:[%s2571_s1 + $0x78] sm:$0xff] }
  0x27   : > { %v317_v14 = vunpack.c.l.b16 %v278_v8  ;;  %v296_v15 = vrot.slane %v294_v3, 4  ;;  %v299_v16 = vrot.slane %v297_v4, 5  ;;  %v305_v17 = vrot.slane %v303_v5, 5  ;;  %v2252_v2 = vld [vmem:[%s2155_s18 + $0x14] sm:$0x1] }
  0x28   : > { %1594 = vmatmul.msk.bf16.vlgmr.msra.gmra.mxu1 %vm336_vm2, %v321_v7  ;;  %v287_v18 = vrot.slane %v286_v11, 4  ;;  %v196_v19 = vshrl.u32 %v172_v1, 16  ;;  %v199_v20 = vshll.u32 %v172_v1, 16  ;;  %v205_v21 = vshll.u32 %v184_v6, 16  ;;  %v2249_v1 = vld [vmem:[%s2155_s18 + $0xc] sm:$0x1] }
  0x29   : > { %v322_v23 = vpack.c.b16 %v317_v14, %v316_v9  ;;  %v300_v24 = vor.u32 %v299_v16, %v296_v15  ;;  %v210_v27 = vshrl.u32 %v173_v12, 16  ;;  %v213_v28 = vshll.u32 %v173_v12, 16  ;;  %992 = vmatpush.bf16.msra.mxu1 %v1881_v35  ;;  %v1599_v5 = vld [vmem:[%s2155_s18] sm:$0xf] }
  0x2a   : > { %v292_v30 = vsel %vm2191_vm3, %v287_v18, %v291_v0  ;;  %v198_v31 = vrot.slane %v196_v19, 4  ;;  %v201_v32 = vrot.slane %v199_v20, 5  ;;  %v207_v33 = vrot.slane %v205_v21, 5  ;;  %v1891_v18 = vld [vmem:[%s2571_s1 + $0x88] sm:$0xff] }
  0x2b   : > { %1595 = vmatmul.msk.bf16.vlgmr.msra.gmra.mxu2 %vm336_vm2, %v322_v23  ;;  %v301_v36 = vrot.slane %v300_v24, 4  ;;  %v318_v38 = vunpack.c.l.b16 %v292_v30  ;;  %v212_v39 = vrot.slane %v210_v27, 4  ;;  %v215_v40 = vrot.slane %v213_v28, 5 }
  0x2c   : > { %v202_v42 = vor.u32 %v201_v32, %v198_v31  ;;  %v219_v43 = vshll.u32 %v185_v25, 16  ;;  %v480_v44 = vrot.slane %v184_v6, 5  ;;  %v484_v45 = vrot.slane %v185_v25, 5  ;;  %1087 = vmatpush.bf16.msra.mxu2 %v1887_v22  ;;  %v1862_v6 = vld [vmem:[%s2155_s18 + $0x4] sm:$0xf0] }
  0x2d   : > { %v306_v49 = vsel %vm2191_vm3, %v301_v36, %v305_v17  ;;  %v216_v50 = vor.u32 %v215_v40, %v212_v39  ;;  %v1625_v51 = vrot.slane %v451_v34, 9  ;;  %v1626_v56 = vrot.slane %v452_v41, 9  ;;  %v453_v31 = vld [vmem:[%s2155_s18 + $0x10] sm:$0xe]  ;;  %v1693_v32 = vld [vmem:[%s2155_s18 + $0x18] sm:$0xf] }
  0x2e   : > { %v319_v52 = vunpack.c.l.b16 %v306_v49  ;;  %v203_v53 = vrot.slane %v202_v42, 4  ;;  %v221_v55 = vrot.slane %v219_v43, 5  ;;  %v700_v60 = vshrl.u32 %v1689_v48, 16  ;;  %v1695_v34 = vld [vmem:[%s2155_s18 + $0x20] sm:$0xf] }
  0x2f   : > { %v217_v57 = vrot.slane %v216_v50, 4  ;;  %v481_v58 = vsel %vm2231_vm6, %v1625_v51, %v480_v44  ;;  %v485_v0 = vsel %vm2231_vm6, %v1626_v56, %v484_v45  ;;  %v703_v11 = vshll.u32 %v1689_v48, 16  ;;  %v454_v36 = vld [vmem:[%s2155_s18 + $0x18] sm:$0xe]  ;;  %v1663_v42 = vld [vmem:[%s2155_s18 + $0x8] sm:$0xf] }
  0x30   : > { %v323_v62 = vpack.c.b16 %v319_v52, %v318_v38  ;;  %v208_v63 = vsel %vm2191_vm3, %v203_v53, %v207_v33  ;;  %v515_v7 = vunpack.c.l.b16 %v481_v58  ;;  %v702_v9 = vrot.slane %v700_v60, 4  ;;  %v1872_v43 = vld [vmem:[%s2155_s18 + $0xc] sm:$0xf0]  ;;  %v2282_v56 = vld [vmem:[%s2155_s18 + $0x1c] sm:$0x1] }
  0x31   : > { %v222_v3 = vsel %vm2191_vm3, %v217_v57, %v221_v55  ;;  %v312_v4 = vunpack.c.l.b16 %v208_v63  ;;  %v714_v12 = vshrl.u32 %v1691_v59, 16  ;;  %v516_v14 = vunpack.c.l.b16 %v485_v0  ;;  %v1603_v63 = vld [vmem:[%s2155_s18 + $0x10] sm:$0xf] }
  0x32   : > { %1596 = vmatmul.msk.bf16.vlgmr.msra.gmra.mxu3 %vm336_vm2, %v323_v62  ;;  %v313_v8 = vunpack.c.l.b16 %v222_v3  ;;  %v709_v15 = vshll.u32 %v2249_v1, 16  ;;  %v717_v16 = vshll.u32 %v1691_v59, 16  ;;  %v723_v17 = vshll.u32 %v2252_v2, 16  ;;  %v2287_v62 = vld [vmem:[%s2155_s18 + $0x24] sm:$0x1] }
  0x33   : > { %1293 = vmatpush.bf16.msra.mxu3 %v1889_v61  ;;  %v1600_v20 = vor.u32 %v1862_v6, %v1599_v5  ;;  %v705_v21 = vrot.slane %v703_v11, 5  ;;  %v716_v22 = vrot.slane %v714_v12, 4  ;;  %v523_v25 = vpack.c.b16 %v516_v14, %v515_v7  ;;  %v1886_v5 = vld [vmem:[%s2571_s1 + $0x60] sm:$0xff]  ;;  %v1697_v12 = vld [vmem:[%s2155_s18 + $0x28] sm:$0xf] }
  0x34   : > { %v320_v19 = vpack.c.b16 %v313_v8, %v312_v4  ;;  %v719_v23 = vrot.slane %v717_v16, 5  ;;  %v711_v27 = vrot.slane %v709_v15, 5  ;;  %v725_v30 = vrot.slane %v723_v17, 5  ;;  %1088 = vmatpush.bf16.msra.mxu2 %v1886_v5  ;;  %v1888_v15 = vld [vmem:[%s2571_s1 + $0x70] sm:$0xff]  ;;  %v1890_v17 = vld [vmem:[%s2571_s1 + $0x80] sm:$0xff] }
  0x35   : > { %v706_v24 = vor.u32 %v705_v21, %v702_v9  ;;  %v1627_v38 = vrot.slane %v453_v31, 9  ;;  %v488_v39 = vrot.slane %v2166_v10, 5  ;;  %v728_v40 = vshrl.u32 %v1693_v32, 16  ;;  %v1880_v16 = vld [vmem:[%s2571_s1 + $0x50] sm:$0xff] }
  0x36   : > { %1593 = vmatmul.msk.bf16.vlgmr.msra.gmra.mxu0 %vm336_vm2, %v320_v19  ;;  %v720_v28 = vor.u32 %v719_v23, %v716_v22  ;;  %v731_v41 = vshll.u32 %v1693_v32, 16  ;;  %v742_v48 = vshrl.u32 %v1695_v34, 16  ;;  %v745_v49 = vshll.u32 %v1695_v34, 16  ;;  %v1699_v22 = vld [vmem:[%s2155_s18 + $0x30] sm:$0xf]  ;;  %993 = vmatpush.bf16.msra.mxu1 %v1880_v16 }
  0x37   : > { %1427 = vmatpush.bf16.msra.mxu0 %v1891_v18  ;;  %v707_v33 = vrot.slane %v706_v24, 4  ;;  %v1628_v50 = vrot.slane %v454_v36, 9  ;;  %v492_v10 = vrot.slane %v2175_v13, 5  ;;  %v1664_v51 = vor.u32 %v1872_v43, %v1663_v42  ;;  %v1863_v13 = vld [vmem:[%s2155_s18 + $0x14] sm:$0xf0]  ;;  %1294 = vmatpush.bf16.msra.mxu3 %v1888_v15 }
  0x38   : > { %1621 = vmatmul.msk.bf16.vlgmr.msrb.gmra.mxu1 %vm336_vm2, %v1600_v20  ;;  %v721_v35 = vrot.slane %v720_v28, 4  ;;  %v489_v55 = vsel %vm2231_vm6, %v1627_v38, %v488_v39  ;;  %v730_v57 = vrot.slane %v728_v40, 4  ;;  %v733_v58 = vrot.slane %v731_v41, 5  ;;  %v455_v23 = vld [vmem:[%s2155_s18 + $0x20] sm:$0xe] }
  0x39   : > { %v712_v44 = vsel %vm2191_vm3, %v707_v33, %v711_v27  ;;  %v744_v59 = vrot.slane %v742_v48, 4  ;;  %v747_v60 = vrot.slane %v745_v49, 5  ;;  %v493_v61 = vsel %vm2231_vm6, %v1628_v50, %v492_v10  ;;  %v456_v24 = vld [vmem:[%s2155_s18 + $0x28] sm:$0xe]  ;;  %v1667_v28 = vld [vmem:[%s2155_s18 + $0x18] sm:$0xf] }
  0x3a   : > { %v726_v45 = vsel %vm2191_vm3, %v721_v35, %v725_v30  ;;  %v816_v52 = vunpack.c.l.b16 %v712_v44  ;;  %v517_v3 = vunpack.c.l.b16 %v489_v55  ;;  %v737_v4 = vshll.u32 %v2282_v56, 16  ;;  %v1873_v30 = vld [vmem:[%s2155_s18 + $0x1c] sm:$0xf0] }
  0x3b   : > { %1645 = vmatmul.msk.bf16.vlgmr.msrb.gmra.mxu2 %vm336_vm2, %v523_v25  ;;  %v817_v53 = vunpack.c.l.b16 %v726_v45  ;;  %v518_v6 = vunpack.c.l.b16 %v493_v61  ;;  %v734_v7 = vor.u32 %v733_v58, %v730_v57  ;;  %v748_v8 = vor.u32 %v747_v60, %v744_v59  ;;  %1428 = vmatpush.bf16.msra.mxu0 %v1890_v17  ;;  %v2322_v45 = vld [vmem:[%s2155_s18 + $0x2c] sm:$0x1] }
  0x3c   : > { %v751_v9 = vshll.u32 %v2287_v62, 16  ;;  %v1604_v11 = vor.u32 %v1863_v13, %v1603_v63  ;;  %v739_v14 = vrot.slane %v737_v4, 5  ;;  %v756_v25 = vshrl.u32 %v1697_v12, 16 }
  0x3d   : > { %v824_v0 = vpack.c.b16 %v817_v53, %v816_v52  ;;  %v524_v18 = vpack.c.b16 %v518_v6, %v517_v3  ;;  %v735_v19 = vrot.slane %v734_v7, 4  ;;  %v749_v20 = vrot.slane %v748_v8, 4  ;;  %v458_v6 = vld [vmem:[%s2155_s18 + $0x38] sm:$0xe]  ;;  %v1703_v8 = vld [vmem:[%s2155_s18 + $0x40] sm:$0xf] }
  0x3e   : > { %v753_v21 = vrot.slane %v751_v9, 5  ;;  %v759_v27 = vshll.u32 %v1697_v12, 16  ;;  %v770_v33 = vshrl.u32 %v1699_v22, 16  ;;  %v773_v34 = vshll.u32 %v1699_v22, 16  ;;  %v1701_v7 = vld [vmem:[%s2155_s18 + $0x38] sm:$0xf] }
  0x3f   : > { %v740_v31 = vsel %vm2191_vm3, %v735_v19, %v739_v14  ;;  %v1629_v35 = vrot.slane %v455_v23, 9  ;;  %v496_v36 = vrot.slane %v2182_v26, 5  ;;  %v1630_v38 = vrot.slane %v456_v24, 9  ;;  %v2329_v26 = vld [vmem:[%s2155_s18 + $0x34] sm:$0x1] }
  0x40   : > { %v754_v32 = vsel %vm2191_vm3, %v749_v20, %v753_v21  ;;  %v500_v39 = vrot.slane %v2185_v29, 5  ;;  %v758_v40 = vrot.slane %v756_v25, 4  ;;  %v761_v41 = vrot.slane %v759_v27, 5  ;;  %v1864_v29 = vld [vmem:[%s2155_s18 + $0x24] sm:$0xf0] }
  0x41   : > { %v1668_v42 = vor.u32 %v1873_v30, %v1667_v28  ;;  %v818_v43 = vunpack.c.l.b16 %v740_v31  ;;  %v819_v44 = vunpack.c.l.b16 %v754_v32  ;;  %v772_v48 = vrot.slane %v770_v33, 4  ;;  %v1671_v9 = vld [vmem:[%s2155_s18 + $0x28] sm:$0xf]  ;;  %v1874_v14 = vld [vmem:[%s2155_s18 + $0x2c] sm:$0xf0] }
  0x42   : > { %1685 = vmatmul.msk.bf16.vlgmr.msrb.gmra.mxu3 %vm336_vm2, %v1664_v51  ;;  %v775_v49 = vrot.slane %v773_v34, 5  ;;  %v497_v50 = vsel %vm2231_vm6, %v1629_v35, %v496_v36  ;;  %v501_v10 = vsel %vm2231_vm6, %v1630_v38, %v500_v39  ;;  %v1607_v51 = vld [vmem:[%s2155_s18 + $0x20] sm:$0xf]  ;;  %v762_v52 = vor.u32 %v761_v41, %v758_v40  ;;  %v2356_v27 = vld [vmem:[%s2155_s18 + $0x3c] sm:$0x1] }
  0x43   : > { %v765_v53 = vshll.u32 %v2322_v45, 16  ;;  %v825_v55 = vpack.c.b16 %v819_v44, %v818_v43  ;;  %v519_v57 = vunpack.c.l.b16 %v497_v50  ;;  %v520_v58 = vunpack.c.l.b16 %v501_v10  ;;  %v2359_v28 = vld [vmem:[%s2155_s18 + $0x44] sm:$0x1]  ;;  %v1611_v34 = vld [vmem:[%s2155_s18 + $0x30] sm:$0xf] }
  0x44   : > { %v776_v59 = vor.u32 %v775_v49, %v772_v48  ;;  %v779_v60 = vshll.u32 %v2329_v26, 16  ;;  %v1608_v61 = vor.u32 %v1864_v29, %v1607_v51  ;;  %v763_v63 = vrot.slane %v762_v52, 4  ;;  %v1865_v35 = vld [vmem:[%s2155_s18 + $0x34] sm:$0xf0] }
  0x45   : > { %v767_v13 = vrot.slane %v765_v53, 5  ;;  %v525_v3 = vpack.c.b16 %v520_v58, %v519_v57  ;;  %v504_v12 = vrot.slane %v2197_v46, 5  ;;  %v1632_v16 = vrot.slane %v458_v6, 9  ;;  %v1795_v49 = vld [vmem:[%s2155_s18 + $0x18] sm:$0xf] }
  0x46   : > { %1717 = vmatmul.msk.bf16.vlgmr.msrb.gmra.mxu0 %vm336_vm2, %v824_v0  ;;  %v457_v0 = vld [vmem:[%s2155_s18 + $0x30] sm:$0xe]  ;;  %v777_v4 = vrot.slane %v776_v59, 4  ;;  %v781_v5 = vrot.slane %v779_v60, 5  ;;  %v508_v17 = vrot.slane %v2203_v54, 5  ;;  %v787_v20 = vshll.u32 %v1701_v7, 16 }
  0x47   : > { %v1631_v15 = vrot.slane %v457_v0, 9  ;;  %v798_v21 = vshrl.u32 %v1703_v8, 16  ;;  %v801_v22 = vshll.u32 %v1703_v8, 16  ;;  %v1672_v23 = vor.u32 %v1874_v14, %v1671_v9  ;;  %v1721_v53 = vld [vmem:[%s2155_s18 + $0x8] sm:$0xe] }
  0x48   : > { %1622 = vmatmul.msk.bf16.gmra.mxu1 %vm336_vm2, %v1604_v11  ;;  %v768_v11 = vsel %vm2191_vm3, %v763_v63, %v767_v13  ;;  %v782_v19 = vsel %vm2191_vm3, %v777_v4, %v781_v5  ;;  %v509_v54 = vsel %vm2231_vm6, %v1632_v16, %v508_v17  ;;  %v789_v31 = vrot.slane %v787_v20, 5  ;;  %v1794_v5 = vld [vmem:[%s2155_s18 + $0x14] sm:$0x1]  ;;  %v1675_v6 = vld [vmem:[%s2155_s18 + $0x38] sm:$0xf] }
  0x49   : > { %v820_v46 = vunpack.c.l.b16 %v768_v11  ;;  %v821_v24 = vunpack.c.l.b16 %v782_v19  ;;  %v505_v25 = vsel %vm2231_vm6, %v1631_v15, %v504_v12  ;;  %v800_v32 = vrot.slane %v798_v21, 4 }
  0x4a   : > { %v803_v33 = vrot.slane %v801_v22, 5  ;;  %v521_v36 = vunpack.c.l.b16 %v505_v25  ;;  %v522_v39 = vunpack.c.l.b16 %v509_v54  ;;  %v793_v40 = vshll.u32 %v2356_v27, 16  ;;  %v1767_v54 = vld [vmem:[%s2155_s18 + $0x10] sm:$0xf] }
  0x4b   : > { %1646 = vmatmul.msk.bf16.gmra.mxu2 %vm336_vm2, %v524_v18  ;;  %v784_v18 = vshrl.u32 %v1701_v7, 16  ;;  %v826_v38 = vpack.c.b16 %v821_v24, %v820_v46  ;;  %v807_v41 = vshll.u32 %v2359_v28, 16  ;;  %v1612_v48 = vor.u32 %v1865_v35, %v1611_v34  ;;  %v1875_v7 = vld [vmem:[%s2155_s18 + $0x3c] sm:$0xf0] }
  0x4c   : > { %v804_v44 = vor.u32 %v803_v33, %v800_v32  ;;  %v526_v51 = vpack.c.b16 %v522_v39, %v521_v36  ;;  %v795_v29 = vrot.slane %v793_v40, 5  ;;  %v1149_v59 = vshrl.u32 %v1795_v49, 16  ;;  %v1882_v32 = vld [vmem:[%s2155_s18 + $0x14] sm:$0xf0]  ;;  %v1797_v35 = vld [vmem:[%s2155_s18 + $0x20] sm:$0xf] }
  0x4d   : > { %v786_v30 = vrot.slane %v784_v18, 4  ;;  %v809_v52 = vrot.slane %v807_v41, 5  ;;  %v1152_v60 = vshll.u32 %v1795_v49, 16  ;;  %v919_v63 = vrot.slane %v2252_v2, 5  ;;  %v1796_v2 = vld [vmem:[%s2155_s18 + $0x1c] sm:$0x1] }
  0x4e   : > { %v805_v58 = vrot.slane %v804_v44, 4  ;;  %v1729_v13 = vrot.slane %v1721_v53, 9  ;;  %v1144_v16 = vshll.u32 %v1794_v5, 16  ;;  %v1676_v17 = vor.u32 %v1875_v7, %v1675_v6  ;;  %v1723_v44 = vld [vmem:[%s2155_s18 + $0x18] sm:$0xe] }
  0x4f   : > { %v790_v43 = vor.u32 %v789_v31, %v786_v30  ;;  %v1154_v11 = vrot.slane %v1152_v60, 5  ;;  %v1158_v21 = vshll.u32 %v1796_v2, 16  ;;  %v1825_v30 = vld [vmem:[%s2155_s18 + $0x10] sm:$0xe]  ;;  %v1826_v31 = vld [vmem:[%s2155_s18 + $0x18] sm:$0xe] }
  0x50   : > { %v810_v9 = vsel %vm2191_vm3, %v805_v58, %v809_v52  ;;  %v1146_v24 = vrot.slane %v1144_v16, 5  ;;  %v1833_v40 = vrot.slane %v1825_v30, 9  ;;  %v1350_v41 = vrot.slane %v1794_v5, 5  ;;  %v1800_v6 = vld [vmem:[%s2155_s18 + $0x2c] sm:$0x1] }
  0x51   : > { %v791_v57 = vrot.slane %v790_v43, 4  ;;  %v823_v19 = vunpack.c.l.b16 %v810_v9  ;;  %v1160_v34 = vrot.slane %v1158_v21, 5  ;;  %v1768_v43 = vor.u32 %v1882_v32, %v1767_v54  ;;  %v1771_v16 = vld [vmem:[%s2155_s18 + $0x20] sm:$0xf]  ;;  %v1801_v21 = vld [vmem:[%s2155_s18 + $0x30] sm:$0xf] }
  0x52   : > { %1686 = vmatmul.msk.bf16.gmra.mxu3 %vm336_vm2, %v1668_v42  ;;  %v1793_v42 = vld [vmem:[%s2155_s18 + $0x10] sm:$0xf]  ;;  %v1163_v49 = vshrl.u32 %v1797_v35, 16  ;;  %v1803_v54 = vld [vmem:[%s2155_s18 + $0x38] sm:$0xf]  ;;  %v1194_v32 = vshll.u32 %v1801_v21, 16 }
  0x53   : > { %v1135_v50 = vshrl.u32 %v1793_v42, 16  ;;  %v1138_v10 = vshll.u32 %v1793_v42, 16  ;;  %v796_v8 = vsel %vm2191_vm3, %v791_v57, %v795_v29  ;;  %v1834_v42 = vrot.slane %v1826_v31, 9 }
  0x54   : > { %v822_v18 = vunpack.c.l.b16 %v796_v8  ;;  %v923_v57 = vrot.slane %v2282_v56, 5  ;;  %v1191_v31 = vshrl.u32 %v1801_v21, 16 }
  0x55   : > { %v1140_v4 = vrot.slane %v1138_v10, 5 }
  0x56   : > { %1718 = vmatmul.msk.bf16.gmra.mxu0 %vm336_vm2, %v825_v55  ;;  %v1722_v55 = vld [vmem:[%s2155_s18 + $0x10] sm:$0xe]  ;;  %v827_v25 = vpack.c.b16 %v823_v19, %v822_v18 }
  0x57   : > { %v1730_v0 = vrot.slane %v1722_v55, 9  ;;  %v1731_v55 = vrot.slane %v1723_v44, 9  ;;  %v931_v44 = vrot.slane %v2322_v45, 5  ;;  %v1804_v45 = vld [vmem:[%s2155_s18 + $0x3c] sm:$0x1] }
  0x58   : > { %1623 = vmatmul.msk.bf16.gmra.mxu1 %vm336_vm2, %v1608_v61  ;;  %v915_v61 = vrot.slane %v2249_v1, 5  ;;  %v1151_v1 = vrot.slane %v1149_v59, 4  ;;  %v927_v59 = vrot.slane %v2287_v62, 5 }
  0x59   : > { %v920_v14 = vsel %vm2231_vm6, %v1730_v0, %v919_v63  ;;  %v1165_v63 = vrot.slane %v1163_v49, 4  ;;  %v924_v62 = vsel %vm2231_vm6, %v1731_v55, %v923_v57 }
  0x5a   : > { %v916_v12 = vsel %vm2231_vm6, %v1729_v13, %v915_v61  ;;  %v1155_v20 = vor.u32 %v1154_v11, %v1151_v1  ;;  %v1351_v61 = vsel %vm2231_vm6, %v1833_v40, %v1350_v41  ;;  %v1362_v41 = vrot.slane %v1800_v6, 5 }
  0x5b   : > { %1647 = vmatmul.msk.bf16.gmra.mxu2 %vm336_vm2, %v525_v3  ;;  %v1137_v3 = vrot.slane %v1135_v50, 4  ;;  %v950_v22 = vunpack.c.l.b16 %v916_v12  ;;  %v1166_v50 = vshll.u32 %v1797_v35, 16  ;;  %v1385_v56 = vunpack.c.l.b16 %v1351_v61 }
  0x5c   : > { %v1156_v33 = vrot.slane %v1155_v20, 4  ;;  %v1186_v12 = vshll.u32 %v1800_v6, 16  ;;  %v1827_v20 = vld [vmem:[%s2155_s18 + $0x20] sm:$0xe] }
  0x5d   : > { %v1141_v15 = vor.u32 %v1140_v4, %v1137_v3  ;;  %v1168_v13 = vrot.slane %v1166_v50, 5  ;;  %v1798_v3 = vld [vmem:[%s2155_s18 + $0x24] sm:$0x1]  ;;  %v1835_v30 = vrot.slane %v1827_v20, 9 }
  0x5e   : > { %v1161_v10 = vsel %vm2191_vm3, %v1156_v33, %v1160_v34  ;;  %v1172_v11 = vshll.u32 %v1798_v3, 16  ;;  %v1358_v35 = vrot.slane %v1798_v3, 5 }
  0x5f   : > { %v1142_v46 = vrot.slane %v1141_v15, 4  ;;  %v1252_v60 = vunpack.c.l.b16 %v1161_v10  ;;  %v1169_v1 = vor.u32 %v1168_v13, %v1165_v63  ;;  %v1193_v10 = vrot.slane %v1191_v31, 4 }
  0x60   : > { %v1174_v19 = vrot.slane %v1172_v11, 5  ;;  %v1359_v55 = vsel %vm2231_vm6, %v1835_v30, %v1358_v35  ;;  %v1830_v11 = vld [vmem:[%s2155_s18 + $0x38] sm:$0xe]  ;;  %v1370_v30 = vrot.slane %v1804_v45, 5  ;;  %v939_v35 = vrot.slane %v2356_v27, 5 }
  0x61   : > { %v1147_v39 = vsel %vm2191_vm3, %v1142_v46, %v1146_v24  ;;  %v1170_v18 = vrot.slane %v1169_v1, 4  ;;  %v1188_v46 = vrot.slane %v1186_v12, 5  ;;  %v1828_v24 = vld [vmem:[%s2155_s18 + $0x28] sm:$0xe]  ;;  %v1829_v1 = vld [vmem:[%s2155_s18 + $0x30] sm:$0xe] }
  0x62   : > { %1687 = vmatmul.msk.bf16.gmra.mxu3 %vm336_vm2, %v1672_v23  ;;  %v951_v23 = vunpack.c.l.b16 %v920_v14  ;;  %v1251_v53 = vunpack.c.l.b16 %v1147_v39  ;;  %v952_v14 = vunpack.c.l.b16 %v924_v62  ;;  %v1726_v39 = vld [vmem:[%s2155_s18 + $0x30] sm:$0xe]  ;;  %v1838_v21 = vrot.slane %v1830_v11, 9 }
  0x63   : > { %v1175_v34 = vsel %vm2191_vm3, %v1170_v18, %v1174_v19  ;;  %v1734_v50 = vrot.slane %v1726_v39, 9  ;;  %v1837_v19 = vrot.slane %v1829_v1, 9 }
  0x64   : > { %v958_v36 = vpack.c.b16 %v951_v23, %v950_v22  ;;  %v1259_v8 = vpack.c.b16 %v1252_v60, %v1251_v53  ;;  %v1883_v22 = vld [vmem:[%s2155_s18 + $0x24] sm:$0xf0]  ;;  %v1802_v53 = vld [vmem:[%s2155_s18 + $0x34] sm:$0x1] }
  0x65   : > { %v1772_v33 = vor.u32 %v1883_v22, %v1771_v16  ;;  %v1200_v63 = vshll.u32 %v1802_v53, 16  ;;  %v1366_v20 = vrot.slane %v1802_v53, 5 }
  0x66   : > { %1719 = vmatmul.msk.bf16.gmra.mxu0 %vm336_vm2, %v826_v38  ;;  %v1799_v38 = vld [vmem:[%s2155_s18 + $0x28] sm:$0xf] }
  0x67   : > { %v1177_v29 = vshrl.u32 %v1799_v38, 16  ;;  %v1180_v52 = vshll.u32 %v1799_v38, 16  ;;  %v1725_v38 = vld [vmem:[%s2155_s18 + $0x28] sm:$0xe] }
  0x68   : > { %1624 = vmatmul.msk.bf16.gmra.mxu1 %vm336_vm2, %v1612_v48  ;;  %v1724_v48 = vld [vmem:[%s2155_s18 + $0x20] sm:$0xe]  ;;  %v1733_v49 = vrot.slane %v1725_v38, 9  ;;  %v943_v38 = vrot.slane %v2359_v28, 5 }
  0x69   : > { %v1732_v58 = vrot.slane %v1724_v48, 9  ;;  %v1179_v4 = vrot.slane %v1177_v29, 4  ;;  %v1182_v5 = vrot.slane %v1180_v52, 5  ;;  %v935_v48 = vrot.slane %v2329_v26, 5 }
  0x6a   : > { %v1253_v29 = vunpack.c.l.b16 %v1175_v34  ;;  %v932_v26 = vsel %vm2231_vm6, %v1733_v49, %v931_v44  ;;  %v1806_v44 = vld [vmem:[%s2155_s18 + $0x44] sm:$0x1] }
  0x6b   : > { %1648 = vmatmul.msk.bf16.gmra.mxu2 %vm336_vm2, %v526_v51  ;;  %v1354_v51 = vrot.slane %v1796_v2, 5  ;;  %v928_v7 = vsel %vm2231_vm6, %v1732_v58, %v927_v59  ;;  %v1183_v2 = vor.u32 %v1182_v5, %v1179_v4  ;;  %v936_v60 = vsel %vm2231_vm6, %v1734_v50, %v935_v48  ;;  %v1808_v50 = vld [vmem:[%s2155_s18 + $0x4c] sm:$0x1] }
  0x6c   : > { %v953_v15 = vunpack.c.l.b16 %v928_v7  ;;  %v1214_v5 = vshll.u32 %v1804_v45, 16  ;;  %v954_v6 = vunpack.c.l.b16 %v932_v26  ;;  %v1202_v7 = vrot.slane %v1200_v63, 5 }
  0x6d   : > { %v1355_v0 = vsel %vm2231_vm6, %v1834_v42, %v1354_v51  ;;  %v1184_v23 = vrot.slane %v1183_v2, 4  ;;  %v1205_v42 = vshrl.u32 %v1803_v54, 16  ;;  %v1196_v51 = vrot.slane %v1194_v32, 5  ;;  %v1884_v2 = vld [vmem:[%s2155_s18 + $0x34] sm:$0xf0] }
  0x6e   : > { %v1386_v9 = vunpack.c.l.b16 %v1355_v0  ;;  %v1387_v0 = vunpack.c.l.b16 %v1359_v55  ;;  %v1228_v53 = vshll.u32 %v1806_v44, 16  ;;  %v1378_v11 = vrot.slane %v1808_v50, 5 }
  0x6f   : > { %v1189_v40 = vsel %vm2191_vm3, %v1184_v23, %v1188_v46  ;;  %v1207_v58 = vrot.slane %v1205_v42, 4  ;;  %v1197_v61 = vor.u32 %v1196_v51, %v1193_v10  ;;  %v1727_v23 = vld [vmem:[%s2155_s18 + $0x38] sm:$0xe]  ;;  %v1728_v46 = vld [vmem:[%s2155_s18 + $0x40] sm:$0xe] }
  0x70   : > { %v1254_v52 = vunpack.c.l.b16 %v1189_v40  ;;  %v1735_v34 = vrot.slane %v1727_v23, 9  ;;  %v1367_v40 = vsel %vm2231_vm6, %v1837_v19, %v1366_v20 }
  0x71   : > { %v1198_v62 = vrot.slane %v1197_v61, 4  ;;  %v1389_v10 = vunpack.c.l.b16 %v1367_v40 }
  0x72   : > { %1688 = vmatmul.msk.bf16.gmra.mxu3 %vm336_vm2, %v1676_v17  ;;  %v1393_v17 = vpack.c.b16 %v1386_v9, %v1385_v56  ;;  %v1260_v13 = vpack.c.b16 %v1254_v52, %v1253_v29  ;;  %v955_v56 = vunpack.c.l.b16 %v936_v60  ;;  %v1775_v9 = vld [vmem:[%s2155_s18 + $0x30] sm:$0xf]  ;;  %v940_v27 = vsel %vm2231_vm6, %v1735_v34, %v939_v35 }
  0x73   : > { %v1203_v18 = vsel %vm2191_vm3, %v1198_v62, %v1202_v7  ;;  %v1776_v22 = vor.u32 %v1884_v2, %v1775_v9  ;;  %v1230_v60 = vrot.slane %v1228_v53, 5  ;;  %v1374_v7 = vrot.slane %v1806_v44, 5 }
  0x74   : > { %v960_v16 = vpack.c.b16 %v955_v56, %v954_v6 }
  0x76   : > { %1720 = vmatmul.msk.bf16.gmra.mxu0 %vm336_vm2, %v827_v25  ;;  %v959_v25 = vpack.c.b16 %v953_v15, %v952_v14  ;;  %v1216_v14 = vrot.slane %v1214_v5, 5  ;;  %v1805_v15 = vld [vmem:[%s2155_s18 + $0x40] sm:$0xf]  ;;  %v1832_v5 = vld [vmem:[%s2155_s18 + $0x48] sm:$0xe] }
  0x77   : > { %v1840_v1 = vrot.slane %v1832_v5, 9 }
  0x78   : > { %1749 = vmatmul.msk.bf16.vlgmr.msra.gmra.mxu1 %vm336_vm2, %v958_v36  ;;  %v1836_v36 = vrot.slane %v1828_v24, 9  ;;  %v1219_v24 = vshrl.u32 %v1805_v15, 16 }
  0x7a   : > { %v1363_v57 = vsel %vm2231_vm6, %v1836_v36, %v1362_v41  ;;  %v1736_v36 = vrot.slane %v1728_v46, 9  ;;  %v1221_v41 = vrot.slane %v1219_v24, 4 }
  0x7b   : > { %1789 = vmatmul.msk.bf16.vlgmr.msra.gmra.mxu2 %vm336_vm2, %v1768_v43  ;;  %v1208_v43 = vshll.u32 %v1803_v54, 16  ;;  %v1388_v3 = vunpack.c.l.b16 %v1363_v57  ;;  %v1242_v57 = vshll.u32 %v1808_v50, 16 }
  0x7c   : > { %v944_v28 = vsel %vm2231_vm6, %v1736_v36, %v943_v38 }
  0x7d   : > { %v1210_v59 = vrot.slane %v1208_v43, 5  ;;  %v1371_v43 = vsel %vm2231_vm6, %v1838_v21, %v1370_v30  ;;  %v1244_v63 = vrot.slane %v1242_v57, 5 }
  0x7e   : > { %v1390_v29 = vunpack.c.l.b16 %v1371_v43 }
  0x7f   : > { %v1211_v4 = vor.u32 %v1210_v59, %v1207_v58  ;;  %v956_v58 = vunpack.c.l.b16 %v940_v27  ;;  %v957_v59 = vunpack.c.l.b16 %v944_v28 }
  0x80   : > { %v1395_v45 = vpack.c.b16 %v1390_v29, %v1389_v10 }
  0x81   : > { %v1212_v12 = vrot.slane %v1211_v4, 4  ;;  %v1885_v4 = vld [vmem:[%s2155_s18 + $0x44] sm:$0xf0] }
  0x82   : > { %1821 = vmatmul.msk.bf16.vlgmr.msra.gmra.mxu3 %vm336_vm2, %v1259_v8  ;;  %v1394_v8 = vpack.c.b16 %v1388_v3, %v1387_v0  ;;  %v961_v0 = vpack.c.b16 %v957_v59, %v956_v58  ;;  %v1779_v3 = vld [vmem:[%s2155_s18 + $0x40] sm:$0xf] }
  0x83   : > { %v1217_v54 = vsel %vm2191_vm3, %v1212_v12, %v1216_v14 }
  0x84   : > { %v1256_v39 = vunpack.c.l.b16 %v1217_v54 }
  0x86   : > { %1853 = vmatmul.msk.bf16.vlgmr.msra.gmra.mxu0 %vm336_vm2, %v1393_v17  ;;  %v1807_v17 = vld [vmem:[%s2155_s18 + $0x48] sm:$0xf] }
  0x87   : > { %v1233_v31 = vshrl.u32 %v1807_v17, 16  ;;  %v1236_v32 = vshll.u32 %v1807_v17, 16 }
  0x88   : > { %1750 = vmatmul.msk.bf16.gmra.mxu1 %vm336_vm2, %v959_v25  ;;  %v1222_v25 = vshll.u32 %v1805_v15, 16  ;;  %v1379_v15 = vsel %vm2231_vm6, %v1840_v1, %v1378_v11 }
  0x89   : > { %v1235_v48 = vrot.slane %v1233_v31, 4  ;;  %v1238_v49 = vrot.slane %v1236_v32, 5  ;;  %v1392_v37 = vunpack.c.l.b16 %v1379_v15 }
  0x8a   : > { %v1224_v42 = vrot.slane %v1222_v25, 5 }
  0x8b   : > { %1790 = vmatmul.msk.bf16.gmra.mxu2 %vm336_vm2, %v1772_v33  ;;  %v1255_v33 = vunpack.c.l.b16 %v1203_v18  ;;  %v1239_v55 = vor.u32 %v1238_v49, %v1235_v48 }
  0x8c   : > { %v1225_v52 = vor.u32 %v1224_v42, %v1221_v41 }
  0x8d   : > { %v1261_v51 = vpack.c.b16 %v1256_v39, %v1255_v33  ;;  %v1240_v61 = vrot.slane %v1239_v55, 4 }
  0x8e   : > { %v1226_v26 = vrot.slane %v1225_v52, 4 }
  0x8f   : > { %v1245_v9 = vsel %vm2191_vm3, %v1240_v61, %v1244_v63 }
  0x90   : > { %v1231_v56 = vsel %vm2191_vm3, %v1226_v26, %v1230_v60  ;;  %v1258_v12 = vunpack.c.l.b16 %v1245_v9 }
  0x91   : > { %v1257_v2 = vunpack.c.l.b16 %v1231_v56 }
  0x92   : > { %1822 = vmatmul.msk.bf16.gmra.mxu3 %vm336_vm2, %v1260_v13  ;;  %v1831_v13 = vld [vmem:[%s2155_s18 + $0x40] sm:$0xe]  ;;  %s158_s18 = sand.u32 1, %s2042_s10  }
  0x93   : > { %v1839_v62 = vrot.slane %v1831_v13, 9  ;;  %v1262_v17 = vpack.c.b16 %v1258_v12, %v1257_v2  ;;  %s1579_s29 = sshll.u32 %s158_s18, 5  ;;  %s1475_s12 = scalar_lea.sflag [#allocation3], %s158_s18 }
  0x94   : > { %s2515_s30 = scalar_lea.vmem [#allocation2], %s1579_s29 }
  0x95   : > { %v1375_v14 = vsel %vm2231_vm6, %v1839_v62, %v1374_v7  ;;  %s1489_s7 = sshll.u32 %s2515_s30, 4  ;;  %s1490_s7 = int_to_ptr.vmem [resolvable:$true] %s1489_s7 }
  0x96   : > { %1854 = vmatmul.msk.bf16.gmra.mxu0 %vm336_vm2, %v1394_v8  ;;  %v1780_v8 = vor.u32 %v1885_v4, %v1779_v3  ;;  %v1391_v18 = vunpack.c.l.b16 %v1375_v14 }
  0x98   : > { %1751 = vmatmul.msk.bf16.gmra.mxu1 %vm336_vm2, %v960_v16  ;;  %v1396_v20 = vpack.c.b16 %v1392_v37, %v1391_v18 }
  0x9b   : > { %1791 = vmatmul.msk.bf16.gmra.mxu2 %vm336_vm2, %v1776_v22 }
  0xa2   : > { %1823 = vmatmul.msk.bf16.gmra.mxu3 %vm336_vm2, %v1261_v51 }
  0xa5   : > { %v363_v6 = vpop.f32.mrf.mxu1 }
  0xa6   : > { %1855 = vmatmul.msk.bf16.gmra.mxu0 %vm336_vm2, %v1395_v45 }
  0xa8   : > { %1752 = vmatmul.msk.bf16.gmra.mxu1 %vm336_vm2, %v961_v0 }
  0xab   : > { %1792 = vmatmul.msk.bf16.gmra.mxu2 %vm336_vm2, %v1780_v8 }
  0xad   : > { %v2487_v16 = vpop.f32.mrf.mxu1 }
  0xae   : > { %v368_v19 = vpop.f32.mrf.mxu2 }
  0xb2   : > { %1824 = vmatmul.msk.bf16.gmra.mxu3 %vm336_vm2, %v1262_v17 }
  0xb3   : > { %v358_v21 = vpop.f32.mrf.mxu0 }
  0xb5   : > { %v373_v22 = vpop.f32.mrf.mxu3  ;;  %v431_v23 = vpop.f32.mrf.mxu1 }
  0xb6   : > { %1856 = vmatmul.msk.bf16.gmra.mxu0 %vm336_vm2, %v1396_v20  ;;  %v2491_v46 = vpop.f32.mrf.mxu2  ;;  %v432_v24 = vadd.f32 %v431_v23, %v358_v21 }
  0xbb   : > { %v360_v25 = vpop.f32.mrf.mxu0 }
  0xbd   : > { %v2493_v47 = vpop.f32.mrf.mxu3  ;;  %v433_v54 = vpop.f32.mrf.mxu1 }
  0xbe   : > { %v560_v30 = vpop.f32.mrf.mxu2  ;;  %v434_v11 = vadd.f32 %v433_v54, %v360_v25 }
  0xbf   : > { %v580_v31 = vadd.f32 %v560_v30, %v432_v24 }
  0xc3   : > { %v861_v32 = vpop.f32.mrf.mxu0 }
  0xc5   : > { %v655_v33 = vpop.f32.mrf.mxu3  ;;  %v436_v34 = vpop.f32.mrf.mxu1 }
  0xc6   : > { %v675_v35 = vadd.f32 %v655_v33, %v580_v31  ;;  %v562_v36 = vpop.f32.mrf.mxu2  ;;  %v437_v38 = vadd.f32 %v436_v34, %v363_v6 }
  0xc7   : > { %v581_v14 = vadd.f32 %v562_v36, %v434_v11 }
  0xc8   : > { %v881_v39 = vadd.f32 %v861_v32, %v675_v35 }
  0xcb   : > { %v863_v40 = vpop.f32.mrf.mxu0 }
  0xcd   : > { %v657_v41 = vpop.f32.mrf.mxu3  ;;  %v438_v42 = vpop.f32.mrf.mxu1 }
  0xce   : > { %v565_v43 = vpop.f32.mrf.mxu2  ;;  %v676_v17 = vadd.f32 %v657_v41, %v581_v14  ;;  %v439_v25 = vadd.f32 %v438_v42, %v2487_v16 }
  0xcf   : > { %v582_v44 = vadd.f32 %v565_v43, %v437_v38 }
  0xd0   : > { %v882_v21 = vadd.f32 %v863_v40, %v676_v17 }
  0xd3   : > { %v866_v48 = vpop.f32.mrf.mxu0 }
  0xd5   : > { %v660_v49 = vpop.f32.mrf.mxu3  ;;  %v441_v50 = vpop.f32.mrf.mxu1 }
  0xd6   : > { %v677_v10 = vadd.f32 %v660_v49, %v582_v44  ;;  %v567_v27 = vpop.f32.mrf.mxu2  ;;  %v442_v28 = vadd.f32 %v441_v50, %v368_v19 }
  0xd7   : > { %v583_v34 = vadd.f32 %v567_v27, %v439_v25 }
  0xd8   : > { %v883_v51 = vadd.f32 %v866_v48, %v677_v10 }
  0xdb   : > { %v868_v29 = vpop.f32.mrf.mxu0 }
  0xdd   : > { %v662_v52 = vpop.f32.mrf.mxu3  ;;  %v2495_v53 = vpop.f32.mrf.mxu1 }
  0xde   : > { %v570_v55 = vpop.f32.mrf.mxu2 }
  0xdf   : > { %v584_v57 = vadd.f32 %v570_v55, %v442_v28  ;;  %v444_v55 = vadd.f32 %v2495_v53, %v2491_v46 }
  0xe3   : > { %v871_v58 = vpop.f32.mrf.mxu0 }
  0xe5   : > { %v665_v59 = vpop.f32.mrf.mxu3  ;;  %v446_v45 = vpop.f32.mrf.mxu1 }
  0xe6   : > { %v679_v26 = vadd.f32 %v665_v59, %v584_v57  ;;  %v572_v60 = vpop.f32.mrf.mxu2  ;;  %v447_v61 = vadd.f32 %v446_v45, %v373_v22 }
  0xe8   : > { %v2497_v63 = vadd.f32 %v871_v58, %v679_v26  ;;  %v585_v58 = vadd.f32 %v572_v60, %v444_v55 }
  0xeb   : > { %v2499_v13 = vpop.f32.mrf.mxu0 }
  0xed   : > { %v667_v0 = vpop.f32.mrf.mxu3  ;;  %v2501_v3 = vpop.f32.mrf.mxu1 }
  0xee   : > { %v575_v4 = vpop.f32.mrf.mxu2  ;;  %v449_v14 = vadd.f32 %v2501_v3, %v2493_v47 }
  0xef   : > { %v586_v5 = vadd.f32 %v575_v4, %v447_v61 }
  0xf3   : > { %v876_v6 = vpop.f32.mrf.mxu0 }
  0xf5   : > { %v670_v56 = vpop.f32.mrf.mxu3  ;;  %v995_v62 = vpop.f32.mrf.mxu1 }
  0xf6   : > { %v681_v7 = vadd.f32 %v670_v56, %v586_v5  ;;  %v2503_v8 = vpop.f32.mrf.mxu2  ;;  %v1015_v20 = vadd.f32 %v995_v62, %v881_v39  ;;  %v678_v39 = vadd.f32 %v662_v52, %v583_v34 }
  0xf7   : > { %v587_v17 = vadd.f32 %v2503_v8, %v449_v14 }
  0xf8   : > { %v2505_v9 = vadd.f32 %v876_v6, %v681_v7  ;;  %v884_v16 = vadd.f32 %v868_v29, %v678_v39 }
  0xfb   : > { %v2507_v1 = vpop.f32.mrf.mxu0 }
  0xfd   : > { %v2509_v2 = vpop.f32.mrf.mxu3  ;;  %v997_v12 = vpop.f32.mrf.mxu1 }
  0xfe   : > { %v1090_v15 = vpop.f32.mrf.mxu2  ;;  %v1016_v24 = vadd.f32 %v997_v12, %v882_v21 }
  0xff   : > { %v1110_v23 = vadd.f32 %v1090_v15, %v1015_v20 }
 0x103   : > { %v1430_v18 = vpop.f32.mrf.mxu0 }
 0x105   : > { %v1296_v37 = vpop.f32.mrf.mxu3  ;;  %v1000_v19 = vpop.f32.mrf.mxu1 }
 0x106   : > { %v1092_v22 = vpop.f32.mrf.mxu2  ;;  %v1316_v54 = vadd.f32 %v1296_v37, %v1110_v23  ;;  %v1017_v48 = vadd.f32 %v1000_v19, %v883_v51  ;;  %v680_v51 = vadd.f32 %v667_v0, %v585_v58 }
 0x107   : > { %v1111_v30 = vadd.f32 %v1092_v22, %v1016_v24 }
 0x108   : > { %v1450_v38 = vadd.f32 %v1430_v18, %v1316_v54  ;;  %v886_v62 = vadd.f32 %v2499_v13, %v680_v51  ;;  %v682_v13 = vadd.f32 %v2509_v2, %v587_v17 }
 0x10a   : > { %v888_v47 = vadd.f32 %v2507_v1, %v682_v13 }
 0x10b   : > { %v1432_v31 = vpop.f32.mrf.mxu0 }
 0x10d   : > { %v1298_v32 = vpop.f32.mrf.mxu3  ;;  %v1002_v33 = vpop.f32.mrf.mxu1 }
 0x10e   : > { %v1317_v35 = vadd.f32 %v1298_v32, %v1111_v30  ;;  %v1095_v36 = vpop.f32.mrf.mxu2  ;;  %v1018_v10 = vadd.f32 %v1002_v33, %v884_v16 }
 0x10f   : > { %v1112_v50 = vadd.f32 %v1095_v36, %v1017_v48 }
 0x110   : > { %v1451_v41 = vadd.f32 %v1432_v31, %v1317_v35 }
 0x112   : > { %v1896_v40 = vpack.c.bf16 %v1451_v41, %v1450_v38 }
 0x113   : > { %v1435_v43 = vpop.f32.mrf.mxu0 }
 0x114   : > { %1897 = vst [vmem:[%s2515_s30] sm:$0xff] %v1896_v40  }
 0x115   : > { %v1301_v44 = vpop.f32.mrf.mxu3  ;;  %v1005_v49 = vpop.f32.mrf.mxu1 }
 0x116   : > { %v1097_v42 = vpop.f32.mrf.mxu2  ;;  %v1318_v52 = vadd.f32 %v1301_v44, %v1112_v50  ;;  %v1019_v56 = vadd.f32 %v1005_v49, %v2497_v63 }
 0x117   : > { %v1113_v27 = vadd.f32 %v1097_v42, %v1018_v10 }
 0x118   : > { %v1452_v26 = vadd.f32 %v1435_v43, %v1318_v52 }
 0x11b   : > { %v1437_v28 = vpop.f32.mrf.mxu0 }
 0x11d   : > { %v1303_v57 = vpop.f32.mrf.mxu3  ;;  %v1007_v4 = vpop.f32.mrf.mxu1 }
 0x11e   : > { %v1319_v59 = vadd.f32 %v1303_v57, %v1113_v27  ;;  %v1100_v45 = vpop.f32.mrf.mxu2  ;;  %v1020_v53 = vadd.f32 %v1007_v4, %v886_v62 }
 0x11f   : > { %v1114_v46 = vadd.f32 %v1100_v45, %v1019_v56 }
 0x120   : > { %v1453_v61 = vadd.f32 %v1437_v28, %v1319_v59 }
 0x122   : > { %v1901_v29 = vpack.c.bf16 %v1453_v61, %v1452_v26 }
 0x123   : > { %v1440_v5 = vpop.f32.mrf.mxu0 }
 0x124   : > { %1913 = vst [vmem:[%s2515_s30 + $0x8] sm:$0xff] %v1901_v29  }
 0x125   : > { %v1306_v6 = vpop.f32.mrf.mxu3  ;;  %v1010_v60 = vpop.f32.mrf.mxu1 }
 0x126   : > { %v1102_v7 = vpop.f32.mrf.mxu2  ;;  %v1320_v15 = vadd.f32 %v1306_v6, %v1114_v46  ;;  %v1021_v24 = vadd.f32 %v1010_v60, %v2505_v9 }
 0x127   : > { %v1115_v11 = vadd.f32 %v1102_v7, %v1020_v53 }
 0x128   : > { %v1454_v63 = vadd.f32 %v1440_v5, %v1320_v15 }
 0x12b   : > { %v1442_v12 = vpop.f32.mrf.mxu0 }
 0x12d   : > { %v1308_v0 = vpop.f32.mrf.mxu3  ;;  %v1012_v21 = vpop.f32.mrf.mxu1 }
 0x12e   : > { %v1321_v18 = vadd.f32 %v1308_v0, %v1115_v11  ;;  %v1105_v37 = vpop.f32.mrf.mxu2  ;;  %v1022_v8 = vadd.f32 %v1012_v21, %v888_v47 }
 0x12f   : > { %v1116_v30 = vadd.f32 %v1105_v37, %v1021_v24 }
 0x130   : > { %v1455_v19 = vadd.f32 %v1442_v12, %v1321_v18 }
 0x132   : > { %v1906_v20 = vpack.c.bf16 %v1455_v19, %v1454_v63 }
 0x133   : > { %v1445_v22 = vpop.f32.mrf.mxu0 }
 0x134   : > { %1914 = vst [vmem:[%s2515_s30 + $0x10] sm:$0xff] %v1906_v20  }
 0x135   : > { %v1311_v23 = vpop.f32.mrf.mxu3 }
 0x136   : > { %v1107_v3 = vpop.f32.mrf.mxu2  ;;  %v1322_v25 = vadd.f32 %v1311_v23, %v1116_v30 }
 0x137   : > { %v1117_v31 = vadd.f32 %v1107_v3, %v1022_v8 }
 0x138   : > { %v1456_v9 = vadd.f32 %v1445_v22, %v1322_v25 }
 0x13b   : > { %v1447_v32 = vpop.f32.mrf.mxu0 }
 0x13d   : > { %v1313_v2 = vpop.f32.mrf.mxu3 }
 0x13e   : > { %v1323_v54 = vadd.f32 %v1313_v2, %v1117_v31 }
 0x140   : > { %v1457_v1 = vadd.f32 %v1447_v32, %v1323_v54 }
 0x142   : > { %v1911_v33 = vpack.c.bf16 %v1457_v1, %v1456_v9 }
 0x144   : > { %1915 = vst [vmem:[%s2515_s30 + $0x18] sm:$0xff] %v1911_v33  }
 0x145   : > { %2007 = shalt.err (!%p2004_p5)
}
 0x146   : > { %s2060_s27 = smov 64   ;;  %s2061_s28 = smov 4  }
 0x147   : > { %1923 = dma.vmem_to_hbm [thread:$0]  (%p2117_p4), %s1490_s7, 512, %s1492_s8, %s1475_s12, %s2060_s27, %s2060_s27, %s2061_s28  }
 0x148 PF: > { %p1929_p6 = scmp.ge.s32.totalorder %s2058_s14, 2  ;;  %s1506_s18 = sand.u32 1, %s2038_s9  }
 0x149   : > { %s1507_s29 = scalar_lea.sflag [#allocation3], %s1506_s18 }
 0x14a   : > { %p1926_p7 = pnand %p1929_p6, %p2124_p8 }
 0x14c   : > { %p1927_p9 = pneg %p1926_p7 }
 0x14e   : > { %2033 = dma.done.wait (%p1927_p9), %s1507_s29, 512  }
 0x14f   : > { %2035 = vsyncadd (%p1927_p9), %s1507_s29, 4294966784  ;;  %s15_s14 = sadd.s32 1, %s2058_s14   ;;  %s2579_s9 = smov %s2042_s10 }
 0x150   : > { %p12_p10 = scmp.ge.s32.totalorder %s15_s14, 4   ;;  %s2580_s10 = smov %s2046_s11 }
 0x151   : > { %s2581_s11 = smov %s2130_s22  ;;  %s2582_s12 = smov %s2054_s13 }
 0x152   : > { %s2583_s13 = smov %s2585_s17  ;;  %14 = sbr.rel (!%p12_p10) target bundleno = 4 (0x4), region = 73 }
 0x157   :  { %1513 = vsyncpa [#allocation3], 1 }
 0x158   :  { %1515 = vsyncpa [#allocation3 + $0x1], 1 }

// kernel: sparse_rcnn_forward.11
= control target key start
LH: loop header
LB: loop body
LE: loop exit
PB: predicated region body
PF: predicated region fallthrough
CT: control target
= control target key end

     0   :  { %7 = vsyncpa [#allocation3], 0  ;;  %s6896_s0 = inlined_call_operand.vmem [shape: bf16[2,1,18,18,32], index: 0, kind: input, shape index: {}]   ;;  %s6897_s1 = inlined_call_operand.vmem [shape: bf16[3,3,32,128], index: 1, kind: input, shape index: {}]   ;;  %s6898_s2 = inlined_call_operand.hbm [shape: bf16[2,256,128], index: 2, kind: output, shape index: {}]  }
   0x1   :  { %9 = vsyncpa [#allocation3 + $0x1], 0  ;;  %s5419_s9 = smov 0   ;;  %s5421_s10 = smov 0  }
   0x2   :  { %s5423_s11 = smov 0   ;;  %s5425_s12 = smov 0  }
   0x3   :  { %s5427_s13 = smov 0   ;;  %s5429_s14 = smov 0  }
   0x4 LB: > { %s4354_s15 = sadd.s32 4294967295, %s5400_s14   ;;  %s4355_s16 = sadd.s32 4294967294, %s5400_s14   ;;  %s5400_s14 = sphi %s5429_s14, %s15_s14   ;;  %s5396_s13 = sphi %s5427_s13, %s6915_s13   ;;  %s5392_s12 = sphi %s5425_s12, %s6914_s12   ;;  %s5388_s11 = sphi %s5423_s11, %s6913_s11   ;;  %s5384_s10 = sphi %s5421_s10, %s6912_s10   ;;  %s5380_s9 = sphi %s5419_s9, %s6911_s9  }
   0x5   : > { %s27_s17 = sadd.s32 1, %s5396_s13  ;;  %s85_s18 = sadd.s32 1, %s5388_s11 }
   0x6   : > { %p29_p0 = scmp.ge.s32.totalorder %s27_s17, 2  ;;  %p95_p1 = scmp.ne.s32.totalorder %s5388_s11, %s5384_s10 }
   0x7   : > { %p96_p2 = scmp.eq.s32.totalorder %s4354_s15, 1  ;;  %p101_p3 = scmp.ne.s32.totalorder %s5384_s10, %s5380_s9 }
   0x8   : > { %s6917_s17 = smov (%p29_p0, %s27_s17), 0  ;;  %p102_p5 = scmp.eq.s32.totalorder %s4355_s16, 1 }
   0x9   : > { %p5459_p4 = por %p96_p2, %p95_p1  ;;  %s80_s20 = ssub.s32 %s5396_s13, %s6917_s17 }
   0xa   : > { %p4358_p6 = scmp.ge.s32.totalorder %s5400_s14, 1  ;;  %p83_p7 = scmp.eq.s32.totalorder %s80_s20, 0 }
   0xb   : > { %p5466_p8 = por %p102_p5, %p101_p3  ;;  %p135_p9 = scmp.lt.s32.totalorder %s5400_s14, 3 }
   0xc   : > { %s5472_s22 = scalar_select %p83_p7, %s5388_s11, %s85_s18  }
   0xd   : > { %p136_p10 = pnand %p4358_p6, %p135_p9 }
   0xf   : > { %139 = sbr.rel (%p136_p10) target bundleno = 769 (0x301), region = 28 }
  0x14   : > { %v5065_v0 = vld [vmem:[%s6897_s1 + $0x18] sm:$0xff]  ;;  %p161_p11 = scmp.lt.s32.totalorder %s5392_s12, 1  ;;  %v5064_v1 = vld [vmem:[%s6897_s1 + $0x10] sm:$0xff]  ;;  %v5067_v2 = vld [vmem:[%s6897_s1 + $0x28] sm:$0xff]  ;;  %vm224_vm0 = vsmask.f32 3328 }
  0x15   : > { %5208 = vmatpush.bf16.msra.mxu1 %v5065_v0  ;;  %5209 = vmatpush.bf16.msra.mxu2 %v5065_v0  ;;  %v5085_v3 = vld [vmem:[%s6897_s1 + $0x38] sm:$0xff]  ;;  %v5063_v4 = vld [vmem:[%s6897_s1 + $0x8] sm:$0xff]  ;;  %vm225_vm1 = vsmask.f32 7440  ;;  %vm676_vm3 = vcmask 261120   ;;  %vm1091_vm4 = vcmask 1042432  }
  0x16   : > { %s162_s27 = scalar_select %p161_p11, %s5392_s12, 1  ;;  %5210 = vmatpush.bf16.msra.mxu3 %v5065_v0  ;;  %731 = vmatpush.bf16.msra.mxu0 %v5065_v0  ;;  %v5087_v5 = vld [vmem:[%s6897_s1 + $0x48] sm:$0xff]  ;;  %vm5509_vm2 = vmor %vm224_vm0, %vm225_vm1  ;;  %vm1092_vm5 = vcmask 1046532  }
  0x17   : > { %vm5704_vm6 = vmor %vm1091_vm4, %vm1092_vm5  ;;  %s158_s29 = sand.u32 1, %s5384_s10   ;;  %s5342_s24 = scalar_lea.hbm %s6898_s2, 256 }
  0x18   : > { %s5214_s28 = smul.u32 216, %s162_s27  ;;  %s4359_s30 = sshll.u32 %s158_s29, 7 }
  0x19   : > { %5211 = vmatpush.bf16.msra.mxu1 %v5064_v1  ;;  %5212 = vmatpush.bf16.msra.mxu2 %v5064_v1  ;;  %s6606_s3 = scalar_lea.vmem [#allocation2], %s4359_s30 }
  0x1a   : > { %s5497_s18 = scalar_lea.vmem %s6896_s0, %s5214_s28  ;;  %5213 = vmatpush.bf16.msra.mxu3 %v5064_v1  ;;  %732 = vmatpush.bf16.msra.mxu0 %v5064_v1  ;;  %s4269_s7 = sshll.u32 %s6606_s3, 4  ;;  %s4270_s7 = int_to_ptr.vmem [resolvable:$true] %s4269_s7 }
  0x1b   : > { %v180_v6 = vld [vmem:[%s5497_s18 + $0x30] sm:$0xf]  ;;  %v181_v7 = vld [vmem:[%s5497_s18 + $0x34] sm:$0xf]  ;;  %v212_v8 = vld [vmem:[%s5497_s18 + $0x38] sm:$0x1] }
  0x1c   : > { %v324_v9 = vshrl.u32 %v180_v6, 16  ;;  %v327_v10 = vshll.u32 %v180_v6, 16  ;;  %v333_v11 = vshll.u32 %v181_v7, 16  ;;  %v337_v12 = vshrl.u32 %v181_v7, 16  ;;  %v188_v13 = vld [vmem:[%s5497_s18 + $0x60] sm:$0xf] }
  0x1d   : > { %1325 = vmatpush.bf16.msrb.mxu2 %v5067_v2  ;;  %v343_v14 = vshll.u32 %v212_v8, 16  ;;  %v189_v15 = vld [vmem:[%s5497_s18 + $0x64] sm:$0xf]  ;;  %v216_v16 = vld [vmem:[%s5497_s18 + $0x68] sm:$0x1]  ;;  %v420_v17 = vshrl.u32 %v188_v13, 16  ;;  %960 = vmatpush.bf16.msrb.mxu1 %v5063_v4 }
  0x1e   : > { %1624 = vmatpush.bf16.msrb.mxu3 %v5085_v3  ;;  %2290 = vmatpush.bf16.msrb.mxu0 %v5087_v5  ;;  %v326_v18 = vrot.slane %v324_v9, 4  ;;  %v329_v19 = vrot.slane %v327_v10, 5  ;;  %v335_v20 = vrot.slane %v333_v11, 5  ;;  %v339_v21 = vrot.slane %v337_v12, 4  ;;  %v196_v22 = vld [vmem:[%s5497_s18 + $0x90] sm:$0xf] }
  0x1f   : > { %v345_v23 = vrot.slane %v343_v14, 5  ;;  %v422_v24 = vrot.slane %v420_v17, 4  ;;  %v423_v25 = vshll.u32 %v188_v13, 16  ;;  %v429_v26 = vshll.u32 %v189_v15, 16  ;;  %v197_v31 = vld [vmem:[%s5497_s18 + $0x94] sm:$0xf] }
  0x20   : > { %v330_v27 = vor.u32 %v329_v19, %v326_v18  ;;  %v340_v28 = vor.u32 %v339_v21, %v335_v20  ;;  %v433_v29 = vshrl.u32 %v189_v15, 16  ;;  %v439_v30 = vshll.u32 %v216_v16, 16  ;;  %v220_v41 = vld [vmem:[%s5497_s18 + $0x98] sm:$0x1]  ;;  %v172_v57 = vld [vmem:[%s5497_s18] sm:$0xf] }
  0x21   : > { %v425_v33 = vrot.slane %v423_v25, 5  ;;  %v431_v34 = vrot.slane %v429_v26, 5  ;;  %v516_v35 = vshrl.u32 %v196_v22, 16  ;;  %v519_v43 = vshll.u32 %v196_v22, 16  ;;  %v5522_v61 = vld [vmem:[%s5497_s18 + $0x4] sm:$0xf] }
  0x22   : > { %v331_v36 = vrot.slane %v330_v27, 4  ;;  %v341_v37 = vrot.slane %v340_v28, 4  ;;  %v435_v38 = vrot.slane %v433_v29, 4  ;;  %v441_v39 = vrot.slane %v439_v30, 5  ;;  %v5525_v62 = vld [vmem:[%s5497_s18 + $0x8] sm:$0x1] }
  0x23   : > { %v426_v40 = vor.u32 %v425_v33, %v422_v24  ;;  %v518_v42 = vrot.slane %v516_v35, 4  ;;  %v525_v44 = vshll.u32 %v197_v31, 16  ;;  %v529_v48 = vshrl.u32 %v197_v31, 16  ;;  %v182_v15 = vld [vmem:[%s5497_s18 + $0x3c] sm:$0xf] }
  0x24   : > { %v336_v45 = vsel %vm5509_vm2, %v331_v36, %v335_v20  ;;  %v346_v46 = vsel %vm5509_vm2, %v341_v37, %v345_v23  ;;  %v436_v47 = vor.u32 %v435_v38, %v431_v34  ;;  %v521_v52 = vrot.slane %v519_v43, 5  ;;  %v5537_v16 = vld [vmem:[%s5497_s18 + $0x40] sm:$0xf]  ;;  %v5542_v21 = vld [vmem:[%s5497_s18 + $0x44] sm:$0x1] }
  0x25   : > { %v624_v49 = vunpack.c.l.b16 %v336_v45  ;;  %v625_v50 = vunpack.c.l.b16 %v346_v46  ;;  %v427_v51 = vrot.slane %v426_v40, 4  ;;  %v527_v54 = vrot.slane %v525_v44, 5  ;;  %v190_v29 = vld [vmem:[%s5497_s18 + $0x6c] sm:$0xf]  ;;  %v217_v43 = vld [vmem:[%s5497_s18 + $0x74] sm:$0x1] }
  0x26   : > { %v437_v53 = vrot.slane %v436_v47, 4  ;;  %v531_v55 = vrot.slane %v529_v48, 4  ;;  %v535_v56 = vshll.u32 %v220_v41, 16  ;;  %v522_v60 = vor.u32 %v521_v52, %v518_v42 }
  0x27   : > { %v652_v58 = vpack.c.b16 %v625_v50, %v624_v49  ;;  %v432_v59 = vsel %vm5509_vm2, %v427_v51, %v431_v34  ;;  %v228_v5 = vshrl.u32 %v172_v57, 16  ;;  %v231_v6 = vshll.u32 %v172_v57, 16  ;;  %v198_v57 = vld [vmem:[%s5497_s18 + $0x9c] sm:$0xf] }
  0x28   : > { %v442_v63 = vsel %vm5509_vm2, %v437_v53, %v441_v39  ;;  %v632_v0 = vunpack.c.l.b16 %v432_v59  ;;  %v532_v1 = vor.u32 %v531_v55, %v527_v54  ;;  %v537_v2 = vrot.slane %v535_v56, 5  ;;  %v191_v39 = vld [vmem:[%s5497_s18 + $0x70] sm:$0xf] }
  0x29   : > { %4377 = vmatmul.msk.bf16.vlgmr.msra.gmra.mxu1 %vm676_vm3, %v652_v58  ;;  %v633_v3 = vunpack.c.l.b16 %v442_v63  ;;  %v523_v4 = vrot.slane %v522_v60, 4  ;;  %v237_v8 = vshll.u32 %v5522_v61, 16  ;;  %v241_v9 = vshrl.u32 %v5522_v61, 16  ;;  %v199_v63 = vld [vmem:[%s5497_s18 + $0xa0] sm:$0xf] }
  0x2a   : > { %v533_v7 = vrot.slane %v532_v1, 4  ;;  %v247_v10 = vshll.u32 %v5525_v62, 16  ;;  %v230_v13 = vrot.slane %v228_v5, 4  ;;  %v233_v14 = vrot.slane %v231_v6, 5 }
  0x2b   : > { %v656_v11 = vpack.c.b16 %v633_v3, %v632_v0  ;;  %v528_v12 = vsel %vm5509_vm2, %v523_v4, %v527_v54  ;;  %v239_v19 = vrot.slane %v237_v8, 5  ;;  %v243_v20 = vrot.slane %v241_v9, 4  ;;  %v221_v4 = vld [vmem:[%s5497_s18 + $0xa4] sm:$0x1] }
  0x2c   : > { %v538_v17 = vsel %vm5509_vm2, %v533_v7, %v537_v2  ;;  %v640_v18 = vunpack.c.l.b16 %v528_v12  ;;  %v234_v23 = vor.u32 %v233_v14, %v230_v13  ;;  %v249_v24 = vrot.slane %v247_v10, 5  ;;  %v174_v13 = vld [vmem:[%s5497_s18 + $0xc] sm:$0xf] }
  0x2d   : > { %4381 = vmatmul.msk.bf16.vlgmr.msra.gmra.mxu2 %vm676_vm3, %v656_v11  ;;  %v641_v22 = vunpack.c.l.b16 %v538_v17  ;;  %v244_v25 = vor.u32 %v243_v20, %v239_v19  ;;  %v348_v26 = vshrl.u32 %v182_v15, 16  ;;  %v351_v27 = vshll.u32 %v182_v15, 16 }
  0x2e   : > { %v357_v28 = vshll.u32 %v5537_v16, 16  ;;  %v235_v31 = vrot.slane %v234_v23, 4  ;;  %v361_v33 = vshrl.u32 %v5537_v16, 16  ;;  %v367_v34 = vshll.u32 %v5542_v21, 16 }
  0x2f   : > { %v660_v30 = vpack.c.b16 %v641_v22, %v640_v18  ;;  %v245_v35 = vrot.slane %v244_v25, 4  ;;  %v350_v36 = vrot.slane %v348_v26, 4  ;;  %v353_v37 = vrot.slane %v351_v27, 5  ;;  %v5571_v25 = vld [vmem:[%s5497_s18 + $0x10] sm:$0xf] }
  0x30   : > { %v359_v38 = vrot.slane %v357_v28, 5  ;;  %v240_v40 = vsel %vm5509_vm2, %v235_v31, %v239_v19  ;;  %v363_v41 = vrot.slane %v361_v33, 4  ;;  %v369_v42 = vrot.slane %v367_v34, 5  ;;  %v5066_v19 = vld [vmem:[%s6897_s1 + $0x20] sm:$0xff] }
  0x31   : > { %4385 = vmatmul.msk.bf16.vlgmr.msra.gmra.mxu3 %vm676_vm3, %v660_v30  ;;  %v444_v44 = vshrl.u32 %v190_v29, 16  ;;  %v250_v45 = vsel %vm5509_vm2, %v245_v35, %v249_v24  ;;  %v616_v46 = vunpack.c.l.b16 %v240_v40  ;;  %v354_v47 = vor.u32 %v353_v37, %v350_v36  ;;  %1326 = vmatpush.bf16.msrb.mxu2 %v5066_v19  ;;  %v5582_v40 = vld [vmem:[%s5497_s18 + $0x4c] sm:$0xf] }
  0x32   : > { %v447_v48 = vshll.u32 %v190_v29, 16  ;;  %v617_v49 = vunpack.c.l.b16 %v250_v45  ;;  %v364_v50 = vor.u32 %v363_v41, %v359_v38  ;;  %v453_v52 = vshll.u32 %v191_v39, 16  ;;  %v5574_v29 = vld [vmem:[%s5497_s18 + $0x14] sm:$0x1] }
  0x33   : > { %v446_v51 = vrot.slane %v444_v44, 4  ;;  %v355_v53 = vrot.slane %v354_v47, 4  ;;  %v457_v55 = vshrl.u32 %v191_v39, 16  ;;  %v463_v56 = vshll.u32 %v217_v43, 16  ;;  %v184_v39 = vld [vmem:[%s5497_s18 + $0x48] sm:$0xf] }
  0x34   : > { %v449_v54 = vrot.slane %v447_v48, 5  ;;  %v648_v58 = vpack.c.b16 %v617_v49, %v616_v46  ;;  %v365_v59 = vrot.slane %v364_v50, 4  ;;  %v455_v60 = vrot.slane %v453_v52, 5  ;;  %v5084_v45 = vld [vmem:[%s6897_s1 + $0x30] sm:$0xff]  ;;  %v5062_v46 = vld [vmem:[%s6897_s1] sm:$0xff] }
  0x35   : > { %v360_v0 = vsel %vm5509_vm2, %v355_v53, %v359_v38  ;;  %v459_v2 = vrot.slane %v457_v55, 4  ;;  %v465_v3 = vrot.slane %v463_v56, 5  ;;  %v540_v7 = vshrl.u32 %v198_v57, 16  ;;  %v5598_v56 = vld [vmem:[%s5497_s18 + $0x50] sm:$0x1]  ;;  %1625 = vmatpush.bf16.msrb.mxu3 %v5084_v45  ;;  %961 = vmatpush.bf16.msrb.mxu1 %v5062_v46 }
  0x36   : > { %v450_v1 = vor.u32 %v449_v54, %v446_v51  ;;  %4373 = vmatmul.msk.bf16.vlgmr.msra.gmra.mxu0 %vm676_vm3, %v648_v58  ;;  %v370_v5 = vsel %vm5509_vm2, %v365_v59, %v369_v42  ;;  %v626_v6 = vunpack.c.l.b16 %v360_v0  ;;  %v543_v8 = vshll.u32 %v198_v57, 16  ;;  %v5086_v51 = vld [vmem:[%s6897_s1 + $0x40] sm:$0xff] }
  0x37   : > { %v627_v9 = vunpack.c.l.b16 %v370_v5  ;;  %v460_v11 = vor.u32 %v459_v2, %v455_v60  ;;  %v549_v12 = vshll.u32 %v199_v63, 16  ;;  %v542_v14 = vrot.slane %v540_v7, 4  ;;  %2291 = vmatpush.bf16.msrb.mxu0 %v5086_v51 }
  0x38   : > { %v451_v10 = vrot.slane %v450_v1, 4  ;;  %v545_v15 = vrot.slane %v543_v8, 5  ;;  %v553_v17 = vshrl.u32 %v199_v63, 16  ;;  %v559_v18 = vshll.u32 %v221_v4, 16  ;;  %v193_v8 = vld [vmem:[%s5497_s18 + $0x7c] sm:$0xf] }
  0x39   : > { %v653_v20 = vpack.c.b16 %v627_v9, %v626_v6  ;;  %v461_v23 = vrot.slane %v460_v11, 4  ;;  %v551_v24 = vrot.slane %v549_v12, 5  ;;  %v252_v33 = vshrl.u32 %v174_v13, 16 }
  0x3a   : > { %v456_v22 = vsel %vm5509_vm2, %v451_v10, %v455_v60  ;;  %v546_v27 = vor.u32 %v545_v15, %v542_v14  ;;  %v555_v28 = vrot.slane %v553_v17, 4  ;;  %v561_v31 = vrot.slane %v559_v18, 5  ;;  %v218_v17 = vld [vmem:[%s5497_s18 + $0x80] sm:$0x1] }
  0x3b   : > { %v634_v26 = vunpack.c.l.b16 %v456_v22  ;;  %4378 = vmatmul.msk.bf16.gmra.mxu1 %vm676_vm3, %v653_v20  ;;  %v466_v30 = vsel %vm5509_vm2, %v461_v23, %v465_v3  ;;  %v255_v34 = vshll.u32 %v174_v13, 16  ;;  %v261_v38 = vshll.u32 %v5571_v25, 16  ;;  %v192_v3 = vld [vmem:[%s5497_s18 + $0x78] sm:$0xf] }
  0x3c   : > { %v635_v35 = vunpack.c.l.b16 %v466_v30  ;;  %v547_v36 = vrot.slane %v546_v27, 4  ;;  %v556_v37 = vor.u32 %v555_v28, %v551_v24  ;;  %v254_v41 = vrot.slane %v252_v33, 4 }
  0x3d   : > { %v257_v42 = vrot.slane %v255_v34, 5  ;;  %v265_v43 = vshrl.u32 %v5571_v25, 16  ;;  %v271_v44 = vshll.u32 %v5574_v29, 16  ;;  %v263_v50 = vrot.slane %v261_v38, 5 }
  0x3e   : > { %v657_v47 = vpack.c.b16 %v635_v35, %v634_v26  ;;  %v552_v48 = vsel %vm5509_vm2, %v547_v36, %v551_v24  ;;  %v557_v49 = vrot.slane %v556_v37, 4  ;;  %v372_v58 = vshrl.u32 %v184_v39, 16  ;;  %v200_v35 = vld [vmem:[%s5497_s18 + $0xa8] sm:$0xf] }
  0x3f   : > { %v642_v52 = vunpack.c.l.b16 %v552_v48  ;;  %v258_v53 = vor.u32 %v257_v42, %v254_v41  ;;  %v267_v54 = vrot.slane %v265_v43, 4  ;;  %v273_v55 = vrot.slane %v271_v44, 5  ;;  %v222_v41 = vld [vmem:[%s5497_s18 + $0xb0] sm:$0x1] }
  0x40   : > { %4382 = vmatmul.msk.bf16.gmra.mxu2 %vm676_vm3, %v657_v47  ;;  %v562_v57 = vsel %vm5509_vm2, %v557_v49, %v561_v31  ;;  %v375_v59 = vshll.u32 %v184_v39, 16  ;;  %v381_v60 = vshll.u32 %v5582_v40, 16  ;;  %v385_v2 = vshrl.u32 %v5582_v40, 16  ;;  %v201_v39 = vld [vmem:[%s5497_s18 + $0xac] sm:$0xf] }
  0x41   : > { %v643_v63 = vunpack.c.l.b16 %v562_v57  ;;  %v259_v0 = vrot.slane %v258_v53, 4  ;;  %v268_v1 = vor.u32 %v267_v54, %v263_v50  ;;  %v374_v4 = vrot.slane %v372_v58, 4 }
  0x42   : > { %v377_v5 = vrot.slane %v375_v59, 5  ;;  %v383_v6 = vrot.slane %v381_v60, 5  ;;  %v391_v7 = vshll.u32 %v5598_v56, 16  ;;  %v387_v12 = vrot.slane %v385_v2, 4  ;;  %v176_v59 = vld [vmem:[%s5497_s18 + $0x18] sm:$0xf] }
  0x43   : > { %v661_v9 = vpack.c.b16 %v643_v63, %v642_v52  ;;  %v264_v10 = vsel %vm5509_vm2, %v259_v0, %v263_v50  ;;  %v269_v11 = vrot.slane %v268_v1, 4  ;;  %v468_v18 = vshrl.u32 %v192_v3, 16  ;;  %v5626_v1 = vld [vmem:[%s5497_s18 + $0x1c] sm:$0xf]  ;;  %v5629_v2 = vld [vmem:[%s5497_s18 + $0x20] sm:$0x1] }
  0x44   : > { %v618_v13 = vunpack.c.l.b16 %v264_v10  ;;  %v378_v14 = vor.u32 %v377_v5, %v374_v4  ;;  %v393_v15 = vrot.slane %v391_v7, 5  ;;  %v388_v20 = vor.u32 %v387_v12, %v383_v6 }
  0x45   : > { %4386 = vmatmul.msk.bf16.gmra.mxu3 %vm676_vm3, %v661_v9  ;;  %v274_v19 = vsel %vm5509_vm2, %v269_v11, %v273_v55  ;;  %v471_v22 = vshll.u32 %v192_v3, 16  ;;  %v477_v23 = vshll.u32 %v193_v8, 16  ;;  %v470_v27 = vrot.slane %v468_v18, 4 }
  0x46   : > { %v619_v24 = vunpack.c.l.b16 %v274_v19  ;;  %v379_v26 = vrot.slane %v378_v14, 4  ;;  %v481_v28 = vshrl.u32 %v193_v8, 16  ;;  %v389_v30 = vrot.slane %v388_v20, 4 }
  0x47   : > { %v473_v31 = vrot.slane %v471_v22, 5  ;;  %v479_v33 = vrot.slane %v477_v23, 5  ;;  %v487_v34 = vshll.u32 %v218_v17, 16  ;;  %v564_v48 = vshrl.u32 %v200_v35, 16  ;;  %v5639_v22 = vld [vmem:[%s5497_s18 + $0x58] sm:$0xf] }
  0x48   : > { %v649_v36 = vpack.c.b16 %v619_v24, %v618_v13  ;;  %v384_v37 = vsel %vm5509_vm2, %v379_v26, %v383_v6  ;;  %v483_v38 = vrot.slane %v481_v28, 4  ;;  %v394_v42 = vsel %vm5509_vm2, %v389_v30, %v393_v15  ;;  %v186_v15 = vld [vmem:[%s5497_s18 + $0x54] sm:$0xf]  ;;  %v5644_v28 = vld [vmem:[%s5497_s18 + $0x5c] sm:$0x1] }
  0x49   : > { %v628_v43 = vunpack.c.l.b16 %v384_v37  ;;  %v474_v44 = vor.u32 %v473_v31, %v470_v27  ;;  %v489_v45 = vrot.slane %v487_v34, 5  ;;  %v629_v46 = vunpack.c.l.b16 %v394_v42 }
  0x4a   : > { %4374 = vmatmul.msk.bf16.gmra.mxu0 %vm676_vm3, %v649_v36  ;;  %v484_v47 = vor.u32 %v483_v38, %v479_v33  ;;  %v567_v49 = vshll.u32 %v200_v35, 16  ;;  %v573_v51 = vshll.u32 %v201_v39, 16  ;;  %v577_v52 = vshrl.u32 %v201_v39, 16  ;;  %v194_v39 = vld [vmem:[%s5497_s18 + $0x84] sm:$0xf] }
  0x4b   : > { %v475_v50 = vrot.slane %v474_v44, 4  ;;  %v583_v53 = vshll.u32 %v222_v41, 16  ;;  %v654_v54 = vpack.c.b16 %v629_v46, %v628_v43  ;;  %v566_v57 = vrot.slane %v564_v48, 4 }
  0x4c   : > { %v485_v55 = vrot.slane %v484_v47, 4  ;;  %v569_v58 = vrot.slane %v567_v49, 5  ;;  %v575_v63 = vrot.slane %v573_v51, 5  ;;  %v579_v0 = vrot.slane %v577_v52, 4  ;;  %v195_v49 = vld [vmem:[%s5497_s18 + $0x88] sm:$0xf] }
  0x4d   : > { %v480_v60 = vsel %vm5509_vm2, %v475_v50, %v479_v33  ;;  %4379 = vmatmul.msk.bf16.gmra.mxu1 %vm676_vm3, %v654_v54  ;;  %v585_v6 = vrot.slane %v583_v53, 5  ;;  %v276_v9 = vshrl.u32 %v176_v59, 16  ;;  %v279_v10 = vshll.u32 %v176_v59, 16  ;;  %v219_v53 = vld [vmem:[%s5497_s18 + $0x8c] sm:$0x1] }
  0x4e   : > { %v490_v3 = vsel %vm5509_vm2, %v485_v55, %v489_v45  ;;  %v636_v4 = vunpack.c.l.b16 %v480_v60  ;;  %v570_v5 = vor.u32 %v569_v58, %v566_v57  ;;  %v580_v8 = vor.u32 %v579_v0, %v575_v63 }
  0x4f   : > { %v637_v7 = vunpack.c.l.b16 %v490_v3  ;;  %v285_v12 = vshll.u32 %v5626_v1, 16  ;;  %v289_v13 = vshrl.u32 %v5626_v1, 16  ;;  %v295_v14 = vshll.u32 %v5629_v2, 16 }
  0x50   : > { %v571_v11 = vrot.slane %v570_v5, 4  ;;  %v581_v18 = vrot.slane %v580_v8, 4  ;;  %v278_v19 = vrot.slane %v276_v9, 4  ;;  %v281_v20 = vrot.slane %v279_v10, 5  ;;  %v202_v8 = vld [vmem:[%s5497_s18 + $0xb4] sm:$0xf] }
  0x51   : > { %v658_v17 = vpack.c.b16 %v637_v7, %v636_v4  ;;  %v287_v24 = vrot.slane %v285_v12, 5  ;;  %v291_v26 = vrot.slane %v289_v13, 4  ;;  %v297_v27 = vrot.slane %v295_v14, 5  ;;  %v203_v12 = vld [vmem:[%s5497_s18 + $0xb8] sm:$0xf] }
  0x52   : > { %v576_v23 = vsel %vm5509_vm2, %v571_v11, %v575_v63  ;;  %v586_v30 = vsel %vm5509_vm2, %v581_v18, %v585_v6  ;;  %v282_v33 = vor.u32 %v281_v20, %v278_v19  ;;  %v396_v34 = vshrl.u32 %v186_v15, 16  ;;  %v223_v18 = vld [vmem:[%s5497_s18 + $0xbc] sm:$0x1]  ;;  %v5107_v19 = vld [vmem:[%s6897_s1 + $0x68] sm:$0xff] }
  0x53   : > { %4383 = vmatmul.msk.bf16.gmra.mxu2 %vm676_vm3, %v658_v17  ;;  %v644_v31 = vunpack.c.l.b16 %v576_v23  ;;  %v645_v35 = vunpack.c.l.b16 %v586_v30  ;;  %v292_v36 = vor.u32 %v291_v26, %v287_v24  ;;  %v399_v37 = vshll.u32 %v186_v15, 16 }
  0x54   : > { %v405_v38 = vshll.u32 %v5639_v22, 16  ;;  %v283_v41 = vrot.slane %v282_v33, 4  ;;  %v398_v42 = vrot.slane %v396_v34, 4  ;;  %v409_v43 = vshrl.u32 %v5639_v22, 16  ;;  %2999 = vmatpush.bf16.msra.mxu2 %v5107_v19 }
  0x55   : > { %v415_v44 = vshll.u32 %v5644_v28, 16  ;;  %v662_v45 = vpack.c.b16 %v645_v35, %v644_v31  ;;  %v293_v46 = vrot.slane %v292_v36, 4  ;;  %v401_v47 = vrot.slane %v399_v37, 5 }
  0x56   : > { %v407_v48 = vrot.slane %v405_v38, 5  ;;  %v288_v50 = vsel %vm5509_vm2, %v283_v41, %v287_v24  ;;  %v411_v51 = vrot.slane %v409_v43, 4  ;;  %v492_v54 = vshrl.u32 %v194_v39, 16  ;;  %v178_v38 = vld [vmem:[%s5497_s18 + $0x24] sm:$0xf] }
  0x57   : > { %v417_v52 = vrot.slane %v415_v44, 5  ;;  %4387 = vmatmul.msk.bf16.gmra.mxu3 %vm676_vm3, %v662_v45  ;;  %v298_v55 = vsel %vm5509_vm2, %v293_v46, %v297_v27  ;;  %v620_v57 = vunpack.c.l.b16 %v288_v50  ;;  %v402_v58 = vor.u32 %v401_v47, %v398_v42  ;;  %v5675_v44 = vld [vmem:[%s5497_s18 + $0x28] sm:$0xf]  ;;  %v5678_v45 = vld [vmem:[%s5497_s18 + $0x2c] sm:$0x1]  ;;  %v5109_v50 = vld [vmem:[%s6897_s1 + $0x78] sm:$0xff] }
  0x58   : > { %v495_v59 = vshll.u32 %v194_v39, 16  ;;  %v621_v60 = vunpack.c.l.b16 %v298_v55  ;;  %v412_v63 = vor.u32 %v411_v51, %v407_v48  ;;  %v494_v0 = vrot.slane %v492_v54, 4  ;;  %v5089_v51 = vld [vmem:[%s6897_s1 + $0x58] sm:$0xff]  ;;  %3665 = vmatpush.bf16.msra.mxu3 %v5109_v50 }
  0x59   : > { %v501_v3 = vshll.u32 %v195_v49, 16  ;;  %v403_v4 = vrot.slane %v402_v58, 4  ;;  %v505_v6 = vshrl.u32 %v195_v49, 16  ;;  %v511_v7 = vshll.u32 %v219_v53, 16  ;;  %2700 = vmatpush.bf16.msra.mxu1 %v5089_v51 }
  0x5a   : > { %v497_v5 = vrot.slane %v495_v59, 5  ;;  %v650_v9 = vpack.c.b16 %v621_v60, %v620_v57  ;;  %v413_v10 = vrot.slane %v412_v63, 4  ;;  %v588_v24 = vshrl.u32 %v202_v8, 16 }
  0x5b   : > { %v503_v11 = vrot.slane %v501_v3, 5  ;;  %v408_v13 = vsel %vm5509_vm2, %v403_v4, %v407_v48  ;;  %v507_v15 = vrot.slane %v505_v6, 4  ;;  %v513_v17 = vrot.slane %v511_v7, 5  ;;  %v1043_v6 = vld [vmem:[%s5497_s18] sm:$0xe] }
  0x5c   : > { %v498_v14 = vor.u32 %v497_v5, %v494_v0  ;;  %4375 = vmatmul.msk.bf16.gmra.mxu0 %vm676_vm3, %v650_v9  ;;  %v418_v20 = vsel %vm5509_vm2, %v413_v10, %v417_v52  ;;  %v630_v23 = vunpack.c.l.b16 %v408_v13  ;;  %v591_v26 = vshll.u32 %v202_v8, 16  ;;  %v5111_v52 = vld [vmem:[%s6897_s1 + $0x88] sm:$0xff] }
  0x5d   : > { %v631_v27 = vunpack.c.l.b16 %v418_v20  ;;  %v508_v31 = vor.u32 %v507_v15, %v503_v11  ;;  %v597_v33 = vshll.u32 %v203_v12, 16  ;;  %v590_v34 = vrot.slane %v588_v24, 4  ;;  %4075 = vmatpush.bf16.msra.mxu0 %v5111_v52  ;;  %v4645_v15 = vld [vmem:[%s5497_s18 + $0xc] sm:$0xf] }
  0x5e   : > { %v499_v30 = vrot.slane %v498_v14, 4  ;;  %v593_v35 = vrot.slane %v591_v26, 5  ;;  %v601_v36 = vshrl.u32 %v203_v12, 16  ;;  %v607_v37 = vshll.u32 %v223_v18, 16 }
  0x5f   : > { %v655_v39 = vpack.c.b16 %v631_v27, %v630_v23  ;;  %v509_v42 = vrot.slane %v508_v31, 4  ;;  %v599_v43 = vrot.slane %v597_v33, 5  ;;  %v1099_v46 = vrot.slane %v5525_v62, 5  ;;  %v4648_v62 = vld [vmem:[%s5497_s18 + $0x18] sm:$0xf] }
  0x60   : > { %v504_v41 = vsel %vm5509_vm2, %v499_v30, %v503_v11  ;;  %v594_v48 = vor.u32 %v593_v35, %v590_v34  ;;  %v603_v49 = vrot.slane %v601_v36, 4  ;;  %v609_v54 = vrot.slane %v607_v37, 5 }
  0x61   : > { %v638_v47 = vunpack.c.l.b16 %v504_v41  ;;  %4380 = vmatmul.msk.bf16.gmra.mxu1 %vm676_vm3, %v655_v39  ;;  %v514_v53 = vsel %vm5509_vm2, %v509_v42, %v513_v17  ;;  %v300_v55 = vshrl.u32 %v178_v38, 16  ;;  %v303_v57 = vshll.u32 %v178_v38, 16  ;;  %v4646_v17 = vld [vmem:[%s5497_s18 + $0x10] sm:$0xf] }
  0x62   : > { %v639_v58 = vunpack.c.l.b16 %v514_v53  ;;  %v595_v59 = vrot.slane %v594_v48, 4  ;;  %v604_v60 = vor.u32 %v603_v49, %v599_v43  ;;  %v309_v63 = vshll.u32 %v5675_v44, 16  ;;  %v5046_v53 = vld [vmem:[%s5497_s18] sm:$0xff] }
  0x63   : > { %v302_v0 = vrot.slane %v300_v55, 4  ;;  %v305_v3 = vrot.slane %v303_v57, 5  ;;  %v313_v4 = vshrl.u32 %v5675_v44, 16  ;;  %v319_v5 = vshll.u32 %v5678_v45, 16 }
  0x64   : > { %v659_v7 = vpack.c.b16 %v639_v58, %v638_v47  ;;  %v600_v8 = vsel %vm5509_vm2, %v595_v59, %v599_v43  ;;  %v605_v9 = vrot.slane %v604_v60, 4  ;;  %v311_v10 = vrot.slane %v309_v63, 5  ;;  %v4647_v43 = vld [vmem:[%s5497_s18 + $0x14] sm:$0x1] }
  0x65   : > { %v646_v11 = vunpack.c.l.b16 %v600_v8  ;;  %v306_v12 = vor.u32 %v305_v3, %v302_v0  ;;  %v315_v13 = vrot.slane %v313_v4, 4  ;;  %v321_v14 = vrot.slane %v319_v5, 5  ;;  %v4649_v4 = vld [vmem:[%s5497_s18 + $0x1c] sm:$0xf]  ;;  %v1044_v5 = vld [vmem:[%s5497_s18 + $0xc] sm:$0xe] }
  0x66   : > { %4384 = vmatmul.msk.bf16.gmra.mxu2 %vm676_vm3, %v659_v7  ;;  %v610_v18 = vsel %vm5509_vm2, %v605_v9, %v609_v54  ;;  %v4477_v19 = vrot.slane %v1043_v6, 9  ;;  %v1096_v27 = vrot.slane %v5522_v61, 5  ;;  %v1788_v30 = vshrl.u32 %v4645_v15, 16 }
  0x67   : > { %v647_v20 = vunpack.c.l.b16 %v610_v18  ;;  %v307_v23 = vrot.slane %v306_v12, 4  ;;  %v316_v24 = vor.u32 %v315_v13, %v311_v10  ;;  %v1791_v31 = vshll.u32 %v4645_v15, 16  ;;  %v5068_v12 = vld [vmem:[%s5497_s18 + $0xc] sm:$0xff] }
  0x68   : > { %v1797_v33 = vshll.u32 %v4646_v17, 16  ;;  %v1801_v34 = vshrl.u32 %v4646_v17, 16  ;;  %v1097_v38 = vsel %vm5704_vm6, %v4477_v19, %v1096_v27  ;;  %v1098_v41 = vrot.slane %v1096_v27, 4 }
  0x69   : > { %v663_v35 = vpack.c.b16 %v647_v20, %v646_v11  ;;  %v312_v36 = vsel %vm5509_vm2, %v307_v23, %v311_v10  ;;  %v317_v37 = vrot.slane %v316_v24, 4  ;;  %v1211_v42 = vunpack.c.l.b16 %v1097_v38  ;;  %v4650_v24 = vld [vmem:[%s5497_s18 + $0x20] sm:$0x1] }
  0x6a   : > { %v622_v39 = vunpack.c.l.b16 %v312_v36  ;;  %v1790_v47 = vrot.slane %v1788_v30, 4  ;;  %v1793_v48 = vrot.slane %v1791_v31, 5  ;;  %v1799_v49 = vrot.slane %v1797_v33, 5  ;;  %v5047_v33 = vld [vmem:[%s5497_s18 + $0xc] sm:$0xff] }
  0x6b   : > { %4388 = vmatmul.msk.bf16.gmra.mxu3 %vm676_vm3, %v663_v35  ;;  %v322_v61 = vsel %vm5509_vm2, %v317_v37, %v321_v14  ;;  %v1803_v50 = vrot.slane %v1801_v34, 4  ;;  %v1100_v52 = vsel %vm5704_vm6, %v1098_v41, %v1099_v46  ;;  %v1807_v58 = vshll.u32 %v4647_v43, 16  ;;  %v4652_v43 = vld [vmem:[%s5497_s18 + $0x28] sm:$0xf] }
  0x6c   : > { %v623_v51 = vunpack.c.l.b16 %v322_v61  ;;  %v1212_v54 = vunpack.c.l.b16 %v1100_v52  ;;  %v1794_v55 = vor.u32 %v1793_v48, %v1790_v47  ;;  %v1103_v46 = vrot.slane %v5571_v25, 5  ;;  %v1045_v61 = vld [vmem:[%s5497_s18 + $0x18] sm:$0xe] }
  0x6d   : > { %v1804_v57 = vor.u32 %v1803_v50, %v1799_v49  ;;  %v1809_v3 = vrot.slane %v1807_v58, 5  ;;  %v1812_v6 = vshrl.u32 %v4648_v62, 16  ;;  %v1815_v7 = vshll.u32 %v4648_v62, 16 }
  0x6e   : > { %v651_v59 = vpack.c.b16 %v623_v51, %v622_v39  ;;  %v1243_v60 = vpack.c.b16 %v1212_v54, %v1211_v42  ;;  %v1795_v63 = vrot.slane %v1794_v55, 4  ;;  %v1821_v10 = vshll.u32 %v4649_v4, 16  ;;  %v4651_v39 = vld [vmem:[%s5497_s18 + $0x24] sm:$0xf] }
  0x6f   : > { %v1805_v0 = vrot.slane %v1804_v57, 4  ;;  %v1825_v11 = vshrl.u32 %v4649_v4, 16  ;;  %v4478_v13 = vrot.slane %v1044_v5, 9  ;;  %v1105_v14 = vrot.slane %v1103_v46, 4  ;;  %v5069_v57 = vld [vmem:[%s5497_s18 + $0x18] sm:$0xff] }
  0x70   : > { %4376 = vmatmul.msk.bf16.gmra.mxu0 %vm676_vm3, %v651_v59  ;;  %v1800_v8 = vsel %vm5509_vm2, %v1795_v63, %v1799_v49  ;;  %v1106_v25 = vrot.slane %v5574_v29, 5  ;;  %v1814_v18 = vrot.slane %v1812_v6, 4  ;;  %v1817_v19 = vrot.slane %v1815_v7, 5  ;;  %v4653_v4 = vld [vmem:[%s5497_s18 + $0x2c] sm:$0x1] }
  0x71   : > { %4461 = vmatmul.msk.bf16.vlgmr.msrb.gmra.mxu1 %vm676_vm3, %v5046_v53  ;;  %v1810_v9 = vsel %vm5509_vm2, %v1805_v0, %v1809_v3  ;;  %v2176_v15 = vunpack.c.l.b16 %v1800_v8  ;;  %v1823_v20 = vrot.slane %v1821_v10, 5  ;;  %v1827_v23 = vrot.slane %v1825_v11, 4 }
  0x72   : > { %v2177_v17 = vunpack.c.l.b16 %v1810_v9  ;;  %v1104_v27 = vsel %vm5704_vm6, %v4478_v13, %v1103_v46  ;;  %v1107_v30 = vsel %vm5704_vm6, %v1105_v14, %v1106_v25  ;;  %v1818_v29 = vor.u32 %v1817_v19, %v1814_v18  ;;  %v5048_v9 = vld [vmem:[%s5497_s18 + $0x18] sm:$0xff] }
  0x73   : > { %v1828_v34 = vor.u32 %v1827_v23, %v1823_v20  ;;  %v1831_v35 = vshll.u32 %v4650_v24, 16  ;;  %v1213_v36 = vunpack.c.l.b16 %v1104_v27  ;;  %v1214_v37 = vunpack.c.l.b16 %v1107_v30  ;;  %v1046_v23 = vld [vmem:[%s5497_s18 + $0x24] sm:$0xe] }
  0x74   : > { %v2208_v31 = vpack.c.b16 %v2177_v17, %v2176_v15  ;;  %v1819_v38 = vrot.slane %v1818_v29, 4  ;;  %v1110_v48 = vrot.slane %v5626_v1, 5  ;;  %v1836_v49 = vshrl.u32 %v4651_v39, 16  ;;  %v4654_v15 = vld [vmem:[%s5497_s18 + $0x30] sm:$0xf]  ;;  %v5070_v29 = vld [vmem:[%s5497_s18 + $0x24] sm:$0xff] }
  0x75   : > { %v1829_v41 = vrot.slane %v1828_v34, 4  ;;  %v1833_v42 = vrot.slane %v1831_v35, 5  ;;  %v1244_v47 = vpack.c.b16 %v1214_v37, %v1213_v36  ;;  %v1839_v51 = vshll.u32 %v4651_v39, 16  ;;  %v4655_v17 = vld [vmem:[%s5497_s18 + $0x34] sm:$0xf] }
  0x76   : > { %4505 = vmatmul.msk.bf16.vlgmr.msrb.gmra.mxu2 %vm676_vm3, %v1243_v60  ;;  %v1824_v50 = vsel %vm5509_vm2, %v1819_v38, %v1823_v20  ;;  %v1845_v52 = vshll.u32 %v4652_v43, 16  ;;  %v1849_v53 = vshrl.u32 %v4652_v43, 16  ;;  %v4479_v55 = vrot.slane %v1045_v61, 9 }
  0x77   : > { %v1834_v54 = vsel %vm5509_vm2, %v1829_v41, %v1833_v42  ;;  %v2178_v58 = vunpack.c.l.b16 %v1824_v50  ;;  %v1112_v59 = vrot.slane %v1110_v48, 4  ;;  %v1113_v1 = vrot.slane %v5629_v2, 5  ;;  %v4656_v42 = vld [vmem:[%s5497_s18 + $0x38] sm:$0x1] }
  0x78   : > { %v1838_v60 = vrot.slane %v1836_v49, 4  ;;  %v2179_v63 = vunpack.c.l.b16 %v1834_v54  ;;  %v1841_v0 = vrot.slane %v1839_v51, 5  ;;  %v1847_v3 = vrot.slane %v1845_v52, 5  ;;  %v4658_v54 = vld [vmem:[%s5497_s18 + $0x40] sm:$0xf] }
  0x79   : > { %v1851_v62 = vrot.slane %v1849_v53, 4  ;;  %v1111_v46 = vsel %vm5704_vm6, %v4479_v55, %v1110_v48  ;;  %v1114_v5 = vsel %vm5704_vm6, %v1112_v59, %v1113_v1  ;;  %v1855_v2 = vshll.u32 %v4653_v4, 16  ;;  %v4657_v53 = vld [vmem:[%s5497_s18 + $0x3c] sm:$0xf]  ;;  %v5272_v1 = vld [vmem:[%s5497_s18 + $0x34] sm:$0xf] }
  0x7a   : > { %v2209_v6 = vpack.c.b16 %v2179_v63, %v2178_v58  ;;  %v1842_v7 = vor.u32 %v1841_v0, %v1838_v60  ;;  %v1215_v10 = vunpack.c.l.b16 %v1111_v46  ;;  %v1216_v11 = vunpack.c.l.b16 %v1114_v5  ;;  %v1047_v63 = vld [vmem:[%s5497_s18 + $0x30] sm:$0xe] }
  0x7b   : > { %4629 = vmatmul.msk.bf16.vlgmr.msrb.gmra.mxu3 %vm676_vm3, %v5068_v12  ;;  %v1852_v8 = vor.u32 %v1851_v62, %v1847_v3  ;;  %v1857_v14 = vrot.slane %v1855_v2, 5  ;;  %v1117_v18 = vrot.slane %v5675_v44, 5  ;;  %v1860_v24 = vshrl.u32 %v4654_v15, 16  ;;  %v5273_v2 = vld [vmem:[%s5497_s18 + $0x38] sm:$0x1] }
  0x7c   : > { %v1843_v12 = vrot.slane %v1842_v7, 4  ;;  %v1245_v25 = vpack.c.b16 %v1216_v11, %v1215_v10  ;;  %v1863_v27 = vshll.u32 %v4654_v15, 16  ;;  %v1869_v30 = vshll.u32 %v4655_v17, 16  ;;  %v5071_v10 = vld [vmem:[%s5497_s18 + $0x30] sm:$0xff] }
  0x7d   : > { %v1853_v13 = vrot.slane %v1852_v8, 4  ;;  %v1119_v34 = vrot.slane %v1117_v18, 4  ;;  %v1120_v44 = vrot.slane %v5678_v45, 5  ;;  %v1862_v37 = vrot.slane %v1860_v24, 4  ;;  %v5049_v45 = vld [vmem:[%s5497_s18 + $0x24] sm:$0xff] }
  0x7e   : > { %v1848_v19 = vsel %vm5509_vm2, %v1843_v12, %v1847_v3  ;;  %v1865_v38 = vrot.slane %v1863_v27, 5  ;;  %v1871_v39 = vrot.slane %v1869_v30, 5  ;;  %v1879_v50 = vshll.u32 %v4656_v42, 16  ;;  %v5050_v30 = vld [vmem:[%s5497_s18 + $0x30] sm:$0xff] }
  0x7f   : > { %v1858_v20 = vsel %vm5509_vm2, %v1853_v13, %v1857_v14  ;;  %v2180_v35 = vunpack.c.l.b16 %v1848_v19  ;;  %v1124_v60 = vrot.slane %v5272_v1, 5  ;;  %v1884_v0 = vshrl.u32 %v4657_v53, 16 }
  0x80   : > { %4705 = vmatmul.msk.bf16.vlgmr.msrb.gmra.mxu0 %vm676_vm3, %v2208_v31  ;;  %v1873_v31 = vshrl.u32 %v4655_v17, 16  ;;  %v2181_v36 = vunpack.c.l.b16 %v1858_v20  ;;  %v1866_v48 = vor.u32 %v1865_v38, %v1862_v37  ;;  %v1881_v58 = vrot.slane %v1879_v50, 5  ;;  %v4659_v17 = vld [vmem:[%s5497_s18 + $0x44] sm:$0x1]  ;;  %v4660_v37 = vld [vmem:[%s5497_s18 + $0x48] sm:$0xf] }
  0x81   : > { %4462 = vmatmul.msk.bf16.gmra.mxu1 %vm676_vm3, %v5047_v33  ;;  %v4480_v33 = vrot.slane %v1046_v23, 9  ;;  %v1887_v3 = vshll.u32 %v4657_v53, 16  ;;  %v1893_v62 = vshll.u32 %v4658_v54, 16  ;;  %v1897_v4 = vshrl.u32 %v4658_v54, 16  ;;  %v4661_v38 = vld [vmem:[%s5497_s18 + $0x4c] sm:$0xf] }
  0x82   : > { %v1875_v41 = vrot.slane %v1873_v31, 4  ;;  %v2210_v61 = vpack.c.b16 %v2181_v36, %v2180_v35  ;;  %v1867_v55 = vrot.slane %v1866_v48, 4  ;;  %v4481_v7 = vrot.slane %v1047_v63, 9  ;;  %v5072_v53 = vld [vmem:[%s5497_s18 + $0x3c] sm:$0xff] }
  0x83   : > { %v1118_v43 = vsel %vm5704_vm6, %v4480_v33, %v1117_v18  ;;  %v1126_v8 = vrot.slane %v1124_v60, 4  ;;  %v1886_v11 = vrot.slane %v1884_v0, 4  ;;  %v1889_v12 = vrot.slane %v1887_v3, 5  ;;  %v4662_v3 = vld [vmem:[%s5497_s18 + $0x50] sm:$0x1] }
  0x84   : > { %v1876_v49 = vor.u32 %v1875_v41, %v1871_v39  ;;  %v1217_v51 = vunpack.c.l.b16 %v1118_v43  ;;  %v1872_v5 = vsel %vm5509_vm2, %v1867_v55, %v1871_v39  ;;  %v1895_v13 = vrot.slane %v1893_v62, 5 }
  0x85   : > { %v1899_v14 = vrot.slane %v1897_v4, 4  ;;  %v1125_v18 = vsel %vm5704_vm6, %v4481_v7, %v1124_v60  ;;  %v1890_v20 = vor.u32 %v1889_v12, %v1886_v11  ;;  %v1903_v24 = vshll.u32 %v4659_v17, 16 }
  0x86   : > { %4506 = vmatmul.msk.bf16.gmra.mxu2 %vm676_vm3, %v1244_v47  ;;  %v1121_v47 = vsel %vm5704_vm6, %v1119_v34, %v1120_v44  ;;  %v1908_v48 = vshrl.u32 %v4660_v37, 16  ;;  %v1917_v50 = vshll.u32 %v4661_v38, 16 }
  0x87   : > { %v1218_v52 = vunpack.c.l.b16 %v1121_v47  ;;  %v1900_v23 = vor.u32 %v1899_v14, %v1895_v13  ;;  %v1891_v44 = vrot.slane %v1890_v20, 4  ;;  %v1905_v36 = vrot.slane %v1903_v24, 5 }
  0x88   : > { %v1919_v63 = vrot.slane %v1917_v50, 5  ;;  %v1138_v20 = vrot.slane %v5582_v40, 5 }
  0x89   : > { %v1246_v59 = vpack.c.b16 %v1218_v52, %v1217_v51  ;;  %v1901_v35 = vrot.slane %v1900_v23, 4  ;;  %v1896_v42 = vsel %vm5509_vm2, %v1891_v44, %v1895_v13  ;;  %v1921_v51 = vshrl.u32 %v4661_v38, 16 }
  0x8a   : > { %v2184_v52 = vunpack.c.l.b16 %v1896_v42  ;;  %v1140_v38 = vrot.slane %v1138_v20, 4 }
  0x8b   : > { %4630 = vmatmul.msk.bf16.gmra.mxu3 %vm676_vm3, %v5069_v57  ;;  %v1877_v57 = vrot.slane %v1876_v49, 4  ;;  %v1906_v43 = vsel %vm5509_vm2, %v1901_v35, %v1905_v36  ;;  %v1911_v49 = vshll.u32 %v4660_v37, 16  ;;  %v1923_v0 = vrot.slane %v1921_v51, 4  ;;  %v5073_v36 = vld [vmem:[%s5497_s18 + $0x48] sm:$0xff]  ;;  %v4665_v51 = vld [vmem:[%s5497_s18 + $0x5c] sm:$0x1] }
  0x8c   : > { %v2185_v54 = vunpack.c.l.b16 %v1906_v43 }
  0x8d   : > { %v1913_v60 = vrot.slane %v1911_v49, 5  ;;  %v1924_v7 = vor.u32 %v1923_v0, %v1919_v63 }
  0x8f   : > { %v1925_v13 = vrot.slane %v1924_v7, 4 }
  0x90   : > { %4706 = vmatmul.msk.bf16.gmra.mxu0 %vm676_vm3, %v2209_v6  ;;  %v1882_v6 = vsel %vm5509_vm2, %v1877_v57, %v1881_v58 }
  0x91   : > { %4463 = vmatmul.msk.bf16.gmra.mxu1 %vm676_vm3, %v5048_v9  ;;  %v1127_v9 = vrot.slane %v5273_v2, 5  ;;  %v2183_v15 = vunpack.c.l.b16 %v1882_v6 }
  0x93   : > { %v1128_v19 = vsel %vm5704_vm6, %v1126_v8, %v1127_v9  ;;  %v1927_v8 = vshll.u32 %v4662_v3, 16  ;;  %v5051_v9 = vld [vmem:[%s5497_s18 + $0x3c] sm:$0xff] }
  0x94   : > { %v1220_v33 = vunpack.c.l.b16 %v1128_v19  ;;  %v4664_v19 = vld [vmem:[%s5497_s18 + $0x58] sm:$0xf]  ;;  %v4666_v3 = vld [vmem:[%s5497_s18 + $0x60] sm:$0xf] }
  0x95   : > { %v1929_v14 = vrot.slane %v1927_v8, 5  ;;  %v1945_v44 = vshrl.u32 %v4664_v19, 16 }
  0x96   : > { %4507 = vmatmul.msk.bf16.gmra.mxu2 %vm676_vm3, %v1245_v25  ;;  %v2182_v25 = vunpack.c.l.b16 %v1872_v5  ;;  %v2212_v5 = vpack.c.b16 %v2185_v54, %v2184_v52 }
  0x97   : > { %v1930_v24 = vsel %vm5509_vm2, %v1925_v13, %v1929_v14  ;;  %v1947_v49 = vrot.slane %v1945_v44, 4 }
  0x98   : > { %v2211_v27 = vpack.c.b16 %v2183_v15, %v2182_v25  ;;  %v2187_v43 = vunpack.c.l.b16 %v1930_v24 }
  0x9b   : > { %4631 = vmatmul.msk.bf16.gmra.mxu3 %vm676_vm3, %v5070_v29  ;;  %v1219_v29 = vunpack.c.l.b16 %v1125_v18  ;;  %v4663_v18 = vld [vmem:[%s5497_s18 + $0x54] sm:$0xf] }
  0x9d   : > { %v1247_v41 = vpack.c.b16 %v1220_v33, %v1219_v29  ;;  %v1935_v29 = vshll.u32 %v4663_v18, 16  ;;  %v1941_v33 = vshll.u32 %v4664_v19, 16 }
  0xa0   : > { %4707 = vmatmul.msk.bf16.gmra.mxu0 %vm676_vm3, %v2210_v61  ;;  %v1131_v61 = vrot.slane %v5537_v16, 5  ;;  %v1910_v16 = vrot.slane %v1908_v48, 4  ;;  %v1943_v48 = vrot.slane %v1941_v33, 5  ;;  %v1148_v33 = vrot.slane %v5644_v28, 5 }
  0xa1   : > { %4464 = vmatmul.msk.bf16.gmra.mxu1 %vm676_vm3, %v5049_v45  ;;  %v1048_v45 = vld [vmem:[%s5497_s18 + $0x3c] sm:$0xe] }
  0xa2   : > { %v4482_v57 = vrot.slane %v1048_v45, 9  ;;  %v1133_v58 = vrot.slane %v1131_v61, 4  ;;  %v1937_v45 = vrot.slane %v1935_v29, 5 }
  0xa4   : > { %v1132_v62 = vsel %vm5704_vm6, %v4482_v57, %v1131_v61  ;;  %v5052_v57 = vld [vmem:[%s5497_s18 + $0x48] sm:$0xff] }
  0xa6   : > { %v5788_v46 = vpop.f32.mrf.mxu1  ;;  %4508 = vmatmul.msk.bf16.gmra.mxu2 %vm676_vm3, %v1246_v59  ;;  %v1134_v59 = vrot.slane %v5542_v21, 5  ;;  %v1914_v21 = vor.u32 %v1913_v60, %v1910_v16  ;;  %v1951_v16 = vshll.u32 %v4665_v51, 16  ;;  %v5053_v51 = vld [vmem:[%s5497_s18 + $0x54] sm:$0xff] }
  0xa8   : > { %v1135_v4 = vsel %vm5704_vm6, %v1133_v58, %v1134_v59  ;;  %v1915_v12 = vrot.slane %v1914_v21, 4  ;;  %v1948_v59 = vor.u32 %v1947_v49, %v1943_v48  ;;  %v1953_v7 = vrot.slane %v1951_v16, 5 }
  0xa9   : > { %v1222_v11 = vunpack.c.l.b16 %v1135_v4 }
  0xaa   : > { %v1920_v23 = vsel %vm5509_vm2, %v1915_v12, %v1919_v63  ;;  %v1949_v21 = vrot.slane %v1948_v59, 4  ;;  %v1145_v12 = vrot.slane %v5639_v22, 5 }
  0xab   : > { %4632 = vmatmul.msk.bf16.gmra.mxu3 %vm676_vm3, %v5071_v10  ;;  %v1221_v10 = vunpack.c.l.b16 %v1132_v62  ;;  %v2186_v42 = vunpack.c.l.b16 %v1920_v23  ;;  %v4667_v62 = vld [vmem:[%s5497_s18 + $0x64] sm:$0xf] }
  0xac   : > { %v1969_v13 = vshrl.u32 %v4667_v62, 16  ;;  %v1954_v19 = vsel %vm5509_vm2, %v1949_v21, %v1953_v7  ;;  %v1147_v29 = vrot.slane %v1145_v12, 4 }
  0xad   : > { %v1248_v15 = vpack.c.b16 %v1222_v11, %v1221_v10  ;;  %v2213_v54 = vpack.c.b16 %v2187_v43, %v2186_v42  ;;  %v1959_v10 = vshll.u32 %v4666_v3, 16  ;;  %v1965_v11 = vshll.u32 %v4667_v62, 16  ;;  %v4669_v62 = vld [vmem:[%s5497_s18 + $0x6c] sm:$0xf] }
  0xae   : > { %v5804_v31 = vpop.f32.mrf.mxu1  ;;  %v1971_v44 = vrot.slane %v1969_v13, 4  ;;  %v1051_v13 = vld [vmem:[%s5497_s18 + $0x60] sm:$0xe] }
  0xaf   : > { %v1961_v24 = vrot.slane %v1959_v10, 5  ;;  %v5274_v10 = vld [vmem:[%s5497_s18 + $0x64] sm:$0xf] }
  0xb0   : > { %v5806_v34 = vpop.f32.mrf.mxu2  ;;  %4708 = vmatmul.msk.bf16.gmra.mxu0 %vm676_vm3, %v2211_v27  ;;  %v1049_v27 = vld [vmem:[%s5497_s18 + $0x48] sm:$0xe] }
  0xb1   : > { %4465 = vmatmul.msk.bf16.gmra.mxu1 %vm676_vm3, %v5050_v30  ;;  %v1932_v30 = vshrl.u32 %v4663_v18, 16  ;;  %v4483_v40 = vrot.slane %v1049_v27, 9  ;;  %v1967_v27 = vrot.slane %v1965_v11, 5  ;;  %v1152_v11 = vrot.slane %v5274_v10, 5 }
  0xb3   : > { %v5812_v39 = vpop.f32.mrf.mxu0  ;;  %v1934_v61 = vrot.slane %v1932_v30, 4  ;;  %v5074_v30 = vld [vmem:[%s5497_s18 + $0x54] sm:$0xff] }
  0xb4   : > { %v5818_v47 = vpop.f32.mrf.mxu3 }
  0xb5   : > { %v1938_v58 = vor.u32 %v1937_v45, %v1934_v61  ;;  %v1149_v45 = vsel %vm5704_vm6, %v1147_v29, %v1148_v33  ;;  %v5075_v29 = vld [vmem:[%s5497_s18 + $0x60] sm:$0xff] }
  0xb6   : > { %4509 = vmatmul.msk.bf16.gmra.mxu2 %vm676_vm3, %v1247_v41  ;;  %v1141_v41 = vrot.slane %v5598_v56, 5 }
  0xb8   : > { %v5824_v55 = vpop.f32.mrf.mxu1  ;;  %v5827_v1 = vpop.f32.mrf.mxu2  ;;  %v1142_v56 = vsel %vm5704_vm6, %v1140_v38, %v1141_v41  ;;  %v4668_v38 = vld [vmem:[%s5497_s18 + $0x68] sm:$0x1] }
  0xb9   : > { %v1224_v63 = vunpack.c.l.b16 %v1142_v56  ;;  %v1975_v49 = vshll.u32 %v4668_v38, 16 }
  0xbb   : > { %4633 = vmatmul.msk.bf16.gmra.mxu3 %vm676_vm3, %v5072_v53  ;;  %v5835_v6 = vpop.f32.mrf.mxu0  ;;  %v1139_v53 = vsel %vm5704_vm6, %v4483_v40, %v1138_v20  ;;  %v2189_v40 = vunpack.c.l.b16 %v1954_v19 }
  0xbc   : > { %v5837_v2 = vpop.f32.mrf.mxu3  ;;  %v1223_v60 = vunpack.c.l.b16 %v1139_v53  ;;  %v5106_v53 = vld [vmem:[%s6897_s1 + $0x60] sm:$0xff] }
  0xbd   : > { %3000 = vmatpush.bf16.msra.mxu2 %v5106_v53 }
  0xbe   : > { %v1249_v8 = vpack.c.b16 %v1224_v63, %v1223_v60  ;;  %v1977_v60 = vrot.slane %v1975_v49, 5  ;;  %v5108_v63 = vld [vmem:[%s6897_s1 + $0x70] sm:$0xff] }
  0xbf   : > { %3666 = vmatpush.bf16.msra.mxu3 %v5108_v63  ;;  %v4671_v49 = vld [vmem:[%s5497_s18 + $0x74] sm:$0x1] }
  0xc0   : > { %4709 = vmatmul.msk.bf16.gmra.mxu0 %vm676_vm3, %v2212_v5  ;;  %v5841_v25 = vpop.f32.mrf.mxu1  ;;  %v1939_v5 = vrot.slane %v1938_v58, 4 }
  0xc1   : > { %4466 = vmatmul.msk.bf16.gmra.mxu1 %vm676_vm3, %v5051_v9  ;;  %v1956_v9 = vshrl.u32 %v4666_v3, 16  ;;  %v5088_v3 = vld [vmem:[%s6897_s1 + $0x50] sm:$0xff] }
  0xc2   : > { %v1944_v18 = vsel %vm5509_vm2, %v1939_v5, %v1943_v48  ;;  %v1972_v48 = vor.u32 %v1971_v44, %v1967_v27  ;;  %v4670_v5 = vld [vmem:[%s5497_s18 + $0x70] sm:$0xf]  ;;  %2701 = vmatpush.bf16.msra.mxu1 %v5088_v3 }
  0xc3   : > { %v5844_v17 = vpop.f32.mrf.mxu2  ;;  %v1958_v23 = vrot.slane %v1956_v9, 4  ;;  %v1989_v19 = vshll.u32 %v4670_v5, 16 }
  0xc4   : > { %v1973_v16 = vrot.slane %v1972_v48, 4 }
  0xc5   : > { %v1962_v43 = vor.u32 %v1961_v24, %v1958_v23  ;;  %v1993_v23 = vshrl.u32 %v4670_v5, 16  ;;  %v5110_v24 = vld [vmem:[%s6897_s1 + $0x80] sm:$0xff] }
  0xc6   : > { %4510 = vmatmul.msk.bf16.gmra.mxu2 %vm676_vm3, %v1248_v15  ;;  %v1050_v15 = vld [vmem:[%s5497_s18 + $0x54] sm:$0xe]  ;;  %v1978_v9 = vsel %vm5509_vm2, %v1973_v16, %v1977_v60  ;;  %4076 = vmatpush.bf16.msra.mxu0 %v5110_v24  ;;  %v5054_v60 = vld [vmem:[%s5497_s18 + $0x60] sm:$0xff] }
  0xc7   : > { %v5854_v35 = vpop.f32.mrf.mxu0  ;;  %v4484_v22 = vrot.slane %v1050_v15, 9  ;;  %v1963_v59 = vrot.slane %v1962_v43, 4  ;;  %v1980_v15 = vshrl.u32 %v4669_v62, 16  ;;  %v2191_v44 = vunpack.c.l.b16 %v1978_v9 }
  0xc8   : > { %v5858_v37 = vpop.f32.mrf.mxu3 }
  0xc9   : > { %v1146_v61 = vsel %vm5704_vm6, %v4484_v22, %v1145_v12  ;;  %v1982_v38 = vrot.slane %v1980_v15, 4  ;;  %v4672_v15 = vld [vmem:[%s5497_s18 + $0x78] sm:$0xf] }
  0xca   : > { %v5861_v50 = vpop.f32.mrf.mxu1 }
  0xcb   : > { %4634 = vmatmul.msk.bf16.gmra.mxu3 %vm676_vm3, %v5073_v36  ;;  %v5865_v52 = vpop.f32.mrf.mxu2  ;;  %v2188_v36 = vunpack.c.l.b16 %v1944_v18  ;;  %v1983_v18 = vshll.u32 %v4669_v62, 16 }
  0xcd   : > { %v2214_v28 = vpack.c.b16 %v2189_v40, %v2188_v36  ;;  %v4485_v36 = vrot.slane %v1051_v13, 9  ;;  %v1154_v40 = vrot.slane %v1152_v11, 4  ;;  %v1985_v43 = vrot.slane %v1983_v18, 5  ;;  %v4673_v18 = vld [vmem:[%s5497_s18 + $0x7c] sm:$0xf] }
  0xcf   : > { %v5872_v0 = vpop.f32.mrf.mxu0 }
  0xd0   : > { %4710 = vmatmul.msk.bf16.gmra.mxu0 %vm676_vm3, %v2213_v54  ;;  %v5877_v4 = vpop.f32.mrf.mxu3  ;;  %v1225_v54 = vunpack.c.l.b16 %v1146_v61  ;;  %v1991_v61 = vrot.slane %v1989_v19, 5  ;;  %v5276_v19 = vld [vmem:[%s5497_s18 + $0x70] sm:$0xf] }
  0xd1   : > { %4467 = vmatmul.msk.bf16.gmra.mxu1 %vm676_vm3, %v5052_v57  ;;  %v1226_v57 = vunpack.c.l.b16 %v1149_v45  ;;  %v1995_v45 = vrot.slane %v1993_v23, 4  ;;  %v1159_v23 = vrot.slane %v5276_v19, 5 }
  0xd2   : > { %v5881_v14 = vpop.f32.mrf.mxu1 }
  0xd3   : > { %v1250_v21 = vpack.c.b16 %v1226_v57, %v1225_v54  ;;  %v1986_v54 = vor.u32 %v1985_v43, %v1982_v38  ;;  %v1996_v57 = vor.u32 %v1995_v45, %v1991_v61  ;;  %v5277_v43 = vld [vmem:[%s5497_s18 + $0x74] sm:$0x1] }
  0xd4   : > { %v1162_v45 = vrot.slane %v5277_v43, 5 }
  0xd5   : > { %v1997_v9 = vrot.slane %v1996_v57, 4 }
  0xd6   : > { %v5888_v20 = vpop.f32.mrf.mxu2  ;;  %4511 = vmatmul.msk.bf16.gmra.mxu2 %vm676_vm3, %v1249_v8  ;;  %v1968_v8 = vsel %vm5509_vm2, %v1963_v59, %v1967_v27  ;;  %v1999_v59 = vshll.u32 %v4671_v49, 16  ;;  %v5076_v49 = vld [vmem:[%s5497_s18 + $0x6c] sm:$0xff] }
  0xd7   : > { %v2190_v33 = vunpack.c.l.b16 %v1968_v8  ;;  %v1987_v8 = vrot.slane %v1986_v54, 4 }
  0xd8   : > { %v2001_v10 = vrot.slane %v1999_v59, 5 }
  0xd9   : > { %v5894_v41 = vpop.f32.mrf.mxu0  ;;  %v2215_v53 = vpack.c.b16 %v2191_v44, %v2190_v33  ;;  %v1992_v24 = vsel %vm5509_vm2, %v1987_v8, %v1991_v61  ;;  %v2007_v33 = vshll.u32 %v4672_v15, 16  ;;  %v2013_v44 = vshll.u32 %v4673_v18, 16  ;;  %v4674_v8 = vld [vmem:[%s5497_s18 + $0x80] sm:$0x1] }
  0xda   : > { %v5896_v42 = vpop.f32.mrf.mxu3 }
  0xdb   : > { %4635 = vmatmul.msk.bf16.gmra.mxu3 %vm676_vm3, %v5074_v30  ;;  %v5275_v30 = vld [vmem:[%s5497_s18 + $0x68] sm:$0x1] }
  0xdc   : > { %v1155_v22 = vrot.slane %v5275_v30, 5  ;;  %v1052_v30 = vld [vmem:[%s5497_s18 + $0x6c] sm:$0xe] }
  0xde   : > { %v5907_v56 = vpop.f32.mrf.mxu1  ;;  %v5909_v58 = vpop.f32.mrf.mxu2 }
  0xe0   : > { %4711 = vmatmul.msk.bf16.gmra.mxu0 %vm676_vm3, %v2214_v28  ;;  %v1153_v28 = vsel %vm5704_vm6, %v4485_v36, %v1152_v11  ;;  %v2017_v36 = vshrl.u32 %v4673_v18, 16 }
  0xe1   : > { %4468 = vmatmul.msk.bf16.gmra.mxu1 %vm676_vm3, %v5053_v51  ;;  %v5921_v7 = vpop.f32.mrf.mxu0  ;;  %v1156_v51 = vsel %vm5704_vm6, %v1154_v40, %v1155_v22  ;;  %v1227_v62 = vunpack.c.l.b16 %v1153_v28  ;;  %v4486_v28 = vrot.slane %v1052_v30, 9 }
  0xe2   : > { %v5928_v12 = vpop.f32.mrf.mxu3  ;;  %v1228_v5 = vunpack.c.l.b16 %v1156_v51  ;;  %v1161_v51 = vrot.slane %v1159_v23, 4 }
  0xe4   : > { %v1251_v13 = vpack.c.b16 %v1228_v5, %v1227_v62  ;;  %v2019_v62 = vrot.slane %v2017_v36, 4 }
  0xe6   : > { %4512 = vmatmul.msk.bf16.gmra.mxu2 %vm676_vm3, %v1250_v21  ;;  %v5936_v27 = vpop.f32.mrf.mxu1 }
  0xe9   : > { %v5939_v48 = vpop.f32.mrf.mxu2 }
  0xeb   : > { %4636 = vmatmul.msk.bf16.gmra.mxu3 %vm676_vm3, %v5075_v29  ;;  %v2004_v29 = vshrl.u32 %v4672_v15, 16  ;;  %v5055_v15 = vld [vmem:[%s5497_s18 + $0x6c] sm:$0xff] }
  0xed   : > { %v5947_v16 = vpop.f32.mrf.mxu0  ;;  %v2006_v59 = vrot.slane %v2004_v29, 4 }
  0xee   : > { %v5950_v63 = vpop.f32.mrf.mxu3  ;;  %v963_v3 = vpop.f32.mrf.mxu1 }
  0xef   : > { %v964_v21 = vadd.f32 %v963_v3, %v5812_v39  ;;  %v2002_v39 = vsel %vm5509_vm2, %v1997_v9, %v2001_v10  ;;  %v2015_v3 = vrot.slane %v2013_v44, 5  ;;  %v1160_v9 = vsel %vm5704_vm6, %v4486_v28, %v1159_v23 }
  0xf0   : > { %4712 = vmatmul.msk.bf16.gmra.mxu0 %vm676_vm3, %v2215_v53  ;;  %v2192_v53 = vunpack.c.l.b16 %v1992_v24  ;;  %v2193_v54 = vunpack.c.l.b16 %v2002_v39  ;;  %v2023_v24 = vshll.u32 %v4674_v8, 16 }
  0xf1   : > { %v5954_v11 = vpop.f32.mrf.mxu2  ;;  %4469 = vmatmul.msk.bf16.gmra.mxu1 %vm676_vm3, %v5054_v60  ;;  %v2009_v60 = vrot.slane %v2007_v33, 5  ;;  %v2020_v19 = vor.u32 %v2019_v62, %v2015_v3 }
  0xf2   : > { %v2216_v10 = vpack.c.b16 %v2193_v54, %v2192_v53  ;;  %v2025_v43 = vrot.slane %v2023_v24, 5  ;;  %v4676_v53 = vld [vmem:[%s5497_s18 + $0x88] sm:$0xf]  ;;  %v5278_v54 = vld [vmem:[%s5497_s18 + $0x7c] sm:$0xf] }
  0xf3   : > { %v2010_v18 = vor.u32 %v2009_v60, %v2006_v59  ;;  %v1053_v59 = vld [vmem:[%s5497_s18 + $0x78] sm:$0xe] }
  0xf5   : > { %v5965_v22 = vpop.f32.mrf.mxu0  ;;  %v2011_v36 = vrot.slane %v2010_v18, 4 }
  0xf6   : > { %v5967_v40 = vpop.f32.mrf.mxu3  ;;  %4513 = vmatmul.msk.bf16.gmra.mxu2 %vm676_vm3, %v1251_v13  ;;  %v965_v38 = vpop.f32.mrf.mxu1 }
  0xf7   : > { %v966_v61 = vadd.f32 %v965_v38, %v5835_v6  ;;  %v1163_v6 = vsel %vm5704_vm6, %v1161_v51, %v1162_v45  ;;  %v2021_v38 = vrot.slane %v2020_v19, 4  ;;  %v4675_v45 = vld [vmem:[%s5497_s18 + $0x84] sm:$0xf]  ;;  %v5077_v19 = vld [vmem:[%s5497_s18 + $0x78] sm:$0xff] }
  0xf8   : > { %v1230_v29 = vunpack.c.l.b16 %v1163_v6  ;;  %v2031_v60 = vshll.u32 %v4675_v45, 16  ;;  %v2041_v6 = vshrl.u32 %v4676_v53, 16 }
  0xf9   : > { %v1328_v57 = vpop.f32.mrf.mxu2  ;;  %v2026_v8 = vsel %vm5509_vm2, %v2021_v38, %v2025_v43 }
  0xfa   : > { %v1408_v5 = vadd.f32 %v1328_v57, %v964_v21  ;;  %v1229_v21 = vunpack.c.l.b16 %v1160_v9  ;;  %v1166_v57 = vrot.slane %v5278_v54, 5  ;;  %v2037_v9 = vshll.u32 %v4676_v53, 16 }
  0xfb   : > { %4637 = vmatmul.msk.bf16.gmra.mxu3 %vm676_vm3, %v5076_v49  ;;  %v2043_v38 = vrot.slane %v2041_v6, 4 }
  0xfc   : > { %v1252_v51 = vpack.c.b16 %v1230_v29, %v1229_v21 }
  0xfd   : > { %v2293_v13 = vpop.f32.mrf.mxu0 }
  0xfe   : > { %v1627_v39 = vpop.f32.mrf.mxu3  ;;  %v968_v30 = vpop.f32.mrf.mxu1 }
  0xff   : > { %v1707_v33 = vadd.f32 %v1627_v39, %v1408_v5  ;;  %v969_v23 = vadd.f32 %v968_v30, %v5854_v35  ;;  %v2028_v35 = vshrl.u32 %v4675_v45, 16  ;;  %v2016_v5 = vsel %vm5509_vm2, %v2011_v36, %v2015_v3 }
 0x100   : > { %4713 = vmatmul.msk.bf16.gmra.mxu0 %vm676_vm3, %v2216_v10  ;;  %v5279_v10 = vld [vmem:[%s5497_s18 + $0x80] sm:$0x1]  ;;  %v4487_v39 = vrot.slane %v1053_v59, 9  ;;  %v1168_v30 = vrot.slane %v1166_v57, 4  ;;  %v2194_v21 = vunpack.c.l.b16 %v2016_v5  ;;  %v2195_v3 = vunpack.c.l.b16 %v2026_v8 }
 0x101   : > { %v1330_v44 = vpop.f32.mrf.mxu2  ;;  %4470 = vmatmul.msk.bf16.gmra.mxu1 %vm676_vm3, %v5055_v15  ;;  %v5984_v49 = vadd.f32 %v2293_v13, %v1707_v33  ;;  %v1169_v13 = vrot.slane %v5279_v10, 5  ;;  %v2030_v29 = vrot.slane %v2028_v35, 4  ;;  %v2033_v33 = vrot.slane %v2031_v60, 5  ;;  %v5056_v35 = vld [vmem:[%s5497_s18 + $0x78] sm:$0xff] }
 0x102   : > { %v1409_v28 = vadd.f32 %v1330_v44, %v966_v61  ;;  %v2039_v36 = vrot.slane %v2037_v9, 5  ;;  %v2217_v53 = vpack.c.b16 %v2195_v3, %v2194_v21  ;;  %v4679_v21 = vld [vmem:[%s5497_s18 + $0x94] sm:$0xf]  ;;  %v5280_v3 = vld [vmem:[%s5497_s18 + $0x88] sm:$0xf] }
 0x103   : > { %v2034_v54 = vor.u32 %v2033_v33, %v2030_v29  ;;  %v1173_v29 = vrot.slane %v5280_v3, 5  ;;  %v1054_v33 = vld [vmem:[%s5497_s18 + $0x84] sm:$0xe] }
 0x104   : > { %v2044_v60 = vor.u32 %v2043_v38, %v2039_v36 }
 0x105   : > { %v2295_v62 = vpop.f32.mrf.mxu0  ;;  %v2035_v10 = vrot.slane %v2034_v54, 4 }
 0x106   : > { %v1629_v61 = vpop.f32.mrf.mxu3  ;;  %4514 = vmatmul.msk.bf16.gmra.mxu2 %vm676_vm3, %v1252_v51  ;;  %v970_v15 = vpop.f32.mrf.mxu1  ;;  %v4677_v51 = vld [vmem:[%s5497_s18 + $0x8c] sm:$0x1] }
 0x107   : > { %v1708_v18 = vadd.f32 %v1629_v61, %v1409_v28  ;;  %v971_v24 = vadd.f32 %v970_v15, %v5872_v0  ;;  %v1167_v28 = vsel %vm5704_vm6, %v4487_v39, %v1166_v57  ;;  %v1170_v0 = vsel %vm5704_vm6, %v1168_v30, %v1169_v13 }
 0x108   : > { %v2047_v5 = vshll.u32 %v4677_v51, 16  ;;  %v1232_v9 = vunpack.c.l.b16 %v1170_v0  ;;  %v2045_v61 = vrot.slane %v2044_v60, 4  ;;  %v2065_v0 = vshrl.u32 %v4679_v21, 16  ;;  %v5078_v60 = vld [vmem:[%s5497_s18 + $0x84] sm:$0xff] }
 0x109   : > { %v1333_v44 = vpop.f32.mrf.mxu2  ;;  %v5997_v43 = vadd.f32 %v2295_v62, %v1708_v18  ;;  %v4678_v18 = vld [vmem:[%s5497_s18 + $0x90] sm:$0xf] }
 0x10a   : > { %v1410_v45 = vadd.f32 %v1333_v44, %v969_v23  ;;  %v1231_v23 = vunpack.c.l.b16 %v1167_v28  ;;  %v2049_v15 = vrot.slane %v2047_v5, 5  ;;  %v2052_v44 = vshrl.u32 %v4678_v18, 16 }
 0x10b   : > { %4638 = vmatmul.msk.bf16.gmra.mxu3 %vm676_vm3, %v5077_v19  ;;  %v2055_v51 = vshll.u32 %v4678_v18, 16  ;;  %v2061_v28 = vshll.u32 %v4679_v21, 16  ;;  %v4488_v5 = vrot.slane %v1054_v33, 9 }
 0x10c   : > { %v1253_v30 = vpack.c.b16 %v1232_v9, %v1231_v23  ;;  %v2054_v9 = vrot.slane %v2052_v44, 4 }
 0x10d   : > { %v2298_v59 = vpop.f32.mrf.mxu0 }
 0x10e   : > { %v1632_v8 = vpop.f32.mrf.mxu3  ;;  %v973_v62 = vpop.f32.mrf.mxu1 }
 0x10f   : > { %v1709_v6 = vadd.f32 %v1632_v8, %v1410_v45  ;;  %v974_v57 = vadd.f32 %v973_v62, %v5894_v41  ;;  %v2040_v41 = vsel %vm5509_vm2, %v2035_v10, %v2039_v36  ;;  %v2050_v45 = vsel %vm5509_vm2, %v2045_v61, %v2049_v15 }
 0x110   : > { %4714 = vmatmul.msk.bf16.gmra.mxu0 %vm676_vm3, %v2217_v53  ;;  %v5281_v53 = vld [vmem:[%s5497_s18 + $0x8c] sm:$0x1]  ;;  %v1175_v8 = vrot.slane %v1173_v29, 4  ;;  %v2196_v62 = vunpack.c.l.b16 %v2040_v41  ;;  %v2197_v23 = vunpack.c.l.b16 %v2050_v45  ;;  %v2057_v10 = vrot.slane %v2055_v51, 5  ;;  %v5057_v41 = vld [vmem:[%s5497_s18 + $0x84] sm:$0xff] }
 0x111   : > { %v1335_v13 = vpop.f32.mrf.mxu2  ;;  %4471 = vmatmul.msk.bf16.gmra.mxu1 %vm676_vm3, %v5056_v35  ;;  %v6010_v19 = vadd.f32 %v2298_v59, %v1709_v6  ;;  %v1176_v54 = vrot.slane %v5281_v53, 5  ;;  %v2067_v61 = vrot.slane %v2065_v0, 4 }
 0x112   : > { %v1411_v39 = vadd.f32 %v1335_v13, %v971_v24  ;;  %v2063_v13 = vrot.slane %v2061_v28, 5  ;;  %v2218_v21 = vpack.c.b16 %v2197_v23, %v2196_v62  ;;  %v2058_v33 = vor.u32 %v2057_v10, %v2054_v9  ;;  %v4682_v62 = vld [vmem:[%s5497_s18 + $0xa0] sm:$0xf]  ;;  %v1055_v10 = vld [vmem:[%s5497_s18 + $0x90] sm:$0xe] }
 0x114   : > { %v2068_v44 = vor.u32 %v2067_v61, %v2063_v13 }
 0x115   : > { %v2300_v38 = vpop.f32.mrf.mxu0 }
 0x116   : > { %v1634_v24 = vpop.f32.mrf.mxu3  ;;  %4515 = vmatmul.msk.bf16.gmra.mxu2 %vm676_vm3, %v1253_v30  ;;  %v975_v59 = vpop.f32.mrf.mxu1  ;;  %v4680_v30 = vld [vmem:[%s5497_s18 + $0x98] sm:$0x1] }
 0x117   : > { %v1710_v35 = vadd.f32 %v1634_v24, %v1411_v39  ;;  %v976_v36 = vadd.f32 %v975_v59, %v5921_v7  ;;  %v1174_v7 = vsel %vm5704_vm6, %v4488_v5, %v1173_v29  ;;  %v1177_v39 = vsel %vm5704_vm6, %v1175_v8, %v1176_v54  ;;  %v4681_v29 = vld [vmem:[%s5497_s18 + $0x9c] sm:$0xf] }
 0x118   : > { %v2071_v45 = vshll.u32 %v4680_v30, 16  ;;  %v1234_v28 = vunpack.c.l.b16 %v1177_v39  ;;  %v2059_v24 = vrot.slane %v2058_v33, 4  ;;  %v2069_v59 = vrot.slane %v2068_v44, 4 }
 0x119   : > { %v1338_v6 = vpop.f32.mrf.mxu2  ;;  %v6023_v15 = vadd.f32 %v2300_v38, %v1710_v35  ;;  %v2076_v23 = vshrl.u32 %v4681_v29, 16  ;;  %v2079_v9 = vshll.u32 %v4681_v29, 16  ;;  %v2089_v39 = vshrl.u32 %v4682_v62, 16 }
 0x11a   : > { %v1412_v18 = vadd.f32 %v1338_v6, %v974_v57  ;;  %v1233_v57 = vunpack.c.l.b16 %v1174_v7  ;;  %v2073_v35 = vrot.slane %v2071_v45, 5  ;;  %v5282_v6 = vld [vmem:[%s5497_s18 + $0x94] sm:$0xf]  ;;  %v2085_v7 = vshll.u32 %v4682_v62, 16 }
 0x11b   : > { %4639 = vmatmul.msk.bf16.gmra.mxu3 %vm676_vm3, %v5078_v60  ;;  %v2078_v33 = vrot.slane %v2076_v23, 4  ;;  %v2081_v44 = vrot.slane %v2079_v9, 5 }
 0x11c   : > { %v1254_v8 = vpack.c.b16 %v1234_v28, %v1233_v57  ;;  %v2074_v30 = vsel %vm5509_vm2, %v2069_v59, %v2073_v35  ;;  %v4489_v57 = vrot.slane %v1055_v10, 9 }
 0x11d   : > { %v2303_v3 = vpop.f32.mrf.mxu0  ;;  %v2082_v62 = vor.u32 %v2081_v44, %v2078_v33  ;;  %v4685_v33 = vld [vmem:[%s5497_s18 + $0xac] sm:$0xf] }
 0x11e   : > { %v1637_v51 = vpop.f32.mrf.mxu3  ;;  %v978_v38 = vpop.f32.mrf.mxu1 }
 0x11f   : > { %v1711_v0 = vadd.f32 %v1637_v51, %v1412_v18  ;;  %v979_v53 = vadd.f32 %v978_v38, %v5947_v16  ;;  %v1180_v16 = vrot.slane %v5282_v6, 5  ;;  %v2064_v18 = vsel %vm5509_vm2, %v2059_v24, %v2063_v13  ;;  %v5079_v51 = vld [vmem:[%s5497_s18 + $0x90] sm:$0xff] }
 0x120   : > { %4715 = vmatmul.msk.bf16.gmra.mxu0 %vm676_vm3, %v2218_v21  ;;  %v5283_v21 = vld [vmem:[%s5497_s18 + $0x98] sm:$0x1]  ;;  %v2198_v28 = vunpack.c.l.b16 %v2064_v18  ;;  %v2091_v24 = vrot.slane %v2089_v39, 4  ;;  %v5058_v6 = vld [vmem:[%s5497_s18 + $0x90] sm:$0xff] }
 0x121   : > { %v1340_v54 = vpop.f32.mrf.mxu2  ;;  %4472 = vmatmul.msk.bf16.gmra.mxu1 %vm676_vm3, %v5057_v41  ;;  %v6036_v60 = vadd.f32 %v2303_v3, %v1711_v0  ;;  %v1183_v3 = vrot.slane %v5283_v21, 5  ;;  %v1182_v13 = vrot.slane %v1180_v16, 4  ;;  %v2199_v0 = vunpack.c.l.b16 %v2074_v30 }
 0x122   : > { %v1413_v5 = vadd.f32 %v1340_v54, %v976_v36  ;;  %v2087_v54 = vrot.slane %v2085_v7, 5  ;;  %v2083_v21 = vrot.slane %v2082_v62, 4  ;;  %v5285_v62 = vld [vmem:[%s5497_s18 + $0xa4] sm:$0x1] }
 0x123   : > { %v2219_v23 = vpack.c.b16 %v2199_v0, %v2198_v28  ;;  %v5284_v28 = vld [vmem:[%s5497_s18 + $0xa0] sm:$0xf] }
 0x124   : > { %v2092_v10 = vor.u32 %v2091_v24, %v2087_v54  ;;  %v1187_v0 = vrot.slane %v5284_v28, 5  ;;  %v1056_v24 = vld [vmem:[%s5497_s18 + $0x9c] sm:$0xe] }
 0x125   : > { %v2305_v61 = vpop.f32.mrf.mxu0 }
 0x126   : > { %v1639_v36 = vpop.f32.mrf.mxu3  ;;  %4516 = vmatmul.msk.bf16.gmra.mxu2 %vm676_vm3, %v1254_v8  ;;  %v980_v41 = vpop.f32.mrf.mxu1  ;;  %v4683_v8 = vld [vmem:[%s5497_s18 + $0xa4] sm:$0x1] }
 0x127   : > { %v1712_v45 = vadd.f32 %v1639_v36, %v1413_v5  ;;  %v981_v38 = vadd.f32 %v980_v41, %v5965_v22  ;;  %v1181_v5 = vsel %vm5704_vm6, %v4489_v57, %v1180_v16  ;;  %v1184_v22 = vsel %vm5704_vm6, %v1182_v13, %v1183_v3  ;;  %v4684_v36 = vld [vmem:[%s5497_s18 + $0xa8] sm:$0xf] }
 0x128   : > { %v2095_v18 = vshll.u32 %v4683_v8, 16  ;;  %v1236_v7 = vunpack.c.l.b16 %v1184_v22  ;;  %v2093_v3 = vrot.slane %v2092_v10, 4  ;;  %v2100_v57 = vshrl.u32 %v4684_v36, 16 }
 0x129   : > { %v1343_v29 = vpop.f32.mrf.mxu2  ;;  %v6049_v59 = vadd.f32 %v2305_v61, %v1712_v45  ;;  %v2088_v13 = vsel %vm5509_vm2, %v2083_v21, %v2087_v54  ;;  %v2113_v8 = vshrl.u32 %v4685_v33, 16 }
 0x12a   : > { %v1414_v35 = vadd.f32 %v1343_v29, %v979_v53  ;;  %v1235_v53 = vunpack.c.l.b16 %v1181_v5  ;;  %v2097_v41 = vrot.slane %v2095_v18, 5  ;;  %v2103_v29 = vshll.u32 %v4684_v36, 16  ;;  %v5080_v18 = vld [vmem:[%s5497_s18 + $0x9c] sm:$0xff] }
 0x12b   : > { %4640 = vmatmul.msk.bf16.gmra.mxu3 %vm676_vm3, %v5079_v51  ;;  %v2102_v54 = vrot.slane %v2100_v57, 4 }
 0x12c   : > { %v1255_v51 = vpack.c.b16 %v1236_v7, %v1235_v53  ;;  %v2098_v22 = vsel %vm5509_vm2, %v2093_v3, %v2097_v41  ;;  %v1189_v53 = vrot.slane %v1187_v0, 4  ;;  %v2105_v7 = vrot.slane %v2103_v29, 5  ;;  %v4686_v41 = vld [vmem:[%s5497_s18 + $0xb0] sm:$0x1] }
 0x12d   : > { %v2308_v9 = vpop.f32.mrf.mxu0  ;;  %v2201_v21 = vunpack.c.l.b16 %v2098_v22 }
 0x12e   : > { %v1642_v61 = vpop.f32.mrf.mxu3  ;;  %v983_v30 = vpop.f32.mrf.mxu1  ;;  %v2106_v57 = vor.u32 %v2105_v7, %v2102_v54 }
 0x12f   : > { %v1713_v39 = vadd.f32 %v1642_v61, %v1414_v35  ;;  %v2109_v35 = vshll.u32 %v4685_v33, 16  ;;  %v4490_v61 = vrot.slane %v1056_v24, 9  ;;  %v5059_v24 = vld [vmem:[%s5497_s18 + $0x9c] sm:$0xff] }
 0x130   : > { %4716 = vmatmul.msk.bf16.gmra.mxu0 %vm676_vm3, %v2219_v23  ;;  %v1190_v23 = vrot.slane %v5285_v62, 5 }
 0x131   : > { %v1345_v16 = vpop.f32.mrf.mxu2  ;;  %4473 = vmatmul.msk.bf16.gmra.mxu1 %vm676_vm3, %v5058_v6  ;;  %v6062_v44 = vadd.f32 %v2308_v9, %v1713_v39  ;;  %v2200_v9 = vunpack.c.l.b16 %v2088_v13  ;;  %v984_v39 = vadd.f32 %v983_v30, %v5788_v46  ;;  %v2111_v36 = vrot.slane %v2109_v35, 5 }
 0x132   : > { %v1415_v45 = vadd.f32 %v1345_v16, %v981_v38  ;;  %v2115_v16 = vrot.slane %v2113_v8, 4  ;;  %v2119_v13 = vshll.u32 %v4686_v41, 16 }
 0x133   : > { %v2220_v46 = vpack.c.b16 %v2201_v21, %v2200_v9  ;;  %v4687_v9 = vld [vmem:[%s5497_s18 + $0xb4] sm:$0xf] }
 0x134   : > { %v2116_v30 = vor.u32 %v2115_v16, %v2111_v36  ;;  %v2121_v54 = vrot.slane %v2119_v13, 5  ;;  %v2127_v41 = vshll.u32 %v4687_v9, 16 }
 0x135   : > { %v2310_v5 = vpop.f32.mrf.mxu0 }
 0x136   : > { %v1644_v38 = vpop.f32.mrf.mxu3  ;;  %4517 = vmatmul.msk.bf16.gmra.mxu2 %vm676_vm3, %v1255_v51  ;;  %v985_v6 = vpop.f32.mrf.mxu1  ;;  %v1191_v51 = vsel %vm5704_vm6, %v1189_v53, %v1190_v23  ;;  %v2117_v23 = vrot.slane %v2116_v30, 4 }
 0x137   : > { %v1714_v10 = vadd.f32 %v1644_v38, %v1415_v45  ;;  %v1188_v45 = vsel %vm5704_vm6, %v4490_v61, %v1187_v0  ;;  %v1238_v22 = vunpack.c.l.b16 %v1191_v51  ;;  %v2107_v38 = vrot.slane %v2106_v57, 4  ;;  %v5287_v57 = vld [vmem:[%s5497_s18 + $0xb0] sm:$0x1] }
 0x138   : > { %v986_v0 = vadd.f32 %v985_v6, %v5804_v31  ;;  %v2124_v31 = vshrl.u32 %v4687_v9, 16  ;;  %v2122_v6 = vsel %vm5509_vm2, %v2117_v23, %v2121_v54 }
 0x139   : > { %v1348_v3 = vpop.f32.mrf.mxu2  ;;  %v6075_v33 = vadd.f32 %v2310_v5, %v1714_v10  ;;  %v1237_v5 = vunpack.c.l.b16 %v1188_v45  ;;  %v2112_v16 = vsel %vm5509_vm2, %v2107_v38, %v2111_v36 }
 0x13a   : > { %v1416_v28 = vadd.f32 %v1348_v3, %v984_v39  ;;  %v5286_v39 = vld [vmem:[%s5497_s18 + $0xac] sm:$0xf]  ;;  %v1057_v3 = vld [vmem:[%s5497_s18 + $0xa8] sm:$0xe] }
 0x13b   : > { %4641 = vmatmul.msk.bf16.gmra.mxu3 %vm676_vm3, %v5080_v18  ;;  %v4688_v18 = vld [vmem:[%s5497_s18 + $0xb8] sm:$0xf]  ;;  %v1256_v7 = vpack.c.b16 %v1238_v22, %v1237_v5  ;;  %v1194_v21 = vrot.slane %v5286_v39, 5  ;;  %v2202_v5 = vunpack.c.l.b16 %v2112_v16  ;;  %v2203_v22 = vunpack.c.l.b16 %v2122_v6  ;;  %v4689_v39 = vld [vmem:[%s5497_s18 + $0xbc] sm:$0x1] }
 0x13c   : > { %v2137_v45 = vshrl.u32 %v4688_v18, 16 }
 0x13d   : > { %v2313_v29 = vpop.f32.mrf.mxu0 }
 0x13e   : > { %v1647_v35 = vpop.f32.mrf.mxu3  ;;  %v988_v8 = vpop.f32.mrf.mxu1  ;;  %v2139_v54 = vrot.slane %v2137_v45, 4 }
 0x13f   : > { %v1715_v62 = vadd.f32 %v1647_v35, %v1416_v28  ;;  %v2133_v28 = vshll.u32 %v4688_v18, 16  ;;  %v5081_v35 = vld [vmem:[%s5497_s18 + $0xa8] sm:$0xff]  ;;  %v989_v38 = vadd.f32 %v988_v8, %v5824_v55  ;;  %v2221_v55 = vpack.c.b16 %v2203_v22, %v2202_v5 }
 0x140   : > { %4717 = vmatmul.msk.bf16.gmra.mxu0 %vm676_vm3, %v2220_v46  ;;  %v1197_v46 = vrot.slane %v5287_v57, 5 }
 0x141   : > { %v1350_v10 = vpop.f32.mrf.mxu2  ;;  %4474 = vmatmul.msk.bf16.gmra.mxu1 %vm676_vm3, %v5059_v24  ;;  %v6088_v61 = vadd.f32 %v2313_v29, %v1715_v62  ;;  %v4491_v29 = vrot.slane %v1057_v3, 9  ;;  %v1196_v24 = vrot.slane %v1194_v21, 4  ;;  %v2126_v62 = vrot.slane %v2124_v31, 4  ;;  %v5060_v31 = vld [vmem:[%s5497_s18 + $0xa8] sm:$0xff] }
 0x142   : > { %v1417_v53 = vadd.f32 %v1350_v10, %v986_v0  ;;  %v2129_v0 = vrot.slane %v2127_v41, 5  ;;  %v6100_v23 = vrot.slane %v2133_v28, 5  ;;  %v2143_v28 = vshll.u32 %v4689_v39, 16 }
 0x144   : > { %v2130_v8 = vor.u32 %v2129_v0, %v2126_v62  ;;  %v2140_v16 = vor.u32 %v2139_v54, %v6100_v23  ;;  %v2145_v62 = vrot.slane %v2143_v28, 5 }
 0x145   : > { %v2315_v51 = vpop.f32.mrf.mxu0 }
 0x146   : > { %v1649_v30 = vpop.f32.mrf.mxu3  ;;  %4518 = vmatmul.msk.bf16.gmra.mxu2 %vm676_vm3, %v1256_v7  ;;  %v990_v13 = vpop.f32.mrf.mxu1  ;;  %v1195_v7 = vsel %vm5704_vm6, %v4491_v29, %v1194_v21  ;;  %v4690_v21 = vld [vmem:[%s5497_s18 + $0xc0] sm:$0xf]  ;;  %v5288_v29 = vld [vmem:[%s5497_s18 + $0x10] sm:$0xf] }
 0x147   : > { %v1716_v36 = vadd.f32 %v1649_v30, %v1417_v53  ;;  %v1198_v53 = vsel %vm5704_vm6, %v1196_v24, %v1197_v46  ;;  %v1239_v6 = vunpack.c.l.b16 %v1195_v7  ;;  %v4691_v30 = vld [vmem:[%s5497_s18 + $0xc4] sm:$0xf]  ;;  %v2471_v46 = vrot.slane %v5288_v29, 5 }
 0x148   : > { %v1240_v41 = vunpack.c.l.b16 %v1198_v53  ;;  %v991_v24 = vadd.f32 %v990_v13, %v5841_v25  ;;  %v2151_v0 = vshll.u32 %v4690_v21, 16  ;;  %v5289_v53 = vld [vmem:[%s5497_s18 + $0xb8] sm:$0xf]  ;;  %v1058_v13 = vld [vmem:[%s5497_s18 + $0xb4] sm:$0xe] }
 0x149   : > { %v1353_v9 = vpop.f32.mrf.mxu2  ;;  %v6102_v10 = vadd.f32 %v2315_v51, %v1716_v36  ;;  %v2131_v36 = vrot.slane %v2130_v8, 4  ;;  %v1201_v39 = vrot.slane %v5289_v53, 5  ;;  %v2473_v8 = vrot.slane %v2471_v46, 4  ;;  %v5082_v53 = vld [vmem:[%s5497_s18 + $0xb4] sm:$0xff] }
 0x14a   : > { %v1418_v18 = vadd.f32 %v1353_v9, %v989_v38  ;;  %v1257_v22 = vpack.c.b16 %v1240_v41, %v1239_v6  ;;  %v2148_v38 = vshrl.u32 %v4690_v21, 16  ;;  %v2157_v9 = vshll.u32 %v4691_v30, 16 }
 0x14b   : > { %4642 = vmatmul.msk.bf16.gmra.mxu3 %vm676_vm3, %v5081_v35  ;;  %v2141_v35 = vrot.slane %v2140_v16, 4  ;;  %v5291_v16 = vld [vmem:[%s5497_s18 + $0x14] sm:$0x1]  ;;  %v2136_v6 = vsel %vm5509_vm2, %v2131_v36, %v6100_v23 }
 0x14c   : > { %v2150_v21 = vrot.slane %v2148_v38, 4  ;;  %v2204_v36 = vunpack.c.l.b16 %v2136_v6 }
 0x14d   : > { %v2318_v3 = vpop.f32.mrf.mxu0  ;;  %v2146_v41 = vsel %vm5509_vm2, %v2141_v35, %v2145_v62 }
 0x14e   : > { %v1652_v45 = vpop.f32.mrf.mxu3  ;;  %v993_v51 = vpop.f32.mrf.mxu1  ;;  %v2205_v35 = vunpack.c.l.b16 %v2146_v41 }
 0x14f   : > { %v1717_v57 = vadd.f32 %v1652_v45, %v1418_v18  ;;  %v2161_v18 = vshrl.u32 %v4691_v30, 16  ;;  %v2474_v45 = vrot.slane %v5291_v16, 5  ;;  %v6130_v30 = vrot.slane %v2157_v9, 5 }
 0x150   : > { %4718 = vmatmul.msk.bf16.gmra.mxu0 %vm676_vm3, %v2221_v55  ;;  %v5290_v55 = vld [vmem:[%s5497_s18 + $0xbc] sm:$0x1]  ;;  %v1203_v16 = vrot.slane %v1201_v39, 4  ;;  %v994_v23 = vadd.f32 %v993_v51, %v5861_v50 }
 0x151   : > { %v1355_v5 = vpop.f32.mrf.mxu2  ;;  %4475 = vmatmul.msk.bf16.gmra.mxu1 %vm676_vm3, %v5060_v31  ;;  %v6118_v7 = vadd.f32 %v2318_v3, %v1717_v57  ;;  %v1204_v25 = vrot.slane %v5290_v55, 5  ;;  %v2153_v57 = vrot.slane %v2151_v0, 5  ;;  %v2163_v29 = vrot.slane %v2161_v18, 4 }
 0x152   : > { %v1419_v54 = vadd.f32 %v1355_v5, %v991_v24  ;;  %v4721_v24 = vld [vmem:[%s5497_s18 + $0xc] sm:$0xe]  ;;  %v4492_v55 = vrot.slane %v1058_v13, 9  ;;  %v2475_v0 = vsel %vm5704_vm6, %v2473_v8, %v2474_v45  ;;  %v4905_v8 = vld [vmem:[%s5497_s18 + $0x18] sm:$0xf] }
 0x153   : > { %6905 = vst [vmem:[#allocation5_spill] sm:$0xff] %v6118_v7  ;;  %v4737_v7 = vrot.slane %v4721_v24, 9  ;;  %v2154_v9 = vor.u32 %v2153_v57, %v2150_v21  ;;  %v2587_v13 = vunpack.c.l.b16 %v2475_v0  ;;  %v1205_v51 = vsel %vm5704_vm6, %v1203_v16, %v1204_v25  ;;  %v5061_v21 = vld [vmem:[%s5497_s18 + $0xb4] sm:$0xff]  ;;  %v6153_v57 = vld [vmem:[%s5497_s18 + $0x1c] sm:$0xf] }
 0x154   : > { %v1202_v50 = vsel %vm5704_vm6, %v4492_v55, %v1201_v39  ;;  %v2164_v6 = vor.u32 %v2163_v29, %v6130_v30  ;;  %v1242_v39 = vunpack.c.l.b16 %v1205_v51  ;;  %v3163_v16 = vshrl.u32 %v4905_v8, 16 }
 0x155   : > { %v2320_v31 = vpop.f32.mrf.mxu0  ;;  %v2472_v38 = vsel %vm5704_vm6, %v4737_v7, %v2471_v46  ;;  %v2222_v46 = vpack.c.b16 %v2205_v35, %v2204_v36  ;;  %v2155_v55 = vrot.slane %v2154_v9, 4  ;;  %v3166_v29 = vshll.u32 %v4905_v8, 16 }
 0x156   : > { %v1654_v3 = vpop.f32.mrf.mxu3  ;;  %4519 = vmatmul.msk.bf16.gmra.mxu2 %vm676_vm3, %v1257_v22  ;;  %v995_v28 = vpop.f32.mrf.mxu1  ;;  %v4692_v22 = vld [vmem:[%s5497_s18 + $0xc8] sm:$0x1]  ;;  %v2586_v18 = vunpack.c.l.b16 %v2472_v38  ;;  %v2165_v25 = vrot.slane %v2164_v6, 4  ;;  %v3176_v35 = vshrl.u32 %v6153_v57, 16  ;;  %v3165_v9 = vrot.slane %v3163_v16, 4 }
 0x157   : > { %v1718_v5 = vadd.f32 %v1654_v3, %v1419_v54  ;;  %v2167_v7 = vshll.u32 %v4692_v22, 16  ;;  %v996_v36 = vadd.f32 %v995_v28, %v5881_v14  ;;  %v2160_v14 = vsel %vm5509_vm2, %v2155_v55, %v6130_v30  ;;  %v4907_v6 = vld [vmem:[%s5497_s18 + $0x20] sm:$0x1]  ;;  %v4908_v16 = vld [vmem:[%s5497_s18 + $0x24] sm:$0xf] }
 0x158   : > { %v6146_v41 = vpack.c.b16 %v2587_v13, %v2586_v18  ;;  %v3168_v18 = vrot.slane %v3166_v29, 5  ;;  %v3182_v55 = vshll.u32 %v4907_v6, 16  ;;  %v6173_v29 = vld [vmem:[%s5497_s18 + $0x28] sm:$0xf] }
 0x159   : > { %v1358_v62 = vpop.f32.mrf.mxu2  ;;  %v6149_v45 = vadd.f32 %v2320_v31, %v1718_v5  ;;  %v2169_v31 = vrot.slane %v2167_v7, 5  ;;  %v3172_v5 = vshll.u32 %v6153_v57, 16 }
 0x15a   : > { %v1420_v54 = vadd.f32 %v1358_v62, %v994_v23  ;;  %v1241_v23 = vunpack.c.l.b16 %v1202_v50  ;;  %v3178_v50 = vrot.slane %v3176_v35, 4  ;;  %v3184_v35 = vrot.slane %v3182_v55, 5 }
 0x15b   : > { %4643 = vmatmul.msk.bf16.gmra.mxu3 %vm676_vm3, %v5082_v53  ;;  %v2170_v28 = vsel %vm5509_vm2, %v2165_v25, %v2169_v31  ;;  %v3174_v13 = vrot.slane %v3172_v5, 5 }
 0x15c   : > { %v1258_v0 = vpack.c.b16 %v1242_v39, %v1241_v23  ;;  %v3169_v23 = vor.u32 %v3168_v18, %v3165_v9  ;;  %v3190_v9 = vshll.u32 %v4908_v16, 16  ;;  %v3196_v18 = vshll.u32 %v6173_v29, 16 }
 0x15d   : > { %v2323_v3 = vpop.f32.mrf.mxu0  ;;  %v3179_v39 = vor.u32 %v3178_v50, %v3174_v13 }
 0x15e   : > { %v1657_v24 = vpop.f32.mrf.mxu3  ;;  %v998_v53 = vpop.f32.mrf.mxu1  ;;  %v3170_v31 = vrot.slane %v3169_v23, 4 }
 0x15f   : > { %v1719_v62 = vadd.f32 %v1657_v24, %v1420_v54  ;;  %v2207_v24 = vunpack.c.l.b16 %v2170_v28  ;;  %v999_v30 = vadd.f32 %v998_v53, %v5907_v56  ;;  %v3180_v5 = vrot.slane %v3179_v39, 4 }
 0x160   : > { %4719 = vmatmul.msk.bf16.gmra.mxu0 %vm676_vm3, %v2222_v46 }
 0x161   : > { %v1360_v22 = vpop.f32.mrf.mxu2  ;;  %4476 = vmatmul.msk.bf16.gmra.mxu1 %vm676_vm3, %v5061_v21  ;;  %v6160_v54 = vadd.f32 %v2323_v3, %v1719_v62  ;;  %v5083_v3 = vld [vmem:[%s5497_s18 + $0xc0] sm:$0xff]  ;;  %v2206_v21 = vunpack.c.l.b16 %v2160_v14  ;;  %v3200_v14 = vshrl.u32 %v6173_v29, 16  ;;  %v3185_v39 = vsel %vm5509_vm2, %v3180_v5, %v3184_v35  ;;  %v6199_v35 = vld [vmem:[%s5497_s18 + $0x2c] sm:$0x1] }
 0x162   : > { %v1421_v38 = vadd.f32 %v1360_v22, %v996_v36  ;;  %v4981_v22 = vld [vmem:[%s5497_s18 + $0x18] sm:$0xe]  ;;  %v3552_v5 = vunpack.c.l.b16 %v3185_v39 }
 0x163   : > { %v2223_v36 = vpack.c.b16 %v2207_v24, %v2206_v21  ;;  %v5293_v21 = vld [vmem:[%s5497_s18 + $0x20] sm:$0x1] }
 0x164   : > { %v2481_v24 = vrot.slane %v5293_v21, 5 }
 0x165   : > { %v2325_v51 = vpop.f32.mrf.mxu0 }
 0x166   : > { %v1659_v46 = vpop.f32.mrf.mxu3  ;;  %4520 = vmatmul.msk.bf16.gmra.mxu2 %vm676_vm3, %v1258_v0  ;;  %v1000_v7 = vpop.f32.mrf.mxu1  ;;  %v3187_v0 = vshrl.u32 %v4908_v16, 16 }
 0x167   : > { %v1720_v8 = vadd.f32 %v1659_v46, %v1421_v38  ;;  %v3846_v38 = vrot.slane %v6153_v57, 5  ;;  %v5292_v46 = vld [vmem:[%s5497_s18 + $0x1c] sm:$0xf]  ;;  %v3175_v57 = vsel %vm5509_vm2, %v3170_v31, %v3174_v13  ;;  %v3202_v13 = vrot.slane %v3200_v14, 4 }
 0x169   : > { %v1363_v62 = vpop.f32.mrf.mxu2  ;;  %v6178_v56 = vadd.f32 %v2325_v51, %v1720_v8  ;;  %v4997_v51 = vrot.slane %v4981_v22, 9  ;;  %v4722_v8 = vld [vmem:[%s5497_s18 + $0x18] sm:$0xe]  ;;  %v3848_v55 = vrot.slane %v3846_v38, 4 }
 0x16a   : > { %v1422_v25 = vadd.f32 %v1363_v62, %v999_v30  ;;  %v1001_v30 = vadd.f32 %v1000_v7, %v5936_v27  ;;  %v3849_v62 = vrot.slane %v4907_v6, 5  ;;  %v5090_v22 = vld [vmem:[%s5497_s18 + $0x18] sm:$0xff]  ;;  %v3551_v7 = vunpack.c.l.b16 %v3175_v57 }
 0x16b   : > { %4644 = vmatmul.msk.bf16.gmra.mxu3 %vm676_vm3, %v5083_v3  ;;  %6906 = vst [vmem:[#allocation6_spill] sm:$0xff] %v6178_v56  ;;  %v2478_v3 = vrot.slane %v5292_v46, 5  ;;  %v6193_v46 = vrot.slane %v3196_v18, 5  ;;  %v3847_v56 = vsel %vm5704_vm6, %v4997_v51, %v3846_v38  ;;  %v3206_v38 = vshll.u32 %v6199_v35, 16 }
 0x16c   : > { %v3583_v51 = vpack.c.b16 %v3552_v5, %v3551_v7  ;;  %v5294_v7 = vld [vmem:[%s5497_s18 + $0x28] sm:$0xf] }
 0x16d   : > { %v2328_v53 = vpop.f32.mrf.mxu0  ;;  %v2480_v21 = vrot.slane %v2478_v3, 4  ;;  %v2485_v5 = vrot.slane %v5294_v7, 5 }
 0x16e   : > { %v1662_v28 = vpop.f32.mrf.mxu3  ;;  %v1003_v50 = vpop.f32.mrf.mxu1 }
 0x16f   : > { %v1721_v23 = vadd.f32 %v1662_v28, %v1422_v25  ;;  %v3189_v25 = vrot.slane %v3187_v0, 4  ;;  %v3192_v28 = vrot.slane %v3190_v9, 5  ;;  %v2482_v14 = vsel %vm5704_vm6, %v2480_v21, %v2481_v24  ;;  %v6218_v21 = vld [vmem:[%s5497_s18 + $0x34] sm:$0xf] }
 0x170   : > { %4720 = vmatmul.msk.bf16.gmra.mxu0 %vm676_vm3, %v2223_v36  ;;  %v4738_v36 = vrot.slane %v4722_v8, 9  ;;  %v1004_v8 = vadd.f32 %v1003_v50, %v5806_v34 }
 0x171   : > { %v1365_v16 = vpop.f32.mrf.mxu2  ;;  %4765 = vmatmul.msk.bf16.vlgmr.msra.gmra.mxu1 %vm676_vm3, %v6146_v41  ;;  %v6196_v27 = vadd.f32 %v2328_v53, %v1721_v23  ;;  %v3850_v41 = vsel %vm5704_vm6, %v3848_v55, %v3849_v62  ;;  %v3193_v0 = vor.u32 %v3192_v28, %v3189_v25  ;;  %v3203_v23 = vor.u32 %v3202_v13, %v6193_v46  ;;  %v4982_v13 = vld [vmem:[%s5497_s18 + $0x24] sm:$0xe] }
 0x172   : > { %v1423_v31 = vadd.f32 %v1365_v16, %v1001_v30  ;;  %v2479_v53 = vsel %vm5704_vm6, %v4738_v36, %v2478_v3  ;;  %v3961_v30 = vunpack.c.l.b16 %v3847_v56  ;;  %v3962_v39 = vunpack.c.l.b16 %v3850_v41 }
 0x173   : > { %v2588_v62 = vunpack.c.l.b16 %v2479_v53  ;;  %v2589_v3 = vunpack.c.l.b16 %v2482_v14  ;;  %v3194_v25 = vrot.slane %v3193_v0, 4  ;;  %v3204_v24 = vrot.slane %v3203_v23, 4 }
 0x174   : > { %v3208_v28 = vrot.slane %v3206_v38, 5  ;;  %v3853_v36 = vrot.slane %v6173_v29, 5  ;;  %v4998_v14 = vrot.slane %v4982_v13, 9  ;;  %v4723_v29 = vld [vmem:[%s5497_s18 + $0x24] sm:$0xe] }
 0x175   : > { %v2330_v6 = vpop.f32.mrf.mxu0  ;;  %v2619_v50 = vpack.c.b16 %v2589_v3, %v2588_v62 }
 0x176   : > { %v1664_v9 = vpop.f32.mrf.mxu3  ;;  %4889 = vmatmul.msk.bf16.vlgmr.msra.gmra.mxu2 %vm676_vm3, %v5090_v22  ;;  %v1005_v18 = vpop.f32.mrf.mxu1  ;;  %v4911_v22 = vld [vmem:[%s5497_s18 + $0x30] sm:$0xf]  ;;  %v3209_v53 = vsel %vm5509_vm2, %v3204_v24, %v3208_v28  ;;  %v5091_v28 = vld [vmem:[%s5497_s18 + $0x24] sm:$0xff] }
 0x177   : > { %v1722_v57 = vadd.f32 %v1664_v9, %v1423_v31  ;;  %v3993_v31 = vpack.c.b16 %v3962_v39, %v3961_v30  ;;  %v3199_v9 = vsel %vm5509_vm2, %v3194_v25, %v6193_v46  ;;  %v3211_v23 = vshrl.u32 %v4911_v22, 16  ;;  %v5295_v39 = vld [vmem:[%s5497_s18 + $0x2c] sm:$0x1] }
 0x178   : > { %v3855_v30 = vrot.slane %v3853_v36, 4  ;;  %v3856_v46 = vrot.slane %v6199_v35, 5  ;;  %v3553_v3 = vunpack.c.l.b16 %v3199_v9  ;;  %v2487_v25 = vrot.slane %v2485_v5, 4 }
 0x179   : > { %v1368_v55 = vpop.f32.mrf.mxu2  ;;  %v6220_v34 = vadd.f32 %v2330_v6, %v1722_v57  ;;  %v3214_v6 = vshll.u32 %v4911_v22, 16  ;;  %v3220_v57 = vshll.u32 %v6218_v21, 16  ;;  %v3554_v13 = vunpack.c.l.b16 %v3209_v53 }
 0x17a   : > { %v1424_v16 = vadd.f32 %v1368_v55, %v1004_v8  ;;  %v1006_v8 = vadd.f32 %v1005_v18, %v5827_v1  ;;  %v2488_v55 = vrot.slane %v5295_v39, 5  ;;  %v3854_v22 = vsel %vm5704_vm6, %v4998_v14, %v3853_v36 }
 0x17b   : > { %4965 = vmatmul.msk.bf16.vlgmr.msra.gmra.mxu3 %vm676_vm3, %v3583_v51  ;;  %v3224_v51 = vshrl.u32 %v6218_v21, 16  ;;  %v3213_v1 = vrot.slane %v3211_v23, 4  ;;  %v3216_v18 = vrot.slane %v3214_v6, 5  ;;  %v6241_v35 = vrot.slane %v3220_v57, 5 }
 0x17c   : > { %v2489_v53 = vsel %vm5704_vm6, %v2487_v25, %v2488_v55  ;;  %v3963_v14 = vunpack.c.l.b16 %v3854_v22  ;;  %v4983_v22 = vld [vmem:[%s5497_s18 + $0x30] sm:$0xe] }
 0x17d   : > { %v2333_v56 = vpop.f32.mrf.mxu0  ;;  %v3226_v7 = vrot.slane %v3224_v51, 4  ;;  %v3217_v57 = vor.u32 %v3216_v18, %v3213_v1 }
 0x17e   : > { %v1667_v41 = vpop.f32.mrf.mxu3  ;;  %v1008_v0 = vpop.f32.mrf.mxu1 }
 0x17f   : > { %v1723_v38 = vadd.f32 %v1667_v41, %v1424_v16  ;;  %v4739_v16 = vrot.slane %v4723_v29, 9  ;;  %v6250_v29 = vld [vmem:[%s5497_s18 + $0x38] sm:$0x1]  ;;  %v3227_v51 = vor.u32 %v3226_v7, %v6241_v35  ;;  %v3218_v25 = vrot.slane %v3217_v57, 4 }
 0x180   : > { %5025 = vmatmul.msk.bf16.vlgmr.msra.gmra.mxu0 %vm676_vm3, %v3993_v31 }
 0x181   : > { %v1370_v62 = vpop.f32.mrf.mxu2  ;;  %4766 = vmatmul.msk.bf16.gmra.mxu1 %vm676_vm3, %v2619_v50  ;;  %v6239_v31 = vadd.f32 %v2333_v56, %v1723_v38  ;;  %v3857_v50 = vsel %vm5704_vm6, %v3855_v30, %v3856_v46  ;;  %v2486_v9 = vsel %vm5704_vm6, %v4739_v16, %v2485_v5  ;;  %v3584_v56 = vpack.c.b16 %v3554_v13, %v3553_v3  ;;  %v6258_v16 = vld [vmem:[%s5497_s18 + $0x40] sm:$0xf] }
 0x182   : > { %v1425_v24 = vadd.f32 %v1370_v62, %v1006_v8  ;;  %v3964_v6 = vunpack.c.l.b16 %v3857_v50  ;;  %v1009_v5 = vadd.f32 %v1008_v0, %v5844_v17  ;;  %v2590_v8 = vunpack.c.l.b16 %v2486_v9  ;;  %v4914_v62 = vld [vmem:[%s5497_s18 + $0x3c] sm:$0xf] }
 0x183   : > { %v2591_v30 = vunpack.c.l.b16 %v2489_v53  ;;  %v3230_v46 = vshll.u32 %v6250_v29, 16  ;;  %v3860_v17 = vrot.slane %v6218_v21, 5  ;;  %v3235_v18 = vshrl.u32 %v4914_v62, 16 }
 0x184   : > { %v3994_v3 = vpack.c.b16 %v3964_v6, %v3963_v14  ;;  %v3238_v7 = vshll.u32 %v4914_v62, 16  ;;  %v3244_v50 = vshll.u32 %v6258_v16, 16  ;;  %v3248_v9 = vshrl.u32 %v6258_v16, 16  ;;  %v5297_v6 = vld [vmem:[%s5497_s18 + $0x38] sm:$0x1] }
 0x185   : > { %v2335_v41 = vpop.f32.mrf.mxu0  ;;  %v3232_v13 = vrot.slane %v3230_v46, 5  ;;  %v2495_v57 = vrot.slane %v5297_v6, 5  ;;  %v3863_v21 = vrot.slane %v6250_v29, 5  ;;  %v3862_v46 = vrot.slane %v3860_v17, 4  ;;  %v6285_v6 = vld [vmem:[%s5497_s18 + $0x44] sm:$0x1] }
 0x186   : > { %v1669_v36 = vpop.f32.mrf.mxu3  ;;  %4890 = vmatmul.msk.bf16.gmra.mxu2 %vm676_vm3, %v5091_v28  ;;  %v1010_v23 = vpop.f32.mrf.mxu1  ;;  %v2620_v28 = vpack.c.b16 %v2591_v30, %v2590_v8  ;;  %v3223_v8 = vsel %vm5509_vm2, %v3218_v25, %v6241_v35  ;;  %v3240_v62 = vrot.slane %v3238_v7, 5  ;;  %v6279_v29 = vrot.slane %v3244_v50, 5 }
 0x187   : > { %v1724_v38 = vadd.f32 %v1669_v36, %v1425_v24  ;;  %v3228_v24 = vrot.slane %v3227_v51, 4  ;;  %v3555_v35 = vunpack.c.l.b16 %v3223_v8 }
 0x189   : > { %v1373_v39 = vpop.f32.mrf.mxu2  ;;  %v6263_v0 = vadd.f32 %v2335_v41, %v1724_v38  ;;  %v4724_v41 = vld [vmem:[%s5497_s18 + $0x30] sm:$0xe]  ;;  %v1011_v38 = vadd.f32 %v1010_v23, %v5865_v52  ;;  %v3233_v30 = vsel %vm5509_vm2, %v3228_v24, %v3232_v13 }
 0x18a   : > { %v1426_v55 = vadd.f32 %v1373_v39, %v1009_v5  ;;  %v4999_v5 = vrot.slane %v4983_v22, 9  ;;  %v3250_v22 = vrot.slane %v3248_v9, 4  ;;  %v4740_v52 = vrot.slane %v4724_v41, 9 }
 0x18b   : > { %4966 = vmatmul.msk.bf16.gmra.mxu3 %vm676_vm3, %v3584_v56  ;;  %v5296_v56 = vld [vmem:[%s5497_s18 + $0x34] sm:$0xf]  ;;  %v3556_v25 = vunpack.c.l.b16 %v3233_v30 }
 0x18c   : > { %v2492_v14 = vrot.slane %v5296_v56, 5  ;;  %v3861_v13 = vsel %vm5704_vm6, %v4999_v5, %v3860_v17  ;;  %v3254_v17 = vshll.u32 %v6285_v6, 16 }
 0x18d   : > { %v2338_v1 = vpop.f32.mrf.mxu0  ;;  %v3585_v41 = vpack.c.b16 %v3556_v25, %v3555_v35  ;;  %v5298_v25 = vld [vmem:[%s5497_s18 + $0x40] sm:$0xf] }
 0x18e   : > { %v1672_v53 = vpop.f32.mrf.mxu3  ;;  %v1013_v36 = vpop.f32.mrf.mxu1  ;;  %v2494_v23 = vrot.slane %v2492_v14, 4 }
 0x18f   : > { %v1725_v51 = vadd.f32 %v1672_v53, %v1426_v55  ;;  %v3237_v55 = vrot.slane %v3235_v18, 4  ;;  %v5092_v53 = vld [vmem:[%s5497_s18 + $0x30] sm:$0xff] }
 0x190   : > { %5026 = vmatmul.msk.bf16.gmra.mxu0 %vm676_vm3, %v3994_v3  ;;  %v2496_v9 = vsel %vm5704_vm6, %v2494_v23, %v2495_v57  ;;  %v6304_v23 = vld [vmem:[%s5497_s18 + $0x4c] sm:$0xf] }
 0x191   : > { %v1375_v39 = vpop.f32.mrf.mxu2  ;;  %4767 = vmatmul.msk.bf16.gmra.mxu1 %vm676_vm3, %v2620_v28  ;;  %v6282_v56 = vadd.f32 %v2338_v1, %v1725_v51  ;;  %v3864_v28 = vsel %vm5704_vm6, %v3862_v46, %v3863_v21  ;;  %v3241_v18 = vor.u32 %v3240_v62, %v3237_v55  ;;  %v2493_v1 = vsel %vm5704_vm6, %v4740_v52, %v2492_v14 }
 0x192   : > { %v1427_v3 = vadd.f32 %v1375_v39, %v1011_v38  ;;  %v3251_v51 = vor.u32 %v3250_v22, %v6279_v29  ;;  %v1014_v21 = vadd.f32 %v1013_v36, %v5888_v20  ;;  %v3965_v38 = vunpack.c.l.b16 %v3861_v13  ;;  %v4984_v22 = vld [vmem:[%s5497_s18 + $0x3c] sm:$0xe] }
 0x193   : > { %v3966_v8 = vunpack.c.l.b16 %v3864_v28  ;;  %v2592_v46 = vunpack.c.l.b16 %v2493_v1  ;;  %v2593_v14 = vunpack.c.l.b16 %v2496_v9  ;;  %v3242_v55 = vrot.slane %v3241_v18, 4 }
 0x194   : > { %v3252_v57 = vrot.slane %v3251_v51, 4  ;;  %v3256_v62 = vrot.slane %v3254_v17, 5  ;;  %v3867_v52 = vrot.slane %v6258_v16, 5  ;;  %v2499_v13 = vrot.slane %v5298_v25, 5  ;;  %v4725_v16 = vld [vmem:[%s5497_s18 + $0x3c] sm:$0xe] }
 0x195   : > { %v2340_v24 = vpop.f32.mrf.mxu0  ;;  %v2621_v35 = vpack.c.b16 %v2593_v14, %v2592_v46  ;;  %v5000_v9 = vrot.slane %v4984_v22, 9 }
 0x196   : > { %v1674_v7 = vpop.f32.mrf.mxu3  ;;  %4891 = vmatmul.msk.bf16.gmra.mxu2 %vm676_vm3, %v5092_v53  ;;  %v1015_v50 = vpop.f32.mrf.mxu1  ;;  %v4917_v53 = vld [vmem:[%s5497_s18 + $0x48] sm:$0xf]  ;;  %v3257_v1 = vsel %vm5509_vm2, %v3252_v57, %v3256_v62  ;;  %v5093_v62 = vld [vmem:[%s5497_s18 + $0x3c] sm:$0xff] }
 0x197   : > { %v1726_v5 = vadd.f32 %v1674_v7, %v1427_v3  ;;  %v3995_v3 = vpack.c.b16 %v3966_v8, %v3965_v38  ;;  %v3247_v7 = vsel %vm5509_vm2, %v3242_v55, %v6279_v29  ;;  %v3259_v51 = vshrl.u32 %v4917_v53, 16  ;;  %v5299_v8 = vld [vmem:[%s5497_s18 + $0x44] sm:$0x1] }
 0x198   : > { %v3869_v38 = vrot.slane %v3867_v52, 4  ;;  %v3870_v29 = vrot.slane %v6285_v6, 5  ;;  %v3557_v14 = vunpack.c.l.b16 %v3247_v7  ;;  %v2501_v55 = vrot.slane %v2499_v13, 4 }
 0x199   : > { %v1378_v30 = vpop.f32.mrf.mxu2  ;;  %v6306_v20 = vadd.f32 %v2340_v24, %v1726_v5  ;;  %v3262_v24 = vshll.u32 %v4917_v53, 16  ;;  %v3268_v5 = vshll.u32 %v6304_v23, 16  ;;  %v3558_v22 = vunpack.c.l.b16 %v3257_v1 }
 0x19a   : > { %v1428_v39 = vadd.f32 %v1378_v30, %v1014_v21  ;;  %v1016_v21 = vadd.f32 %v1015_v50, %v5909_v58  ;;  %v2502_v30 = vrot.slane %v5299_v8, 5  ;;  %v3868_v53 = vsel %vm5704_vm6, %v5000_v9, %v3867_v52 }
 0x19b   : > { %4967 = vmatmul.msk.bf16.gmra.mxu3 %vm676_vm3, %v3585_v41  ;;  %v3272_v41 = vshrl.u32 %v6304_v23, 16  ;;  %v3261_v58 = vrot.slane %v3259_v51, 4  ;;  %v3264_v50 = vrot.slane %v3262_v24, 5  ;;  %v6327_v6 = vrot.slane %v3268_v5, 5 }
 0x19c   : > { %v2503_v1 = vsel %vm5704_vm6, %v2501_v55, %v2502_v30  ;;  %v3967_v9 = vunpack.c.l.b16 %v3868_v53  ;;  %v4985_v53 = vld [vmem:[%s5497_s18 + $0x48] sm:$0xe] }
 0x19d   : > { %v2343_v36 = vpop.f32.mrf.mxu0  ;;  %v3274_v25 = vrot.slane %v3272_v41, 4  ;;  %v3265_v5 = vor.u32 %v3264_v50, %v3261_v58 }
 0x19e   : > { %v1677_v28 = vpop.f32.mrf.mxu3  ;;  %v1018_v18 = vpop.f32.mrf.mxu1 }
 0x19f   : > { %v1727_v17 = vadd.f32 %v1677_v28, %v1428_v39  ;;  %v4741_v39 = vrot.slane %v4725_v16, 9  ;;  %v6336_v16 = vld [vmem:[%s5497_s18 + $0x50] sm:$0x1]  ;;  %v3275_v41 = vor.u32 %v3274_v25, %v6327_v6  ;;  %v3266_v55 = vrot.slane %v3265_v5, 4 }
 0x1a0   : > { %5027 = vmatmul.msk.bf16.gmra.mxu0 %vm676_vm3, %v3995_v3 }
 0x1a1   : > { %v1380_v46 = vpop.f32.mrf.mxu2  ;;  %4768 = vmatmul.msk.bf16.gmra.mxu1 %vm676_vm3, %v2621_v35  ;;  %v6325_v3 = vadd.f32 %v2343_v36, %v1727_v17  ;;  %v3871_v35 = vsel %vm5704_vm6, %v3869_v38, %v3870_v29  ;;  %v2500_v7 = vsel %vm5704_vm6, %v4741_v39, %v2499_v13  ;;  %v3586_v36 = vpack.c.b16 %v3558_v22, %v3557_v14  ;;  %v6344_v39 = vld [vmem:[%s5497_s18 + $0x58] sm:$0xf] }
 0x1a2   : > { %v1429_v57 = vadd.f32 %v1380_v46, %v1016_v21  ;;  %v3968_v24 = vunpack.c.l.b16 %v3871_v35  ;;  %v1019_v13 = vadd.f32 %v1018_v18, %v5939_v48  ;;  %v2594_v21 = vunpack.c.l.b16 %v2500_v7  ;;  %v4920_v46 = vld [vmem:[%s5497_s18 + $0x54] sm:$0xf] }
 0x1a3   : > { %v2595_v38 = vunpack.c.l.b16 %v2503_v1  ;;  %v3278_v29 = vshll.u32 %v6336_v16, 16  ;;  %v3874_v48 = vrot.slane %v6304_v23, 5  ;;  %v3283_v50 = vshrl.u32 %v4920_v46, 16 }
 0x1a4   : > { %v3996_v14 = vpack.c.b16 %v3968_v24, %v3967_v9  ;;  %v3286_v25 = vshll.u32 %v4920_v46, 16  ;;  %v3292_v35 = vshll.u32 %v6344_v39, 16  ;;  %v3296_v7 = vshrl.u32 %v6344_v39, 16  ;;  %v5301_v24 = vld [vmem:[%s5497_s18 + $0x50] sm:$0x1] }
 0x1a5   : > { %v2345_v28 = vpop.f32.mrf.mxu0  ;;  %v3280_v22 = vrot.slane %v3278_v29, 5  ;;  %v2509_v5 = vrot.slane %v5301_v24, 5  ;;  %v3877_v23 = vrot.slane %v6336_v16, 5  ;;  %v3876_v29 = vrot.slane %v3874_v48, 4  ;;  %v6371_v24 = vld [vmem:[%s5497_s18 + $0x5c] sm:$0x1] }
 0x1a6   : > { %v1679_v52 = vpop.f32.mrf.mxu3  ;;  %4892 = vmatmul.msk.bf16.gmra.mxu2 %vm676_vm3, %v5093_v62  ;;  %v1020_v51 = vpop.f32.mrf.mxu1  ;;  %v2622_v62 = vpack.c.b16 %v2595_v38, %v2594_v21  ;;  %v3271_v21 = vsel %vm5509_vm2, %v3266_v55, %v6327_v6  ;;  %v3288_v46 = vrot.slane %v3286_v25, 5  ;;  %v6365_v16 = vrot.slane %v3292_v35, 5 }
 0x1a7   : > { %v1728_v17 = vadd.f32 %v1679_v52, %v1429_v57  ;;  %v3276_v57 = vrot.slane %v3275_v41, 4  ;;  %v3559_v6 = vunpack.c.l.b16 %v3271_v21 }
 0x1a9   : > { %v1383_v8 = vpop.f32.mrf.mxu2  ;;  %v6349_v18 = vadd.f32 %v2345_v28, %v1728_v17  ;;  %v4726_v28 = vld [vmem:[%s5497_s18 + $0x48] sm:$0xe]  ;;  %v1021_v17 = vadd.f32 %v1020_v51, %v5954_v11  ;;  %v3281_v38 = vsel %vm5509_vm2, %v3276_v57, %v3280_v22 }
 0x1aa   : > { %v1430_v30 = vadd.f32 %v1383_v8, %v1019_v13  ;;  %v5001_v13 = vrot.slane %v4985_v53, 9  ;;  %v3298_v53 = vrot.slane %v3296_v7, 4  ;;  %v4742_v11 = vrot.slane %v4726_v28, 9 }
 0x1ab   : > { %4968 = vmatmul.msk.bf16.gmra.mxu3 %vm676_vm3, %v3586_v36  ;;  %v5300_v36 = vld [vmem:[%s5497_s18 + $0x4c] sm:$0xf]  ;;  %v3560_v55 = vunpack.c.l.b16 %v3281_v38 }
 0x1ac   : > { %v2506_v9 = vrot.slane %v5300_v36, 5  ;;  %v3875_v22 = vsel %vm5704_vm6, %v5001_v13, %v3874_v48  ;;  %v3302_v48 = vshll.u32 %v6371_v24, 16 }
 0x1ad   : > { %v2348_v58 = vpop.f32.mrf.mxu0  ;;  %v3587_v28 = vpack.c.b16 %v3560_v55, %v3559_v6  ;;  %v5302_v55 = vld [vmem:[%s5497_s18 + $0x58] sm:$0xf] }
 0x1ae   : > { %v1682_v1 = vpop.f32.mrf.mxu3  ;;  %v1023_v52 = vpop.f32.mrf.mxu1  ;;  %v2508_v51 = vrot.slane %v2506_v9, 4 }
 0x1af   : > { %v1729_v41 = vadd.f32 %v1682_v1, %v1430_v30  ;;  %v3285_v30 = vrot.slane %v3283_v50, 4  ;;  %v5094_v1 = vld [vmem:[%s5497_s18 + $0x48] sm:$0xff] }
 0x1b0   : > { %5028 = vmatmul.msk.bf16.gmra.mxu0 %vm676_vm3, %v3996_v14  ;;  %v2510_v7 = vsel %vm5704_vm6, %v2508_v51, %v2509_v5  ;;  %v6390_v51 = vld [vmem:[%s5497_s18 + $0x64] sm:$0xf] }
 0x1b1   : > { %v1385_v8 = vpop.f32.mrf.mxu2  ;;  %4769 = vmatmul.msk.bf16.gmra.mxu1 %vm676_vm3, %v2622_v62  ;;  %v6368_v36 = vadd.f32 %v2348_v58, %v1729_v41  ;;  %v3878_v62 = vsel %vm5704_vm6, %v3876_v29, %v3877_v23  ;;  %v3289_v50 = vor.u32 %v3288_v46, %v3285_v30  ;;  %v2507_v58 = vsel %vm5704_vm6, %v4742_v11, %v2506_v9 }
 0x1b2   : > { %v1431_v14 = vadd.f32 %v1385_v8, %v1021_v17  ;;  %v3299_v41 = vor.u32 %v3298_v53, %v6365_v16  ;;  %v1024_v23 = vadd.f32 %v1023_v52, %v5818_v47  ;;  %v3969_v17 = vunpack.c.l.b16 %v3875_v22  ;;  %v4986_v53 = vld [vmem:[%s5497_s18 + $0x54] sm:$0xe] }
 0x1b3   : > { %v3970_v21 = vunpack.c.l.b16 %v3878_v62  ;;  %v2596_v29 = vunpack.c.l.b16 %v2507_v58  ;;  %v2597_v9 = vunpack.c.l.b16 %v2510_v7  ;;  %v3290_v30 = vrot.slane %v3289_v50, 4 }
 0x1b4   : > { %v3300_v5 = vrot.slane %v3299_v41, 4  ;;  %v3304_v46 = vrot.slane %v3302_v48, 5  ;;  %v3881_v11 = vrot.slane %v6344_v39, 5  ;;  %v2513_v22 = vrot.slane %v5302_v55, 5  ;;  %v4727_v39 = vld [vmem:[%s5497_s18 + $0x54] sm:$0xe] }
 0x1b5   : > { %v2350_v57 = vpop.f32.mrf.mxu0  ;;  %v2623_v6 = vpack.c.b16 %v2597_v9, %v2596_v29  ;;  %v5002_v7 = vrot.slane %v4986_v53, 9 }
 0x1b6   : > { %v1684_v25 = vpop.f32.mrf.mxu3  ;;  %4893 = vmatmul.msk.bf16.gmra.mxu2 %vm676_vm3, %v5094_v1  ;;  %v1025_v35 = vpop.f32.mrf.mxu1  ;;  %v4923_v1 = vld [vmem:[%s5497_s18 + $0x60] sm:$0xf]  ;;  %v3305_v58 = vsel %vm5509_vm2, %v3300_v5, %v3304_v46  ;;  %v5095_v46 = vld [vmem:[%s5497_s18 + $0x54] sm:$0xff] }
 0x1b7   : > { %v1730_v13 = vadd.f32 %v1684_v25, %v1431_v14  ;;  %v3997_v14 = vpack.c.b16 %v3970_v21, %v3969_v17  ;;  %v3295_v25 = vsel %vm5509_vm2, %v3290_v30, %v6365_v16  ;;  %v3307_v41 = vshrl.u32 %v4923_v1, 16  ;;  %v5303_v21 = vld [vmem:[%s5497_s18 + $0x5c] sm:$0x1] }
 0x1b8   : > { %v3883_v17 = vrot.slane %v3881_v11, 4  ;;  %v3884_v16 = vrot.slane %v6371_v24, 5  ;;  %v3561_v9 = vunpack.c.l.b16 %v3295_v25  ;;  %v2515_v30 = vrot.slane %v2513_v22, 4 }
 0x1b9   : > { %v1388_v38 = vpop.f32.mrf.mxu2  ;;  %v6392_v47 = vadd.f32 %v2350_v57, %v1730_v13  ;;  %v3310_v57 = vshll.u32 %v4923_v1, 16  ;;  %v3316_v13 = vshll.u32 %v6390_v51, 16  ;;  %v3562_v53 = vunpack.c.l.b16 %v3305_v58 }
 0x1ba   : > { %v1432_v8 = vadd.f32 %v1388_v38, %v1024_v23  ;;  %v1026_v23 = vadd.f32 %v1025_v35, %v5837_v2  ;;  %v2516_v38 = vrot.slane %v5303_v21, 5  ;;  %v3882_v1 = vsel %vm5704_vm6, %v5002_v7, %v3881_v11 }
 0x1bb   : > { %4969 = vmatmul.msk.bf16.gmra.mxu3 %vm676_vm3, %v3587_v28  ;;  %v3320_v28 = vshrl.u32 %v6390_v51, 16  ;;  %v3309_v2 = vrot.slane %v3307_v41, 4  ;;  %v3312_v35 = vrot.slane %v3310_v57, 5  ;;  %v6413_v24 = vrot.slane %v3316_v13, 5 }
 0x1bc   : > { %v2517_v58 = vsel %vm5704_vm6, %v2515_v30, %v2516_v38  ;;  %v3971_v7 = vunpack.c.l.b16 %v3882_v1  ;;  %v4987_v1 = vld [vmem:[%s5497_s18 + $0x60] sm:$0xe] }
 0x1bd   : > { %v2353_v52 = vpop.f32.mrf.mxu0  ;;  %v3322_v55 = vrot.slane %v3320_v28, 4  ;;  %v3313_v13 = vor.u32 %v3312_v35, %v3309_v2 }
 0x1be   : > { %v1687_v62 = vpop.f32.mrf.mxu3  ;;  %v1028_v50 = vpop.f32.mrf.mxu1 }
 0x1bf   : > { %v1731_v48 = vadd.f32 %v1687_v62, %v1432_v8  ;;  %v4743_v8 = vrot.slane %v4727_v39, 9  ;;  %v6422_v39 = vld [vmem:[%s5497_s18 + $0x68] sm:$0x1]  ;;  %v3323_v28 = vor.u32 %v3322_v55, %v6413_v24  ;;  %v3314_v30 = vrot.slane %v3313_v13, 4 }
 0x1c0   : > { %5029 = vmatmul.msk.bf16.gmra.mxu0 %vm676_vm3, %v3997_v14 }
 0x1c1   : > { %v1390_v29 = vpop.f32.mrf.mxu2  ;;  %4770 = vmatmul.msk.bf16.gmra.mxu1 %vm676_vm3, %v2623_v6  ;;  %v6411_v14 = vadd.f32 %v2353_v52, %v1731_v48  ;;  %v3885_v6 = vsel %vm5704_vm6, %v3883_v17, %v3884_v16  ;;  %v2514_v25 = vsel %vm5704_vm6, %v4743_v8, %v2513_v22  ;;  %v3588_v52 = vpack.c.b16 %v3562_v53, %v3561_v9  ;;  %v6430_v8 = vld [vmem:[%s5497_s18 + $0x70] sm:$0xf] }
 0x1c2   : > { %v1433_v5 = vadd.f32 %v1390_v29, %v1026_v23  ;;  %v3972_v57 = vunpack.c.l.b16 %v3885_v6  ;;  %v1029_v22 = vadd.f32 %v1028_v50, %v5858_v37  ;;  %v2598_v23 = vunpack.c.l.b16 %v2514_v25  ;;  %v4926_v29 = vld [vmem:[%s5497_s18 + $0x6c] sm:$0xf] }
 0x1c3   : > { %v2599_v17 = vunpack.c.l.b16 %v2517_v58  ;;  %v3326_v16 = vshll.u32 %v6422_v39, 16  ;;  %v3888_v37 = vrot.slane %v6390_v51, 5  ;;  %v3331_v35 = vshrl.u32 %v4926_v29, 16 }
 0x1c4   : > { %v3998_v9 = vpack.c.b16 %v3972_v57, %v3971_v7  ;;  %v3334_v55 = vshll.u32 %v4926_v29, 16  ;;  %v3340_v6 = vshll.u32 %v6430_v8, 16  ;;  %v3344_v25 = vshrl.u32 %v6430_v8, 16  ;;  %v5305_v57 = vld [vmem:[%s5497_s18 + $0x68] sm:$0x1] }
 0x1c5   : > { %v2355_v62 = vpop.f32.mrf.mxu0  ;;  %v3328_v53 = vrot.slane %v3326_v16, 5  ;;  %v2523_v13 = vrot.slane %v5305_v57, 5  ;;  %v3891_v51 = vrot.slane %v6422_v39, 5  ;;  %v3890_v16 = vrot.slane %v3888_v37, 4 }
 0x1c6   : > { %v1689_v11 = vpop.f32.mrf.mxu3  ;;  %4894 = vmatmul.msk.bf16.gmra.mxu2 %vm676_vm3, %v5095_v46  ;;  %v1030_v41 = vpop.f32.mrf.mxu1  ;;  %v2624_v46 = vpack.c.b16 %v2599_v17, %v2598_v23  ;;  %v3319_v23 = vsel %vm5509_vm2, %v3314_v30, %v6413_v24  ;;  %v3336_v29 = vrot.slane %v3334_v55, 5  ;;  %v3342_v39 = vrot.slane %v3340_v6, 5  ;;  %v6455_v30 = vld [vmem:[%s5497_s18 + $0x74] sm:$0x1] }
 0x1c7   : > { %v1732_v48 = vadd.f32 %v1689_v11, %v1433_v5  ;;  %v3324_v5 = vrot.slane %v3323_v28, 4  ;;  %v3563_v57 = vunpack.c.l.b16 %v3319_v23 }
 0x1c9   : > { %v1393_v21 = vpop.f32.mrf.mxu2  ;;  %v6435_v50 = vadd.f32 %v2355_v62, %v1732_v48  ;;  %v4728_v62 = vld [vmem:[%s5497_s18 + $0x60] sm:$0xe]  ;;  %v1031_v48 = vadd.f32 %v1030_v41, %v5877_v4  ;;  %v3329_v17 = vsel %vm5509_vm2, %v3324_v5, %v3328_v53 }
 0x1ca   : > { %v1434_v38 = vadd.f32 %v1393_v21, %v1029_v22  ;;  %v5003_v22 = vrot.slane %v4987_v1, 9  ;;  %v3346_v1 = vrot.slane %v3344_v25, 4  ;;  %v3564_v24 = vunpack.c.l.b16 %v3329_v17 }
 0x1cb   : > { %4970 = vmatmul.msk.bf16.gmra.mxu3 %vm676_vm3, %v3588_v52  ;;  %6907 = vst [vmem:[#allocation7_spill] sm:$0xff] %v6435_v50  ;;  %v5304_v52 = vld [vmem:[%s5497_s18 + $0x64] sm:$0xf] }
 0x1cc   : > { %v2520_v7 = vrot.slane %v5304_v52, 5  ;;  %v4744_v52 = vrot.slane %v4728_v62, 9  ;;  %v3889_v5 = vsel %vm5704_vm6, %v5003_v22, %v3888_v37  ;;  %v3347_v25 = vor.u32 %v3346_v1, %v3342_v39  ;;  %v4929_v1 = vld [vmem:[%s5497_s18 + $0x78] sm:$0xf] }
 0x1cd   : > { %v2358_v2 = vpop.f32.mrf.mxu0  ;;  %v3589_v22 = vpack.c.b16 %v3564_v24, %v3563_v57  ;;  %v3973_v62 = vunpack.c.l.b16 %v3889_v5 }
 0x1ce   : > { %v1692_v58 = vpop.f32.mrf.mxu3  ;;  %v1033_v11 = vpop.f32.mrf.mxu1  ;;  %v2522_v4 = vrot.slane %v2520_v7, 4 }
 0x1cf   : > { %v1733_v28 = vadd.f32 %v1692_v58, %v1434_v38  ;;  %v3333_v38 = vrot.slane %v3331_v35, 4 }
 0x1d0   : > { %5030 = vmatmul.msk.bf16.gmra.mxu0 %vm676_vm3, %v3998_v9  ;;  %v5096_v9 = vld [vmem:[%s5497_s18 + $0x60] sm:$0xff]  ;;  %v2524_v6 = vsel %vm5704_vm6, %v2522_v4, %v2523_v13  ;;  %v4988_v13 = vld [vmem:[%s5497_s18 + $0x6c] sm:$0xe] }
 0x1d1   : > { %v1395_v21 = vpop.f32.mrf.mxu2  ;;  %4771 = vmatmul.msk.bf16.gmra.mxu1 %vm676_vm3, %v2624_v46  ;;  %v6452_v41 = vadd.f32 %v2358_v2, %v1733_v28  ;;  %v3892_v46 = vsel %vm5704_vm6, %v3890_v16, %v3891_v51  ;;  %v3337_v53 = vor.u32 %v3336_v29, %v3333_v38  ;;  %v2521_v2 = vsel %vm5704_vm6, %v4744_v52, %v2520_v7  ;;  %v6473_v52 = vld [vmem:[%s5497_s18 + $0x7c] sm:$0xf] }
 0x1d2   : > { %v1435_v58 = vadd.f32 %v1395_v21, %v1031_v48  ;;  %v3350_v28 = vshll.u32 %v6455_v30, 16  ;;  %v1034_v51 = vadd.f32 %v1033_v11, %v5896_v42  ;;  %v3974_v48 = vunpack.c.l.b16 %v3892_v46 }
 0x1d3   : > { %v2600_v17 = vunpack.c.l.b16 %v2521_v2  ;;  %v2601_v16 = vunpack.c.l.b16 %v2524_v6  ;;  %v3338_v7 = vrot.slane %v3337_v53, 4  ;;  %v3348_v38 = vrot.slane %v3347_v25, 4  ;;  %v5306_v2 = vld [vmem:[%s5497_s18 + $0x70] sm:$0xf] }
 0x1d4   : > { %v3352_v29 = vrot.slane %v3350_v28, 5  ;;  %v5004_v57 = vrot.slane %v4988_v13, 9  ;;  %v2527_v6 = vrot.slane %v5306_v2, 5  ;;  %v3355_v25 = vshrl.u32 %v4929_v1, 16 }
 0x1d5   : > { %v2360_v50 = vpop.f32.mrf.mxu0  ;;  %v2625_v4 = vpack.c.b16 %v2601_v16, %v2600_v17  ;;  %v3343_v46 = vsel %vm5509_vm2, %v3338_v7, %v3342_v39  ;;  %v3358_v28 = vshll.u32 %v4929_v1, 16  ;;  %v5097_v7 = vld [vmem:[%s5497_s18 + $0x6c] sm:$0xff] }
 0x1d6   : > { %v1694_v35 = vpop.f32.mrf.mxu3  ;;  %4895 = vmatmul.msk.bf16.gmra.mxu2 %vm676_vm3, %v5096_v9  ;;  %v1035_v55 = vpop.f32.mrf.mxu1  ;;  %v3895_v9 = vrot.slane %v6430_v8, 5  ;;  %v3353_v53 = vsel %vm5509_vm2, %v3348_v38, %v3352_v29  ;;  %v2529_v38 = vrot.slane %v2527_v6, 4  ;;  %v5307_v29 = vld [vmem:[%s5497_s18 + $0x74] sm:$0x1] }
 0x1d7   : > { %v1734_v37 = vadd.f32 %v1694_v35, %v1435_v58  ;;  %v3999_v58 = vpack.c.b16 %v3974_v48, %v3973_v62  ;;  %v4729_v35 = vld [vmem:[%s5497_s18 + $0x6c] sm:$0xe]  ;;  %v3565_v48 = vunpack.c.l.b16 %v3343_v46  ;;  %v2530_v13 = vrot.slane %v5307_v29, 5  ;;  %v6500_v46 = vld [vmem:[%s5497_s18 + $0x80] sm:$0x1] }
 0x1d8   : > { %v3897_v39 = vrot.slane %v3895_v9, 4  ;;  %v3896_v17 = vsel %vm5704_vm6, %v5004_v57, %v3895_v9  ;;  %v4745_v16 = vrot.slane %v4729_v35, 9 }
 0x1d9   : > { %v1398_v23 = vpop.f32.mrf.mxu2  ;;  %v6475_v42 = vadd.f32 %v2360_v50, %v1734_v37  ;;  %v3364_v50 = vshll.u32 %v6473_v52, 16  ;;  %v3368_v37 = vshrl.u32 %v6473_v52, 16  ;;  %v2531_v2 = vsel %vm5704_vm6, %v2529_v38, %v2530_v13  ;;  %v4989_v38 = vld [vmem:[%s5497_s18 + $0x78] sm:$0xe] }
 0x1da   : > { %v1436_v21 = vadd.f32 %v1398_v23, %v1034_v51  ;;  %v3898_v51 = vrot.slane %v6455_v30, 5  ;;  %v3566_v23 = vunpack.c.l.b16 %v3353_v53  ;;  %v3975_v53 = vunpack.c.l.b16 %v3896_v17  ;;  %v6512_v17 = vld [vmem:[%s5497_s18 + $0x88] sm:$0xf] }
 0x1db   : > { %4971 = vmatmul.msk.bf16.gmra.mxu3 %vm676_vm3, %v3589_v22  ;;  %v1036_v22 = vadd.f32 %v1035_v55, %v5928_v12  ;;  %v3357_v12 = vrot.slane %v3355_v25, 4  ;;  %v3360_v55 = vrot.slane %v3358_v28, 5  ;;  %v6495_v30 = vrot.slane %v3364_v50, 5 }
 0x1dc   : > { %v3590_v57 = vpack.c.b16 %v3566_v23, %v3565_v48  ;;  %v2528_v35 = vsel %vm5704_vm6, %v4745_v16, %v2527_v6  ;;  %v4932_v48 = vld [vmem:[%s5497_s18 + $0x84] sm:$0xf] }
 0x1dd   : > { %v2363_v11 = vpop.f32.mrf.mxu0  ;;  %v3361_v28 = vor.u32 %v3360_v55, %v3357_v12  ;;  %v3382_v55 = vshll.u32 %v4932_v48, 16 }
 0x1de   : > { %v1697_v24 = vpop.f32.mrf.mxu3  ;;  %v1038_v5 = vpop.f32.mrf.mxu1 }
 0x1df   : > { %v1735_v8 = vadd.f32 %v1697_v24, %v1436_v21  ;;  %v3362_v16 = vrot.slane %v3361_v28, 4 }
 0x1e0   : > { %5031 = vmatmul.msk.bf16.gmra.mxu0 %vm676_vm3, %v3999_v58  ;;  %v3370_v58 = vrot.slane %v3368_v37, 4  ;;  %v1039_v37 = vadd.f32 %v1038_v5, %v5950_v63  ;;  %v3902_v63 = vrot.slane %v6473_v52, 5  ;;  %v3379_v5 = vshrl.u32 %v4932_v48, 16 }
 0x1e1   : > { %v1400_v62 = vpop.f32.mrf.mxu2  ;;  %4772 = vmatmul.msk.bf16.gmra.mxu1 %vm676_vm3, %v2625_v4  ;;  %v6493_v1 = vadd.f32 %v2363_v11, %v1735_v8  ;;  %v3899_v4 = vsel %vm5704_vm6, %v3897_v39, %v3898_v51  ;;  %v2602_v51 = vunpack.c.l.b16 %v2528_v35  ;;  %v5308_v35 = vld [vmem:[%s5497_s18 + $0x7c] sm:$0xf]  ;;  %v3367_v52 = vsel %vm5509_vm2, %v3362_v16, %v6495_v30 }
 0x1e2   : > { %v1437_v21 = vadd.f32 %v1400_v62, %v1036_v22  ;;  %v3976_v8 = vunpack.c.l.b16 %v3899_v4  ;;  %v3371_v50 = vor.u32 %v3370_v58, %v6495_v30  ;;  %v3374_v22 = vshll.u32 %v6500_v46, 16  ;;  %v5098_v16 = vld [vmem:[%s5497_s18 + $0x78] sm:$0xff] }
 0x1e3   : > { %v2603_v62 = vunpack.c.l.b16 %v2531_v2  ;;  %v3388_v58 = vshll.u32 %v6512_v17, 16  ;;  %v3392_v4 = vshrl.u32 %v6512_v17, 16  ;;  %v2534_v2 = vrot.slane %v5308_v35, 5 }
 0x1e4   : > { %v4000_v6 = vpack.c.b16 %v3976_v8, %v3975_v53  ;;  %v4730_v53 = vld [vmem:[%s5497_s18 + $0x78] sm:$0xe] }
 0x1e5   : > { %v2365_v24 = vpop.f32.mrf.mxu0  ;;  %v2626_v12 = vpack.c.b16 %v2603_v62, %v2602_v51  ;;  %v4746_v51 = vrot.slane %v4730_v53, 9  ;;  %v3384_v62 = vrot.slane %v3382_v55, 5  ;;  %v3390_v30 = vrot.slane %v3388_v58, 5 }
 0x1e6   : > { %v1699_v9 = vpop.f32.mrf.mxu3  ;;  %4896 = vmatmul.msk.bf16.gmra.mxu2 %vm676_vm3, %v5097_v7  ;;  %v1040_v11 = vpop.f32.mrf.mxu1  ;;  %v3376_v7 = vrot.slane %v3374_v22, 5  ;;  %v3381_v22 = vrot.slane %v3379_v5, 4  ;;  %v3394_v48 = vrot.slane %v3392_v4, 4 }
 0x1e7   : > { %v1736_v25 = vadd.f32 %v1699_v9, %v1437_v21  ;;  %v3372_v21 = vrot.slane %v3371_v50, 4  ;;  %v1041_v28 = vadd.f32 %v1040_v11, %v5967_v40  ;;  %v3567_v40 = vunpack.c.l.b16 %v3367_v52 }
 0x1e8   : > { %v3385_v55 = vor.u32 %v3384_v62, %v3381_v22  ;;  %v3395_v35 = vor.u32 %v3394_v48, %v3390_v30 }
 0x1e9   : > { %v1403_v39 = vpop.f32.mrf.mxu2  ;;  %v6517_v29 = vadd.f32 %v2365_v24, %v1736_v25  ;;  %v5005_v24 = vrot.slane %v4989_v38, 9  ;;  %v3905_v25 = vrot.slane %v6500_v46, 5  ;;  %v3377_v50 = vsel %vm5509_vm2, %v3372_v21, %v3376_v7  ;;  %v5309_v38 = vld [vmem:[%s5497_s18 + $0x80] sm:$0x1]  ;;  %v6539_v21 = vld [vmem:[%s5497_s18 + $0x8c] sm:$0x1] }
 0x1ea   : > { %v1438_v23 = vadd.f32 %v1403_v39, %v1039_v37  ;;  %v3904_v37 = vrot.slane %v3902_v63, 4  ;;  %v2536_v46 = vrot.slane %v2534_v2, 4  ;;  %v3568_v11 = vunpack.c.l.b16 %v3377_v50 }
 0x1eb   : > { %4972 = vmatmul.msk.bf16.gmra.mxu3 %vm676_vm3, %v3590_v57  ;;  %v3903_v5 = vsel %vm5704_vm6, %v5005_v24, %v3902_v63  ;;  %v3386_v22 = vrot.slane %v3385_v55, 4  ;;  %v3396_v62 = vrot.slane %v3395_v35, 4 }
 0x1ec   : > { %v3591_v52 = vpack.c.b16 %v3568_v11, %v3567_v40  ;;  %v3977_v24 = vunpack.c.l.b16 %v3903_v5 }
 0x1ed   : > { %v2368_v13 = vpop.f32.mrf.mxu0  ;;  %v3391_v11 = vsel %vm5509_vm2, %v3386_v22, %v3390_v30  ;;  %v5099_v22 = vld [vmem:[%s5497_s18 + $0x84] sm:$0xff] }
 0x1ee   : > { %v1702_v9 = vpop.f32.mrf.mxu3  ;;  %v6521_v57 = vpop.f32.mrf.mxu1 }
 0x1ef   : > { %v1737_v8 = vadd.f32 %v1702_v9, %v1438_v23 }
 0x1f0   : > { %5032 = vmatmul.msk.bf16.gmra.mxu0 %vm676_vm3, %v4000_v6  ;;  %v2537_v6 = vrot.slane %v5309_v38, 5 }
 0x1f1   : > { %v1405_v39 = vpop.f32.mrf.mxu2  ;;  %4773 = vmatmul.msk.bf16.gmra.mxu1 %vm676_vm3, %v2626_v12  ;;  %v6536_v9 = vadd.f32 %v2368_v13, %v1737_v8  ;;  %v3906_v12 = vsel %vm5704_vm6, %v3904_v37, %v3905_v25  ;;  %v2535_v13 = vsel %vm5704_vm6, %v4746_v51, %v2534_v2  ;;  %v3398_v8 = vshll.u32 %v6539_v21, 16  ;;  %v4935_v2 = vld [vmem:[%s5497_s18 + $0x90] sm:$0xf] }
 0x1f2   : > { %v1439_v23 = vadd.f32 %v1405_v39, %v1041_v28  ;;  %v2538_v53 = vsel %vm5704_vm6, %v2536_v46, %v2537_v6  ;;  %v3978_v25 = vunpack.c.l.b16 %v3906_v12  ;;  %v2604_v50 = vunpack.c.l.b16 %v2535_v13  ;;  %v4990_v39 = vld [vmem:[%s5497_s18 + $0x84] sm:$0xe]  ;;  %v5310_v13 = vld [vmem:[%s5497_s18 + $0x88] sm:$0xf] }
 0x1f3   : > { %v2605_v37 = vunpack.c.l.b16 %v2538_v53  ;;  %v3909_v51 = vrot.slane %v6512_v17, 5  ;;  %v5006_v46 = vrot.slane %v4990_v39, 9  ;;  %v3403_v5 = vshrl.u32 %v4935_v2, 16 }
 0x1f4   : > { %v4001_v48 = vpack.c.b16 %v3978_v25, %v3977_v24  ;;  %v3912_v17 = vrot.slane %v6539_v21, 5  ;;  %v2541_v53 = vrot.slane %v5310_v13, 5  ;;  %v3406_v35 = vshll.u32 %v4935_v2, 16 }
 0x1f5   : > { %v2370_v7 = vpop.f32.mrf.mxu0  ;;  %v2627_v40 = vpack.c.b16 %v2605_v37, %v2604_v50  ;;  %v3569_v24 = vunpack.c.l.b16 %v3391_v11  ;;  %v3910_v21 = vsel %vm5704_vm6, %v5006_v46, %v3909_v51 }
 0x1f6   : > { %v1704_v58 = vpop.f32.mrf.mxu3  ;;  %4897 = vmatmul.msk.bf16.gmra.mxu2 %vm676_vm3, %v5098_v16  ;;  %v2705_v4 = vpop.f32.mrf.mxu1  ;;  %v3400_v16 = vrot.slane %v3398_v8, 5  ;;  %v3911_v8 = vrot.slane %v3909_v51, 4 }
 0x1f7   : > { %v1738_v63 = vadd.f32 %v1704_v58, %v1439_v23  ;;  %v6556_v23 = vld [vmem:[%s5497_s18 + $0x94] sm:$0xf]  ;;  %v2784_v50 = vadd.f32 %v2705_v4, %v5997_v43  ;;  %v6586_v4 = vld [vmem:[%s5497_s18 + $0x98] sm:$0x1] }
 0x1f8   : > { %v3401_v58 = vsel %vm5509_vm2, %v3396_v62, %v3400_v16  ;;  %v3412_v30 = vshll.u32 %v6556_v23, 16  ;;  %v2543_v62 = vrot.slane %v2541_v53, 4  ;;  %v5311_v16 = vld [vmem:[%s5497_s18 + $0x8c] sm:$0x1] }
 0x1f9   : > { %v3002_v28 = vpop.f32.mrf.mxu2  ;;  %v6558_v38 = vadd.f32 %v2370_v7, %v1738_v63  ;;  %v2783_v7 = vadd.f32 %v6521_v57, %v5984_v49  ;;  %v4731_v63 = vld [vmem:[%s5497_s18 + $0x84] sm:$0xe]  ;;  %v3570_v49 = vunpack.c.l.b16 %v3401_v58  ;;  %v3405_v57 = vrot.slane %v3403_v5, 4 }
 0x1fa   : > { %v4747_v39 = vrot.slane %v4731_v63, 9  ;;  %v2544_v2 = vrot.slane %v5311_v16, 5  ;;  %v6582_v51 = vrot.slane %v3412_v30, 5  ;;  %v3979_v5 = vunpack.c.l.b16 %v3910_v21  ;;  %v4938_v16 = vld [vmem:[%s5497_s18 + $0x9c] sm:$0xf] }
 0x1fb   : > { %4973 = vmatmul.msk.bf16.gmra.mxu3 %vm676_vm3, %v3591_v52  ;;  %v3416_v52 = vshrl.u32 %v6556_v23, 16  ;;  %v3082_v25 = vadd.f32 %v3002_v28, %v2783_v7  ;;  %v3913_v28 = vsel %vm5704_vm6, %v3911_v8, %v3912_v17 }
 0x1fc   : > { %v3980_v13 = vunpack.c.l.b16 %v3913_v28  ;;  %v2542_v7 = vsel %vm5704_vm6, %v4747_v39, %v2541_v53  ;;  %v2545_v17 = vsel %vm5704_vm6, %v2543_v62, %v2544_v2  ;;  %v6599_v53 = vld [vmem:[%s5497_s18 + $0xa0] sm:$0xf] }
 0x1fd   : > { %v4078_v6 = vpop.f32.mrf.mxu0  ;;  %v3418_v43 = vrot.slane %v3416_v52, 4  ;;  %v3422_v52 = vshll.u32 %v6586_v4, 16  ;;  %v3436_v28 = vshll.u32 %v6599_v53, 16 }
 0x1fe   : > { %v3668_v12 = vpop.f32.mrf.mxu3  ;;  %v6562_v55 = vpop.f32.mrf.mxu1  ;;  %v4002_v39 = vpack.c.b16 %v3980_v13, %v3979_v5 }
 0x1ff   : > { %v3748_v46 = vadd.f32 %v3668_v12, %v3082_v25  ;;  %v3592_v12 = vpack.c.b16 %v3570_v49, %v3569_v24  ;;  %v3419_v30 = vor.u32 %v3418_v43, %v6582_v51  ;;  %v3424_v24 = vrot.slane %v3422_v52, 5  ;;  %v4991_v49 = vld [vmem:[%s5497_s18 + $0x90] sm:$0xe] }
 0x200   : > { %5033 = vmatmul.msk.bf16.gmra.mxu0 %vm676_vm3, %v4001_v48  ;;  %v3408_v48 = vrot.slane %v3406_v35, 5  ;;  %v3440_v43 = vshrl.u32 %v6599_v53, 16  ;;  %v5007_v13 = vrot.slane %v4991_v49, 9  ;;  %v4732_v52 = vld [vmem:[%s5497_s18 + $0x90] sm:$0xe] }
 0x201   : > { %v3004_v37 = vpop.f32.mrf.mxu2  ;;  %4774 = vmatmul.msk.bf16.gmra.mxu1 %vm676_vm3, %v2627_v40  ;;  %v4158_v21 = vadd.f32 %v4078_v6, %v3748_v46  ;;  %v3420_v2 = vrot.slane %v3419_v30, 4  ;;  %v3430_v6 = vshll.u32 %v4938_v16, 16 }
 0x202   : > { %v3083_v11 = vadd.f32 %v3004_v37, %v2784_v50  ;;  %v3409_v8 = vor.u32 %v3408_v48, %v3405_v57  ;;  %v2606_v37 = vunpack.c.l.b16 %v2542_v7  ;;  %v3916_v48 = vrot.slane %v6556_v23, 5  ;;  %v5312_v23 = vld [vmem:[%s5497_s18 + $0x94] sm:$0xf] }
 0x203   : > { %v3919_v7 = vrot.slane %v6586_v4, 5 }
 0x204   : > { %v3410_v62 = vrot.slane %v3409_v8, 4  ;;  %v2785_v8 = vadd.f32 %v6562_v55, %v6010_v19  ;;  %v3918_v30 = vrot.slane %v3916_v48, 4 }
 0x205   : > { %v4080_v40 = vpop.f32.mrf.mxu0 }
 0x206   : > { %v3670_v58 = vpop.f32.mrf.mxu3  ;;  %4898 = vmatmul.msk.bf16.gmra.mxu2 %vm676_vm3, %v5099_v22  ;;  %v2710_v35 = vpop.f32.mrf.mxu1  ;;  %v2607_v22 = vunpack.c.l.b16 %v2545_v17  ;;  %v2548_v17 = vrot.slane %v5312_v23, 5 }
 0x207   : > { %v3749_v63 = vadd.f32 %v3670_v58, %v3083_v11  ;;  %v3427_v11 = vshrl.u32 %v4938_v16, 16  ;;  %v2786_v19 = vadd.f32 %v2710_v35, %v6023_v15  ;;  %v5100_v16 = vld [vmem:[%s5497_s18 + $0x90] sm:$0xff] }
 0x209   : > { %v4159_v25 = vadd.f32 %v4080_v40, %v3749_v63  ;;  %v3007_v50 = vpop.f32.mrf.mxu2  ;;  %v2628_v40 = vpack.c.b16 %v2607_v22, %v2606_v37  ;;  %v3415_v63 = vsel %vm5509_vm2, %v3410_v62, %v6582_v51  ;;  %v3429_v4 = vrot.slane %v3427_v11, 4  ;;  %v6627_v51 = vld [vmem:[%s5497_s18 + $0xa4] sm:$0x1] }
 0x20a   : > { %v3442_v37 = vrot.slane %v3440_v43, 4  ;;  %v3084_v22 = vadd.f32 %v3007_v50, %v2785_v8  ;;  %v4748_v62 = vrot.slane %v4732_v52, 9  ;;  %v3920_v50 = vsel %vm5704_vm6, %v3918_v30, %v3919_v7 }
 0x20b   : > { %v5116_v57 = vpack.c.bf16 %v4159_v25, %v4158_v21  ;;  %4974 = vmatmul.msk.bf16.gmra.mxu3 %vm676_vm3, %v3592_v12  ;;  %v3425_v12 = vsel %vm5509_vm2, %v3420_v2, %v3424_v24  ;;  %v3432_v21 = vrot.slane %v3430_v6, 5  ;;  %v6622_v25 = vrot.slane %v3436_v28, 5  ;;  %v5313_v2 = vld [vmem:[%s5497_s18 + $0x98] sm:$0x1] }
 0x20c   : > { %v2551_v24 = vrot.slane %v5313_v2, 5  ;;  %v3572_v11 = vunpack.c.l.b16 %v3425_v12  ;;  %v3917_v6 = vsel %vm5704_vm6, %v5007_v13, %v3916_v48  ;;  %v3446_v28 = vshll.u32 %v6627_v51, 16 }
 0x20d   : > { %5117 = vst [vmem:[%s6606_s3] sm:$0xff] %v5116_v57   ;;  %v4083_v46 = vpop.f32.mrf.mxu0  ;;  %v2550_v57 = vrot.slane %v2548_v17, 4  ;;  %v3433_v15 = vor.u32 %v3432_v21, %v3429_v4  ;;  %v3443_v35 = vor.u32 %v3442_v37, %v6622_v25  ;;  %v3981_v12 = vunpack.c.l.b16 %v3917_v6 }
 0x20e   : > { %v3673_v5 = vpop.f32.mrf.mxu3  ;;  %v6609_v58 = vpop.f32.mrf.mxu1  ;;  %v3982_v30 = vunpack.c.l.b16 %v3920_v50  ;;  %v3448_v4 = vrot.slane %v3446_v28, 5  ;;  %v3923_v21 = vrot.slane %v6599_v53, 5  ;;  %v3926_v50 = vrot.slane %v6627_v51, 5  ;;  %v5314_v28 = vld [vmem:[%s5497_s18 + $0xa0] sm:$0xf] }
 0x20f   : > { %v3750_v43 = vadd.f32 %v3673_v5, %v3084_v22  ;;  %v2552_v48 = vsel %vm5704_vm6, %v2550_v57, %v2551_v24  ;;  %v3434_v52 = vrot.slane %v3433_v15, 4  ;;  %v3444_v5 = vrot.slane %v3443_v35, 4  ;;  %v4941_v57 = vld [vmem:[%s5497_s18 + $0xa8] sm:$0xf] }
 0x210   : > { %5034 = vmatmul.msk.bf16.gmra.mxu0 %vm676_vm3, %v4002_v39  ;;  %v3571_v39 = vunpack.c.l.b16 %v3415_v63  ;;  %v2549_v63 = vsel %vm5704_vm6, %v4748_v62, %v2548_v17  ;;  %v2609_v17 = vunpack.c.l.b16 %v2552_v48  ;;  %v4003_v2 = vpack.c.b16 %v3982_v30, %v3981_v12 }
 0x211   : > { %v3009_v55 = vpop.f32.mrf.mxu2  ;;  %4775 = vmatmul.msk.bf16.gmra.mxu1 %vm676_vm3, %v2628_v40  ;;  %v4160_v37 = vadd.f32 %v4083_v46, %v3750_v43  ;;  %v3439_v24 = vsel %vm5509_vm2, %v3434_v52, %v6622_v25  ;;  %v3925_v6 = vrot.slane %v3923_v21, 4  ;;  %v2555_v43 = vrot.slane %v5314_v28, 5 }
 0x212   : > { %v3085_v49 = vadd.f32 %v3009_v55, %v2786_v19  ;;  %v3593_v7 = vpack.c.b16 %v3572_v11, %v3571_v39  ;;  %v2608_v55 = vunpack.c.l.b16 %v2549_v63  ;;  %v6650_v39 = vld [vmem:[%s5497_s18 + $0xac] sm:$0xf]  ;;  %v3449_v11 = vsel %vm5509_vm2, %v3444_v5, %v3448_v4  ;;  %v5101_v5 = vld [vmem:[%s5497_s18 + $0x9c] sm:$0xff] }
 0x213   : > { %v2787_v25 = vadd.f32 %v6609_v58, %v6036_v60  ;;  %v3454_v63 = vshll.u32 %v4941_v57, 16  ;;  %v3460_v48 = vshll.u32 %v6650_v39, 16  ;;  %v3573_v51 = vunpack.c.l.b16 %v3439_v24 }
 0x214   : > { %v2629_v46 = vpack.c.b16 %v2609_v17, %v2608_v55  ;;  %v3927_v58 = vsel %vm5704_vm6, %v3925_v6, %v3926_v50 }
 0x215   : > { %v4085_v40 = vpop.f32.mrf.mxu0 }
 0x216   : > { %v3675_v23 = vpop.f32.mrf.mxu3  ;;  %4899 = vmatmul.msk.bf16.gmra.mxu2 %vm676_vm3, %v5100_v16  ;;  %v2715_v8 = vpop.f32.mrf.mxu1  ;;  %v4992_v16 = vld [vmem:[%s5497_s18 + $0x9c] sm:$0xe] }
 0x217   : > { %v3751_v13 = vadd.f32 %v3675_v23, %v3085_v49  ;;  %v5008_v49 = vrot.slane %v4992_v16, 9  ;;  %v4733_v23 = vld [vmem:[%s5497_s18 + $0x9c] sm:$0xe]  ;;  %v2788_v30 = vadd.f32 %v2715_v8, %v6049_v59  ;;  %v6676_v8 = vld [vmem:[%s5497_s18 + $0xb0] sm:$0x1] }
 0x218   : > { %v4749_v4 = vrot.slane %v4733_v23, 9 }
 0x219   : > { %v4161_v22 = vadd.f32 %v4085_v40, %v3751_v13  ;;  %v3012_v19 = vpop.f32.mrf.mxu2  ;;  %v3451_v40 = vshrl.u32 %v4941_v57, 16  ;;  %v3464_v13 = vshrl.u32 %v6650_v39, 16  ;;  %v3924_v60 = vsel %vm5704_vm6, %v5008_v49, %v3923_v21 }
 0x21a   : > { %v3086_v12 = vadd.f32 %v3012_v19, %v2787_v25  ;;  %v3456_v19 = vrot.slane %v3454_v63, 5  ;;  %v3983_v24 = vunpack.c.l.b16 %v3924_v60  ;;  %v2556_v6 = vsel %vm5704_vm6, %v4749_v4, %v2555_v43 }
 0x21b   : > { %v5121_v62 = vpack.c.bf16 %v4161_v22, %v4160_v37  ;;  %4975 = vmatmul.msk.bf16.gmra.mxu3 %vm676_vm3, %v3593_v7  ;;  %v3574_v7 = vunpack.c.l.b16 %v3449_v11  ;;  %v2557_v37 = vrot.slane %v2555_v43, 4  ;;  %v5315_v22 = vld [vmem:[%s5497_s18 + $0xa4] sm:$0x1]  ;;  %v3453_v17 = vrot.slane %v3451_v40, 4 }
 0x21c   : > { %v2558_v55 = vrot.slane %v5315_v22, 5  ;;  %v3466_v59 = vrot.slane %v3464_v13, 4  ;;  %v3470_v25 = vshll.u32 %v6676_v8, 16  ;;  %v2610_v13 = vunpack.c.l.b16 %v2556_v6  ;;  %v4734_v6 = vld [vmem:[%s5497_s18 + $0xa8] sm:$0xe] }
 0x21d   : > { %5193 = vst [vmem:[%s6606_s3 + $0x8] sm:$0xff] %v5121_v62   ;;  %v4088_v53 = vpop.f32.mrf.mxu0  ;;  %v6673_v62 = vrot.slane %v3460_v48, 5  ;;  %v3594_v49 = vpack.c.b16 %v3574_v7, %v3573_v51  ;;  %v3457_v40 = vor.u32 %v3456_v19, %v3453_v17  ;;  %v4944_v7 = vld [vmem:[%s5497_s18 + $0xb4] sm:$0xf] }
 0x21e   : > { %v3678_v15 = vpop.f32.mrf.mxu3  ;;  %v6656_v35 = vpop.f32.mrf.mxu1  ;;  %v2559_v50 = vsel %vm5704_vm6, %v2557_v37, %v2558_v55  ;;  %v3475_v4 = vshrl.u32 %v4944_v7, 16 }
 0x21f   : > { %v3752_v57 = vadd.f32 %v3678_v15, %v3086_v12  ;;  %v3467_v15 = vor.u32 %v3466_v59, %v6673_v62  ;;  %v2611_v51 = vunpack.c.l.b16 %v2559_v50  ;;  %v6687_v12 = vld [vmem:[%s5497_s18 + $0xb8] sm:$0xf] }
 0x220   : > { %5035 = vmatmul.msk.bf16.gmra.mxu0 %vm676_vm3, %v4003_v2  ;;  %v3484_v37 = vshll.u32 %v6687_v12, 16  ;;  %v3488_v22 = vshrl.u32 %v6687_v12, 16 }
 0x221   : > { %v3014_v52 = vpop.f32.mrf.mxu2  ;;  %4776 = vmatmul.msk.bf16.gmra.mxu1 %vm676_vm3, %v2629_v46  ;;  %v3984_v46 = vunpack.c.l.b16 %v3927_v58  ;;  %v4162_v23 = vadd.f32 %v4088_v53, %v3752_v57  ;;  %v3468_v60 = vrot.slane %v3467_v15, 4  ;;  %v3472_v58 = vrot.slane %v3470_v25, 5  ;;  %v5316_v57 = vld [vmem:[%s5497_s18 + $0xac] sm:$0xf] }
 0x222   : > { %v3087_v16 = vadd.f32 %v3014_v52, %v2788_v30  ;;  %v3458_v52 = vrot.slane %v3457_v40, 4  ;;  %v3478_v53 = vshll.u32 %v4944_v7, 16  ;;  %v2630_v17 = vpack.c.b16 %v2611_v51, %v2610_v13  ;;  %v5317_v7 = vld [vmem:[%s5497_s18 + $0xb0] sm:$0x1] }
 0x223   : > { %v4004_v43 = vpack.c.b16 %v3984_v46, %v3983_v24  ;;  %v2789_v24 = vadd.f32 %v6656_v35, %v6062_v44  ;;  %v3490_v40 = vrot.slane %v3488_v22, 4  ;;  %v3933_v25 = vrot.slane %v6676_v8, 5 }
 0x224   : > { %v3480_v50 = vrot.slane %v3478_v53, 5  ;;  %v4750_v13 = vrot.slane %v4734_v6, 9 }
 0x225   : > { %v4090_v2 = vpop.f32.mrf.mxu0 }
 0x226   : > { %v3680_v21 = vpop.f32.mrf.mxu3  ;;  %4900 = vmatmul.msk.bf16.gmra.mxu2 %vm676_vm3, %v5101_v5  ;;  %v2720_v11 = vpop.f32.mrf.mxu1  ;;  %v4993_v5 = vld [vmem:[%s5497_s18 + $0xa8] sm:$0xe] }
 0x227   : > { %v3753_v28 = vadd.f32 %v3680_v21, %v3087_v16  ;;  %v3930_v16 = vrot.slane %v6650_v39, 5  ;;  %v3463_v21 = vsel %vm5509_vm2, %v3458_v52, %v6673_v62  ;;  %v5009_v46 = vrot.slane %v4993_v5, 9 }
 0x228   : > { %v3477_v39 = vrot.slane %v3475_v4, 4  ;;  %v2790_v35 = vadd.f32 %v2720_v11, %v6075_v33  ;;  %v3575_v52 = vunpack.c.l.b16 %v3463_v21 }
 0x229   : > { %v4163_v63 = vadd.f32 %v4090_v2, %v3753_v28  ;;  %v3017_v48 = vpop.f32.mrf.mxu2  ;;  %v2562_v2 = vrot.slane %v5316_v57, 5  ;;  %v6707_v28 = vrot.slane %v3484_v37, 5  ;;  %v3932_v62 = vrot.slane %v3930_v16, 4 }
 0x22a   : > { %v3088_v44 = vadd.f32 %v3017_v48, %v2789_v24  ;;  %v3931_v48 = vsel %vm5704_vm6, %v5009_v46, %v3930_v16  ;;  %v3481_v33 = vor.u32 %v3480_v50, %v3477_v39 }
 0x22b   : > { %v5126_v30 = vpack.c.bf16 %v4163_v63, %v4162_v23  ;;  %4976 = vmatmul.msk.bf16.gmra.mxu3 %vm676_vm3, %v3594_v49  ;;  %v3473_v49 = vsel %vm5509_vm2, %v3468_v60, %v3472_v58  ;;  %v6713_v23 = vld [vmem:[%s5497_s18 + $0xbc] sm:$0x1]  ;;  %v5102_v63 = vld [vmem:[%s5497_s18 + $0xa8] sm:$0xff]  ;;  %v2564_v51 = vrot.slane %v2562_v2, 4  ;;  %v3491_v11 = vor.u32 %v3490_v40, %v6707_v28 }
 0x22c   : > { %v3576_v60 = vunpack.c.l.b16 %v3473_v49  ;;  %v3494_v58 = vshll.u32 %v6713_v23, 16  ;;  %v3934_v4 = vsel %vm5704_vm6, %v3932_v62, %v3933_v25  ;;  %v2563_v22 = vsel %vm5704_vm6, %v4750_v13, %v2562_v2  ;;  %v6731_v62 = vld [vmem:[%s5497_s18 + $0xc4] sm:$0xf] }
 0x22d   : > { %5194 = vst [vmem:[%s6606_s3 + $0x10] sm:$0xff] %v5126_v30   ;;  %v4093_v55 = vpop.f32.mrf.mxu0  ;;  %v3986_v24 = vunpack.c.l.b16 %v3934_v4  ;;  %v3482_v21 = vrot.slane %v3481_v33, 4  ;;  %v3492_v49 = vrot.slane %v3491_v11, 4  ;;  %v2612_v40 = vunpack.c.l.b16 %v2563_v22  ;;  %v4735_v11 = vld [vmem:[%s5497_s18 + $0xb4] sm:$0xe] }
 0x22e   : > { %v3683_v19 = vpop.f32.mrf.mxu3  ;;  %v6695_v59 = vpop.f32.mrf.mxu1  ;;  %v3595_v57 = vpack.c.b16 %v3576_v60, %v3575_v52  ;;  %v3496_v46 = vrot.slane %v3494_v58, 5  ;;  %v5318_v52 = vld [vmem:[%s5497_s18 + $0xb8] sm:$0xf] }
 0x22f   : > { %v3754_v5 = vadd.f32 %v3683_v19, %v3088_v44  ;;  %v3985_v19 = vunpack.c.l.b16 %v3931_v48  ;;  %v2569_v60 = vrot.slane %v5318_v52, 5  ;;  %v2791_v33 = vadd.f32 %v6695_v59, %v6088_v61 }
 0x230   : > { %5036 = vmatmul.msk.bf16.gmra.mxu0 %vm676_vm3, %v4004_v43  ;;  %v2565_v43 = vrot.slane %v5317_v7, 5  ;;  %v3497_v13 = vsel %vm5509_vm2, %v3492_v49, %v3496_v46  ;;  %v3937_v7 = vrot.slane %v6687_v12, 5  ;;  %v3940_v59 = vrot.slane %v6713_v23, 5 }
 0x231   : > { %v3019_v15 = vpop.f32.mrf.mxu2  ;;  %4777 = vmatmul.msk.bf16.gmra.mxu1 %vm676_vm3, %v2630_v17  ;;  %v4164_v6 = vadd.f32 %v4093_v55, %v3754_v5  ;;  %v3487_v55 = vsel %vm5509_vm2, %v3482_v21, %v6707_v28  ;;  %v3508_v28 = vshll.u32 %v6731_v62, 16  ;;  %v3512_v5 = vshrl.u32 %v6731_v62, 16 }
 0x232   : > { %v3089_v30 = vadd.f32 %v3019_v15, %v2790_v35  ;;  %v2566_v17 = vsel %vm5704_vm6, %v2564_v51, %v2565_v43  ;;  %v4947_v35 = vld [vmem:[%s5497_s18 + $0xc0] sm:$0xf]  ;;  %v4005_v15 = vpack.c.b16 %v3986_v24, %v3985_v19  ;;  %v4994_v51 = vld [vmem:[%s5497_s18 + $0xb4] sm:$0xe]  ;;  %v3577_v12 = vunpack.c.l.b16 %v3487_v55  ;;  %v5319_v24 = vld [vmem:[%s5497_s18 + $0xbc] sm:$0x1] }
 0x233   : > { %v2613_v2 = vunpack.c.l.b16 %v2566_v17  ;;  %v3499_v48 = vshrl.u32 %v4947_v35, 16  ;;  %v3502_v58 = vshll.u32 %v4947_v35, 16  ;;  %v5010_v4 = vrot.slane %v4994_v51, 9 }
 0x234   : > { %v3939_v61 = vrot.slane %v3937_v7, 4  ;;  %v2571_v19 = vrot.slane %v2569_v60, 4  ;;  %v2572_v21 = vrot.slane %v5319_v24, 5  ;;  %v5320_v24 = vld [vmem:[%s5497_s18 + $0xc4] sm:$0xf] }
 0x235   : > { %v4095_v8 = vpop.f32.mrf.mxu0  ;;  %v3501_v49 = vrot.slane %v3499_v48, 4 }
 0x236   : > { %v3685_v53 = vpop.f32.mrf.mxu3  ;;  %4901 = vmatmul.msk.bf16.gmra.mxu2 %vm676_vm3, %v5102_v63  ;;  %v2725_v37 = vpop.f32.mrf.mxu1  ;;  %v2631_v63 = vpack.c.b16 %v2613_v2, %v2612_v40  ;;  %v6758_v40 = vld [vmem:[%s5497_s18 + $0xc8] sm:$0x1]  ;;  %v3938_v2 = vsel %vm5704_vm6, %v5010_v4, %v3937_v7  ;;  %v3941_v23 = vsel %vm5704_vm6, %v3939_v61, %v3940_v59  ;;  %v2573_v55 = vsel %vm5704_vm6, %v2571_v19, %v2572_v21  ;;  %v4950_v59 = vld [vmem:[%s5497_s18 + $0xcc] sm:$0xf] }
 0x237   : > { %v3755_v16 = vadd.f32 %v3685_v53, %v3089_v30  ;;  %v2792_v22 = vadd.f32 %v2725_v37, %v6102_v10  ;;  %v3518_v7 = vshll.u32 %v6758_v40, 16  ;;  %v3987_v52 = vunpack.c.l.b16 %v3938_v2 }
 0x238   : > { %v3988_v48 = vunpack.c.l.b16 %v3941_v23  ;;  %v2576_v21 = vrot.slane %v5320_v24, 5  ;;  %v3526_v2 = vshll.u32 %v4950_v59, 16 }
 0x239   : > { %v4165_v39 = vadd.f32 %v4095_v8, %v3755_v16  ;;  %v3022_v50 = vpop.f32.mrf.mxu2  ;;  %v3578_v8 = vunpack.c.l.b16 %v3497_v13  ;;  %v5103_v16 = vld [vmem:[%s5497_s18 + $0xb4] sm:$0xff]  ;;  %v3520_v4 = vrot.slane %v3518_v7, 5  ;;  %v5321_v7 = vld [vmem:[%s5497_s18 + $0xc8] sm:$0x1] }
 0x23a   : > { %v3090_v53 = vadd.f32 %v3022_v50, %v2791_v33  ;;  %v3514_v50 = vrot.slane %v3512_v5, 4 }
 0x23b   : > { %v5131_v44 = vpack.c.bf16 %v4165_v39, %v4164_v6  ;;  %4977 = vmatmul.msk.bf16.gmra.mxu3 %vm676_vm3, %v3595_v57  ;;  %v4751_v57 = vrot.slane %v4735_v11, 9  ;;  %v3504_v6 = vrot.slane %v3502_v58, 5  ;;  %v6755_v39 = vrot.slane %v3508_v28, 5 }
 0x23c   : > { %v3596_v35 = vpack.c.b16 %v3578_v8, %v3577_v12 }
 0x23d   : > { %5195 = vst [vmem:[%s6606_s3 + $0x18] sm:$0xff] %v5131_v44   ;;  %v4098_v25 = vpop.f32.mrf.mxu0  ;;  %v3505_v51 = vor.u32 %v3504_v6, %v3501_v49  ;;  %v6908_v49 = vld [vmem:[#allocation5_spill] sm:$0xff] }
 0x23e   : > { %v3688_v43 = vpop.f32.mrf.mxu3  ;;  %v6741_v30 = vpop.f32.mrf.mxu1 }
 0x23f   : > { %v3756_v10 = vadd.f32 %v3688_v43, %v3090_v53  ;;  %v3515_v43 = vor.u32 %v3514_v50, %v6755_v39  ;;  %v3506_v12 = vrot.slane %v3505_v51, 4  ;;  %v4006_v53 = vpack.c.b16 %v3988_v48, %v3987_v52 }
 0x240   : > { %5037 = vmatmul.msk.bf16.gmra.mxu0 %vm676_vm3, %v4005_v15  ;;  %v2579_v52 = vrot.slane %v5321_v7, 5 }
 0x241   : > { %v3024_v17 = vpop.f32.mrf.mxu2  ;;  %4778 = vmatmul.msk.bf16.gmra.mxu1 %vm676_vm3, %v2631_v63  ;;  %v2570_v63 = vsel %vm5704_vm6, %v4751_v57, %v2569_v60  ;;  %v4166_v33 = vadd.f32 %v4098_v25, %v3756_v10  ;;  %v2615_v60 = vunpack.c.l.b16 %v2573_v55  ;;  %v3516_v8 = vrot.slane %v3515_v43, 4  ;;  %v4736_v10 = vld [vmem:[%s5497_s18 + $0xc0] sm:$0xe] }
 0x242   : > { %v3091_v46 = vadd.f32 %v3024_v17, %v2792_v22  ;;  %v2614_v28 = vunpack.c.l.b16 %v2570_v63  ;;  %v4995_v22 = vld [vmem:[%s5497_s18 + $0xc0] sm:$0xe]  ;;  %v3944_v25 = vrot.slane %v6731_v62, 5  ;;  %v3511_v6 = vsel %vm5509_vm2, %v3506_v12, %v6755_v39 }
 0x243   : > { %v3521_v50 = vsel %vm5509_vm2, %v3516_v8, %v3520_v4  ;;  %v5011_v62 = vrot.slane %v4995_v22, 9  ;;  %v3947_v55 = vrot.slane %v6758_v40, 5  ;;  %v4752_v51 = vrot.slane %v4736_v10, 9  ;;  %v4952_v8 = vld [vmem:[%s5497_s18 + $0xd4] sm:$0x1] }
 0x244   : > { %v2632_v61 = vpack.c.b16 %v2615_v60, %v2614_v28  ;;  %v3946_v39 = vrot.slane %v3944_v25, 4  ;;  %v2578_v43 = vrot.slane %v2576_v21, 4 }
 0x245   : > { %v4100_v37 = vpop.f32.mrf.mxu0  ;;  %v2577_v22 = vsel %vm5704_vm6, %v4752_v51, %v2576_v21 }
 0x246   : > { %v3690_v44 = vpop.f32.mrf.mxu3  ;;  %4902 = vmatmul.msk.bf16.gmra.mxu2 %vm676_vm3, %v5103_v16  ;;  %v2730_v15 = vpop.f32.mrf.mxu1  ;;  %v6777_v16 = vld [vmem:[%s5497_s18 + $0xd0] sm:$0xf]  ;;  %v3948_v40 = vsel %vm5704_vm6, %v3946_v39, %v3947_v55  ;;  %v4996_v55 = vld [vmem:[%s5497_s18 + $0xcc] sm:$0xe] }
 0x247   : > { %v3757_v13 = vadd.f32 %v3690_v44, %v3091_v46  ;;  %v2793_v46 = vadd.f32 %v6741_v30, %v6908_v49  ;;  %v3532_v23 = vshll.u32 %v6777_v16, 16  ;;  %v3536_v44 = vshrl.u32 %v6777_v16, 16 }
 0x249   : > { %v4167_v11 = vadd.f32 %v4100_v37, %v3757_v13  ;;  %v3027_v58 = vpop.f32.mrf.mxu2  ;;  %v3523_v37 = vshrl.u32 %v4950_v59, 16  ;;  %v5104_v13 = vld [vmem:[%s5497_s18 + $0xc0] sm:$0xff]  ;;  %v3538_v60 = vrot.slane %v3536_v44, 4 }
 0x24a   : > { %v3092_v30 = vadd.f32 %v3027_v58, %v2793_v46  ;;  %v3945_v58 = vsel %vm5704_vm6, %v5011_v62, %v3944_v25 }
 0x24b   : > { %v5136_v5 = vpack.c.bf16 %v4167_v11, %v4166_v33  ;;  %4978 = vmatmul.msk.bf16.gmra.mxu3 %vm676_vm3, %v3596_v35  ;;  %v2794_v35 = vadd.f32 %v2730_v15, %v6149_v45  ;;  %v3579_v33 = vunpack.c.l.b16 %v3511_v6  ;;  %v3580_v11 = vunpack.c.l.b16 %v3521_v50 }
 0x24c   : > { %v3525_v28 = vrot.slane %v3523_v37, 4  ;;  %v3528_v45 = vrot.slane %v3526_v2, 5  ;;  %v3534_v15 = vrot.slane %v3532_v23, 5  ;;  %v3989_v24 = vunpack.c.l.b16 %v3945_v58 }
 0x24d   : > { %5196 = vst [vmem:[%s6606_s3 + $0x20] sm:$0xff] %v5136_v5   ;;  %v4103_v17 = vpop.f32.mrf.mxu0  ;;  %v3597_v59 = vpack.c.b16 %v3580_v11, %v3579_v33  ;;  %v3542_v6 = vshll.u32 %v4952_v8, 16  ;;  %v2616_v37 = vunpack.c.l.b16 %v2577_v22  ;;  %v6909_v11 = vld [vmem:[#allocation6_spill] sm:$0xff] }
 0x24e   : > { %v3693_v57 = vpop.f32.mrf.mxu3  ;;  %v6779_v19 = vpop.f32.mrf.mxu1  ;;  %v3529_v49 = vor.u32 %v3528_v45, %v3525_v28  ;;  %v3539_v46 = vor.u32 %v3538_v60, %v3534_v15  ;;  %v3954_v45 = vrot.slane %v4952_v8, 5  ;;  %v5105_v60 = vld [vmem:[%s5497_s18 + $0xcc] sm:$0xff]  ;;  %s5112_s18 = sshll.u32 %s5392_s12, 7  ;;  %s4255_s12 = scalar_lea.sflag [#allocation3], %s158_s29 }
 0x24f   : > { %v3758_v5 = vadd.f32 %v3693_v57, %v3092_v30  ;;  %v3990_v57 = vunpack.c.l.b16 %v3948_v40  ;;  %s4268_s6 = scalar_lea.hbm %s6898_s2, %s5112_s18 }
 0x250   : > { %5038 = vmatmul.msk.bf16.gmra.mxu0 %vm676_vm3, %v4006_v53  ;;  %v3530_v44 = vrot.slane %v3529_v49, 4  ;;  %v3540_v30 = vrot.slane %v3539_v46, 4  ;;  %s4271_s8 = sshll.u32 %s4268_s6, 4  ;;  %s4272_s8 = int_to_ptr.hbm [resolvable:$true] %s4271_s8 }
 0x251   : > { %v3029_v63 = vpop.f32.mrf.mxu2  ;;  %4779 = vmatmul.msk.bf16.gmra.mxu1 %vm676_vm3, %v2632_v61  ;;  %v2580_v61 = vsel %vm5704_vm6, %v2578_v43, %v2579_v52  ;;  %v4168_v50 = vadd.f32 %v4103_v17, %v3758_v5  ;;  %v4007_v21 = vpack.c.b16 %v3990_v57, %v3989_v24  ;;  %v2795_v43 = vadd.f32 %v6779_v19, %v6160_v54  ;;  %s5336_s15 = sshra.s32 %s4272_s8, 4  ;;  %s5337_s15 = int_to_ptr.hbm [resolvable:$true] %s5336_s15 }
 0x252   : > { %v3093_v48 = vadd.f32 %v3029_v63, %v2794_v35  ;;  %v2617_v2 = vunpack.c.l.b16 %v2580_v61  ;;  %v3544_v35 = vrot.slane %v3542_v6, 5  ;;  %v3535_v7 = vsel %vm5509_vm2, %v3530_v44, %v3534_v15  ;;  %s5338_s16 = scalar_lea.hbm %s5337_s15, 128  ;;  %p5343_p1 = scmp.lt.s32.totalorder %s5337_s15, %s6898_s2 }
 0x253   : > { %v3581_v54 = vunpack.c.l.b16 %v3535_v7  ;;  %p5339_p12 = scmp.ne.s32.totalorder %s5337_s15, %s5338_s16  ;;  %p5344_p2 = scmp.lt.s32.totalorder %s5342_s24, %s5338_s16 }
 0x254   : > { %v2633_v39 = vpack.c.b16 %v2617_v2, %v2616_v37  ;;  %v3545_v52 = vsel %vm5509_vm2, %v3540_v30, %v3544_v35 }
 0x255   : > { %v4105_v12 = vpop.f32.mrf.mxu0  ;;  %v3582_v19 = vunpack.c.l.b16 %v3545_v52  ;;  %p5340_p13 = pnand %p5339_p12, %p5459_p4  ;;  %p5345_p3 = por %p5344_p2, %p5343_p1 }
 0x256   : > { %v3695_v4 = vpop.f32.mrf.mxu3  ;;  %4903 = vmatmul.msk.bf16.gmra.mxu2 %vm676_vm3, %v5104_v13  ;;  %v2735_v53 = vpop.f32.mrf.mxu1  ;;  %v3951_v13 = vrot.slane %v6777_v16, 5 }
 0x257   : > { %v3759_v25 = vadd.f32 %v3695_v4, %v3093_v48  ;;  %v5012_v48 = vrot.slane %v4996_v55, 9  ;;  %v2796_v58 = vadd.f32 %v2735_v53, %v6909_v11  ;;  %v3598_v61 = vpack.c.b16 %v3582_v19, %v3581_v54  ;;  %p5341_p0 = pneg %p5340_p13 }
 0x258   : > { %v3953_v16 = vrot.slane %v3951_v13, 4 }
 0x259   : > { %v4169_v62 = vadd.f32 %v4105_v12, %v3759_v25  ;;  %v3032_v10 = vpop.f32.mrf.mxu2  ;;  %v3952_v32 = vsel %vm5704_vm6, %v5012_v48, %v3951_v13  ;;  %p5346_p5 = pnand %p5345_p3, %p5341_p0 }
 0x25a   : > { %v3094_v33 = vadd.f32 %v3032_v10, %v2795_v43  ;;  %v3955_v15 = vsel %vm5704_vm6, %v3953_v16, %v3954_v45  ;;  %v3991_v8 = vunpack.c.l.b16 %v3952_v32 }
 0x25b   : > { %v5141_v23 = vpack.c.bf16 %v4169_v62, %v4168_v50  ;;  %4979 = vmatmul.msk.bf16.gmra.mxu3 %vm676_vm3, %v3597_v59  ;;  %v3992_v25 = vunpack.c.l.b16 %v3955_v15 }
 0x25d   : > { %5197 = vst [vmem:[%s6606_s3 + $0x28] sm:$0xff] %v5141_v23   ;;  %v4108_v63 = vpop.f32.mrf.mxu0  ;;  %v4008_v46 = vpack.c.b16 %v3992_v25, %v3991_v8 }
 0x25e   : > { %v3698_v51 = vpop.f32.mrf.mxu3  ;;  %v2738_v17 = vpop.f32.mrf.mxu1 }
 0x25f   : > { %v3760_v12 = vadd.f32 %v3698_v51, %v3094_v33  ;;  %v2797_v62 = vadd.f32 %v2738_v17, %v6196_v27 }
 0x260   : > { %5039 = vmatmul.msk.bf16.gmra.mxu0 %vm676_vm3, %v4007_v21 }
 0x261   : > { %v3034_v28 = vpop.f32.mrf.mxu2  ;;  %4780 = vmatmul.msk.bf16.gmra.mxu1 %vm676_vm3, %v2633_v39  ;;  %v4170_v59 = vadd.f32 %v4108_v63, %v3760_v12 }
 0x262   : > { %v3095_v5 = vadd.f32 %v3034_v28, %v2796_v58 }
 0x265   : > { %v4110_v40 = vpop.f32.mrf.mxu0 }
 0x266   : > { %v3700_v4 = vpop.f32.mrf.mxu3  ;;  %4904 = vmatmul.msk.bf16.gmra.mxu2 %vm676_vm3, %v5105_v60  ;;  %v2740_v53 = vpop.f32.mrf.mxu1 }
 0x267   : > { %v3761_v22 = vadd.f32 %v3700_v4, %v3095_v5  ;;  %v2798_v37 = vadd.f32 %v2740_v53, %v6220_v34 }
 0x269   : > { %v4171_v24 = vadd.f32 %v4110_v40, %v3761_v22  ;;  %v3037_v57 = vpop.f32.mrf.mxu2 }
 0x26a   : > { %v3096_v10 = vadd.f32 %v3037_v57, %v2797_v62 }
 0x26b   : > { %v5146_v49 = vpack.c.bf16 %v4171_v24, %v4170_v59  ;;  %4980 = vmatmul.msk.bf16.gmra.mxu3 %vm676_vm3, %v3598_v61 }
 0x26d   : > { %5198 = vst [vmem:[%s6606_s3 + $0x30] sm:$0xff] %v5146_v49   ;;  %v4113_v6 = vpop.f32.mrf.mxu0 }
 0x26e   : > { %v3703_v50 = vpop.f32.mrf.mxu3  ;;  %v2743_v26 = vpop.f32.mrf.mxu1 }
 0x26f   : > { %v3762_v21 = vadd.f32 %v3703_v50, %v3096_v10  ;;  %v2799_v17 = vadd.f32 %v2743_v26, %v6239_v31 }
 0x270   : > { %5040 = vmatmul.msk.bf16.gmra.mxu0 %vm676_vm3, %v4008_v46 }
 0x271   : > { %v3039_v2 = vpop.f32.mrf.mxu2  ;;  %v4172_v39 = vadd.f32 %v4113_v6, %v3762_v21 }
 0x272   : > { %v3097_v23 = vadd.f32 %v3039_v2, %v2798_v37 }
 0x275   : > { %v4115_v44 = vpop.f32.mrf.mxu0 }
 0x276   : > { %v3705_v30 = vpop.f32.mrf.mxu3  ;;  %v2745_v35 = vpop.f32.mrf.mxu1 }
 0x277   : > { %v3763_v63 = vadd.f32 %v3705_v30, %v3097_v23  ;;  %v2800_v34 = vadd.f32 %v2745_v35, %v6263_v0 }
 0x279   : > { %v4173_v55 = vadd.f32 %v4115_v44, %v3763_v63  ;;  %v3042_v13 = vpop.f32.mrf.mxu2 }
 0x27a   : > { %v3098_v52 = vadd.f32 %v3042_v13, %v2799_v17 }
 0x27b   : > { %v5151_v51 = vpack.c.bf16 %v4173_v55, %v4172_v39 }
 0x27d   : > { %5199 = vst [vmem:[%s6606_s3 + $0x38] sm:$0xff] %v5151_v51   ;;  %v4118_v43 = vpop.f32.mrf.mxu0 }
 0x27e   : > { %v3708_v7 = vpop.f32.mrf.mxu3  ;;  %v2748_v27 = vpop.f32.mrf.mxu1 }
 0x27f   : > { %v3764_v11 = vadd.f32 %v3708_v7, %v3098_v52  ;;  %v2801_v31 = vadd.f32 %v2748_v27, %v6282_v56 }
 0x281   : > { %v3044_v48 = vpop.f32.mrf.mxu2  ;;  %v4174_v60 = vadd.f32 %v4118_v43, %v3764_v11 }
 0x282   : > { %v3099_v33 = vadd.f32 %v3044_v48, %v2800_v34 }
 0x285   : > { %v4120_v58 = vpop.f32.mrf.mxu0 }
 0x286   : > { %v3710_v28 = vpop.f32.mrf.mxu3  ;;  %v2750_v16 = vpop.f32.mrf.mxu1 }
 0x287   : > { %v3765_v45 = vadd.f32 %v3710_v28, %v3099_v33  ;;  %v2802_v0 = vadd.f32 %v2750_v16, %v6306_v20 }
 0x289   : > { %v4175_v5 = vadd.f32 %v4120_v58, %v3765_v45  ;;  %v3047_v54 = vpop.f32.mrf.mxu2 }
 0x28a   : > { %v3100_v15 = vadd.f32 %v3047_v54, %v2801_v31 }
 0x28b   : > { %v5156_v19 = vpack.c.bf16 %v4175_v5, %v4174_v60 }
 0x28d   : > { %5200 = vst [vmem:[%s6606_s3 + $0x40] sm:$0xff] %v5156_v19   ;;  %v4123_v12 = vpop.f32.mrf.mxu0 }
 0x28e   : > { %v3713_v40 = vpop.f32.mrf.mxu3  ;;  %v2753_v32 = vpop.f32.mrf.mxu1 }
 0x28f   : > { %v3766_v22 = vadd.f32 %v3713_v40, %v3100_v15  ;;  %v2803_v56 = vadd.f32 %v2753_v32, %v6325_v3 }
 0x291   : > { %v3049_v4 = vpop.f32.mrf.mxu2  ;;  %v4176_v24 = vadd.f32 %v4123_v12, %v3766_v22 }
 0x292   : > { %v3101_v53 = vadd.f32 %v3049_v4, %v2802_v0 }
 0x295   : > { %v4125_v61 = vpop.f32.mrf.mxu0 }
 0x296   : > { %v3715_v8 = vpop.f32.mrf.mxu3  ;;  %v2755_v25 = vpop.f32.mrf.mxu1 }
 0x297   : > { %v3767_v59 = vadd.f32 %v3715_v8, %v3101_v53  ;;  %v2804_v20 = vadd.f32 %v2755_v25, %v6349_v18 }
 0x299   : > { %v4177_v57 = vadd.f32 %v4125_v61, %v3767_v59  ;;  %v3052_v49 = vpop.f32.mrf.mxu2 }
 0x29a   : > { %v3102_v62 = vadd.f32 %v3052_v49, %v2803_v56 }
 0x29b   : > { %v5161_v46 = vpack.c.bf16 %v4177_v57, %v4176_v24 }
 0x29d   : > { %5201 = vst [vmem:[%s6606_s3 + $0x48] sm:$0xff] %v5161_v46   ;;  %v4128_v6 = vpop.f32.mrf.mxu0 }
 0x29e   : > { %v3718_v50 = vpop.f32.mrf.mxu3  ;;  %v2758_v26 = vpop.f32.mrf.mxu1 }
 0x29f   : > { %v3768_v2 = vadd.f32 %v3718_v50, %v3102_v62  ;;  %v2805_v3 = vadd.f32 %v2758_v26, %v6368_v36 }
 0x2a1   : > { %v3054_v10 = vpop.f32.mrf.mxu2  ;;  %v4178_v35 = vadd.f32 %v4128_v6, %v3768_v2 }
 0x2a2   : > { %v3103_v37 = vadd.f32 %v3054_v10, %v2804_v20 }
 0x2a5   : > { %v4130_v23 = vpop.f32.mrf.mxu0 }
 0x2a6   : > { %v3720_v21 = vpop.f32.mrf.mxu3  ;;  %v2760_v44 = vpop.f32.mrf.mxu1 }
 0x2a7   : > { %v3769_v30 = vadd.f32 %v3720_v21, %v3103_v37  ;;  %v2806_v18 = vadd.f32 %v2760_v44, %v6392_v47  ;;  %v6910_v47 = vld [vmem:[#allocation7_spill] sm:$0xff] }
 0x2a9   : > { %v4179_v63 = vadd.f32 %v4130_v23, %v3769_v30  ;;  %v3057_v39 = vpop.f32.mrf.mxu2 }
 0x2aa   : > { %v3104_v7 = vadd.f32 %v3057_v39, %v2805_v3 }
 0x2ab   : > { %v5166_v55 = vpack.c.bf16 %v4179_v63, %v4178_v35 }
 0x2ad   : > { %5202 = vst [vmem:[%s6606_s3 + $0x50] sm:$0xff] %v5166_v55   ;;  %v4133_v13 = vpop.f32.mrf.mxu0 }
 0x2ae   : > { %v3723_v51 = vpop.f32.mrf.mxu3  ;;  %v2763_v43 = vpop.f32.mrf.mxu1 }
 0x2af   : > { %v3770_v52 = vadd.f32 %v3723_v51, %v3104_v7  ;;  %v2807_v36 = vadd.f32 %v2763_v43, %v6411_v14 }
 0x2b1   : > { %v3059_v27 = vpop.f32.mrf.mxu2  ;;  %v4180_v58 = vadd.f32 %v4133_v13, %v3770_v52 }
 0x2b2   : > { %v3105_v17 = vadd.f32 %v3059_v27, %v2806_v18 }
 0x2b5   : > { %v4135_v34 = vpop.f32.mrf.mxu0 }
 0x2b6   : > { %v3725_v48 = vpop.f32.mrf.mxu3  ;;  %v2765_v33 = vpop.f32.mrf.mxu1 }
 0x2b7   : > { %v3771_v11 = vadd.f32 %v3725_v48, %v3105_v17  ;;  %v2808_v12 = vadd.f32 %v2765_v33, %v6910_v47 }
 0x2b9   : > { %v4181_v28 = vadd.f32 %v4135_v34, %v3771_v11  ;;  %v3062_v16 = vpop.f32.mrf.mxu2 }
 0x2ba   : > { %v3106_v19 = vadd.f32 %v3062_v16, %v2807_v36 }
 0x2bb   : > { %v5171_v45 = vpack.c.bf16 %v4181_v28, %v4180_v58 }
 0x2bd   : > { %5203 = vst [vmem:[%s6606_s3 + $0x58] sm:$0xff] %v5171_v45   ;;  %v4138_v60 = vpop.f32.mrf.mxu0 }
 0x2be   : > { %v3728_v5 = vpop.f32.mrf.mxu3  ;;  %v2768_v54 = vpop.f32.mrf.mxu1 }
 0x2bf   : > { %v3772_v31 = vadd.f32 %v3728_v5, %v3106_v19  ;;  %v2809_v14 = vadd.f32 %v2768_v54, %v6452_v41 }
 0x2c1   : > { %v3064_v40 = vpop.f32.mrf.mxu2  ;;  %v4182_v22 = vadd.f32 %v4138_v60, %v3772_v31 }
 0x2c2   : > { %v3107_v32 = vadd.f32 %v3064_v40, %v2808_v12 }
 0x2c5   : > { %v4140_v15 = vpop.f32.mrf.mxu0 }
 0x2c6   : > { %v3730_v0 = vpop.f32.mrf.mxu3  ;;  %v2770_v4 = vpop.f32.mrf.mxu1 }
 0x2c7   : > { %v3773_v53 = vadd.f32 %v3730_v0, %v3107_v32  ;;  %v2810_v46 = vadd.f32 %v2770_v4, %v6475_v42 }
 0x2c9   : > { %v4183_v61 = vadd.f32 %v4140_v15, %v3773_v53  ;;  %v3067_v8 = vpop.f32.mrf.mxu2 }
 0x2ca   : > { %v3108_v49 = vadd.f32 %v3067_v8, %v2809_v14 }
 0x2cb   : > { %v5176_v25 = vpack.c.bf16 %v4183_v61, %v4182_v22 }
 0x2cd   : > { %5204 = vst [vmem:[%s6606_s3 + $0x60] sm:$0xff] %v5176_v25   ;;  %v4143_v59 = vpop.f32.mrf.mxu0 }
 0x2ce   : > { %v3733_v24 = vpop.f32.mrf.mxu3  ;;  %v2773_v57 = vpop.f32.mrf.mxu1 }
 0x2cf   : > { %v3774_v26 = vadd.f32 %v3733_v24, %v3108_v49  ;;  %v2811_v41 = vadd.f32 %v2773_v57, %v6493_v1 }
 0x2d1   : > { %v3069_v6 = vpop.f32.mrf.mxu2  ;;  %v4184_v10 = vadd.f32 %v4143_v59, %v3774_v26 }
 0x2d2   : > { %v3109_v50 = vadd.f32 %v3069_v6, %v2810_v46 }
 0x2d5   : > { %v4145_v56 = vpop.f32.mrf.mxu0 }
 0x2d6   : > { %v3735_v62 = vpop.f32.mrf.mxu3  ;;  %v2775_v23 = vpop.f32.mrf.mxu1 }
 0x2d7   : > { %v3775_v20 = vadd.f32 %v3735_v62, %v3109_v50  ;;  %v2812_v42 = vadd.f32 %v2775_v23, %v6517_v29 }
 0x2d9   : > { %v4185_v37 = vadd.f32 %v4145_v56, %v3775_v20  ;;  %v3072_v2 = vpop.f32.mrf.mxu2 }
 0x2da   : > { %v3110_v35 = vadd.f32 %v3072_v2, %v2811_v41 }
 0x2db   : > { %v5181_v21 = vpack.c.bf16 %v4185_v37, %v4184_v10 }
 0x2dd   : > { %5205 = vst [vmem:[%s6606_s3 + $0x68] sm:$0xff] %v5181_v21   ;;  %v4148_v44 = vpop.f32.mrf.mxu0 }
 0x2de   : > { %v3738_v30 = vpop.f32.mrf.mxu3  ;;  %v2778_v55 = vpop.f32.mrf.mxu1 }
 0x2df   : > { %v3776_v13 = vadd.f32 %v3738_v30, %v3110_v35  ;;  %v2813_v48 = vadd.f32 %v2778_v55, %v6536_v9 }
 0x2e1   : > { %v3074_v63 = vpop.f32.mrf.mxu2  ;;  %v4186_v7 = vadd.f32 %v4148_v44, %v3776_v13 }
 0x2e2   : > { %v3111_v39 = vadd.f32 %v3074_v63, %v2812_v42 }
 0x2e5   : > { %v4150_v51 = vpop.f32.mrf.mxu0 }
 0x2e6   : > { %v3740_v43 = vpop.f32.mrf.mxu3  ;;  %v2780_v52 = vpop.f32.mrf.mxu1 }
 0x2e7   : > { %v3777_v3 = vadd.f32 %v3740_v43, %v3111_v39  ;;  %v2814_v33 = vadd.f32 %v2780_v52, %v6558_v38 }
 0x2e9   : > { %v4187_v18 = vadd.f32 %v4150_v51, %v3777_v3  ;;  %v3077_v27 = vpop.f32.mrf.mxu2 }
 0x2ea   : > { %v3112_v29 = vadd.f32 %v3077_v27, %v2813_v48 }
 0x2eb   : > { %v5186_v17 = vpack.c.bf16 %v4187_v18, %v4186_v7 }
 0x2ed   : > { %5206 = vst [vmem:[%s6606_s3 + $0x70] sm:$0xff] %v5186_v17   ;;  %v4153_v34 = vpop.f32.mrf.mxu0 }
 0x2ee   : > { %v3743_v1 = vpop.f32.mrf.mxu3 }
 0x2ef   : > { %v3778_v28 = vadd.f32 %v3743_v1, %v3112_v29 }
 0x2f1   : > { %v3079_v11 = vpop.f32.mrf.mxu2  ;;  %v4188_v9 = vadd.f32 %v4153_v34, %v3778_v28 }
 0x2f2   : > { %v3113_v58 = vadd.f32 %v3079_v11, %v2814_v33 }
 0x2f5   : > { %v4155_v60 = vpop.f32.mrf.mxu0 }
 0x2f6   : > { %v3745_v16 = vpop.f32.mrf.mxu3 }
 0x2f7   : > { %v3779_v45 = vadd.f32 %v3745_v16, %v3113_v58 }
 0x2f9   : > { %v4189_v5 = vadd.f32 %v4155_v60, %v3779_v45 }
 0x2fb   : > { %v5191_v38 = vpack.c.bf16 %v4189_v5, %v4188_v9 }
 0x2fd   : > { %5207 = vst [vmem:[%s6606_s3 + $0x78] sm:$0xff] %v5191_v38  }
 0x2fe   : > { %5349 = shalt.err (!%p5346_p5)
}
 0x2ff   : > { %s5402_s27 = smov 64   ;;  %s5403_s28 = smov 4  }
 0x300   : > { %5215 = dma.vmem_to_hbm [thread:$0]  (%p5459_p4), %s4270_s7, 2048, %s4272_s8, %s4255_s12, %s5402_s27, %s5402_s27, %s5403_s28  }
 0x301 PF: > { %p5221_p6 = scmp.ge.s32.totalorder %s5400_s14, 2  ;;  %s4286_s29 = sand.u32 1, %s5380_s9  }
 0x302   : > { %s4287_s30 = scalar_lea.sflag [#allocation3], %s4286_s29 }
 0x303   : > { %p5218_p7 = pnand %p5221_p6, %p5466_p8 }
 0x305   : > { %p5219_p9 = pneg %p5218_p7 }
 0x307   : > { %5375 = dma.done.wait (%p5219_p9), %s4287_s30, 2048  }
 0x308   : > { %5377 = vsyncadd (%p5219_p9), %s4287_s30, 4294965248  ;;  %s15_s14 = sadd.s32 1, %s5400_s14   ;;  %s6911_s9 = smov %s5384_s10 }
 0x309   : > { %p12_p10 = scmp.ge.s32.totalorder %s15_s14, 4   ;;  %s6912_s10 = smov %s5388_s11 }
 0x30a   : > { %s6913_s11 = smov %s5472_s22  ;;  %s6914_s12 = smov %s5396_s13 }
 0x30b   : > { %s6915_s13 = smov %s6917_s17  ;;  %14 = sbr.rel (!%p12_p10) target bundleno = 4 (0x4), region = 73 }
 0x310   :  { %4293 = vsyncpa [#allocation3], 1 }
 0x311   :  { %4295 = vsyncpa [#allocation3 + $0x1], 1 }

</bundles_post_ra>
